<compile_context>
chip_gen: v5e
topology: v5e:2x2
jax: 0.10.0
libtpu: 0.0.40
codegen_flags: <defaults>
</compile_context>

<pallas_src>
import jax
import jax.numpy as jnp
import numpy as np
from jax import lax
from jax.experimental import pallas as pl
from jax.experimental.pallas import tpu as pltpu

EPS = 1e-5


def _conv_bn_relu_pool(xp_ref, w_ref, scale, bias, H, W):
    """One ConvBlock (3x3 conv pad=1 -> folded BN -> ReLU -> 2x2 max-pool) for one image.

    xp_ref: (H+3, W+2, Cin) zero-padded input; rows 1..H / cols 1..W hold the image,
            everything else is zero (one extra zero row at the bottom so the shifted
            row-slices below never run past the end).
    w_ref:  (3, Cin, 3*Cout) packed weights: w_ref[dy, c, dx*Cout + o] = w[dy, dx, c, o].
    scale:  (1, Cout) folded BN scale;  bias: (1, Cout) folded BN bias (incl. conv bias).
    Returns (H//2, W//2, Cout) float32.
    """
    Wp = W + 2                    # compute the conv at padded width, crop after pooling
    n = H * Wp
    nb = (H + 1) * Wp
    Cin = xp_ref.shape[-1]
    Cout = w_ref.shape[-1] // 3

    # One matmul per dy tap row; the 3 dx taps share it via the packed N = 3*Cout dim.
    # Each band is a contiguous leading-dim window flattened at padded width.
    band0 = xp_ref[0:H + 1, :, :].reshape(nb, Cin)
    band1 = xp_ref[1:H + 2, :, :].reshape(nb, Cin)
    band2 = xp_ref[2:H + 3, :, :].reshape(nb, Cin)
    prod = jnp.dot(band0, w_ref[0], preferred_element_type=jnp.float32)      # (nb, 3*Cout)
    prod = prod + jnp.dot(band1, w_ref[1], preferred_element_type=jnp.float32)
    prod = prod + jnp.dot(band2, w_ref[2], preferred_element_type=jnp.float32)

    # Combine the dx column groups with row-shifted adds (shift = dx rows in the
    # flattened (H, W+2) space).  Shift spill only lands in the garbage columns w >= W.
    acc = (prod[0:n, 0:Cout]
           + prod[1:n + 1, Cout:2 * Cout]
           + prod[2:n + 2, 2 * Cout:3 * Cout])                               # (n, Cout)

    # Folded BatchNorm (+ conv bias) and ReLU (f32 on the VPU).
    y = jnp.maximum(acc * scale + bias, 0.0)

    # 2x2 max-pool (stride 2) at padded width, then crop the garbage pooled column.
    y = y.reshape(H // 2, 2, Wp // 2, 2, Cout)
    pooled = jnp.max(y, axis=(1, 3))                                         # (H//2, W//2+1, Cout)
    return pooled[:, :W // 2, :]


def _make_fused_kernel(spatial, n_layers):
    """Builds the fused kernel. `spatial[i]` = (H, W) entering layer i."""

    def kernel(*refs):
        x_ref = refs[0]                          # (H+3, W+2, Cin) padded input (batch squeezed)
        w_refs = refs[1:1 + n_layers]            # packed conv weights per layer
        scale_ref = refs[1 + n_layers]           # (n_layers, hid)
        bias_ref = refs[2 + n_layers]            # (n_layers, hid)
        o_ref = refs[3 + n_layers]               # (Hf, Wf, hid)
        pad_refs = refs[4 + n_layers:]           # (n_layers-1) padded VMEM activation buffers

        scales = scale_ref[...]
        biases = bias_ref[...]

        src = x_ref                              # layer-0 padded input comes from its block
        for li in range(n_layers):
            H, W = spatial[li]
            out = _conv_bn_relu_pool(src, w_refs[li],
                                     scales[li:li + 1, :], biases[li:li + 1, :], H, W)
            Ho, Wo = H // 2, W // 2
            if li + 1 < n_layers:
                nxt = pad_refs[li]
                nxt[...] = jnp.zeros_like(nxt)          # zero padding border (stays in VMEM)
                nxt[1:Ho + 1, 1:Wo + 1, :] = out        # write the interior
                src = nxt
            else:
                o_ref[...] = out.astype(o_ref.dtype)

    return kernel


@jax.jit
def convnet_forward(x_nchw, packed_ws, scales, biases):
    """Forward pass matching Convnet.forward.  x_nchw: (N, C, H, W) float32."""
    N, C, H, W = x_nchw.shape
    n_layers = len(packed_ws)
    hid = packed_ws[0].shape[-1] // 3
    assert H % (2 ** n_layers) == 0 and W % (2 ** n_layers) == 0
    # TODO(synk): odd spatial sizes / PyTorch MaxPool2d ceil_mode semantics not handled.

    # NCHW -> NHWC and zero-pad (pad=1, plus one extra zero row); tiny ops that XLA fuses
    # into a single producer of the kernel's input DMA.
    x = jnp.transpose(x_nchw, (0, 2, 3, 1))
    xp = jnp.pad(x, ((0, 0), (1, 2), (1, 1), (0, 0)))          # (N, H+3, W+2, C)

    spatial = tuple((H // 2 ** i, W // 2 ** i) for i in range(n_layers))
    Hf, Wf = H // 2 ** n_layers, W // 2 ** n_layers

    in_specs = [pl.BlockSpec((None, H + 3, W + 2, C), lambda b: (b, 0, 0, 0))]
    in_specs += [pl.BlockSpec(wp.shape, lambda b: (0, 0, 0)) for wp in packed_ws]
    in_specs += [pl.BlockSpec(scales.shape, lambda b: (0, 0)),
                 pl.BlockSpec(biases.shape, lambda b: (0, 0))]

    # Padded activation buffers for layers 1..n-1 live in VMEM for the whole fused pass.
    scratch = [pltpu.VMEM((spatial[i][0] + 3, spatial[i][1] + 2, hid), jnp.float32)
               for i in range(1, n_layers)]

    out = pl.pallas_call(
        _make_fused_kernel(spatial, n_layers),
        out_shape=jax.ShapeDtypeStruct((N, Hf, Wf, hid), jnp.float32),
        grid_spec=pltpu.PrefetchScalarGridSpec(
            num_scalar_prefetch=0,
            grid=(N,),
            in_specs=in_specs,
            out_specs=pl.BlockSpec((None, Hf, Wf, hid), lambda b: (b, 0, 0, 0)),
            scratch_shapes=scratch),
        compiler_params=pltpu.CompilerParams(
            dimension_semantics=("parallel",)),
    )(xp, *packed_ws, scales, biases)

    # Back to NCHW so the flatten matches PyTorch's x.view(N, -1) element order.
    out = jnp.transpose(out, (0, 3, 1, 2))
    return out.reshape(N, -1)


def init_params(key, x_dim=3, hid_dim=64, layers=4):
    """Deterministic parameters for the 4 ConvBlocks (conv W/b + BN affine/running stats)."""
    params = []
    cin = x_dim
    for _ in range(layers):
        key, kw, kb, kg, kbe, km, kv = jax.random.split(key, 7)
        fan_in = cin * 9
        w = jax.random.normal(kw, (3, 3, cin, hid_dim), jnp.float32) / np.sqrt(fan_in)
        conv_b = 0.1 * jax.random.normal(kb, (hid_dim,), jnp.float32)
        gamma = 1.0 + 0.1 * jax.random.normal(kg, (hid_dim,), jnp.float32)
        beta = 0.1 * jax.random.normal(kbe, (hid_dim,), jnp.float32)
        run_mean = 0.1 * jax.random.normal(km, (hid_dim,), jnp.float32)
        run_var = 1.0 + 0.5 * jax.random.uniform(kv, (hid_dim,), jnp.float32)
        params.append((w, conv_b, gamma, beta, run_mean, run_var))
        cin = hid_dim
    return params


def pack_params(params):
    """Fold eval-mode BN (+ conv bias) into per-channel scale/bias and pack conv weights
    as (3, Cin, 3*Cout) with the 3 dx taps stacked along the MXU N dimension."""
    packed_ws, scales, biases = [], [], []
    for w, conv_b, gamma, beta, mean, var in params:
        cin, cout = w.shape[2], w.shape[3]
        scale = gamma / jnp.sqrt(var + EPS)
        bias = beta + scale * (conv_b - mean)
        wp = jnp.transpose(w, (0, 2, 1, 3)).reshape(3, cin, 3 * cout)  # [dy, c, dx*Cout+o]
        packed_ws.append(wp)
        scales.append(scale)
        biases.append(bias)
    return tuple(packed_ws), jnp.stack(scales), jnp.stack(biases)


def reference_forward(x_nchw, params):
    """Pure-JAX (lax.conv / reduce_window) reference for validation (no folding)."""
    x = x_nchw
    for w, conv_b, gamma, beta, mean, var in params:
        w_oihw = jnp.transpose(w, (3, 2, 0, 1))  # (Cout, Cin, 3, 3)
        y = lax.conv_general_dilated(
            x, w_oihw, window_strides=(1, 1), padding=((1, 1), (1, 1)),
            dimension_numbers=("NCHW", "OIHW", "NCHW"),
            precision=lax.Precision.HIGHEST)
        y = y + conv_b[None, :, None, None]
        y = (y - mean[None, :, None, None]) / jnp.sqrt(var[None, :, None, None] + EPS)
        y = y * gamma[None, :, None, None] + beta[None, :, None, None]
        y = jnp.maximum(y, 0.0)
        y = lax.reduce_window(y, -jnp.inf, lax.max,
                              window_dimensions=(1, 1, 2, 2),
                              window_strides=(1, 1, 2, 2),
                              padding="VALID")
        x = y
    return x.reshape(x.shape[0], -1)


if __name__ == "__main__":
    key = jax.random.PRNGKey(0)
    key, kx = jax.random.split(key)

    # Small shapes consistent with the module: N=2, C=x_dim=3, 16x16 spatial, hidden=64.
    # After 4 maxpools 16 -> 8 -> 4 -> 2 -> 1, so the flatten gives 64 features.
    N, C, H, W = 2, 3, 16, 16
    x = jax.random.normal(kx, (N, C, H, W), jnp.float32)

    params = init_params(key, x_dim=C, hid_dim=64, layers=4)
    packed_ws, scales, biases = pack_params(params)

    out = convnet_forward(x, packed_ws, scales, biases)
    out = jax.block_until_ready(out)
    assert out.shape == (N, 64), out.shape

    ref = jax.block_until_ready(reference_forward(x, params))
    np.testing.assert_allclose(np.asarray(out), np.asarray(ref), rtol=1e-2, atol=1e-2)

    print("KERNEL_OK")
</pallas_src>

<mosaic_0001>
module attributes {stable_mosaic.version = 11 : i64} {
  func.func @kernel(%arg0: i32, %arg1: memref<1x19x18x3xf32, #tpu.memory_space<vmem>>, %arg2: memref<3x3x192xf32, #tpu.memory_space<vmem>>, %arg3: memref<3x64x192xf32, #tpu.memory_space<vmem>>, %arg4: memref<3x64x192xf32, #tpu.memory_space<vmem>>, %arg5: memref<3x64x192xf32, #tpu.memory_space<vmem>>, %arg6: memref<4x64xf32, #tpu.memory_space<vmem>>, %arg7: memref<4x64xf32, #tpu.memory_space<vmem>>, %arg8: memref<1x1x1x64xf32, #tpu.memory_space<vmem>>, %arg9: memref<11x10x64xf32, #tpu.memory_space<vmem>>, %arg10: memref<7x6x64xf32, #tpu.memory_space<vmem>>, %arg11: memref<5x4x64xf32, #tpu.memory_space<vmem>>) attributes {dimension_semantics = [#tpu.dimension_semantics<parallel>], iteration_bounds = array<i64: 2>, scalar_prefetch = 0 : i64, scratch_operands = 3 : i64, tpu.core_type = #tpu.core_type<tc>, window_params = [{transform_indices = @transform_0, window_bounds = array<i64: 1, 19, 18, 3>}, {pipeline_mode = #tpu.pipeline_mode<synchronous>, transform_indices = @transform_1, window_bounds = array<i64: 3, 3, 192>}, {pipeline_mode = #tpu.pipeline_mode<synchronous>, transform_indices = @transform_2, window_bounds = array<i64: 3, 64, 192>}, {pipeline_mode = #tpu.pipeline_mode<synchronous>, transform_indices = @transform_3, window_bounds = array<i64: 3, 64, 192>}, {pipeline_mode = #tpu.pipeline_mode<synchronous>, transform_indices = @transform_4, window_bounds = array<i64: 3, 64, 192>}, {pipeline_mode = #tpu.pipeline_mode<synchronous>, transform_indices = @transform_5, window_bounds = array<i64: 4, 64>}, {pipeline_mode = #tpu.pipeline_mode<synchronous>, transform_indices = @transform_6, window_bounds = array<i64: 4, 64>}, {transform_indices = @transform_7, window_bounds = array<i64: 1, 1, 1, 64>}]} {
    %c0 = arith.constant 0 : index
    %c0_0 = arith.constant 0 : index
    %0 = vector.load %arg6[%c0, %c0_0] : memref<4x64xf32, #tpu.memory_space<vmem>>, vector<4x64xf32>
    %c0_1 = arith.constant 0 : index
    %c0_2 = arith.constant 0 : index
    %1 = vector.load %arg7[%c0_1, %c0_2] : memref<4x64xf32, #tpu.memory_space<vmem>>, vector<4x64xf32>
    %2 = vector.extract_strided_slice %0 {offsets = [0, 0], sizes = [1, 64], strides = [1, 1]} : vector<4x64xf32> to vector<1x64xf32>
    %3 = vector.extract_strided_slice %1 {offsets = [0, 0], sizes = [1, 64], strides = [1, 1]} : vector<4x64xf32> to vector<1x64xf32>
    %c0_3 = arith.constant 0 : index
    %c0_4 = arith.constant 0 : index
    %c0_5 = arith.constant 0 : index
    %c0_6 = arith.constant 0 : index
    %4 = vector.load %arg1[%c0_3, %c0_4, %c0_5, %c0_6] : memref<1x19x18x3xf32, #tpu.memory_space<vmem>>, vector<1x17x18x3xf32>
    %5 = vector.shape_cast %4 : vector<1x17x18x3xf32> to vector<17x18x3xf32>
    %6 = vector.shape_cast %5 : vector<17x18x3xf32> to vector<306x3xf32>
    %c0_7 = arith.constant 0 : index
    %c1 = arith.constant 1 : index
    %c0_8 = arith.constant 0 : index
    %c0_9 = arith.constant 0 : index
    %7 = vector.load %arg1[%c0_7, %c1, %c0_8, %c0_9] : memref<1x19x18x3xf32, #tpu.memory_space<vmem>>, vector<1x17x18x3xf32>
    %8 = vector.shape_cast %7 : vector<1x17x18x3xf32> to vector<17x18x3xf32>
    %9 = vector.shape_cast %8 : vector<17x18x3xf32> to vector<306x3xf32>
    %c0_10 = arith.constant 0 : index
    %c2 = arith.constant 2 : index
    %c0_11 = arith.constant 0 : index
    %c0_12 = arith.constant 0 : index
    %10 = vector.load %arg1[%c0_10, %c2, %c0_11, %c0_12] : memref<1x19x18x3xf32, #tpu.memory_space<vmem>>, vector<1x17x18x3xf32>
    %11 = vector.shape_cast %10 : vector<1x17x18x3xf32> to vector<17x18x3xf32>
    %12 = vector.shape_cast %11 : vector<17x18x3xf32> to vector<306x3xf32>
    %c0_13 = arith.constant 0 : index
    %c0_14 = arith.constant 0 : index
    %c0_15 = arith.constant 0 : index
    %13 = vector.load %arg2[%c0_13, %c0_14, %c0_15] : memref<3x3x192xf32, #tpu.memory_space<vmem>>, vector<1x3x192xf32>
    %14 = vector.shape_cast %13 : vector<1x3x192xf32> to vector<3x192xf32>
    %cst = arith.constant dense<0.000000e+00> : vector<306x192xf32>
    %15 = tpu.matmul %6, %14, %cst {dimension_numbers = #tpu.dot_dimension_numbers<[1], [0], [0], [1], [0, 0, 1, 1], [], []>} : vector<306x3xf32>, vector<3x192xf32>, vector<306x192xf32> -> vector<306x192xf32>
    %c1_16 = arith.constant 1 : index
    %c0_17 = arith.constant 0 : index
    %c0_18 = arith.constant 0 : index
    %16 = vector.load %arg2[%c1_16, %c0_17, %c0_18] : memref<3x3x192xf32, #tpu.memory_space<vmem>>, vector<1x3x192xf32>
    %17 = vector.shape_cast %16 : vector<1x3x192xf32> to vector<3x192xf32>
    %cst_19 = arith.constant dense<0.000000e+00> : vector<306x192xf32>
    %18 = tpu.matmul %9, %17, %cst_19 {dimension_numbers = #tpu.dot_dimension_numbers<[1], [0], [0], [1], [0, 0, 1, 1], [], []>} : vector<306x3xf32>, vector<3x192xf32>, vector<306x192xf32> -> vector<306x192xf32>
    %19 = arith.addf %15, %18 : vector<306x192xf32>
    %c2_20 = arith.constant 2 : index
    %c0_21 = arith.constant 0 : index
    %c0_22 = arith.constant 0 : index
    %20 = vector.load %arg2[%c2_20, %c0_21, %c0_22] : memref<3x3x192xf32, #tpu.memory_space<vmem>>, vector<1x3x192xf32>
    %21 = vector.shape_cast %20 : vector<1x3x192xf32> to vector<3x192xf32>
    %cst_23 = arith.constant dense<0.000000e+00> : vector<306x192xf32>
    %22 = tpu.matmul %12, %21, %cst_23 {dimension_numbers = #tpu.dot_dimension_numbers<[1], [0], [0], [1], [0, 0, 1, 1], [], []>} : vector<306x3xf32>, vector<3x192xf32>, vector<306x192xf32> -> vector<306x192xf32>
    %23 = arith.addf %19, %22 : vector<306x192xf32>
    %24 = vector.extract_strided_slice %23 {offsets = [0, 0], sizes = [288, 64], strides = [1, 1]} : vector<306x192xf32> to vector<288x64xf32>
    %25 = vector.extract_strided_slice %23 {offsets = [1, 64], sizes = [288, 64], strides = [1, 1]} : vector<306x192xf32> to vector<288x64xf32>
    %26 = arith.addf %24, %25 : vector<288x64xf32>
    %27 = vector.extract_strided_slice %23 {offsets = [2, 128], sizes = [288, 64], strides = [1, 1]} : vector<306x192xf32> to vector<288x64xf32>
    %28 = arith.addf %26, %27 : vector<288x64xf32>
    %29 = vector.broadcast %2 : vector<1x64xf32> to vector<288x64xf32>
    %30 = arith.mulf %28, %29 : vector<288x64xf32>
    %31 = vector.broadcast %3 : vector<1x64xf32> to vector<288x64xf32>
    %32 = arith.addf %30, %31 : vector<288x64xf32>
    %cst_24 = arith.constant 0.000000e+00 : f32
    %33 = vector.broadcast %cst_24 : f32 to vector<288x64xf32>
    %34 = arith.maximumf %32, %33 : vector<288x64xf32>
    %35 = vector.shape_cast %34 : vector<288x64xf32> to vector<8x2x9x2x64xf32>
    %cst_25 = arith.constant dense<0xFF800000> : vector<8x9x64xf32>
    %36 = vector.multi_reduction <maximumf>, %35, %cst_25 [1, 3] : vector<8x2x9x2x64xf32> to vector<8x9x64xf32>
    %37 = vector.extract_strided_slice %36 {offsets = [0, 0, 0], sizes = [8, 8, 64], strides = [1, 1, 1]} : vector<8x9x64xf32> to vector<8x8x64xf32>
    %cst_26 = arith.constant 0.000000e+00 : f32
    %38 = vector.broadcast %cst_26 : f32 to vector<11x10x64xf32>
    %c0_27 = arith.constant 0 : index
    %c0_28 = arith.constant 0 : index
    %c0_29 = arith.constant 0 : index
    %39 = vector.load %arg9[%c0_27, %c0_28, %c0_29] : memref<11x10x64xf32, #tpu.memory_space<vmem>>, vector<11x10x64xf32>
    tpu.vector_store %arg9[%c0_27, %c0_28, %c0_29], %38 {strides = array<i32>} : memref<11x10x64xf32, #tpu.memory_space<vmem>>, vector<11x10x64xf32>,
    %c1_30 = arith.constant 1 : index
    %c1_31 = arith.constant 1 : index
    %c0_32 = arith.constant 0 : index
    %40 = vector.load %arg9[%c1_30, %c1_31, %c0_32] : memref<11x10x64xf32, #tpu.memory_space<vmem>>, vector<8x8x64xf32>
    tpu.vector_store %arg9[%c1_30, %c1_31, %c0_32], %37 {strides = array<i32>} : memref<11x10x64xf32, #tpu.memory_space<vmem>>, vector<8x8x64xf32>,
    %41 = vector.extract_strided_slice %0 {offsets = [1, 0], sizes = [1, 64], strides = [1, 1]} : vector<4x64xf32> to vector<1x64xf32>
    %42 = vector.extract_strided_slice %1 {offsets = [1, 0], sizes = [1, 64], strides = [1, 1]} : vector<4x64xf32> to vector<1x64xf32>
    %c0_33 = arith.constant 0 : index
    %c0_34 = arith.constant 0 : index
    %c0_35 = arith.constant 0 : index
    %43 = vector.load %arg9[%c0_33, %c0_34, %c0_35] : memref<11x10x64xf32, #tpu.memory_space<vmem>>, vector<9x10x64xf32>
    %44 = vector.shape_cast %43 : vector<9x10x64xf32> to vector<90x64xf32>
    %c1_36 = arith.constant 1 : index
    %c0_37 = arith.constant 0 : index
    %c0_38 = arith.constant 0 : index
    %45 = vector.load %arg9[%c1_36, %c0_37, %c0_38] : memref<11x10x64xf32, #tpu.memory_space<vmem>>, vector<9x10x64xf32>
    %46 = vector.shape_cast %45 : vector<9x10x64xf32> to vector<90x64xf32>
    %c2_39 = arith.constant 2 : index
    %c0_40 = arith.constant 0 : index
    %c0_41 = arith.constant 0 : index
    %47 = vector.load %arg9[%c2_39, %c0_40, %c0_41] : memref<11x10x64xf32, #tpu.memory_space<vmem>>, vector<9x10x64xf32>
    %48 = vector.shape_cast %47 : vector<9x10x64xf32> to vector<90x64xf32>
    %c0_42 = arith.constant 0 : index
    %c0_43 = arith.constant 0 : index
    %c0_44 = arith.constant 0 : index
    %49 = vector.load %arg3[%c0_42, %c0_43, %c0_44] : memref<3x64x192xf32, #tpu.memory_space<vmem>>, vector<1x64x192xf32>
    %50 = vector.shape_cast %49 : vector<1x64x192xf32> to vector<64x192xf32>
    %cst_45 = arith.constant dense<0.000000e+00> : vector<90x192xf32>
    %51 = tpu.matmul %44, %50, %cst_45 {dimension_numbers = #tpu.dot_dimension_numbers<[1], [0], [0], [1], [0, 0, 1, 1], [], []>} : vector<90x64xf32>, vector<64x192xf32>, vector<90x192xf32> -> vector<90x192xf32>
    %c1_46 = arith.constant 1 : index
    %c0_47 = arith.constant 0 : index
    %c0_48 = arith.constant 0 : index
    %52 = vector.load %arg3[%c1_46, %c0_47, %c0_48] : memref<3x64x192xf32, #tpu.memory_space<vmem>>, vector<1x64x192xf32>
    %53 = vector.shape_cast %52 : vector<1x64x192xf32> to vector<64x192xf32>
    %cst_49 = arith.constant dense<0.000000e+00> : vector<90x192xf32>
    %54 = tpu.matmul %46, %53, %cst_49 {dimension_numbers = #tpu.dot_dimension_numbers<[1], [0], [0], [1], [0, 0, 1, 1], [], []>} : vector<90x64xf32>, vector<64x192xf32>, vector<90x192xf32> -> vector<90x192xf32>
    %55 = arith.addf %51, %54 : vector<90x192xf32>
    %c2_50 = arith.constant 2 : index
    %c0_51 = arith.constant 0 : index
    %c0_52 = arith.constant 0 : index
    %56 = vector.load %arg3[%c2_50, %c0_51, %c0_52] : memref<3x64x192xf32, #tpu.memory_space<vmem>>, vector<1x64x192xf32>
    %57 = vector.shape_cast %56 : vector<1x64x192xf32> to vector<64x192xf32>
    %cst_53 = arith.constant dense<0.000000e+00> : vector<90x192xf32>
    %58 = tpu.matmul %48, %57, %cst_53 {dimension_numbers = #tpu.dot_dimension_numbers<[1], [0], [0], [1], [0, 0, 1, 1], [], []>} : vector<90x64xf32>, vector<64x192xf32>, vector<90x192xf32> -> vector<90x192xf32>
    %59 = arith.addf %55, %58 : vector<90x192xf32>
    %60 = vector.extract_strided_slice %59 {offsets = [0, 0], sizes = [80, 64], strides = [1, 1]} : vector<90x192xf32> to vector<80x64xf32>
    %61 = vector.extract_strided_slice %59 {offsets = [1, 64], sizes = [80, 64], strides = [1, 1]} : vector<90x192xf32> to vector<80x64xf32>
    %62 = arith.addf %60, %61 : vector<80x64xf32>
    %63 = vector.extract_strided_slice %59 {offsets = [2, 128], sizes = [80, 64], strides = [1, 1]} : vector<90x192xf32> to vector<80x64xf32>
    %64 = arith.addf %62, %63 : vector<80x64xf32>
    %65 = vector.broadcast %41 : vector<1x64xf32> to vector<80x64xf32>
    %66 = arith.mulf %64, %65 : vector<80x64xf32>
    %67 = vector.broadcast %42 : vector<1x64xf32> to vector<80x64xf32>
    %68 = arith.addf %66, %67 : vector<80x64xf32>
    %cst_54 = arith.constant 0.000000e+00 : f32
    %69 = vector.broadcast %cst_54 : f32 to vector<80x64xf32>
    %70 = arith.maximumf %68, %69 : vector<80x64xf32>
    %71 = vector.shape_cast %70 : vector<80x64xf32> to vector<4x2x5x2x64xf32>
    %cst_55 = arith.constant dense<0xFF800000> : vector<4x5x64xf32>
    %72 = vector.multi_reduction <maximumf>, %71, %cst_55 [1, 3] : vector<4x2x5x2x64xf32> to vector<4x5x64xf32>
    %73 = vector.extract_strided_slice %72 {offsets = [0, 0, 0], sizes = [4, 4, 64], strides = [1, 1, 1]} : vector<4x5x64xf32> to vector<4x4x64xf32>
    %cst_56 = arith.constant 0.000000e+00 : f32
    %74 = vector.broadcast %cst_56 : f32 to vector<7x6x64xf32>
    %c0_57 = arith.constant 0 : index
    %c0_58 = arith.constant 0 : index
    %c0_59 = arith.constant 0 : index
    %75 = vector.load %arg10[%c0_57, %c0_58, %c0_59] : memref<7x6x64xf32, #tpu.memory_space<vmem>>, vector<7x6x64xf32>
    tpu.vector_store %arg10[%c0_57, %c0_58, %c0_59], %74 {strides = array<i32>} : memref<7x6x64xf32, #tpu.memory_space<vmem>>, vector<7x6x64xf32>,
    %c1_60 = arith.constant 1 : index
    %c1_61 = arith.constant 1 : index
    %c0_62 = arith.constant 0 : index
    %76 = vector.load %arg10[%c1_60, %c1_61, %c0_62] : memref<7x6x64xf32, #tpu.memory_space<vmem>>, vector<4x4x64xf32>
    tpu.vector_store %arg10[%c1_60, %c1_61, %c0_62], %73 {strides = array<i32>} : memref<7x6x64xf32, #tpu.memory_space<vmem>>, vector<4x4x64xf32>,
    %77 = vector.extract_strided_slice %0 {offsets = [2, 0], sizes = [1, 64], strides = [1, 1]} : vector<4x64xf32> to vector<1x64xf32>
    %78 = vector.extract_strided_slice %1 {offsets = [2, 0], sizes = [1, 64], strides = [1, 1]} : vector<4x64xf32> to vector<1x64xf32>
    %c0_63 = arith.constant 0 : index
    %c0_64 = arith.constant 0 : index
    %c0_65 = arith.constant 0 : index
    %79 = vector.load %arg10[%c0_63, %c0_64, %c0_65] : memref<7x6x64xf32, #tpu.memory_space<vmem>>, vector<5x6x64xf32>
    %80 = vector.shape_cast %79 : vector<5x6x64xf32> to vector<30x64xf32>
    %c1_66 = arith.constant 1 : index
    %c0_67 = arith.constant 0 : index
    %c0_68 = arith.constant 0 : index
    %81 = vector.load %arg10[%c1_66, %c0_67, %c0_68] : memref<7x6x64xf32, #tpu.memory_space<vmem>>, vector<5x6x64xf32>
    %82 = vector.shape_cast %81 : vector<5x6x64xf32> to vector<30x64xf32>
    %c2_69 = arith.constant 2 : index
    %c0_70 = arith.constant 0 : index
    %c0_71 = arith.constant 0 : index
    %83 = vector.load %arg10[%c2_69, %c0_70, %c0_71] : memref<7x6x64xf32, #tpu.memory_space<vmem>>, vector<5x6x64xf32>
    %84 = vector.shape_cast %83 : vector<5x6x64xf32> to vector<30x64xf32>
    %c0_72 = arith.constant 0 : index
    %c0_73 = arith.constant 0 : index
    %c0_74 = arith.constant 0 : index
    %85 = vector.load %arg4[%c0_72, %c0_73, %c0_74] : memref<3x64x192xf32, #tpu.memory_space<vmem>>, vector<1x64x192xf32>
    %86 = vector.shape_cast %85 : vector<1x64x192xf32> to vector<64x192xf32>
    %cst_75 = arith.constant dense<0.000000e+00> : vector<30x192xf32>
    %87 = tpu.matmul %80, %86, %cst_75 {dimension_numbers = #tpu.dot_dimension_numbers<[1], [0], [0], [1], [0, 0, 1, 1], [], []>} : vector<30x64xf32>, vector<64x192xf32>, vector<30x192xf32> -> vector<30x192xf32>
    %c1_76 = arith.constant 1 : index
    %c0_77 = arith.constant 0 : index
    %c0_78 = arith.constant 0 : index
    %88 = vector.load %arg4[%c1_76, %c0_77, %c0_78] : memref<3x64x192xf32, #tpu.memory_space<vmem>>, vector<1x64x192xf32>
    %89 = vector.shape_cast %88 : vector<1x64x192xf32> to vector<64x192xf32>
    %cst_79 = arith.constant dense<0.000000e+00> : vector<30x192xf32>
    %90 = tpu.matmul %82, %89, %cst_79 {dimension_numbers = #tpu.dot_dimension_numbers<[1], [0], [0], [1], [0, 0, 1, 1], [], []>} : vector<30x64xf32>, vector<64x192xf32>, vector<30x192xf32> -> vector<30x192xf32>
    %91 = arith.addf %87, %90 : vector<30x192xf32>
    %c2_80 = arith.constant 2 : index
    %c0_81 = arith.constant 0 : index
    %c0_82 = arith.constant 0 : index
    %92 = vector.load %arg4[%c2_80, %c0_81, %c0_82] : memref<3x64x192xf32, #tpu.memory_space<vmem>>, vector<1x64x192xf32>
    %93 = vector.shape_cast %92 : vector<1x64x192xf32> to vector<64x192xf32>
    %cst_83 = arith.constant dense<0.000000e+00> : vector<30x192xf32>
    %94 = tpu.matmul %84, %93, %cst_83 {dimension_numbers = #tpu.dot_dimension_numbers<[1], [0], [0], [1], [0, 0, 1, 1], [], []>} : vector<30x64xf32>, vector<64x192xf32>, vector<30x192xf32> -> vector<30x192xf32>
    %95 = arith.addf %91, %94 : vector<30x192xf32>
    %96 = vector.extract_strided_slice %95 {offsets = [0, 0], sizes = [24, 64], strides = [1, 1]} : vector<30x192xf32> to vector<24x64xf32>
    %97 = vector.extract_strided_slice %95 {offsets = [1, 64], sizes = [24, 64], strides = [1, 1]} : vector<30x192xf32> to vector<24x64xf32>
    %98 = arith.addf %96, %97 : vector<24x64xf32>
    %99 = vector.extract_strided_slice %95 {offsets = [2, 128], sizes = [24, 64], strides = [1, 1]} : vector<30x192xf32> to vector<24x64xf32>
    %100 = arith.addf %98, %99 : vector<24x64xf32>
    %101 = vector.broadcast %77 : vector<1x64xf32> to vector<24x64xf32>
    %102 = arith.mulf %100, %101 : vector<24x64xf32>
    %103 = vector.broadcast %78 : vector<1x64xf32> to vector<24x64xf32>
    %104 = arith.addf %102, %103 : vector<24x64xf32>
    %cst_84 = arith.constant 0.000000e+00 : f32
    %105 = vector.broadcast %cst_84 : f32 to vector<24x64xf32>
    %106 = arith.maximumf %104, %105 : vector<24x64xf32>
    %107 = vector.shape_cast %106 : vector<24x64xf32> to vector<2x2x3x2x64xf32>
    %cst_85 = arith.constant dense<0xFF800000> : vector<2x3x64xf32>
    %108 = vector.multi_reduction <maximumf>, %107, %cst_85 [1, 3] : vector<2x2x3x2x64xf32> to vector<2x3x64xf32>
    %109 = vector.extract_strided_slice %108 {offsets = [0, 0, 0], sizes = [2, 2, 64], strides = [1, 1, 1]} : vector<2x3x64xf32> to vector<2x2x64xf32>
    %cst_86 = arith.constant 0.000000e+00 : f32
    %110 = vector.broadcast %cst_86 : f32 to vector<5x4x64xf32>
    %c0_87 = arith.constant 0 : index
    %c0_88 = arith.constant 0 : index
    %c0_89 = arith.constant 0 : index
    %111 = vector.load %arg11[%c0_87, %c0_88, %c0_89] : memref<5x4x64xf32, #tpu.memory_space<vmem>>, vector<5x4x64xf32>
    tpu.vector_store %arg11[%c0_87, %c0_88, %c0_89], %110 {strides = array<i32>} : memref<5x4x64xf32, #tpu.memory_space<vmem>>, vector<5x4x64xf32>,
    %c1_90 = arith.constant 1 : index
    %c1_91 = arith.constant 1 : index
    %c0_92 = arith.constant 0 : index
    %112 = vector.load %arg11[%c1_90, %c1_91, %c0_92] : memref<5x4x64xf32, #tpu.memory_space<vmem>>, vector<2x2x64xf32>
    tpu.vector_store %arg11[%c1_90, %c1_91, %c0_92], %109 {strides = array<i32>} : memref<5x4x64xf32, #tpu.memory_space<vmem>>, vector<2x2x64xf32>,
    %113 = vector.extract_strided_slice %0 {offsets = [3, 0], sizes = [1, 64], strides = [1, 1]} : vector<4x64xf32> to vector<1x64xf32>
    %114 = vector.extract_strided_slice %1 {offsets = [3, 0], sizes = [1, 64], strides = [1, 1]} : vector<4x64xf32> to vector<1x64xf32>
    %c0_93 = arith.constant 0 : index
    %c0_94 = arith.constant 0 : index
    %c0_95 = arith.constant 0 : index
    %115 = vector.load %arg11[%c0_93, %c0_94, %c0_95] : memref<5x4x64xf32, #tpu.memory_space<vmem>>, vector<3x4x64xf32>
    %116 = vector.shape_cast %115 : vector<3x4x64xf32> to vector<12x64xf32>
    %c1_96 = arith.constant 1 : index
    %c0_97 = arith.constant 0 : index
    %c0_98 = arith.constant 0 : index
    %117 = vector.load %arg11[%c1_96, %c0_97, %c0_98] : memref<5x4x64xf32, #tpu.memory_space<vmem>>, vector<3x4x64xf32>
    %118 = vector.shape_cast %117 : vector<3x4x64xf32> to vector<12x64xf32>
    %c2_99 = arith.constant 2 : index
    %c0_100 = arith.constant 0 : index
    %c0_101 = arith.constant 0 : index
    %119 = vector.load %arg11[%c2_99, %c0_100, %c0_101] : memref<5x4x64xf32, #tpu.memory_space<vmem>>, vector<3x4x64xf32>
    %120 = vector.shape_cast %119 : vector<3x4x64xf32> to vector<12x64xf32>
    %c0_102 = arith.constant 0 : index
    %c0_103 = arith.constant 0 : index
    %c0_104 = arith.constant 0 : index
    %121 = vector.load %arg5[%c0_102, %c0_103, %c0_104] : memref<3x64x192xf32, #tpu.memory_space<vmem>>, vector<1x64x192xf32>
    %122 = vector.shape_cast %121 : vector<1x64x192xf32> to vector<64x192xf32>
    %cst_105 = arith.constant dense<0.000000e+00> : vector<12x192xf32>
    %123 = tpu.matmul %116, %122, %cst_105 {dimension_numbers = #tpu.dot_dimension_numbers<[1], [0], [0], [1], [0, 0, 1, 1], [], []>} : vector<12x64xf32>, vector<64x192xf32>, vector<12x192xf32> -> vector<12x192xf32>
    %c1_106 = arith.constant 1 : index
    %c0_107 = arith.constant 0 : index
    %c0_108 = arith.constant 0 : index
    %124 = vector.load %arg5[%c1_106, %c0_107, %c0_108] : memref<3x64x192xf32, #tpu.memory_space<vmem>>, vector<1x64x192xf32>
    %125 = vector.shape_cast %124 : vector<1x64x192xf32> to vector<64x192xf32>
    %cst_109 = arith.constant dense<0.000000e+00> : vector<12x192xf32>
    %126 = tpu.matmul %118, %125, %cst_109 {dimension_numbers = #tpu.dot_dimension_numbers<[1], [0], [0], [1], [0, 0, 1, 1], [], []>} : vector<12x64xf32>, vector<64x192xf32>, vector<12x192xf32> -> vector<12x192xf32>
    %127 = arith.addf %123, %126 : vector<12x192xf32>
    %c2_110 = arith.constant 2 : index
    %c0_111 = arith.constant 0 : index
    %c0_112 = arith.constant 0 : index
    %128 = vector.load %arg5[%c2_110, %c0_111, %c0_112] : memref<3x64x192xf32, #tpu.memory_space<vmem>>, vector<1x64x192xf32>
    %129 = vector.shape_cast %128 : vector<1x64x192xf32> to vector<64x192xf32>
    %cst_113 = arith.constant dense<0.000000e+00> : vector<12x192xf32>
    %130 = tpu.matmul %120, %129, %cst_113 {dimension_numbers = #tpu.dot_dimension_numbers<[1], [0], [0], [1], [0, 0, 1, 1], [], []>} : vector<12x64xf32>, vector<64x192xf32>, vector<12x192xf32> -> vector<12x192xf32>
    %131 = arith.addf %127, %130 : vector<12x192xf32>
    %132 = vector.extract_strided_slice %131 {offsets = [0, 0], sizes = [8, 64], strides = [1, 1]} : vector<12x192xf32> to vector<8x64xf32>
    %133 = vector.extract_strided_slice %131 {offsets = [1, 64], sizes = [8, 64], strides = [1, 1]} : vector<12x192xf32> to vector<8x64xf32>
    %134 = arith.addf %132, %133 : vector<8x64xf32>
    %135 = vector.extract_strided_slice %131 {offsets = [2, 128], sizes = [8, 64], strides = [1, 1]} : vector<12x192xf32> to vector<8x64xf32>
    %136 = arith.addf %134, %135 : vector<8x64xf32>
    %137 = vector.broadcast %113 : vector<1x64xf32> to vector<8x64xf32>
    %138 = arith.mulf %136, %137 : vector<8x64xf32>
    %139 = vector.broadcast %114 : vector<1x64xf32> to vector<8x64xf32>
    %140 = arith.addf %138, %139 : vector<8x64xf32>
    %cst_114 = arith.constant 0.000000e+00 : f32
    %141 = vector.broadcast %cst_114 : f32 to vector<8x64xf32>
    %142 = arith.maximumf %140, %141 : vector<8x64xf32>
    %143 = vector.shape_cast %142 : vector<8x64xf32> to vector<1x2x2x2x64xf32>
    %cst_115 = arith.constant dense<0xFF800000> : vector<1x2x64xf32>
    %144 = vector.multi_reduction <maximumf>, %143, %cst_115 [1, 3] : vector<1x2x2x2x64xf32> to vector<1x2x64xf32>
    %145 = vector.extract_strided_slice %144 {offsets = [0, 0, 0], sizes = [1, 1, 64], strides = [1, 1, 1]} : vector<1x2x64xf32> to vector<1x1x64xf32>
    %c0_116 = arith.constant 0 : index
    %c0_117 = arith.constant 0 : index
    %c0_118 = arith.constant 0 : index
    %c0_119 = arith.constant 0 : index
    %146 = vector.load %arg8[%c0_116, %c0_117, %c0_118, %c0_119] : memref<1x1x1x64xf32, #tpu.memory_space<vmem>>, vector<1x1x1x64xf32>
    %147 = vector.shape_cast %146 : vector<1x1x1x64xf32> to vector<1x1x64xf32>
    %148 = vector.shape_cast %145 : vector<1x1x64xf32> to vector<1x1x1x64xf32>
    tpu.vector_store %arg8[%c0_116, %c0_117, %c0_118, %c0_119], %148 {strides = array<i32>} : memref<1x1x1x64xf32, #tpu.memory_space<vmem>>, vector<1x1x1x64xf32>,
    return
  }
  func.func @transform_0(%arg0: i32) -> (i32, i32, i32, i32) {
    %c0_i32 = arith.constant 0 : i32
    %c0_i32_0 = arith.constant 0 : i32
    %c0_i32_1 = arith.constant 0 : i32
    %c0_i32_2 = arith.constant 0 : i32
    return %arg0, %c0_i32, %c0_i32_0, %c0_i32_1 : i32, i32, i32, i32
  }
  func.func @transform_1(%arg0: i32) -> (i32, i32, i32) {
    %c0_i32 = arith.constant 0 : i32
    %c0_i32_0 = arith.constant 0 : i32
    %c0_i32_1 = arith.constant 0 : i32
    %c0_i32_2 = arith.constant 0 : i32
    return %c0_i32, %c0_i32_0, %c0_i32_1 : i32, i32, i32
  }
  func.func @transform_2(%arg0: i32) -> (i32, i32, i32) {
    %c0_i32 = arith.constant 0 : i32
    %c0_i32_0 = arith.constant 0 : i32
    %c0_i32_1 = arith.constant 0 : i32
    %c0_i32_2 = arith.constant 0 : i32
    return %c0_i32, %c0_i32_0, %c0_i32_1 : i32, i32, i32
  }
  func.func @transform_3(%arg0: i32) -> (i32, i32, i32) {
    %c0_i32 = arith.constant 0 : i32
    %c0_i32_0 = arith.constant 0 : i32
    %c0_i32_1 = arith.constant 0 : i32
    %c0_i32_2 = arith.constant 0 : i32
    return %c0_i32, %c0_i32_0, %c0_i32_1 : i32, i32, i32
  }
  func.func @transform_4(%arg0: i32) -> (i32, i32, i32) {
    %c0_i32 = arith.constant 0 : i32
    %c0_i32_0 = arith.constant 0 : i32
    %c0_i32_1 = arith.constant 0 : i32
    %c0_i32_2 = arith.constant 0 : i32
    return %c0_i32, %c0_i32_0, %c0_i32_1 : i32, i32, i32
  }
  func.func @transform_5(%arg0: i32) -> (i32, i32) {
    %c0_i32 = arith.constant 0 : i32
    %c0_i32_0 = arith.constant 0 : i32
    %c0_i32_1 = arith.constant 0 : i32
    return %c0_i32, %c0_i32_0 : i32, i32
  }
  func.func @transform_6(%arg0: i32) -> (i32, i32) {
    %c0_i32 = arith.constant 0 : i32
    %c0_i32_0 = arith.constant 0 : i32
    %c0_i32_1 = arith.constant 0 : i32
    return %c0_i32, %c0_i32_0 : i32, i32
  }
  func.func @transform_7(%arg0: i32) -> (i32, i32, i32, i32) {
    %c0_i32 = arith.constant 0 : i32
    %c0_i32_0 = arith.constant 0 : i32
    %c0_i32_1 = arith.constant 0 : i32
    %c0_i32_2 = arith.constant 0 : i32
    return %arg0, %c0_i32, %c0_i32_0, %c0_i32_1 : i32, i32, i32, i32
  }
}

</mosaic_0001>

<bundles_post_ra>
// kernel: convnet_forward.1
= control target key start
LH: loop header
LB: loop body
LE: loop exit
PB: predicated region body
PF: predicated region fallthrough
CT: control target
= control target key end

     0   :  { %12 = vsyncpa [#allocation6], 0  ;;  %s11229_s0 = inlined_call_operand.vmem [shape: f32[2,19,18,3], index: 0, kind: input, shape index: {}]   ;;  %s11230_s1 = inlined_call_operand.vmem [shape: f32[3,3,192], index: 1, kind: input, shape index: {}]   ;;  %s11231_s2 = inlined_call_operand.vmem [shape: f32[3,64,192], index: 2, kind: input, shape index: {}]   ;;  %s11232_s3 = inlined_call_operand.vmem [shape: f32[3,64,192], index: 3, kind: input, shape index: {}]   ;;  %s11233_s4 = inlined_call_operand.vmem [shape: f32[3,64,192], index: 4, kind: input, shape index: {}]   ;;  %s11234_s5 = inlined_call_operand.vmem [shape: f32[4,64], index: 5, kind: input, shape index: {}]   ;;  %s11235_s6 = inlined_call_operand.vmem [shape: f32[4,64], index: 6, kind: input, shape index: {}]   ;;  %s11236_s7 = inlined_call_operand.hbm [shape: f32[2,1,1,64], index: 7, kind: output, shape index: {}]  }
   0x1   :  { %14 = vsyncpa [#allocation6 + $0x1], 0  ;;  %s6949_s24 = smov 0   ;;  %s6951_s25 = smov 0  }
   0x2   :  { %s6953_s26 = smov 0   ;;  %s6955_s27 = smov 0  }
   0x3 LB: > { %s6970_s28 = sadd.s32 4294967295, %s6905_s27   ;;  %s6242_s29 = sadd.s32 4294967294, %s6905_s27   ;;  %s6905_s27 = sphi %s6955_s27, %s11864_s27   ;;  %s6901_s26 = sphi %s6953_s26, %s11863_s26   ;;  %s6897_s25 = sphi %s6951_s25, %s11862_s25   ;;  %s6893_s24 = sphi %s6949_s24, %s11861_s24  }
   0x4   : > { %s6974_s30 = sadd.s32 1, %s6905_s27   ;;  %s179_s8 = sadd.s32 1, %s6901_s26 }
   0x5   : > { %s176_s9 = ssub.s32 %s6905_s27, %s6974_s30  ;;  %p189_p0 = scmp.ne.s32.totalorder %s6901_s26, %s6897_s25 }
   0x6   : > { %p177_p1 = scmp.eq.s32.totalorder %s176_s9, 0  ;;  %p190_p2 = scmp.eq.s32.totalorder %s6970_s28, 1 }
   0x7   : > { %p195_p3 = scmp.ne.s32.totalorder %s6897_s25, %s6893_s24  ;;  %p196_p4 = scmp.eq.s32.totalorder %s6242_s29, 1 }
   0x8   : > { %s6985_s10 = scalar_select %p177_p1, %s6901_s26, %s179_s8  }
   0x9   : > { %p6987_p5 = por %p190_p2, %p189_p0  ;;  %p6991_p6 = por %p196_p4, %p195_p3 }
   0xa   : > { %p6245_p7 = scmp.ge.s32.totalorder %s6905_s27, 1  ;;  %p240_p8 = scmp.lt.s32.totalorder %s6905_s27, 3 }
   0xc   : > { %p241_p9 = pnand %p6245_p7, %p240_p8 }
   0xe   : > { %244 = sbr.rel (%p241_p9) target bundleno = 2499 (0x9c3), region = 48 }
  0x13   : > { %p271_p10 = scmp.lt.s32.totalorder %s6970_s28, 1  ;;  %vm1177_vm0 = vcmask 1042432   ;;  %vm1098_vm1 = vcmask 23552   ;;  %vm2657_vm2 = vcmask 1046528   ;;  %vm2912_vm3 = vcmask 1045504   ;;  %s6907_s29 = smov 64  }
  0x14   : > { %vm3396_vm4 = vcmask 517120   ;;  %vm3973_vm5 = vcmask 523264   ;;  %vm4060_vm6 = vcmask 1041409   ;;  %vm4062_vm7 = vcmask 1042434   ;;  %s6863_s22 = scalar_lea.hbm %s11236_s7, 2 }
  0x15   : > { %s272_s13 = scalar_select %p271_p10, %s6970_s28, 1  ;;  %vm4064_vm8 = vcmask 1043459   ;;  %vm4066_vm9 = vcmask 1044484   ;;  %vm4068_vm10 = vcmask 1045509   ;;  %vm4070_vm11 = vcmask 1046534  }
  0x16   : > { %vm4072_vm12 = vcmask 1047559   ;;  %vm5336_vm13 = vcmask 521216   ;;  %vm5377_vm14 = vcmask 519168   ;;  %vm6172_vm15 = vcmask 516096  }
  0x17   : > { %s6797_s14 = smul.u32 456, %s272_s13 }
  0x19   : > { %s7002_s17 = scalar_lea.vmem %s11229_s0, %s6797_s14  ;;  %s6183_s14 = scalar_lea.hbm %s11236_s7, %s6970_s28 }
  0x1a   : > { %v7005_v0 = vld [vmem:[%s7002_s17 + $0x18] sm:$0xff]  ;;  %v7009_v2 = vld [vmem:[%s7002_s17 + $0x20] sm:$0xff]  ;;  %v7031_v8 = vld [vmem:[%s7002_s17 + $0x30] sm:$0xff] }
  0x1b   : > { %v11308_v1 = vrot.slane %v7005_v0, 2  ;;  %v11304_v3 = vrot.slane %v7005_v0, 4  ;;  %v11254_v4 = vrot.slane %v7005_v0, 6  ;;  %895 = vst [vmem:[#allocation1] ss:$4 sm:$0xff] %v7005_v0  ;;  %v11253_v5 = vrot.slane %v7009_v2, 2 }
  0x1c   : > { %v11252_v6 = vrot.slane %v7009_v2, 4  ;;  %v11303_v7 = vrot.slane %v7009_v2, 6  ;;  %903 = vst [vmem:[#allocation1 + $0x20] ss:$4 sm:$0xff] %v7009_v2  ;;  %v6249_v9 = vld [vmem:[%s7002_s17 + $0x28] sm:$0x3] }
  0x1d   : > { %897 = vst [vmem:[#allocation1 + $0x1] ss:$4 sm:$0xff] %v11308_v1  ;;  %v11302_v10 = vrot.slane %v7031_v8, 2  ;;  %v11251_v11 = vrot.slane %v7031_v8, 4  ;;  %v11250_v13 = vrot.slane %v7031_v8, 6  ;;  %v7040_v14 = vld [vmem:[%s7002_s17 + $0x38] sm:$0xff] }
  0x1e   : > { %899 = vst [vmem:[#allocation1 + $0x2] ss:$4 sm:$0xff] %v11304_v3  ;;  %v11249_v16 = vrot.slane %v7040_v14, 2  ;;  %v11298_v17 = vrot.slane %v7040_v14, 4  ;;  %v7057_v18 = vld [vmem:[%s7002_s17 + $0x48] sm:$0xff]  ;;  %v11297_v19 = vrot.slane %v7040_v14, 6 }
  0x1f   : > { %901 = vst [vmem:[#allocation1 + $0x3] ss:$4 sm:$0xff] %v11254_v4  ;;  %v6252_v20 = vld [vmem:[%s7002_s17 + $0x40] sm:$0x3]  ;;  %v11246_v21 = vrot.slane %v7057_v18, 2  ;;  %v11245_v23 = vrot.slane %v7057_v18, 4 }
  0x20   : > { %905 = vst [vmem:[#allocation1 + $0x21] ss:$4 sm:$0xff] %v11253_v5  ;;  %v11243_v24 = vrot.slane %v7057_v18, 6  ;;  %v7071_v25 = vld [vmem:[%s7002_s17 + $0x50] sm:$0xff]  ;;  %v6255_v30 = vld [vmem:[%s7002_s17 + $0x58] sm:$0x3] }
  0x21   : > { %907 = vst [vmem:[#allocation1 + $0x22] ss:$4 sm:$0xff] %v11252_v6  ;;  %v11293_v26 = vrot.slane %v7071_v25, 2  ;;  %v11292_v28 = vrot.slane %v7071_v25, 4  ;;  %v11288_v29 = vrot.slane %v7071_v25, 6  ;;  %v6256_v31 = vld [vmem:[%s7002_s17 + $0x60] sm:$0xff] }
  0x22   : > { %909 = vst [vmem:[#allocation1 + $0x23] ss:$4 sm:$0xff] %v11303_v7  ;;  %v603_v33 = vrot.slane %v6256_v31, 2  ;;  %v604_v34 = vrot.slane %v6256_v31, 4  ;;  %v605_v35 = vrot.slane %v6256_v31, 6  ;;  %v7099_v37 = vld [vmem:[%s7002_s17 + $0x68] sm:$0xff] }
  0x23   : > { %v11287_v38 = vrot.slane %v7099_v37, 2  ;;  %v11286_v39 = vrot.slane %v7099_v37, 4  ;;  %v7105_v40 = vld [vmem:[%s7002_s17 + $0x78] sm:$0xff]  ;;  %v11285_v41 = vrot.slane %v7099_v37, 6  ;;  %v6258_v43 = vld [vmem:[%s7002_s17 + $0x70] sm:$0x3] }
  0x24   : > { %v11242_v44 = vrot.slane %v7105_v40, 2  ;;  %v11241_v45 = vrot.slane %v7105_v40, 4  ;;  %v11282_v46 = vrot.slane %v7105_v40, 6  ;;  %v7124_v48 = vld [vmem:[%s7002_s17 + $0x80] sm:$0xff]  ;;  %v6261_v53 = vld [vmem:[%s7002_s17 + $0x88] sm:$0x3] }
  0x25   : > { %v11281_v49 = vrot.slane %v7124_v48, 2  ;;  %v11276_v50 = vrot.slane %v7124_v48, 4  ;;  %v11240_v51 = vrot.slane %v7124_v48, 6  ;;  %v7140_v54 = vld [vmem:[%s7002_s17 + $0x90] sm:$0xff]  ;;  %v7154_v58 = vld [vmem:[%s7002_s17 + $0x98] sm:$0xff]  ;;  %v7233_v6 = vld [vmem:[%s7002_s17 + $0xe0] sm:$0xff] }
  0x26   : > { %v7036_v12 = vld.sshfl [vmem:[#allocation1] sm:$0xff pattern:$0x73625140]  ;;  %v11239_v55 = vrot.slane %v7140_v54, 2  ;;  %v11275_v56 = vrot.slane %v7140_v54, 4  ;;  %v11273_v59 = vrot.slane %v7140_v54, 6 }
  0x27   : > { %912 = vst [vmem:[#allocation1] ss:$4 sm:$0xff] %v6249_v9  ;;  %v11268_v60 = vrot.slane %v7154_v58, 2  ;;  %v11237_v61 = vrot.slane %v7154_v58, 4  ;;  %v11238_v63 = vrot.slane %v7154_v58, 6 }
  0x28   : > { %913 = vst [vmem:[#allocation1 + $0x1] ss:$4 sm:$0xff] %v7031_v8  ;;  %v6264_v9 = vld [vmem:[%s7002_s17 + $0xa0] sm:$0x3] }
  0x29   : > { %v7042_v15 = vld.sshfl [vmem:[#allocation1 + $0x20] sm:$0xff pattern:$0x73625140]  ;;  %914 = vst [vmem:[#allocation1 + $0x2] ss:$4 sm:$0xff] %v11302_v10 }
  0x2a   : > { %915 = vst [vmem:[#allocation1 + $0x3] ss:$4 sm:$0xff] %v11251_v11 }
  0x2b   : > { %916 = vst [vmem:[#allocation1 + $0x20] ss:$4 sm:$0xff] %v11250_v13  ;;  %v7229_v13 = vld [vmem:[%s7002_s17 + $0xd8] sm:$0xff] }
  0x2c   : > { %917 = vst [vmem:[#allocation1 + $0x21] ss:$4 sm:$0xff] %v7040_v14  ;;  %v11257_v11 = vrot.slane %v7229_v13, 2  ;;  %v11256_v5 = vrot.slane %v7229_v13, 4  ;;  %v11259_v4 = vrot.slane %v7229_v13, 6 }
  0x2d   : > { %918 = vst [vmem:[#allocation1 + $0x22] ss:$4 sm:$0xff] %v11249_v16  ;;  %v6270_v16 = vld [vmem:[%s7002_s17 + $0xd0] sm:$0x3] }
  0x2e   : > { %919 = vst [vmem:[#allocation1 + $0x23] ss:$4 sm:$0xff] %v11298_v17 }
  0x31   : > { %v7064_v22 = vld.sshfl [vmem:[#allocation1] sm:$0xff pattern:$0x73625140] }
  0x32   : > { %922 = vst [vmem:[#allocation1] ss:$4 sm:$0xff] %v11297_v19 }
  0x33   : > { %923 = vst [vmem:[#allocation1 + $0x1] ss:$4 sm:$0xff] %v6252_v20  ;;  %v7171_v20 = vld [vmem:[%s7002_s17 + $0xa8] sm:$0xff] }
  0x34   : > { %924 = vst [vmem:[#allocation1 + $0x2] ss:$4 sm:$0xff] %v7057_v18 }
  0x35   : > { %v7075_v27 = vld.sshfl [vmem:[#allocation1 + $0x20] sm:$0xff pattern:$0x73625140]  ;;  %925 = vst [vmem:[#allocation1 + $0x3] ss:$4 sm:$0xff] %v11246_v21 }
  0x36   : > { %926 = vst [vmem:[#allocation1 + $0x20] ss:$4 sm:$0xff] %v11245_v23 }
  0x37   : > { %927 = vst [vmem:[#allocation1 + $0x21] ss:$4 sm:$0xff] %v11243_v24 }
  0x38   : > { %928 = vst [vmem:[#allocation1 + $0x22] ss:$4 sm:$0xff] %v7071_v25 }
  0x39   : > { %929 = vst [vmem:[#allocation1 + $0x23] ss:$4 sm:$0xff] %v11293_v26 }
  0x3c   : > { %v7090_v32 = vld.sshfl [vmem:[#allocation1] sm:$0xff pattern:$0x73625140] }
  0x3d   : > { %932 = vst [vmem:[#allocation1] ss:$4 sm:$0xff] %v11292_v28 }
  0x3e   : > { %933 = vst [vmem:[#allocation1 + $0x1] ss:$4 sm:$0xff] %v11288_v29 }
  0x3f   : > { %934 = vst [vmem:[#allocation1 + $0x2] ss:$4 sm:$0xff] %v6255_v30  ;;  %v11267_v30 = vrot.slane %v7171_v20, 2 }
  0x40   : > { %v7096_v36 = vld.sshfl [vmem:[#allocation1 + $0x20] sm:$0xff pattern:$0x73625140]  ;;  %935 = vst [vmem:[#allocation1 + $0x3] ss:$4 sm:$0xff] %v6256_v31 }
  0x41   : > { %936 = vst [vmem:[#allocation1 + $0x20] ss:$4 sm:$0xff] %v603_v33  ;;  %v7184_v33 = vld [vmem:[%s7002_s17 + $0xb0] sm:$0xff] }
  0x42   : > { %937 = vst [vmem:[#allocation1 + $0x21] ss:$4 sm:$0xff] %v604_v34  ;;  %v11266_v34 = vrot.slane %v7171_v20, 4 }
  0x43   : > { %938 = vst [vmem:[#allocation1 + $0x22] ss:$4 sm:$0xff] %v605_v35  ;;  %v11264_v35 = vrot.slane %v7171_v20, 6 }
  0x44   : > { %939 = vst [vmem:[#allocation1 + $0x23] ss:$4 sm:$0xff] %v7099_v37 }
  0x47   : > { %v7108_v42 = vld.sshfl [vmem:[#allocation1] sm:$0xff pattern:$0x73625140] }
  0x48   : > { %942 = vst [vmem:[#allocation1] ss:$4 sm:$0xff] %v11287_v38 }
  0x49   : > { %943 = vst [vmem:[#allocation1 + $0x1] ss:$4 sm:$0xff] %v11286_v39 }
  0x4a   : > { %944 = vst [vmem:[#allocation1 + $0x2] ss:$4 sm:$0xff] %v11285_v41 }
  0x4b   : > { %v7120_v47 = vld.sshfl [vmem:[#allocation1 + $0x20] sm:$0xff pattern:$0x73625140]  ;;  %945 = vst [vmem:[#allocation1 + $0x3] ss:$4 sm:$0xff] %v6258_v43  ;;  %v11244_v43 = vrot.slane %v7184_v33, 2 }
  0x4c   : > { %946 = vst [vmem:[#allocation1 + $0x20] ss:$4 sm:$0xff] %v7105_v40 }
  0x4d   : > { %947 = vst [vmem:[#allocation1 + $0x21] ss:$4 sm:$0xff] %v11242_v44 }
  0x4e   : > { %948 = vst [vmem:[#allocation1 + $0x22] ss:$4 sm:$0xff] %v11241_v45 }
  0x4f   : > { %949 = vst [vmem:[#allocation1 + $0x23] ss:$4 sm:$0xff] %v11282_v46 }
  0x52   : > { %v7135_v52 = vld.sshfl [vmem:[#allocation1] sm:$0xff pattern:$0x73625140] }
  0x53   : > { %952 = vst [vmem:[#allocation1] ss:$4 sm:$0xff] %v7124_v48 }
  0x54   : > { %953 = vst [vmem:[#allocation1 + $0x1] ss:$4 sm:$0xff] %v11281_v49 }
  0x55   : > { %954 = vst [vmem:[#allocation1 + $0x2] ss:$4 sm:$0xff] %v11276_v50 }
  0x56   : > { %v7148_v57 = vld.sshfl [vmem:[#allocation1 + $0x20] sm:$0xff pattern:$0x73625140]  ;;  %955 = vst [vmem:[#allocation1 + $0x3] ss:$4 sm:$0xff] %v11240_v51 }
  0x57   : > { %956 = vst [vmem:[#allocation1 + $0x20] ss:$4 sm:$0xff] %v6261_v53  ;;  %v7206_v51 = vld [vmem:[%s7002_s17 + $0xc0] sm:$0xff] }
  0x58   : > { %957 = vst [vmem:[#allocation1 + $0x21] ss:$4 sm:$0xff] %v7140_v54  ;;  %v11260_v45 = vrot.slane %v7206_v51, 2  ;;  %v11258_v44 = vrot.slane %v7206_v51, 4  ;;  %v11255_v24 = vrot.slane %v7206_v51, 6 }
  0x59   : > { %958 = vst [vmem:[#allocation1 + $0x22] ss:$4 sm:$0xff] %v11239_v55 }
  0x5a   : > { %959 = vst [vmem:[#allocation1 + $0x23] ss:$4 sm:$0xff] %v11275_v56  ;;  %v6279_v56 = vld [vmem:[%s7002_s17 + $0x118] sm:$0x3] }
  0x5d   : > { %v7163_v62 = vld.sshfl [vmem:[#allocation1] sm:$0xff pattern:$0x73625140] }
  0x5e   : > { %962 = vst [vmem:[#allocation1] ss:$4 sm:$0xff] %v11273_v59 }
  0x5f   : > { %963 = vst [vmem:[#allocation1 + $0x1] ss:$4 sm:$0xff] %v7154_v58 }
  0x60   : > { %964 = vst [vmem:[#allocation1 + $0x2] ss:$4 sm:$0xff] %v11268_v60 }
  0x61   : > { %v7176_v31 = vld.sshfl [vmem:[#allocation1 + $0x20] sm:$0xff pattern:$0x73625140]  ;;  %965 = vst [vmem:[#allocation1 + $0x3] ss:$4 sm:$0xff] %v11237_v61  ;;  %v11248_v61 = vrot.slane %v7184_v33, 4 }
  0x62   : > { %966 = vst [vmem:[#allocation1 + $0x20] ss:$4 sm:$0xff] %v11238_v63  ;;  %v6267_v63 = vld [vmem:[%s7002_s17 + $0xb8] sm:$0x3] }
  0x63   : > { %967 = vst [vmem:[#allocation1 + $0x21] ss:$4 sm:$0xff] %v6264_v9  ;;  %v11247_v9 = vrot.slane %v7184_v33, 6 }
  0x64   : > { %968 = vst [vmem:[#allocation1 + $0x22] ss:$4 sm:$0xff] %v7171_v20 }
  0x65   : > { %969 = vst [vmem:[#allocation1 + $0x23] ss:$4 sm:$0xff] %v11267_v30 }
  0x68   : > { %v7191_v53 = vld.sshfl [vmem:[#allocation1] sm:$0xff pattern:$0x73625140] }
  0x69   : > { %972 = vst [vmem:[#allocation1] ss:$4 sm:$0xff] %v11266_v34  ;;  %v6276_v34 = vld [vmem:[%s7002_s17 + $0x100] sm:$0x3] }
  0x6a   : > { %973 = vst [vmem:[#allocation1 + $0x1] ss:$4 sm:$0xff] %v11264_v35 }
  0x6b   : > { %974 = vst [vmem:[#allocation1 + $0x2] ss:$4 sm:$0xff] %v7184_v33 }
  0x6c   : > { %v7201_v55 = vld.sshfl [vmem:[#allocation1 + $0x20] sm:$0xff pattern:$0x73625140]  ;;  %975 = vst [vmem:[#allocation1 + $0x3] ss:$4 sm:$0xff] %v11244_v43  ;;  %v6269_v43 = vld [vmem:[%s7002_s17 + $0xc8] sm:$0xff] }
  0x6d   : > { %976 = vst [vmem:[#allocation1 + $0x20] ss:$4 sm:$0xff] %v11248_v61  ;;  %v630_v21 = vrot.slane %v6269_v43, 2 }
  0x6e   : > { %977 = vst [vmem:[#allocation1 + $0x21] ss:$4 sm:$0xff] %v11247_v9  ;;  %v631_v9 = vrot.slane %v6269_v43, 4 }
  0x6f   : > { %978 = vst [vmem:[#allocation1 + $0x22] ss:$4 sm:$0xff] %v6267_v63  ;;  %v632_v63 = vrot.slane %v6269_v43, 6 }
  0x70   : > { %979 = vst [vmem:[#allocation1 + $0x23] ss:$4 sm:$0xff] %v7206_v51 }
  0x73   : > { %v7217_v23 = vld.sshfl [vmem:[#allocation1] sm:$0xff pattern:$0x73625140] }
  0x74   : > { %982 = vst [vmem:[#allocation1] ss:$4 sm:$0xff] %v11260_v45 }
  0x75   : > { %983 = vst [vmem:[#allocation1 + $0x1] ss:$4 sm:$0xff] %v11258_v44 }
  0x76   : > { %984 = vst [vmem:[#allocation1 + $0x2] ss:$4 sm:$0xff] %v11255_v24 }
  0x77   : > { %v7225_v61 = vld.sshfl [vmem:[#allocation1 + $0x20] sm:$0xff pattern:$0x73625140]  ;;  %985 = vst [vmem:[#allocation1 + $0x3] ss:$4 sm:$0xff] %v6269_v43  ;;  %v11263_v43 = vrot.slane %v7233_v6, 6 }
  0x78   : > { %986 = vst [vmem:[#allocation1 + $0x20] ss:$4 sm:$0xff] %v630_v21  ;;  %v11261_v21 = vrot.slane %v7233_v6, 2 }
  0x79   : > { %987 = vst [vmem:[#allocation1 + $0x21] ss:$4 sm:$0xff] %v631_v9 }
  0x7a   : > { %988 = vst [vmem:[#allocation1 + $0x22] ss:$4 sm:$0xff] %v632_v63  ;;  %v7255_v63 = vld [vmem:[%s7002_s17 + $0xf0] sm:$0xff] }
  0x7b   : > { %989 = vst [vmem:[#allocation1 + $0x23] ss:$4 sm:$0xff] %v6270_v16  ;;  %v11262_v16 = vrot.slane %v7233_v6, 4  ;;  %v11271_v44 = vrot.slane %v7255_v63, 4  ;;  %v11269_v45 = vrot.slane %v7255_v63, 6 }
  0x7e   : > { %v7237_v24 = vld.sshfl [vmem:[#allocation1] sm:$0xff pattern:$0x73625140] }
  0x7f   : > { %992 = vst [vmem:[#allocation1] ss:$4 sm:$0xff] %v7229_v13 }
  0x80   : > { %993 = vst [vmem:[#allocation1 + $0x1] ss:$4 sm:$0xff] %v11257_v11  ;;  %v11265_v11 = vrot.slane %v7255_v63, 2 }
  0x81   : > { %994 = vst [vmem:[#allocation1 + $0x2] ss:$4 sm:$0xff] %v11256_v5  ;;  %v6273_v5 = vld [vmem:[%s7002_s17 + $0xe8] sm:$0x3] }
  0x82   : > { %v7247_v9 = vld.sshfl [vmem:[#allocation1 + $0x20] sm:$0xff pattern:$0x73625140]  ;;  %995 = vst [vmem:[#allocation1 + $0x3] ss:$4 sm:$0xff] %v11259_v4 }
  0x83   : > { %996 = vst [vmem:[#allocation1 + $0x20] ss:$4 sm:$0xff] %v7233_v6 }
  0x84   : > { %997 = vst [vmem:[#allocation1 + $0x21] ss:$4 sm:$0xff] %v11261_v21  ;;  %v7268_v21 = vld [vmem:[%s7002_s17 + $0xf8] sm:$0xff] }
  0x85   : > { %998 = vst [vmem:[#allocation1 + $0x22] ss:$4 sm:$0xff] %v11262_v16  ;;  %v11270_v16 = vrot.slane %v7268_v21, 2 }
  0x86   : > { %999 = vst [vmem:[#allocation1 + $0x23] ss:$4 sm:$0xff] %v11263_v43  ;;  %v11272_v43 = vrot.slane %v7268_v21, 4 }
  0x89   : > { %v7264_v4 = vld.sshfl [vmem:[#allocation1] sm:$0xff pattern:$0x73625140] }
  0x8a   : > { %1002 = vst [vmem:[#allocation1] ss:$4 sm:$0xff] %v6273_v5  ;;  %v7285_v5 = vld [vmem:[%s7002_s17 + $0x108] sm:$0xff] }
  0x8b   : > { %1003 = vst [vmem:[#allocation1 + $0x1] ss:$4 sm:$0xff] %v7255_v63  ;;  %v11277_v30 = vrot.slane %v7285_v5, 2 }
  0x8c   : > { %1004 = vst [vmem:[#allocation1 + $0x2] ss:$4 sm:$0xff] %v11265_v11  ;;  %v11274_v11 = vrot.slane %v7268_v21, 6 }
  0x8d   : > { %v7275_v35 = vld.sshfl [vmem:[#allocation1 + $0x20] sm:$0xff pattern:$0x73625140]  ;;  %1005 = vst [vmem:[#allocation1 + $0x3] ss:$4 sm:$0xff] %v11271_v44  ;;  %v7299_v44 = vld [vmem:[%s7002_s17 + $0x110] sm:$0xff] }
  0x8e   : > { %1006 = vst [vmem:[#allocation1 + $0x20] ss:$4 sm:$0xff] %v11269_v45  ;;  %v11279_v45 = vrot.slane %v7285_v5, 4 }
  0x8f   : > { %1007 = vst [vmem:[#allocation1 + $0x21] ss:$4 sm:$0xff] %v7268_v21 }
  0x90   : > { %1008 = vst [vmem:[#allocation1 + $0x22] ss:$4 sm:$0xff] %v11270_v16  ;;  %v11278_v16 = vrot.slane %v7285_v5, 6 }
  0x91   : > { %1009 = vst [vmem:[#allocation1 + $0x23] ss:$4 sm:$0xff] %v11272_v43  ;;  %v11280_v43 = vrot.slane %v7299_v44, 2 }
  0x94   : > { %v7292_v60 = vld.sshfl [vmem:[#allocation1] sm:$0xff pattern:$0x73625140] }
  0x95   : > { %1012 = vst [vmem:[#allocation1] ss:$4 sm:$0xff] %v11274_v11  ;;  %v11284_v11 = vrot.slane %v7299_v44, 6 }
  0x96   : > { %1013 = vst [vmem:[#allocation1 + $0x1] ss:$4 sm:$0xff] %v6276_v34  ;;  %v11283_v34 = vrot.slane %v7299_v44, 4 }
  0x97   : > { %1014 = vst [vmem:[#allocation1 + $0x2] ss:$4 sm:$0xff] %v7285_v5 }
  0x98   : > { %v7303_v59 = vld.sshfl [vmem:[#allocation1 + $0x20] sm:$0xff pattern:$0x73625140]  ;;  %1015 = vst [vmem:[#allocation1 + $0x3] ss:$4 sm:$0xff] %v11277_v30 }
  0x99   : > { %1016 = vst [vmem:[#allocation1 + $0x20] ss:$4 sm:$0xff] %v11279_v45  ;;  %v7320_v30 = vld [vmem:[%s7002_s17 + $0x120] sm:$0xff] }
  0x9a   : > { %1017 = vst [vmem:[#allocation1 + $0x21] ss:$4 sm:$0xff] %v11278_v16  ;;  %v7327_v16 = vld [vmem:[%s7002_s17 + $0x128] sm:$0xff] }
  0x9b   : > { %1018 = vst [vmem:[#allocation1 + $0x22] ss:$4 sm:$0xff] %v7299_v44  ;;  %v11290_v49 = vrot.slane %v7327_v16, 4  ;;  %v11289_v46 = vrot.slane %v7327_v16, 6 }
  0x9c   : > { %1019 = vst [vmem:[#allocation1 + $0x23] ss:$4 sm:$0xff] %v11280_v43  ;;  %v11291_v43 = vrot.slane %v7327_v16, 2 }
  0x9f   : > { %v7317_v50 = vld.sshfl [vmem:[#allocation1] sm:$0xff pattern:$0x73625140] }
  0xa0   : > { %1022 = vst [vmem:[#allocation1] ss:$4 sm:$0xff] %v11283_v34 }
  0xa1   : > { %1023 = vst [vmem:[#allocation1 + $0x1] ss:$4 sm:$0xff] %v11284_v11  ;;  %v6282_v11 = vld [vmem:[%s7002_s17 + $0x130] sm:$0x3] }
  0xa2   : > { %1024 = vst [vmem:[#allocation1 + $0x2] ss:$4 sm:$0xff] %v6279_v56  ;;  %v7346_v56 = vld [vmem:[%s7002_s17 + $0x140] sm:$0xff] }
  0xa3   : > { %v7329_v45 = vld.sshfl [vmem:[#allocation1 + $0x20] sm:$0xff pattern:$0x73625140]  ;;  %1025 = vst [vmem:[#allocation1 + $0x3] ss:$4 sm:$0xff] %v7320_v30  ;;  %v11296_v41 = vrot.slane %v7346_v56, 2 }
  0xa4   : > { %1029 = vst [vmem:[#allocation1 + $0x23] ss:$4 sm:$0xff] %v7327_v16  ;;  %v11295_v39 = vrot.slane %v7346_v56, 4  ;;  %v11294_v38 = vrot.slane %v7346_v56, 6 }
  0xaa   : > { %v7336_v34 = vld.sshfl [vmem:[#allocation1] sm:$0xff pattern:$0x73625140] }
  0xab   : > { %11412 = vst [vmem:[#allocation8_spill] sm:$0xff] %v7336_v34 }
  0xac   : > { %1032 = vst [vmem:[#allocation1] ss:$4 sm:$0xff] %v11291_v43 }
  0xad   : > { %1033 = vst [vmem:[#allocation1 + $0x1] ss:$4 sm:$0xff] %v11290_v49 }
  0xae   : > { %1034 = vst [vmem:[#allocation1 + $0x2] ss:$4 sm:$0xff] %v11289_v46  ;;  %v7364_v46 = vld [vmem:[%s7002_s17 + $0x158] sm:$0xff] }
  0xaf   : > { %1035 = vst [vmem:[#allocation1 + $0x3] ss:$4 sm:$0xff] %v6282_v11  ;;  %v7361_v11 = vld [vmem:[%s7002_s17 + $0x150] sm:$0xff]  ;;  %v11301_v43 = vrot.slane %v7364_v46, 2  ;;  %v11300_v28 = vrot.slane %v7364_v46, 4 }
  0xb0   : > { %v11299_v49 = vrot.slane %v7361_v11, 6 }
  0xb6   : > { %v7351_v29 = vld.sshfl [vmem:[#allocation1] sm:$0xff pattern:$0x73625140] }
  0xb7   : > { %11413 = vst [vmem:[#allocation9_spill] sm:$0xff] %v7351_v29  ;;  %v278_v29 = vld [vmem:[%s7002_s17] sm:$0xff] }
  0xb8   : > { %1042 = vst [vmem:[#allocation1] ss:$4 sm:$0xff] %v7346_v56  ;;  %v380_v34 = vrot.slane %v278_v29, 2 }
  0xb9   : > { %1043 = vst [vmem:[#allocation1 + $0x1] ss:$4 sm:$0xff] %v11296_v41 }
  0xba   : > { %1044 = vst [vmem:[#allocation1 + $0x2] ss:$4 sm:$0xff] %v11295_v39  ;;  %v7382_v39 = vld [vmem:[%s7002_s17 + $0x170] sm:$0xff] }
  0xbb   : > { %1045 = vst [vmem:[#allocation1 + $0x3] ss:$4 sm:$0xff] %v11294_v38  ;;  %v7379_v38 = vld [vmem:[%s7002_s17 + $0x168] sm:$0xff]  ;;  %v11306_v17 = vrot.slane %v7382_v39, 2 }
  0xbc   : > { %v11305_v41 = vrot.slane %v7379_v38, 4  ;;  %v11307_v19 = vrot.slane %v7379_v38, 6 }
  0xc2   : > { %v7369_v26 = vld.sshfl [vmem:[#allocation1] sm:$0xff pattern:$0x73625140] }
  0xc3   : > { %11414 = vst [vmem:[#allocation10_spill] sm:$0xff] %v7369_v26 }
  0xc4   : > { %1052 = vst [vmem:[#allocation1] ss:$4 sm:$0xff] %v11299_v49 }
  0xc5   : > { %1053 = vst [vmem:[#allocation1 + $0x1] ss:$4 sm:$0xff] %v7364_v46 }
  0xc6   : > { %1054 = vst [vmem:[#allocation1 + $0x2] ss:$4 sm:$0xff] %v11301_v43 }
  0xc7   : > { %1055 = vst [vmem:[#allocation1 + $0x3] ss:$4 sm:$0xff] %v11300_v28  ;;  %v7397_v28 = vld [vmem:[%s7002_s17 + $0x180] sm:$0xff] }
  0xc8   : > { %v11311_v43 = vrot.slane %v7397_v28, 2  ;;  %v11314_v10 = vrot.slane %v7397_v28, 4  ;;  %v11313_v7 = vrot.slane %v7397_v28, 6 }
  0xce   : > { %v7387_v49 = vld.sshfl [vmem:[#allocation1] sm:$0xff pattern:$0x73625140] }
  0xcf   : > { %11415 = vst [vmem:[#allocation11_spill] sm:$0xff] %v7387_v49 }
  0xd0   : > { %1062 = vst [vmem:[#allocation1] ss:$4 sm:$0xff] %v11305_v41  ;;  %v7405_v41 = vld [vmem:[%s7002_s17 + $0x188] sm:$0xff] }
  0xd1   : > { %1063 = vst [vmem:[#allocation1 + $0x1] ss:$4 sm:$0xff] %v11307_v19 }
  0xd2   : > { %1064 = vst [vmem:[#allocation1 + $0x2] ss:$4 sm:$0xff] %v7382_v39 }
  0xd3   : > { %1065 = vst [vmem:[#allocation1 + $0x3] ss:$4 sm:$0xff] %v11306_v17  ;;  %v6295_v17 = vld [vmem:[%s7002_s17 + $0x198] sm:$0xff] }
  0xd4   : > { %v681_v19 = vrot.slane %v6295_v17, 2  ;;  %v682_v1 = vrot.slane %v6295_v17, 4  ;;  %v683_v49 = vrot.slane %v6295_v17, 6 }
  0xda   : > { %v7402_v3 = vld.sshfl [vmem:[#allocation1] sm:$0xff pattern:$0x73625140] }
  0xdb   : > { %11416 = vst [vmem:[#allocation12_spill] sm:$0xff] %v7402_v3 }
  0xdc   : > { %1072 = vst [vmem:[#allocation1] ss:$4 sm:$0xff] %v11311_v43  ;;  %v6297_v43 = vld [vmem:[%s7002_s17 + $0x1a8] sm:$0x3] }
  0xdd   : > { %1073 = vst [vmem:[#allocation1 + $0x1] ss:$4 sm:$0xff] %v11314_v10 }
  0xde   : > { %1074 = vst [vmem:[#allocation1 + $0x2] ss:$4 sm:$0xff] %v11313_v7  ;;  %v6349_v7 = vld [vmem:[%s11230_s1 + $0x8] sm:$0x77] }
  0xdf   : > { %1075 = vst [vmem:[#allocation1 + $0x3] ss:$4 sm:$0xff] %v7405_v41 }
  0xe6   : > { %v7415_v26 = vld.sshfl [vmem:[#allocation1] sm:$0xff pattern:$0x73625140] }
  0xe7   : > { %1082 = vst [vmem:[#allocation1] ss:$4 sm:$0xff] %v6295_v17  ;;  %v381_v17 = vrot.slane %v278_v29, 4 }
  0xe8   : > { %1083 = vst [vmem:[#allocation1 + $0x1] ss:$4 sm:$0xff] %v681_v19  ;;  %v382_v19 = vrot.slane %v278_v29, 6 }
  0xe9   : > { %1084 = vst [vmem:[#allocation1 + $0x2] ss:$4 sm:$0xff] %v682_v1 }
  0xea   : > { %1085 = vst [vmem:[#allocation1 + $0x3] ss:$4 sm:$0xff] %v683_v49 }
  0xf1   : > { %v7418_v3 = vld.sshfl [vmem:[#allocation1] sm:$0xff pattern:$0x73625140] }
  0xf2   : > { %1092 = vst [vmem:[#allocation1] ss:$4 sm:$0xff] %v6297_v43 }
  0xf9   : > { %v7423_v10 = vld.sshfl [vmem:[#allocation1] sm:$0xff pattern:$0x73625140] }
  0xfa   : > { %1095 = vst [vmem:[#allocation1] ss:$2 sm:$0xff] %v6349_v7  ;;  %v280_v7 = vld [vmem:[%s7002_s17 + $0x10] sm:$0x3] }
 0x101   : > { %v1096_v1 = vld.sshfl [vmem:[#allocation1] sm:$0xff pattern:$0x75316420]  ;;  %v1097_v49 = vld.sshfl [vmem:[#allocation1 + $0x8] sm:$0xff pattern:$0x75316420] }
 0x102   : > { %6350 = vmatpush.msk.msra.mxu0 %vm1177_vm0, %v1096_v1  ;;  %6390 = vmatpush.msk.msra.mxu1 %vm1177_vm0, %v1097_v49  ;;  %1446 = vst [vmem:[#allocation1] ss:$4 sm:$0xff] %v278_v29  ;;  %v11417_v29 = vrot.slane %v7005_v0, 2  ;;  %v11421_v49 = vrot.slane %v7040_v14, 4 }
 0x103   : > { %6351 = vmatmul.msk.f32.vlgmr.msra.gmra.mxu0 %vm1098_vm1, %v7036_v12  ;;  %6391 = vmatmul.msk.f32.vlgmr.msra.gmra.mxu1 %vm1098_vm1, %v7036_v12  ;;  %1448 = vst [vmem:[#allocation1 + $0x1] ss:$4 sm:$0xff] %v380_v34  ;;  %v11418_v12 = vrot.slane %v7005_v0, 4  ;;  %v283_v34 = vld [vmem:[%s7002_s17 + $0x28] sm:$0x3] }
 0x104   : > { %1450 = vst [vmem:[#allocation1 + $0x2] ss:$4 sm:$0xff] %v381_v17  ;;  %v11419_v17 = vrot.slane %v7009_v2, 6 }
 0x105   : > { %1452 = vst [vmem:[#allocation1 + $0x3] ss:$4 sm:$0xff] %v382_v19  ;;  %v11420_v19 = vrot.slane %v7031_v8, 2 }
 0x10b   : > { %6352 = vmatmul.msk.f32.gmra.mxu0 %vm1098_vm1, %v7042_v15  ;;  %6392 = vmatmul.msk.f32.gmra.mxu1 %vm1098_vm1, %v7042_v15 }
 0x10c   : > { %v7437_v43 = vld.sshfl [vmem:[#allocation1] sm:$0xff pattern:$0x73625140] }
 0x10d   : > { %1463 = vst [vmem:[#allocation1] ss:$4 sm:$0xff] %v280_v7  ;;  %v11422_v7 = vrot.slane %v7040_v14, 6 }
 0x10e   : > { %1464 = vst [vmem:[#allocation1 + $0x1] ss:$4 sm:$0xff] %v7005_v0 }
 0x10f   : > { %1465 = vst [vmem:[#allocation1 + $0x2] ss:$4 sm:$0xff] %v11417_v29  ;;  %v289_v29 = vld [vmem:[%s7002_s17 + $0x58] sm:$0x3] }
 0x110   : > { %1466 = vst [vmem:[#allocation1 + $0x3] ss:$4 sm:$0xff] %v11418_v12  ;;  %v11424_v12 = vrot.slane %v7071_v25, 4 }
 0x113   : > { %6353 = vmatmul.msk.f32.gmra.mxu0 %vm1098_vm1, %v7064_v22  ;;  %6393 = vmatmul.msk.f32.gmra.mxu1 %vm1098_vm1, %v7064_v22  ;;  %v286_v22 = vld [vmem:[%s7002_s17 + $0x40] sm:$0x3] }
 0x117   : > { %v7449_v15 = vld.sshfl [vmem:[#allocation1] sm:$0xff pattern:$0x73625140] }
 0x118   : > { %1473 = vst [vmem:[#allocation1] ss:$4 sm:$0xff] %v11419_v17  ;;  %v11426_v17 = vrot.slane %v7099_v37, 2 }
 0x119   : > { %1474 = vst [vmem:[#allocation1 + $0x1] ss:$4 sm:$0xff] %v283_v34  ;;  %v11425_v34 = vrot.slane %v7071_v25, 6 }
 0x11a   : > { %1475 = vst [vmem:[#allocation1 + $0x2] ss:$4 sm:$0xff] %v7031_v8 }
 0x11b   : > { %6354 = vmatmul.msk.f32.gmra.mxu0 %vm1098_vm1, %v7075_v27  ;;  %6394 = vmatmul.msk.f32.gmra.mxu1 %vm1098_vm1, %v7075_v27  ;;  %1476 = vst [vmem:[#allocation1 + $0x3] ss:$4 sm:$0xff] %v11420_v19  ;;  %v11427_v19 = vrot.slane %v7099_v37, 4 }
 0x122   : > { %v7461_v1 = vld.sshfl [vmem:[#allocation1] sm:$0xff pattern:$0x73625140] }
 0x123   : > { %6355 = vmatmul.msk.f32.gmra.mxu0 %vm1098_vm1, %v7090_v32  ;;  %6395 = vmatmul.msk.f32.gmra.mxu1 %vm1098_vm1, %v7090_v32  ;;  %1483 = vst [vmem:[#allocation1] ss:$4 sm:$0xff] %v11421_v49  ;;  %v11423_v32 = vrot.slane %v7071_v25, 2  ;;  %v11429_v49 = vrot.slane %v7105_v40, 6 }
 0x124   : > { %1484 = vst [vmem:[#allocation1 + $0x1] ss:$4 sm:$0xff] %v11422_v7  ;;  %v11431_v7 = vrot.slane %v7124_v48, 4 }
 0x125   : > { %1485 = vst [vmem:[#allocation1 + $0x2] ss:$4 sm:$0xff] %v286_v22  ;;  %v11428_v22 = vrot.slane %v7099_v37, 6 }
 0x126   : > { %1486 = vst [vmem:[#allocation1 + $0x3] ss:$4 sm:$0xff] %v7057_v18 }
 0x12b   : > { %6356 = vmatmul.msk.f32.gmra.mxu0 %vm1098_vm1, %v7096_v36  ;;  %6396 = vmatmul.msk.f32.gmra.mxu1 %vm1098_vm1, %v7096_v36 }
 0x12d   : > { %v7476_v27 = vld.sshfl [vmem:[#allocation1] sm:$0xff pattern:$0x73625140] }
 0x12e   : > { %1493 = vst [vmem:[#allocation1] ss:$4 sm:$0xff] %v11423_v32  ;;  %v651_v32 = vrot.slane %v7320_v30, 2 }
 0x12f   : > { %1494 = vst [vmem:[#allocation1 + $0x1] ss:$4 sm:$0xff] %v11424_v12  ;;  %v652_v12 = vrot.slane %v7320_v30, 4 }
 0x130   : > { %1495 = vst [vmem:[#allocation1 + $0x2] ss:$4 sm:$0xff] %v11425_v34  ;;  %v653_v34 = vrot.slane %v7320_v30, 6 }
 0x131   : > { %1496 = vst [vmem:[#allocation1 + $0x3] ss:$4 sm:$0xff] %v289_v29  ;;  %v11433_v29 = vrot.slane %v7140_v54, 6 }
 0x132   : > { %1026 = vst [vmem:[#allocation1 + $0x20] ss:$4 sm:$0xff] %v651_v32 }
 0x133   : > { %6357 = vmatmul.msk.f32.gmra.mxu0 %vm1098_vm1, %v7108_v42  ;;  %6397 = vmatmul.msk.f32.gmra.mxu1 %vm1098_vm1, %v7108_v42  ;;  %1027 = vst [vmem:[#allocation1 + $0x21] ss:$4 sm:$0xff] %v652_v12  ;;  %v11322_v12 = vrot.slane %v7361_v11, 4 }
 0x134   : > { %1028 = vst [vmem:[#allocation1 + $0x22] ss:$4 sm:$0xff] %v653_v34 }
 0x138   : > { %v7489_v36 = vld.sshfl [vmem:[#allocation1] sm:$0xff pattern:$0x73625140] }
 0x139   : > { %1503 = vst [vmem:[#allocation1] ss:$4 sm:$0xff] %v7099_v37 }
 0x13a   : > { %1504 = vst [vmem:[#allocation1 + $0x1] ss:$4 sm:$0xff] %v11426_v17  ;;  %v11434_v17 = vrot.slane %v7154_v58, 2 }
 0x13b   : > { %6358 = vmatmul.msk.f32.gmra.mxu0 %vm1098_vm1, %v7120_v47  ;;  %6398 = vmatmul.msk.f32.gmra.mxu1 %vm1098_vm1, %v7120_v47  ;;  %1505 = vst [vmem:[#allocation1 + $0x2] ss:$4 sm:$0xff] %v11427_v19  ;;  %v11430_v47 = vrot.slane %v7124_v48, 2 }
 0x13c   : > { %1506 = vst [vmem:[#allocation1 + $0x3] ss:$4 sm:$0xff] %v11428_v22  ;;  %v11435_v22 = vrot.slane %v7171_v20, 2 }
 0x143   : > { %6359 = vmatmul.msk.f32.gmra.mxu0 %vm1098_vm1, %v7135_v52  ;;  %6399 = vmatmul.msk.f32.gmra.mxu1 %vm1098_vm1, %v7135_v52  ;;  %v7506_v42 = vld.sshfl [vmem:[#allocation1] sm:$0xff pattern:$0x73625140]  ;;  %v11432_v52 = vrot.slane %v7140_v54, 4 }
 0x144   : > { %1513 = vst [vmem:[#allocation1] ss:$4 sm:$0xff] %v11429_v49  ;;  %v11436_v49 = vrot.slane %v7171_v20, 4 }
 0x145   : > { %1514 = vst [vmem:[#allocation1 + $0x1] ss:$4 sm:$0xff] %v7124_v48 }
 0x146   : > { %1515 = vst [vmem:[#allocation1 + $0x2] ss:$4 sm:$0xff] %v11430_v47  ;;  %v7554_v47 = vld.sshfl [vmem:[#allocation1 + $0x20] sm:$0xff pattern:$0x73625140] }
 0x147   : > { %1516 = vst [vmem:[#allocation1 + $0x3] ss:$4 sm:$0xff] %v11431_v7 }
 0x14b   : > { %6360 = vmatmul.msk.f32.gmra.mxu0 %vm1098_vm1, %v7148_v57  ;;  %6400 = vmatmul.msk.f32.gmra.mxu1 %vm1098_vm1, %v7148_v57  ;;  %v7536_v57 = vld [vmem:[%s7002_s17 + $0x138] sm:$0xff] }
 0x14c   : > { %v7541_v30 = vrot.slane %v7536_v57, 2  ;;  %v7557_v7 = vrot.slane %v7536_v57, 6  ;;  %1036 = vst [vmem:[#allocation1 + $0x20] ss:$4 sm:$0xff] %v7536_v57 }
 0x14e   : > { %v7519_v37 = vld.sshfl [vmem:[#allocation1] sm:$0xff pattern:$0x73625140]  ;;  %11437 = vst [vmem:[#allocation13_spill] sm:$0xff] %v7557_v7 }
 0x14f   : > { %1523 = vst [vmem:[#allocation1] ss:$4 sm:$0xff] %v11432_v52  ;;  %v11438_v52 = vrot.slane %v7171_v20, 6 }
 0x150   : > { %1524 = vst [vmem:[#allocation1 + $0x1] ss:$4 sm:$0xff] %v11433_v29  ;;  %v11320_v29 = vrot.slane %v7361_v11, 2 }
 0x151   : > { %1525 = vst [vmem:[#allocation1 + $0x2] ss:$4 sm:$0xff] %v7154_v58 }
 0x152   : > { %1526 = vst [vmem:[#allocation1 + $0x3] ss:$4 sm:$0xff] %v11434_v17  ;;  %v11440_v17 = vrot.slane %v7206_v51, 4 }
 0x153   : > { %6361 = vmatmul.msk.f32.gmra.mxu0 %vm1098_vm1, %v7163_v62  ;;  %6401 = vmatmul.msk.f32.gmra.mxu1 %vm1098_vm1, %v7163_v62  ;;  %v7550_v62 = vrot.slane %v7536_v57, 4  ;;  %1037 = vst [vmem:[#allocation1 + $0x21] ss:$4 sm:$0xff] %v7541_v30 }
 0x154   : > { %1039 = vst [vmem:[#allocation1 + $0x23] ss:$4 sm:$0xff] %v7557_v7 }
 0x155   : > { %1038 = vst [vmem:[#allocation1 + $0x22] ss:$4 sm:$0xff] %v7550_v62 }
 0x159   : > { %v7538_v19 = vld.sshfl [vmem:[#allocation1] sm:$0xff pattern:$0x73625140] }
 0x15a   : > { %1533 = vst [vmem:[#allocation1] ss:$4 sm:$0xff] %v11435_v22  ;;  %v11441_v22 = vrot.slane %v7206_v51, 6 }
 0x15b   : > { %6362 = vmatmul.msk.f32.gmra.mxu0 %vm1098_vm1, %v7176_v31  ;;  %6402 = vmatmul.msk.f32.gmra.mxu1 %vm1098_vm1, %v7176_v31  ;;  %1534 = vst [vmem:[#allocation1 + $0x1] ss:$4 sm:$0xff] %v11436_v49  ;;  %v6285_v31 = vld [vmem:[%s7002_s17 + $0x148] sm:$0x3]  ;;  %v11317_v49 = vrot.slane %v7364_v46, 6 }
 0x15c   : > { %1535 = vst [vmem:[#allocation1 + $0x2] ss:$4 sm:$0xff] %v11438_v52  ;;  %v7572_v32 = vld.sshfl [vmem:[#allocation1 + $0x20] sm:$0xff pattern:$0x73625140] }
 0x15d   : > { %1536 = vst [vmem:[#allocation1 + $0x3] ss:$4 sm:$0xff] %v7184_v33 }
 0x15e   : > { %1047 = vst [vmem:[#allocation1 + $0x21] ss:$4 sm:$0xff] %v7361_v11 }
 0x15f   : > { %1046 = vst [vmem:[#allocation1 + $0x20] ss:$4 sm:$0xff] %v6285_v31  ;;  %v6288_v31 = vld [vmem:[%s7002_s17 + $0x160] sm:$0x3] }
 0x160   : > { %1048 = vst [vmem:[#allocation1 + $0x22] ss:$4 sm:$0xff] %v11320_v29  ;;  %v680_v29 = vrot.slane %v7405_v41, 6 }
 0x161   : > { %1049 = vst [vmem:[#allocation1 + $0x23] ss:$4 sm:$0xff] %v11322_v12  ;;  %v7655_v12 = vld [vmem:[%s7002_s17 + $0x1a0] sm:$0xff] }
 0x162   : > { %11446 = vst [vmem:[#allocation14_spill] sm:$0xff] %v7655_v12 }
 0x163   : > { %6363 = vmatmul.msk.f32.gmra.mxu0 %vm1098_vm1, %v7191_v53  ;;  %6403 = vmatmul.msk.f32.gmra.mxu1 %vm1098_vm1, %v7191_v53  ;;  %v11439_v53 = vrot.slane %v7206_v51, 2 }
 0x164   : > { %v7576_v34 = vld.sshfl [vmem:[#allocation1] sm:$0xff pattern:$0x73625140] }
 0x165   : > { %1543 = vst [vmem:[#allocation1] ss:$4 sm:$0xff] %v7206_v51  ;;  %v304_v51 = vld [vmem:[%s7002_s17 + $0xd0] sm:$0x3] }
 0x166   : > { %1544 = vst [vmem:[#allocation1 + $0x1] ss:$4 sm:$0xff] %v11439_v53 }
 0x167   : > { %1545 = vst [vmem:[#allocation1 + $0x2] ss:$4 sm:$0xff] %v11440_v17  ;;  %v11442_v17 = vrot.slane %v7229_v13, 2 }
 0x168   : > { %1546 = vst [vmem:[#allocation1 + $0x3] ss:$4 sm:$0xff] %v11441_v22  ;;  %v7594_v52 = vld.sshfl [vmem:[#allocation1 + $0x20] sm:$0xff pattern:$0x73625140]  ;;  %v11443_v22 = vrot.slane %v7229_v13, 4 }
 0x169   : > { %1058 = vst [vmem:[#allocation1 + $0x22] ss:$4 sm:$0xff] %v7379_v38 }
 0x16a   : > { %1056 = vst [vmem:[#allocation1 + $0x20] ss:$4 sm:$0xff] %v11317_v49 }
 0x16b   : > { %6364 = vmatmul.msk.f32.gmra.mxu0 %vm1098_vm1, %v7201_v55  ;;  %6404 = vmatmul.msk.f32.gmra.mxu1 %vm1098_vm1, %v7201_v55  ;;  %v11321_v55 = vrot.slane %v7379_v38, 2  ;;  %1057 = vst [vmem:[#allocation1 + $0x21] ss:$4 sm:$0xff] %v6288_v31  ;;  %v11319_v31 = vrot.slane %v7382_v39, 6 }
 0x16d   : > { %1059 = vst [vmem:[#allocation1 + $0x23] ss:$4 sm:$0xff] %v11321_v55 }
 0x16f   : > { %v7608_v53 = vld.sshfl [vmem:[#allocation1] sm:$0xff pattern:$0x73625140] }
 0x170   : > { %1553 = vst [vmem:[#allocation1] ss:$4 sm:$0xff] %v304_v51  ;;  %v6291_v51 = vld [vmem:[%s7002_s17 + $0x178] sm:$0x3] }
 0x171   : > { %1554 = vst [vmem:[#allocation1 + $0x1] ss:$4 sm:$0xff] %v7229_v13 }
 0x172   : > { %1555 = vst [vmem:[#allocation1 + $0x2] ss:$4 sm:$0xff] %v11442_v17 }
 0x173   : > { %6365 = vmatmul.msk.f32.gmra.mxu0 %vm1098_vm1, %v7217_v23  ;;  %6405 = vmatmul.msk.f32.gmra.mxu1 %vm1098_vm1, %v7217_v23  ;;  %v11318_v23 = vrot.slane %v7382_v39, 4  ;;  %1556 = vst [vmem:[#allocation1 + $0x3] ss:$4 sm:$0xff] %v11443_v22  ;;  %v11444_v22 = vrot.slane %v7233_v6, 6 }
 0x174   : > { %v7621_v49 = vld.sshfl [vmem:[#allocation1 + $0x20] sm:$0xff pattern:$0x73625140] }
 0x175   : > { %1069 = vst [vmem:[#allocation1 + $0x23] ss:$4 sm:$0xff] %v7397_v28 }
 0x176   : > { %1066 = vst [vmem:[#allocation1 + $0x20] ss:$4 sm:$0xff] %v11318_v23  ;;  %v678_v23 = vrot.slane %v7405_v41, 2 }
 0x177   : > { %1067 = vst [vmem:[#allocation1 + $0x21] ss:$4 sm:$0xff] %v11319_v31  ;;  %v11445_v31 = vrot.slane %v7255_v63, 2 }
 0x178   : > { %1068 = vst [vmem:[#allocation1 + $0x22] ss:$4 sm:$0xff] %v6291_v51  ;;  %v679_v51 = vrot.slane %v7405_v41, 4  ;;  %v11447_v41 = vrot.slane %v7268_v21, 4 }
 0x17a   : > { %v7630_v17 = vld.sshfl [vmem:[#allocation1] sm:$0xff pattern:$0x73625140] }
 0x17b   : > { %6366 = vmatmul.msk.f32.gmra.mxu0 %vm1098_vm1, %v7225_v61  ;;  %6406 = vmatmul.msk.f32.gmra.mxu1 %vm1098_vm1, %v7225_v61  ;;  %v307_v61 = vld [vmem:[%s7002_s17 + $0xe8] sm:$0x3]  ;;  %1563 = vst [vmem:[#allocation1] ss:$4 sm:$0xff] %v11444_v22 }
 0x17c   : > { %1564 = vst [vmem:[#allocation1 + $0x1] ss:$4 sm:$0xff] %v307_v61  ;;  %v310_v61 = vld [vmem:[%s7002_s17 + $0x100] sm:$0x3] }
 0x17d   : > { %1565 = vst [vmem:[#allocation1 + $0x2] ss:$4 sm:$0xff] %v7255_v63 }
 0x17e   : > { %1566 = vst [vmem:[#allocation1 + $0x3] ss:$4 sm:$0xff] %v11445_v31  ;;  %v11325_v31 = vrot.slane %v7655_v12, 2 }
 0x17f   : > { %v7644_v55 = vld.sshfl [vmem:[#allocation1 + $0x20] sm:$0xff pattern:$0x73625140] }
 0x180   : > { %1076 = vst [vmem:[#allocation1 + $0x20] ss:$4 sm:$0xff] %v678_v23  ;;  %v11448_v23 = vrot.slane %v7268_v21, 6 }
 0x181   : > { %1077 = vst [vmem:[#allocation1 + $0x21] ss:$4 sm:$0xff] %v679_v51  ;;  %v11323_v51 = vrot.slane %v7655_v12, 6 }
 0x182   : > { %1078 = vst [vmem:[#allocation1 + $0x22] ss:$4 sm:$0xff] %v680_v29 }
 0x183   : > { %6367 = vmatmul.msk.f32.gmra.mxu0 %vm1098_vm1, %v7237_v24  ;;  %6407 = vmatmul.msk.f32.gmra.mxu1 %vm1098_vm1, %v7237_v24  ;;  %v6294_v24 = vld [vmem:[%s7002_s17 + $0x190] sm:$0x3] }
 0x184   : > { %1079 = vst [vmem:[#allocation1 + $0x23] ss:$4 sm:$0xff] %v6294_v24 }
 0x185   : > { %v7652_v22 = vld.sshfl [vmem:[#allocation1] sm:$0xff pattern:$0x73625140] }
 0x186   : > { %1573 = vst [vmem:[#allocation1] ss:$4 sm:$0xff] %v11447_v41  ;;  %v11450_v41 = vrot.slane %v7299_v44, 4 }
 0x187   : > { %1574 = vst [vmem:[#allocation1 + $0x1] ss:$4 sm:$0xff] %v11448_v23  ;;  %v11451_v23 = vrot.slane %v7299_v44, 6 }
 0x188   : > { %1575 = vst [vmem:[#allocation1 + $0x2] ss:$4 sm:$0xff] %v310_v61  ;;  %v313_v61 = vld [vmem:[%s7002_s17 + $0x118] sm:$0x3] }
 0x189   : > { %1576 = vst [vmem:[#allocation1 + $0x3] ss:$4 sm:$0xff] %v7285_v5 }
 0x18b   : > { %6368 = vmatmul.msk.f32.gmra.mxu0 %vm1098_vm1, %v7247_v9  ;;  %6408 = vmatmul.msk.f32.gmra.mxu1 %vm1098_vm1, %v7247_v9  ;;  %v11324_v9 = vrot.slane %v7655_v12, 4  ;;  %v7668_v29 = vld.sshfl [vmem:[#allocation1 + $0x20] sm:$0xff pattern:$0x73625140] }
 0x18c   : > { %1086 = vst [vmem:[#allocation1 + $0x20] ss:$4 sm:$0xff] %v7655_v12 }
 0x18d   : > { %1087 = vst [vmem:[#allocation1 + $0x21] ss:$4 sm:$0xff] %v11325_v31 }
 0x18e   : > { %1088 = vst [vmem:[#allocation1 + $0x22] ss:$4 sm:$0xff] %v11324_v9  ;;  %v11462_v9 = vrot.slane %v7361_v11, 4 }
 0x18f   : > { %1089 = vst [vmem:[#allocation1 + $0x23] ss:$4 sm:$0xff] %v11323_v51  ;;  %v11453_v51 = vrot.slane %v7327_v16, 4 }
 0x190   : > { %v7678_v24 = vld.sshfl [vmem:[#allocation1] sm:$0xff pattern:$0x73625140] }
 0x191   : > { %1584 = vst [vmem:[#allocation1 + $0x1] ss:$4 sm:$0xff] %v11450_v41  ;;  %v11452_v41 = vrot.slane %v7327_v16, 2 }
 0x192   : > { %1585 = vst [vmem:[#allocation1 + $0x2] ss:$4 sm:$0xff] %v11451_v23 }
 0x193   : > { %6369 = vmatmul.msk.f32.gmra.mxu0 %vm1098_vm1, %v7264_v4  ;;  %6409 = vmatmul.msk.f32.gmra.mxu1 %vm1098_vm1, %v7264_v4  ;;  %v11449_v4 = vrot.slane %v7299_v44, 2  ;;  %1586 = vst [vmem:[#allocation1 + $0x3] ss:$4 sm:$0xff] %v313_v61  ;;  %v11455_v61 = vrot.slane %v7327_v16, 6 }
 0x195   : > { %1583 = vst [vmem:[#allocation1] ss:$4 sm:$0xff] %v11449_v4 }
 0x19b   : > { %6370 = vmatmul.msk.f32.gmra.mxu0 %vm1098_vm1, %v7275_v35  ;;  %6410 = vmatmul.msk.f32.gmra.mxu1 %vm1098_vm1, %v7275_v35  ;;  %v7702_v35 = vpop.f32.mrf.mxu0 }
 0x19c   : > { %v7695_v4 = vld.sshfl [vmem:[#allocation1] sm:$0xff pattern:$0x73625140]  ;;  %11454 = vst [vmem:[#allocation15_spill] sm:$0xff] %v7702_v35 }
 0x19d   : > { %1593 = vst [vmem:[#allocation1] ss:$4 sm:$0xff] %v7327_v16  ;;  %v11459_v16 = vrot.slane %v7346_v56, 4 }
 0x19e   : > { %1594 = vst [vmem:[#allocation1 + $0x1] ss:$4 sm:$0xff] %v11452_v41  ;;  %v11458_v41 = vrot.slane %v7346_v56, 2 }
 0x19f   : > { %1595 = vst [vmem:[#allocation1 + $0x2] ss:$4 sm:$0xff] %v11453_v51 }
 0x1a0   : > { %1596 = vst [vmem:[#allocation1 + $0x3] ss:$4 sm:$0xff] %v11455_v61 }
 0x1a3   : > { %6371 = vmatmul.msk.f32.gmra.mxu0 %vm1098_vm1, %v7292_v60  ;;  %6411 = vmatmul.msk.f32.gmra.mxu1 %vm1098_vm1, %v7292_v60  ;;  %v7710_v60 = vpop.f32.mrf.mxu1  ;;  %v7716_v51 = vpop.f32.mrf.mxu0 }
 0x1a4   : > { %11456 = vst [vmem:[#allocation16_spill] sm:$0xff] %v7710_v60 }
 0x1a5   : > { %11457 = vst [vmem:[#allocation17_spill] sm:$0xff] %v7716_v51 }
 0x1a7   : > { %v7712_v23 = vld.sshfl [vmem:[#allocation1] sm:$0xff pattern:$0x73625140] }
 0x1a8   : > { %1603 = vst [vmem:[#allocation1] ss:$4 sm:$0xff] %v7557_v7  ;;  %v11467_v7 = vld [vmem:[#allocation8_spill] sm:$0xff] }
 0x1a9   : > { %1604 = vst [vmem:[#allocation1 + $0x1] ss:$4 sm:$0xff] %v7346_v56 }
 0x1aa   : > { %1605 = vst [vmem:[#allocation1 + $0x2] ss:$4 sm:$0xff] %v11458_v41  ;;  %v11464_v41 = vrot.slane %v7361_v11, 6 }
 0x1ab   : > { %6372 = vmatmul.msk.f32.gmra.mxu0 %vm1098_vm1, %v7303_v59  ;;  %6412 = vmatmul.msk.f32.gmra.mxu1 %vm1098_vm1, %v7303_v59  ;;  %1606 = vst [vmem:[#allocation1 + $0x3] ss:$4 sm:$0xff] %v11459_v16  ;;  %v7726_v59 = vpop.f32.mrf.mxu1  ;;  %v7732_v31 = vpop.f32.mrf.mxu0 }
 0x1ac   : > { %11460 = vst [vmem:[#allocation18_spill] sm:$0xff] %v7726_v59 }
 0x1ad   : > { %11463 = vst [vmem:[#allocation20_spill] sm:$0xff] %v7732_v31 }
 0x1b2   : > { %v7728_v61 = vld.sshfl [vmem:[#allocation1] sm:$0xff pattern:$0x73625140] }
 0x1b3   : > { %6373 = vmatmul.msk.f32.gmra.mxu0 %vm1098_vm1, %v7317_v50  ;;  %6413 = vmatmul.msk.f32.gmra.mxu1 %vm1098_vm1, %v7317_v50  ;;  %11461 = vst [vmem:[#allocation19_spill] sm:$0xff] %v7728_v61  ;;  %v11465_v50 = vrot.slane %v7364_v46, 2  ;;  %v7743_v16 = vpop.f32.mrf.mxu1  ;;  %v7751_v31 = vpop.f32.mrf.mxu0  ;;  %v7887_v61 = vld [vmem:[%s7002_s17 + $0x80] sm:$0xff] }
 0x1b4   : > { %1613 = vst [vmem:[#allocation1] ss:$4 sm:$0xff] %v11462_v9 }
 0x1b5   : > { %1614 = vst [vmem:[#allocation1 + $0x1] ss:$4 sm:$0xff] %v11464_v41  ;;  %v11471_v41 = vrot.slane %v7379_v38, 4 }
 0x1b6   : > { %1615 = vst [vmem:[#allocation1 + $0x2] ss:$4 sm:$0xff] %v7364_v46 }
 0x1b7   : > { %1616 = vst [vmem:[#allocation1 + $0x3] ss:$4 sm:$0xff] %v11465_v50  ;;  %v11472_v50 = vrot.slane %v7379_v38, 6 }
 0x1b8   : > { %11466 = vst [vmem:[#allocation21_spill] sm:$0xff] %v7743_v16  ;;  %v11478_v16 = vld [vmem:[#allocation9_spill] sm:$0xff] }
 0x1b9   : > { %11469 = vst [vmem:[#allocation22_spill] sm:$0xff] %v7751_v31 }
 0x1bb   : > { %6374 = vmatmul.msk.f32.gmra.mxu0 %vm1098_vm1, %v7329_v45  ;;  %6414 = vmatmul.msk.f32.gmra.mxu1 %vm1098_vm1, %v7329_v45  ;;  %v11470_v45 = vrot.slane %v7379_v38, 2  ;;  %v7766_v31 = vpop.f32.mrf.mxu0 }
 0x1bc   : > { %11474 = vst [vmem:[#allocation24_spill] sm:$0xff] %v7766_v31 }
 0x1be   : > { %v7749_v9 = vld.sshfl [vmem:[#allocation1] sm:$0xff pattern:$0x73625140] }
 0x1bf   : > { %11468 = vst [vmem:[#allocation8_spill] sm:$0xff] %v7749_v9 }
 0x1c0   : > { %1623 = vst [vmem:[#allocation1] ss:$4 sm:$0xff] %v11470_v45 }
 0x1c1   : > { %1624 = vst [vmem:[#allocation1 + $0x1] ss:$4 sm:$0xff] %v11471_v41  ;;  %v11476_v41 = vrot.slane %v7397_v28, 2 }
 0x1c2   : > { %1625 = vst [vmem:[#allocation1 + $0x2] ss:$4 sm:$0xff] %v11472_v50  ;;  %v11477_v50 = vrot.slane %v7397_v28, 4 }
 0x1c3   : > { %6375 = vmatmul.msk.f32.gmra.mxu0 %vm1098_vm1, %v11467_v7  ;;  %6415 = vmatmul.msk.f32.gmra.mxu1 %vm1098_vm1, %v11467_v7  ;;  %1626 = vst [vmem:[#allocation1 + $0x3] ss:$4 sm:$0xff] %v7382_v39  ;;  %v7764_v7 = vpop.f32.mrf.mxu1  ;;  %v7784_v59 = vpop.f32.mrf.mxu0 }
 0x1c4   : > { %11473 = vst [vmem:[#allocation23_spill] sm:$0xff] %v7764_v7  ;;  %v328_v7 = vld [vmem:[%s7002_s17 + $0x190] sm:$0x3] }
 0x1c5   : > { %11481 = vst [vmem:[#allocation26_spill] sm:$0xff] %v7784_v59 }
 0x1ca   : > { %v7768_v45 = vld.sshfl [vmem:[#allocation1] sm:$0xff pattern:$0x73625140] }
 0x1cb   : > { %6376 = vmatmul.msk.f32.gmra.mxu0 %vm1098_vm1, %v7554_v47  ;;  %6416 = vmatmul.msk.f32.gmra.mxu1 %vm1098_vm1, %v7554_v47  ;;  %11475 = vst [vmem:[#allocation25_spill] sm:$0xff] %v7768_v45  ;;  %v11479_v47 = vrot.slane %v7397_v28, 6  ;;  %v7781_v31 = vpop.f32.mrf.mxu1 }
 0x1cc   : > { %1633 = vst [vmem:[#allocation1] ss:$4 sm:$0xff] %v7397_v28  ;;  %v892_v28 = vld [vmem:[%s11230_s1] sm:$0x77] }
 0x1cd   : > { %1634 = vst [vmem:[#allocation1 + $0x1] ss:$4 sm:$0xff] %v11476_v41 }
 0x1ce   : > { %1635 = vst [vmem:[#allocation1 + $0x2] ss:$4 sm:$0xff] %v11477_v50  ;;  %v7799_v50 = vpop.f32.mrf.mxu0 }
 0x1cf   : > { %1636 = vst [vmem:[#allocation1 + $0x3] ss:$4 sm:$0xff] %v11479_v47  ;;  %v11486_v47 = vld [vmem:[#allocation10_spill] sm:$0xff] }
 0x1d0   : > { %11480 = vst [vmem:[#allocation9_spill] sm:$0xff] %v7781_v31 }
 0x1d1   : > { %11485 = vst [vmem:[#allocation30_spill] sm:$0xff] %v7799_v50 }
 0x1d3   : > { %6377 = vmatmul.msk.f32.gmra.mxu0 %vm1098_vm1, %v11478_v16  ;;  %6417 = vmatmul.msk.f32.gmra.mxu1 %vm1098_vm1, %v11478_v16  ;;  %v7792_v41 = vpop.f32.mrf.mxu1 }
 0x1d4   : > { %11483 = vst [vmem:[#allocation28_spill] sm:$0xff] %v7792_v41 }
 0x1d6   : > { %v7786_v51 = vld.sshfl [vmem:[#allocation1] sm:$0xff pattern:$0x73625140] }
 0x1d7   : > { %11482 = vst [vmem:[#allocation27_spill] sm:$0xff] %v7786_v51  ;;  %v6306_v51 = vld [vmem:[%s7002_s17 + $0x70] sm:$0x3] }
 0x1d8   : > { %1643 = vst [vmem:[#allocation1] ss:$4 sm:$0xff] %v328_v7  ;;  %v6298_v7 = vld [vmem:[%s7002_s17 + $0x30] sm:$0xff] }
 0x1d9   : > { %v790_v59 = vrot.slane %v6298_v7, 2  ;;  %v792_v41 = vrot.slane %v6298_v7, 6 }
 0x1db   : > { %6378 = vmatmul.msk.f32.gmra.mxu0 %vm1098_vm1, %v7572_v32  ;;  %6418 = vmatmul.msk.f32.gmra.mxu1 %vm1098_vm1, %v7572_v32  ;;  %v791_v32 = vrot.slane %v6298_v7, 4  ;;  %v7806_v31 = vpop.f32.mrf.mxu1 }
 0x1dc   : > { %11487 = vst [vmem:[#allocation10_spill] sm:$0xff] %v7806_v31  ;;  %v11494_v31 = vld [vmem:[#allocation12_spill] sm:$0xff] }
 0x1df   : > { %v7797_v16 = vld.sshfl [vmem:[#allocation1] sm:$0xff pattern:$0x73625140] }
 0x1e0   : > { %11484 = vst [vmem:[#allocation29_spill] sm:$0xff] %v7797_v16 }
 0x1e1   : > { %1646 = vst [vmem:[#allocation1] ss:$2 sm:$0xff] %v892_v28  ;;  %v7815_v28 = vpop.f32.mrf.mxu0 }
 0x1e2   : > { %11488 = vst [vmem:[#allocation31_spill] sm:$0xff] %v7815_v28 }
 0x1e3   : > { %6379 = vmatmul.msk.f32.gmra.mxu0 %vm1098_vm1, %v11486_v47  ;;  %6419 = vmatmul.msk.f32.gmra.mxu1 %vm1098_vm1, %v11486_v47  ;;  %v7821_v47 = vld [vmem:[%s7002_s17 + $0x48] sm:$0xff] }
 0x1e8   : > { %v1647_v60 = vld.sshfl [vmem:[#allocation1] sm:$0xff pattern:$0x75316420]  ;;  %v1648_v35 = vld.sshfl [vmem:[#allocation1 + $0x8] sm:$0xff pattern:$0x75316420] }
 0x1e9   : > { %6430 = vmatpush.msk.msra.mxu2 %vm1177_vm0, %v1647_v60  ;;  %1997 = vst [vmem:[#allocation1] ss:$4 sm:$0xff] %v6298_v7  ;;  %6470 = vmatpush.msk.msra.mxu3 %vm1177_vm0, %v1648_v35  ;;  %v11489_v60 = vld [vmem:[#allocation11_spill] sm:$0xff]  ;;  %v7826_v7 = vpop.f32.mrf.mxu1  ;;  %v797_v35 = vrot.slane %v7821_v47, 4 }
 0x1ea   : > { %1999 = vst [vmem:[#allocation1 + $0x1] ss:$4 sm:$0xff] %v790_v59  ;;  %6431 = vmatmul.msk.f32.vlgmr.msra.gmra.mxu2 %vm1098_vm1, %v7437_v43  ;;  %6471 = vmatmul.msk.f32.vlgmr.msra.gmra.mxu3 %vm1098_vm1, %v7437_v43  ;;  %v6300_v59 = vld [vmem:[%s7002_s17 + $0x40] sm:$0x3]  ;;  %v7834_v43 = vpop.f32.mrf.mxu0 }
 0x1eb   : > { %6380 = vmatmul.msk.f32.gmra.mxu0 %vm1098_vm1, %v7594_v52  ;;  %6420 = vmatmul.msk.f32.gmra.mxu1 %vm1098_vm1, %v7594_v52  ;;  %2001 = vst [vmem:[#allocation1 + $0x2] ss:$4 sm:$0xff] %v791_v32  ;;  %v796_v52 = vrot.slane %v7821_v47, 2  ;;  %v7838_v32 = vld [vmem:[%s7002_s17 + $0x50] sm:$0xff] }
 0x1ec   : > { %2003 = vst [vmem:[#allocation1 + $0x3] ss:$4 sm:$0xff] %v792_v41 }
 0x1ed   : > { %11490 = vst [vmem:[#allocation11_spill] sm:$0xff] %v7826_v7  ;;  %v801_v7 = vrot.slane %v7838_v32, 6 }
 0x1ee   : > { %11491 = vst [vmem:[#allocation32_spill] sm:$0xff] %v7834_v43  ;;  %v6303_v43 = vld [vmem:[%s7002_s17 + $0x58] sm:$0x3] }
 0x1f2   : > { %v7854_v28 = vpop.f32.mrf.mxu0 }
 0x1f3   : > { %6381 = vmatmul.msk.f32.gmra.mxu0 %vm1098_vm1, %v11489_v60  ;;  %6421 = vmatmul.msk.f32.gmra.mxu1 %vm1098_vm1, %v11489_v60  ;;  %v7832_v41 = vld.sshfl [vmem:[#allocation1] sm:$0xff pattern:$0x73625140]  ;;  %11493 = vst [vmem:[#allocation34_spill] sm:$0xff] %v7854_v28 }
 0x1f4   : > { %2014 = vst [vmem:[#allocation1] ss:$4 sm:$0xff] %v6300_v59  ;;  %v7845_v60 = vld [vmem:[%s7002_s17 + $0x60] sm:$0xff]  ;;  %v7848_v59 = vpop.f32.mrf.mxu1 }
 0x1f5   : > { %2015 = vst [vmem:[#allocation1 + $0x1] ss:$4 sm:$0xff] %v7821_v47 }
 0x1f6   : > { %2016 = vst [vmem:[#allocation1 + $0x2] ss:$4 sm:$0xff] %v796_v52  ;;  %v11330_v52 = vrot.slane %v7845_v60, 2 }
 0x1f7   : > { %2017 = vst [vmem:[#allocation1 + $0x3] ss:$4 sm:$0xff] %v797_v35 }
 0x1f8   : > { %11492 = vst [vmem:[#allocation33_spill] sm:$0xff] %v7848_v59  ;;  %v7866_v59 = vld.sshfl [vmem:[#allocation1 + $0x20] sm:$0xff pattern:$0x73625140] }
 0x1fa   : > { %v7874_v45 = vpop.f32.mrf.mxu0 }
 0x1fb   : > { %6382 = vmatmul.msk.f32.gmra.mxu0 %vm1098_vm1, %v7621_v49  ;;  %6422 = vmatmul.msk.f32.gmra.mxu1 %vm1098_vm1, %v7621_v49  ;;  %v7864_v49 = vld [vmem:[%s7002_s17 + $0x68] sm:$0xff]  ;;  %11496 = vst [vmem:[#allocation35_spill] sm:$0xff] %v7874_v45 }
 0x1fc   : > { %v7868_v50 = vpop.f32.mrf.mxu1  ;;  %v807_v28 = vrot.slane %v7864_v49, 6 }
 0x1fd   : > { %11495 = vst [vmem:[#allocation12_spill] sm:$0xff] %v7868_v50 }
 0x1fe   : > { %v7852_v35 = vld.sshfl [vmem:[#allocation1] sm:$0xff pattern:$0x73625140] }
 0x1ff   : > { %2024 = vst [vmem:[#allocation1] ss:$4 sm:$0xff] %v801_v7  ;;  %v806_v7 = vrot.slane %v7864_v49, 4 }
 0x200   : > { %2025 = vst [vmem:[#allocation1 + $0x1] ss:$4 sm:$0xff] %v6303_v43  ;;  %v279_v43 = vld [vmem:[%s7002_s17 + $0x8] sm:$0xff] }
 0x201   : > { %2026 = vst [vmem:[#allocation1 + $0x2] ss:$4 sm:$0xff] %v7845_v60  ;;  %v383_v16 = vrot.slane %v279_v43, 2  ;;  %v384_v50 = vrot.slane %v279_v43, 4  ;;  %v385_v9 = vrot.slane %v279_v43, 6 }
 0x202   : > { %2027 = vst [vmem:[#allocation1 + $0x3] ss:$4 sm:$0xff] %v11330_v52  ;;  %v7881_v52 = vld [vmem:[%s7002_s17 + $0x78] sm:$0xff] }
 0x203   : > { %6383 = vmatmul.msk.f32.gmra.mxu0 %vm1098_vm1, %v11494_v31  ;;  %6423 = vmatmul.msk.f32.gmra.mxu1 %vm1098_vm1, %v11494_v31  ;;  %1454 = vst [vmem:[#allocation1 + $0x20] ss:$4 sm:$0xff] %v279_v43 }
 0x204   : > { %1456 = vst [vmem:[#allocation1 + $0x21] ss:$4 sm:$0xff] %v383_v16  ;;  %v7889_v45 = vpop.f32.mrf.mxu1  ;;  %v811_v16 = vrot.slane %v7887_v61, 2 }
 0x205   : > { %1458 = vst [vmem:[#allocation1 + $0x22] ss:$4 sm:$0xff] %v384_v50 }
 0x206   : > { %1460 = vst [vmem:[#allocation1 + $0x23] ss:$4 sm:$0xff] %v385_v9  ;;  %v813_v9 = vrot.slane %v7887_v61, 6 }
 0x207   : > { %11497 = vst [vmem:[#allocation36_spill] sm:$0xff] %v7889_v45 }
 0x209   : > { %v7878_v31 = vld.sshfl [vmem:[#allocation1] sm:$0xff pattern:$0x73625140] }
 0x20a   : > { %2034 = vst [vmem:[#allocation1] ss:$4 sm:$0xff] %v806_v7  ;;  %v6309_v7 = vld [vmem:[%s7002_s17 + $0x88] sm:$0x3] }
 0x20b   : > { %6384 = vmatmul.msk.f32.gmra.mxu0 %vm1098_vm1, %v7644_v55  ;;  %6424 = vmatmul.msk.f32.gmra.mxu1 %vm1098_vm1, %v7644_v55  ;;  %2035 = vst [vmem:[#allocation1 + $0x1] ss:$4 sm:$0xff] %v807_v28  ;;  %v812_v55 = vrot.slane %v7887_v61, 4 }
 0x20c   : > { %2036 = vst [vmem:[#allocation1 + $0x2] ss:$4 sm:$0xff] %v6306_v51  ;;  %v7897_v51 = vpop.f32.mrf.mxu0  ;;  %v7904_v50 = vpop.f32.mrf.mxu1 }
 0x20d   : > { %2037 = vst [vmem:[#allocation1 + $0x3] ss:$4 sm:$0xff] %v7881_v52 }
 0x20e   : > { %11498 = vst [vmem:[#allocation37_spill] sm:$0xff] %v7897_v51  ;;  %v1462_v51 = vld.sshfl [vmem:[#allocation1 + $0x20] sm:$0xff pattern:$0x73625140] }
 0x20f   : > { %11499 = vst [vmem:[#allocation38_spill] sm:$0xff] %v7904_v50  ;;  %6432 = vmatmul.msk.f32.gmra.mxu2 %vm1098_vm1, %v1462_v51  ;;  %6472 = vmatmul.msk.f32.gmra.mxu3 %vm1098_vm1, %v1462_v51  ;;  %v7937_v51 = vld [vmem:[%s7002_s17 + $0xb0] sm:$0xff] }
 0x210   : > { %1468 = vst [vmem:[#allocation1 + $0x21] ss:$4 sm:$0xff] %v7009_v2 }
 0x213   : > { %6385 = vmatmul.msk.f32.gmra.mxu0 %vm1098_vm1, %v7415_v26  ;;  %6425 = vmatmul.msk.f32.gmra.mxu1 %vm1098_vm1, %v7415_v26  ;;  %v6311_v26 = vld [vmem:[%s7002_s17 + $0x98] sm:$0xff] }
 0x214   : > { %v7899_v28 = vld.sshfl [vmem:[#allocation1] sm:$0xff pattern:$0x73625140]  ;;  %v7909_v43 = vpop.f32.mrf.mxu0 }
 0x215   : > { %2044 = vst [vmem:[#allocation1] ss:$4 sm:$0xff] %v811_v16  ;;  %v11501_v16 = vrot.slane %v7005_v0, 6  ;;  %v7932_v0 = vld [vmem:[%s7002_s17 + $0xa8] sm:$0xff] }
 0x216   : > { %2045 = vst [vmem:[#allocation1 + $0x1] ss:$4 sm:$0xff] %v812_v55  ;;  %v11502_v55 = vrot.slane %v7009_v2, 2 }
 0x217   : > { %11500 = vst [vmem:[#allocation39_spill] sm:$0xff] %v7909_v43  ;;  %v819_v43 = vrot.slane %v6311_v26, 6  ;;  %6433 = vmatmul.msk.f32.gmra.mxu2 %vm1098_vm1, %v7449_v15  ;;  %6473 = vmatmul.msk.f32.gmra.mxu3 %vm1098_vm1, %v7449_v15  ;;  %v824_v15 = vrot.slane %v7937_v51, 4 }
 0x218   : > { %2046 = vst [vmem:[#allocation1 + $0x2] ss:$4 sm:$0xff] %v813_v9  ;;  %v818_v9 = vrot.slane %v6311_v26, 4 }
 0x219   : > { %2047 = vst [vmem:[#allocation1 + $0x3] ss:$4 sm:$0xff] %v6309_v7  ;;  %v11503_v7 = vrot.slane %v7009_v2, 4 }
 0x21a   : > { %1467 = vst [vmem:[#allocation1 + $0x20] ss:$4 sm:$0xff] %v11501_v16  ;;  %v822_v16 = vrot.slane %v7932_v0, 6 }
 0x21b   : > { %6386 = vmatmul.msk.f32.gmra.mxu0 %vm1098_vm1, %v7668_v29  ;;  %6426 = vmatmul.msk.f32.gmra.mxu1 %vm1098_vm1, %v7668_v29  ;;  %v817_v29 = vrot.slane %v6311_v26, 2  ;;  %1469 = vst [vmem:[#allocation1 + $0x22] ss:$4 sm:$0xff] %v11502_v55  ;;  %v11507_v55 = vrot.slane %v7040_v14, 2 }
 0x21c   : > { %1470 = vst [vmem:[#allocation1 + $0x23] ss:$4 sm:$0xff] %v11503_v7  ;;  %v7925_v45 = vpop.f32.mrf.mxu0 }
 0x21d   : > { %11504 = vst [vmem:[#allocation40_spill] sm:$0xff] %v7925_v45  ;;  %v8003_v45 = vld [vmem:[%s7002_s17 + $0xe0] sm:$0xff] }
 0x220   : > { %v7923_v50 = vld.sshfl [vmem:[#allocation1] sm:$0xff pattern:$0x73625140] }
 0x221   : > { %2054 = vst [vmem:[#allocation1] ss:$4 sm:$0xff] %v6311_v26  ;;  %v11505_v26 = vrot.slane %v7031_v8, 4 }
 0x222   : > { %2055 = vst [vmem:[#allocation1 + $0x1] ss:$4 sm:$0xff] %v817_v29  ;;  %v11506_v29 = vrot.slane %v7031_v8, 6  ;;  %v7959_v8 = vld [vmem:[%s7002_s17 + $0xc0] sm:$0xff] }
 0x223   : > { %6387 = vmatmul.msk.f32.gmra.mxu0 %vm1098_vm1, %v7418_v3  ;;  %2056 = vst [vmem:[#allocation1 + $0x2] ss:$4 sm:$0xff] %v818_v9  ;;  %v1472_v2 = vld.sshfl [vmem:[#allocation1 + $0x20] sm:$0xff pattern:$0x73625140] }
 0x224   : > { %2057 = vst [vmem:[#allocation1 + $0x3] ss:$4 sm:$0xff] %v819_v43  ;;  %v823_v43 = vrot.slane %v7937_v51, 2  ;;  %v7951_v7 = vpop.f32.mrf.mxu0  ;;  %6434 = vmatmul.msk.f32.gmra.mxu2 %vm1098_vm1, %v1472_v2  ;;  %6474 = vmatmul.msk.f32.gmra.mxu3 %vm1098_vm1, %v1472_v2  ;;  %v11511_v2 = vrot.slane %v7057_v18, 6 }
 0x225   : > { %1477 = vst [vmem:[#allocation1 + $0x20] ss:$4 sm:$0xff] %v11505_v26  ;;  %v11509_v26 = vrot.slane %v7057_v18, 2 }
 0x226   : > { %1478 = vst [vmem:[#allocation1 + $0x21] ss:$4 sm:$0xff] %v11506_v29  ;;  %v7964_v29 = vld [vmem:[%s7002_s17 + $0xc8] sm:$0xff] }
 0x227   : > { %1479 = vst [vmem:[#allocation1 + $0x22] ss:$4 sm:$0xff] %v7040_v14 }
 0x228   : > { %1480 = vst [vmem:[#allocation1 + $0x23] ss:$4 sm:$0xff] %v11507_v55  ;;  %v827_v55 = vrot.slane %v7959_v8, 4 }
 0x229   : > { %11508 = vst [vmem:[#allocation41_spill] sm:$0xff] %v7951_v7  ;;  %v828_v7 = vrot.slane %v7959_v8, 6 }
 0x22b   : > { %6388 = vmatmul.msk.f32.gmra.mxu0 %vm1098_vm1, %v7866_v59  ;;  %v7949_v9 = vld.sshfl [vmem:[#allocation1] sm:$0xff pattern:$0x73625140] }
 0x22c   : > { %2064 = vst [vmem:[#allocation1] ss:$4 sm:$0xff] %v822_v16  ;;  %v11510_v16 = vrot.slane %v7057_v18, 4  ;;  %6435 = vmatmul.msk.f32.gmra.mxu2 %vm1098_vm1, %v7461_v1  ;;  %6475 = vmatmul.msk.f32.gmra.mxu3 %vm1098_vm1, %v7461_v1  ;;  %v7984_v18 = vld [vmem:[%s7002_s17 + $0xd8] sm:$0xff] }
 0x22d   : > { %2065 = vst [vmem:[#allocation1 + $0x1] ss:$4 sm:$0xff] %v7937_v51  ;;  %v832_v1 = vrot.slane %v7984_v18, 2 }
 0x22e   : > { %2066 = vst [vmem:[#allocation1 + $0x2] ss:$4 sm:$0xff] %v823_v43  ;;  %v11333_v43 = vrot.slane %v7964_v29, 2 }
 0x22f   : > { %2067 = vst [vmem:[#allocation1 + $0x3] ss:$4 sm:$0xff] %v824_v15  ;;  %v1482_v14 = vld.sshfl [vmem:[#allocation1 + $0x20] sm:$0xff pattern:$0x73625140] }
 0x230   : > { %1487 = vst [vmem:[#allocation1 + $0x20] ss:$4 sm:$0xff] %v11509_v26  ;;  %v11334_v26 = vrot.slane %v7845_v60, 4 }
 0x231   : > { %1488 = vst [vmem:[#allocation1 + $0x21] ss:$4 sm:$0xff] %v11510_v16 }
 0x232   : > { %1489 = vst [vmem:[#allocation1 + $0x22] ss:$4 sm:$0xff] %v11511_v2  ;;  %v834_v2 = vrot.slane %v7984_v18, 6 }
 0x233   : > { %6389 = vmatmul.msk.f32.gmra.mxu0 %vm1098_vm1, %v7423_v10  ;;  %1490 = vst [vmem:[#allocation1 + $0x23] ss:$4 sm:$0xff] %v7071_v25  ;;  %v11335_v25 = vrot.slane %v7845_v60, 6 }
 0x234   : > { %6436 = vmatmul.msk.f32.gmra.mxu2 %vm1098_vm1, %v1482_v14  ;;  %6476 = vmatmul.msk.f32.gmra.mxu3 %vm1098_vm1, %v1482_v14  ;;  %v292_v14 = vld [vmem:[%s7002_s17 + $0x70] sm:$0x3] }
 0x236   : > { %v7978_v15 = vld.sshfl [vmem:[#allocation1] sm:$0xff pattern:$0x73625140] }
 0x237   : > { %11512 = vst [vmem:[#allocation42_spill] sm:$0xff] %v7978_v15 }
 0x238   : > { %2074 = vst [vmem:[#allocation1] ss:$4 sm:$0xff] %v827_v55  ;;  %v833_v55 = vrot.slane %v7984_v18, 4 }
 0x239   : > { %2075 = vst [vmem:[#allocation1 + $0x1] ss:$4 sm:$0xff] %v828_v7  ;;  %v11513_v7 = vrot.slane %v7845_v60, 2 }
 0x23a   : > { %2076 = vst [vmem:[#allocation1 + $0x2] ss:$4 sm:$0xff] %v7964_v29  ;;  %v1492_v16 = vld.sshfl [vmem:[#allocation1 + $0x20] sm:$0xff pattern:$0x73625140] }
 0x23b   : > { %2077 = vst [vmem:[#allocation1 + $0x3] ss:$4 sm:$0xff] %v11333_v43 }
 0x23c   : > { %1497 = vst [vmem:[#allocation1 + $0x20] ss:$4 sm:$0xff] %v7845_v60  ;;  %6437 = vmatmul.msk.f32.gmra.mxu2 %vm1098_vm1, %v7476_v27  ;;  %6477 = vmatmul.msk.f32.gmra.mxu3 %vm1098_vm1, %v7476_v27  ;;  %v8021_v27 = vpop.f32.mrf.mxu1 }
 0x23d   : > { %1498 = vst [vmem:[#allocation1 + $0x21] ss:$4 sm:$0xff] %v11513_v7  ;;  %v6322_v7 = vld [vmem:[%s7002_s17 + $0xf0] sm:$0xff]  ;;  %6427 = vmatmul.msk.f32.gmra.mxu1 %vm1098_vm1, %v7418_v3 }
 0x23e   : > { %1499 = vst [vmem:[#allocation1 + $0x22] ss:$4 sm:$0xff] %v11334_v26 }
 0x23f   : > { %1500 = vst [vmem:[#allocation1 + $0x23] ss:$4 sm:$0xff] %v11335_v25  ;;  %v838_v25 = vrot.slane %v6322_v7, 2 }
 0x240   : > { %11517 = vst [vmem:[#allocation44_spill] sm:$0xff] %v8021_v27 }
 0x242   : > { %v8000_v43 = vld.sshfl [vmem:[#allocation1] sm:$0xff pattern:$0x73625140] }
 0x243   : > { %11514 = vst [vmem:[#allocation43_spill] sm:$0xff] %v8000_v43  ;;  %v840_v43 = vrot.slane %v6322_v7, 6 }
 0x244   : > { %2084 = vst [vmem:[#allocation1] ss:$4 sm:$0xff] %v832_v1  ;;  %v11515_v1 = vrot.slane %v7105_v40, 2  ;;  %6438 = vmatmul.msk.f32.gmra.mxu2 %vm1098_vm1, %v1492_v16  ;;  %6478 = vmatmul.msk.f32.gmra.mxu3 %vm1098_vm1, %v1492_v16 }
 0x245   : > { %2085 = vst [vmem:[#allocation1 + $0x1] ss:$4 sm:$0xff] %v833_v55  ;;  %v839_v55 = vrot.slane %v6322_v7, 4 }
 0x246   : > { %2086 = vst [vmem:[#allocation1 + $0x2] ss:$4 sm:$0xff] %v834_v2  ;;  %v1502_v26 = vld.sshfl [vmem:[#allocation1 + $0x20] sm:$0xff pattern:$0x73625140]  ;;  %v11516_v2 = vrot.slane %v7105_v40, 4 }
 0x247   : > { %2087 = vst [vmem:[#allocation1 + $0x3] ss:$4 sm:$0xff] %v8003_v45 }
 0x248   : > { %1507 = vst [vmem:[#allocation1 + $0x20] ss:$4 sm:$0xff] %v292_v14  ;;  %v295_v14 = vld [vmem:[%s7002_s17 + $0x88] sm:$0x3] }
 0x249   : > { %1508 = vst [vmem:[#allocation1 + $0x21] ss:$4 sm:$0xff] %v7105_v40 }
 0x24a   : > { %1509 = vst [vmem:[#allocation1 + $0x22] ss:$4 sm:$0xff] %v11515_v1  ;;  %v8027_v1 = vld [vmem:[%s7002_s17 + $0x108] sm:$0xff] }
 0x24b   : > { %1510 = vst [vmem:[#allocation1 + $0x23] ss:$4 sm:$0xff] %v11516_v2  ;;  %v11518_v2 = vrot.slane %v7124_v48, 6  ;;  %v844_v3 = vrot.slane %v8027_v1, 2  ;;  %v845_v48 = vrot.slane %v8027_v1, 4 }
 0x24c   : > { %6439 = vmatmul.msk.f32.gmra.mxu2 %vm1098_vm1, %v7489_v36  ;;  %6479 = vmatmul.msk.f32.gmra.mxu3 %vm1098_vm1, %v7489_v36  ;;  %v298_v36 = vld [vmem:[%s7002_s17 + $0xa0] sm:$0x3] }
 0x24e   : > { %v8017_v15 = vld.sshfl [vmem:[#allocation1] sm:$0xff pattern:$0x73625140] }
 0x24f   : > { %2094 = vst [vmem:[#allocation1] ss:$4 sm:$0xff] %v6322_v7  ;;  %v8045_v7 = vld [vmem:[%s7002_s17 + $0x110] sm:$0xff] }
 0x250   : > { %2095 = vst [vmem:[#allocation1 + $0x1] ss:$4 sm:$0xff] %v838_v25  ;;  %v6324_v25 = vld [vmem:[%s7002_s17 + $0x100] sm:$0x3] }
 0x251   : > { %2096 = vst [vmem:[#allocation1 + $0x2] ss:$4 sm:$0xff] %v839_v55 }
 0x252   : > { %2097 = vst [vmem:[#allocation1 + $0x3] ss:$4 sm:$0xff] %v840_v43  ;;  %v1512_v40 = vld.sshfl [vmem:[#allocation1 + $0x20] sm:$0xff pattern:$0x73625140]  ;;  %v11519_v43 = vrot.slane %v7140_v54, 2 }
 0x253   : > { %1517 = vst [vmem:[#allocation1 + $0x20] ss:$4 sm:$0xff] %v11518_v2  ;;  %v849_v2 = vrot.slane %v8045_v7, 6 }
 0x254   : > { %1518 = vst [vmem:[#allocation1 + $0x21] ss:$4 sm:$0xff] %v295_v14  ;;  %6440 = vmatmul.msk.f32.gmra.mxu2 %vm1098_vm1, %v1502_v26  ;;  %6480 = vmatmul.msk.f32.gmra.mxu3 %vm1098_vm1, %v1502_v26  ;;  %v8053_v14 = vld [vmem:[%s7002_s17 + $0x120] sm:$0xff]  ;;  %v301_v26 = vld [vmem:[%s7002_s17 + $0xb8] sm:$0x3] }
 0x255   : > { %1519 = vst [vmem:[#allocation1 + $0x22] ss:$4 sm:$0xff] %v7140_v54  ;;  %v11520_v54 = vrot.slane %v7154_v58, 4 }
 0x256   : > { %1520 = vst [vmem:[#allocation1 + $0x23] ss:$4 sm:$0xff] %v11519_v43  ;;  %v11338_v43 = vrot.slane %v8053_v14, 2 }
 0x259   : > { %v8041_v16 = vld.sshfl [vmem:[#allocation1] sm:$0xff pattern:$0x73625140] }
 0x25a   : > { %2104 = vst [vmem:[#allocation1] ss:$4 sm:$0xff] %v6324_v25  ;;  %v11521_v25 = vrot.slane %v7154_v58, 6  ;;  %v8071_v58 = vld [vmem:[%s7002_s17 + $0x128] sm:$0xff] }
 0x25b   : > { %2105 = vst [vmem:[#allocation1 + $0x1] ss:$4 sm:$0xff] %v8027_v1 }
 0x25c   : > { %2106 = vst [vmem:[#allocation1 + $0x2] ss:$4 sm:$0xff] %v844_v3  ;;  %v6327_v3 = vld [vmem:[%s7002_s17 + $0x118] sm:$0x3]  ;;  %6441 = vmatmul.msk.f32.gmra.mxu2 %vm1098_vm1, %v7506_v42  ;;  %6481 = vmatmul.msk.f32.gmra.mxu3 %vm1098_vm1, %v7506_v42  ;;  %v855_v42 = vrot.slane %v8071_v58, 6 }
 0x25d   : > { %2107 = vst [vmem:[#allocation1 + $0x3] ss:$4 sm:$0xff] %v845_v48  ;;  %v1522_v55 = vld.sshfl [vmem:[#allocation1 + $0x20] sm:$0xff pattern:$0x73625140] }
 0x25e   : > { %1527 = vst [vmem:[#allocation1 + $0x20] ss:$4 sm:$0xff] %v11520_v54  ;;  %v8078_v54 = vpop.f32.mrf.mxu0 }
 0x25f   : > { %1528 = vst [vmem:[#allocation1 + $0x21] ss:$4 sm:$0xff] %v11521_v25  ;;  %v11524_v25 = vrot.slane %v7184_v33, 4 }
 0x260   : > { %1529 = vst [vmem:[#allocation1 + $0x22] ss:$4 sm:$0xff] %v298_v36  ;;  %v11522_v36 = vrot.slane %v7184_v33, 2 }
 0x261   : > { %1530 = vst [vmem:[#allocation1 + $0x23] ss:$4 sm:$0xff] %v7171_v20 }
 0x262   : > { %11523 = vst [vmem:[#allocation45_spill] sm:$0xff] %v8078_v54  ;;  %v6333_v54 = vld [vmem:[%s7002_s17 + $0x148] sm:$0x3] }
 0x264   : > { %v8061_v48 = vld.sshfl [vmem:[#allocation1] sm:$0xff pattern:$0x73625140]  ;;  %6442 = vmatmul.msk.f32.gmra.mxu2 %vm1098_vm1, %v1512_v40  ;;  %6482 = vmatmul.msk.f32.gmra.mxu3 %vm1098_vm1, %v1512_v40 }
 0x265   : > { %2114 = vst [vmem:[#allocation1] ss:$4 sm:$0xff] %v849_v2  ;;  %v854_v2 = vrot.slane %v8071_v58, 4 }
 0x266   : > { %2115 = vst [vmem:[#allocation1 + $0x1] ss:$4 sm:$0xff] %v6327_v3  ;;  %v11525_v3 = vrot.slane %v7184_v33, 6  ;;  %v11340_v33 = vrot.slane %v7964_v29, 6  ;;  %v8103_v40 = vpop.f32.mrf.mxu0 }
 0x267   : > { %2116 = vst [vmem:[#allocation1 + $0x2] ss:$4 sm:$0xff] %v8053_v14 }
 0x268   : > { %2117 = vst [vmem:[#allocation1 + $0x3] ss:$4 sm:$0xff] %v11338_v43  ;;  %v8073_v20 = vld.sshfl [vmem:[#allocation1 + $0x20] sm:$0xff pattern:$0x73625140] }
 0x269   : > { %1537 = vst [vmem:[#allocation1 + $0x20] ss:$4 sm:$0xff] %v11522_v36  ;;  %v6330_v43 = vld [vmem:[%s7002_s17 + $0x130] sm:$0x3]  ;;  %v8093_v36 = vld [vmem:[%s7002_s17 + $0x140] sm:$0xff] }
 0x26a   : > { %1538 = vst [vmem:[#allocation1 + $0x21] ss:$4 sm:$0xff] %v11524_v25  ;;  %v11339_v25 = vrot.slane %v7964_v29, 4 }
 0x26b   : > { %1539 = vst [vmem:[#allocation1 + $0x22] ss:$4 sm:$0xff] %v11525_v3  ;;  %v8099_v3 = vpop.f32.mrf.mxu1  ;;  %6428 = vmatmul.msk.f32.gmra.mxu1 %vm1098_vm1, %v7866_v59  ;;  %v861_v59 = vrot.slane %v8093_v36, 6 }
 0x26c   : > { %1540 = vst [vmem:[#allocation1 + $0x23] ss:$4 sm:$0xff] %v301_v26  ;;  %6443 = vmatmul.msk.f32.gmra.mxu2 %vm1098_vm1, %v7519_v37  ;;  %6483 = vmatmul.msk.f32.gmra.mxu3 %vm1098_vm1, %v7519_v37 }
 0x26d   : > { %11526 = vst [vmem:[#allocation46_spill] sm:$0xff] %v8099_v3  ;;  %v11532_v3 = vrot.slane %v7229_v13, 6 }
 0x26e   : > { %11527 = vst [vmem:[#allocation47_spill] sm:$0xff] %v8103_v40  ;;  %v8128_v37 = vpop.f32.mrf.mxu0 }
 0x26f   : > { %v8088_v27 = vld.sshfl [vmem:[#allocation1] sm:$0xff pattern:$0x73625140]  ;;  %11531 = vst [vmem:[#allocation50_spill] sm:$0xff] %v8128_v37 }
 0x270   : > { %2124 = vst [vmem:[#allocation1] ss:$4 sm:$0xff] %v854_v2  ;;  %v11528_v2 = vrot.slane %v7964_v29, 2 }
 0x271   : > { %2125 = vst [vmem:[#allocation1 + $0x1] ss:$4 sm:$0xff] %v855_v42  ;;  %v860_v42 = vrot.slane %v8093_v36, 4 }
 0x272   : > { %2126 = vst [vmem:[#allocation1 + $0x2] ss:$4 sm:$0xff] %v6330_v43  ;;  %v859_v43 = vrot.slane %v8093_v36, 2 }
 0x273   : > { %2127 = vst [vmem:[#allocation1 + $0x3] ss:$4 sm:$0xff] %v7536_v57  ;;  %v8097_v26 = vld.sshfl [vmem:[#allocation1 + $0x20] sm:$0xff pattern:$0x73625140] }
 0x274   : > { %1547 = vst [vmem:[#allocation1 + $0x20] ss:$4 sm:$0xff] %v7964_v29  ;;  %6444 = vmatmul.msk.f32.gmra.mxu2 %vm1098_vm1, %v1522_v55  ;;  %6484 = vmatmul.msk.f32.gmra.mxu3 %vm1098_vm1, %v1522_v55 }
 0x275   : > { %1548 = vst [vmem:[#allocation1 + $0x21] ss:$4 sm:$0xff] %v11528_v2  ;;  %v8122_v2 = vpop.f32.mrf.mxu1  ;;  %6429 = vmatmul.msk.f32.gmra.mxu1 %vm1098_vm1, %v7423_v10 }
 0x276   : > { %1549 = vst [vmem:[#allocation1 + $0x22] ss:$4 sm:$0xff] %v11339_v25  ;;  %v6335_v25 = vld [vmem:[%s7002_s17 + $0x158] sm:$0xff]  ;;  %v8148_v13 = vpop.f32.mrf.mxu0 }
 0x277   : > { %1550 = vst [vmem:[#allocation1 + $0x23] ss:$4 sm:$0xff] %v11340_v33  ;;  %v866_v10 = vrot.slane %v6335_v25, 4  ;;  %v867_v55 = vrot.slane %v6335_v25, 6 }
 0x278   : > { %11530 = vst [vmem:[#allocation49_spill] sm:$0xff] %v8122_v2 }
 0x279   : > { %11537 = vst [vmem:[#allocation53_spill] sm:$0xff] %v8148_v13  ;;  %v8180_v13 = vld [vmem:[%s7002_s17 + $0x180] sm:$0xff] }
 0x27a   : > { %v8119_v40 = vld.sshfl [vmem:[#allocation1] sm:$0xff pattern:$0x73625140]  ;;  %11545 = vst [vmem:[#allocation58_spill] sm:$0xff] %v8180_v13 }
 0x27b   : > { %11529 = vst [vmem:[#allocation48_spill] sm:$0xff] %v8119_v40  ;;  %v798_v40 = vrot.slane %v7821_v47, 6 }
 0x27c   : > { %2134 = vst [vmem:[#allocation1] ss:$4 sm:$0xff] %v859_v43  ;;  %v865_v43 = vrot.slane %v6335_v25, 2  ;;  %6445 = vmatmul.msk.f32.gmra.mxu2 %vm1098_vm1, %v7538_v19  ;;  %6485 = vmatmul.msk.f32.gmra.mxu3 %vm1098_vm1, %v7538_v19 }
 0x27d   : > { %2135 = vst [vmem:[#allocation1 + $0x1] ss:$4 sm:$0xff] %v860_v42  ;;  %v11533_v42 = vrot.slane %v7233_v6, 2  ;;  %v8142_v37 = vpop.f32.mrf.mxu1 }
 0x27e   : > { %2136 = vst [vmem:[#allocation1 + $0x2] ss:$4 sm:$0xff] %v861_v59  ;;  %v8131_v33 = vld.sshfl [vmem:[#allocation1 + $0x20] sm:$0xff pattern:$0x73625140] }
 0x27f   : > { %2137 = vst [vmem:[#allocation1 + $0x3] ss:$4 sm:$0xff] %v6333_v54  ;;  %v11534_v54 = vrot.slane %v7233_v6, 4 }
 0x280   : > { %1557 = vst [vmem:[#allocation1 + $0x20] ss:$4 sm:$0xff] %v11532_v3  ;;  %v8151_v3 = vld [vmem:[%s7002_s17 + $0x168] sm:$0xff] }
 0x281   : > { %1558 = vst [vmem:[#allocation1 + $0x21] ss:$4 sm:$0xff] %v7233_v6 }
 0x282   : > { %1559 = vst [vmem:[#allocation1 + $0x22] ss:$4 sm:$0xff] %v11533_v42  ;;  %v8156_v42 = vld [vmem:[%s7002_s17 + $0x170] sm:$0xff] }
 0x283   : > { %1560 = vst [vmem:[#allocation1 + $0x23] ss:$4 sm:$0xff] %v11534_v54  ;;  %v11539_v54 = vrot.slane %v7255_v63, 4 }
 0x284   : > { %11536 = vst [vmem:[#allocation52_spill] sm:$0xff] %v8142_v37  ;;  %6446 = vmatmul.msk.f32.gmra.mxu2 %vm1098_vm1, %v8073_v20  ;;  %6486 = vmatmul.msk.f32.gmra.mxu3 %vm1098_vm1, %v8073_v20  ;;  %v11547_v20 = vrot.slane %v7285_v5, 2 }
 0x285   : > { %11538 = vst [vmem:[#allocation54_spill] sm:$0xff] %v8156_v42  ;;  %v8163_v19 = vpop.f32.mrf.mxu1 }
 0x286   : > { %v8140_v59 = vld.sshfl [vmem:[#allocation1] sm:$0xff pattern:$0x73625140]  ;;  %11541 = vst [vmem:[#allocation55_spill] sm:$0xff] %v8163_v19 }
 0x287   : > { %11535 = vst [vmem:[#allocation51_spill] sm:$0xff] %v8140_v59 }
 0x288   : > { %2144 = vst [vmem:[#allocation1] ss:$4 sm:$0xff] %v6335_v25  ;;  %v870_v25 = vrot.slane %v8151_v3, 6 }
 0x289   : > { %2145 = vst [vmem:[#allocation1 + $0x1] ss:$4 sm:$0xff] %v865_v43  ;;  %v11540_v43 = vrot.slane %v7255_v63, 6 }
 0x28a   : > { %2146 = vst [vmem:[#allocation1 + $0x2] ss:$4 sm:$0xff] %v866_v10  ;;  %v8153_v6 = vld.sshfl [vmem:[#allocation1 + $0x20] sm:$0xff pattern:$0x73625140]  ;;  %v871_v10 = vrot.slane %v8156_v42, 2 }
 0x28b   : > { %2147 = vst [vmem:[#allocation1 + $0x3] ss:$4 sm:$0xff] %v867_v55  ;;  %v11542_v55 = vrot.slane %v7268_v21, 2 }
 0x28c   : > { %1567 = vst [vmem:[#allocation1 + $0x20] ss:$4 sm:$0xff] %v11539_v54  ;;  %v872_v54 = vrot.slane %v8156_v42, 4  ;;  %6447 = vmatmul.msk.f32.gmra.mxu2 %vm1098_vm1, %v7576_v34  ;;  %6487 = vmatmul.msk.f32.gmra.mxu3 %vm1098_vm1, %v7576_v34 }
 0x28d   : > { %1568 = vst [vmem:[#allocation1 + $0x21] ss:$4 sm:$0xff] %v11540_v43  ;;  %v8177_v43 = vpop.f32.mrf.mxu0  ;;  %v8182_v19 = vpop.f32.mrf.mxu1 }
 0x28e   : > { %1569 = vst [vmem:[#allocation1 + $0x22] ss:$4 sm:$0xff] %v7268_v21 }
 0x28f   : > { %1570 = vst [vmem:[#allocation1 + $0x23] ss:$4 sm:$0xff] %v11542_v55  ;;  %v11549_v55 = vrot.slane %v7285_v5, 4 }
 0x290   : > { %11544 = vst [vmem:[#allocation57_spill] sm:$0xff] %v8177_v43  ;;  %v11550_v43 = vrot.slane %v7285_v5, 6  ;;  %v11343_v5 = vrot.slane %v8053_v14, 4 }
 0x291   : > { %11546 = vst [vmem:[#allocation59_spill] sm:$0xff] %v8182_v19 }
 0x292   : > { %v8174_v63 = vld.sshfl [vmem:[#allocation1] sm:$0xff pattern:$0x73625140] }
 0x293   : > { %11543 = vst [vmem:[#allocation56_spill] sm:$0xff] %v8174_v63 }
 0x294   : > { %2154 = vst [vmem:[#allocation1] ss:$4 sm:$0xff] %v870_v25  ;;  %v8193_v25 = vld [vmem:[%s7002_s17 + $0x188] sm:$0xff]  ;;  %6448 = vmatmul.msk.f32.gmra.mxu2 %vm1098_vm1, %v8097_v26  ;;  %6488 = vmatmul.msk.f32.gmra.mxu3 %vm1098_vm1, %v8097_v26 }
 0x295   : > { %2155 = vst [vmem:[#allocation1 + $0x1] ss:$4 sm:$0xff] %v8156_v42  ;;  %v8205_v34 = vpop.f32.mrf.mxu1  ;;  %v8207_v37 = vpop.f32.mrf.mxu0 }
 0x296   : > { %2156 = vst [vmem:[#allocation1 + $0x2] ss:$4 sm:$0xff] %v871_v10  ;;  %v8184_v21 = vld.sshfl [vmem:[#allocation1 + $0x20] sm:$0xff pattern:$0x73625140]  ;;  %v875_v10 = vrot.slane %v8180_v13, 4 }
 0x297   : > { %2157 = vst [vmem:[#allocation1 + $0x3] ss:$4 sm:$0xff] %v872_v54  ;;  %v876_v54 = vrot.slane %v8180_v13, 6 }
 0x298   : > { %1577 = vst [vmem:[#allocation1 + $0x20] ss:$4 sm:$0xff] %v11547_v20  ;;  %v11341_v20 = vrot.slane %v8193_v25, 2 }
 0x299   : > { %11548 = vst [vmem:[#allocation60_spill] sm:$0xff] %v8193_v25 }
 0x29a   : > { %1578 = vst [vmem:[#allocation1 + $0x21] ss:$4 sm:$0xff] %v11549_v55 }
 0x29b   : > { %1579 = vst [vmem:[#allocation1 + $0x22] ss:$4 sm:$0xff] %v11550_v43 }
 0x29c   : > { %1580 = vst [vmem:[#allocation1 + $0x23] ss:$4 sm:$0xff] %v7299_v44  ;;  %v8217_v44 = vld [vmem:[%s7002_s17 + $0x198] sm:$0xff]  ;;  %6449 = vmatmul.msk.f32.gmra.mxu2 %vm1098_vm1, %v7608_v53  ;;  %6489 = vmatmul.msk.f32.gmra.mxu3 %vm1098_vm1, %v7608_v53 }
 0x29d   : > { %11552 = vst [vmem:[#allocation62_spill] sm:$0xff] %v8205_v34  ;;  %v880_v55 = vrot.slane %v8217_v44, 2  ;;  %v881_v26 = vrot.slane %v8217_v44, 4  ;;  %v882_v43 = vrot.slane %v8217_v44, 6  ;;  %v11556_v34 = vrot.slane %v8053_v14, 6 }
 0x29e   : > { %v8203_v19 = vld.sshfl [vmem:[#allocation1] sm:$0xff pattern:$0x73625140]  ;;  %11553 = vst [vmem:[#allocation63_spill] sm:$0xff] %v8207_v37  ;;  %v8229_v37 = vpop.f32.mrf.mxu3 }
 0x29f   : > { %11551 = vst [vmem:[#allocation61_spill] sm:$0xff] %v8203_v19  ;;  %v8237_v19 = vpop.f32.mrf.mxu1 }
 0x2a0   : > { %2164 = vst [vmem:[#allocation1] ss:$4 sm:$0xff] %v875_v10 }
 0x2a1   : > { %2165 = vst [vmem:[#allocation1 + $0x1] ss:$4 sm:$0xff] %v876_v54  ;;  %v11555_v54 = vrot.slane %v8053_v14, 2 }
 0x2a2   : > { %2166 = vst [vmem:[#allocation1 + $0x2] ss:$4 sm:$0xff] %v8193_v25 }
 0x2a3   : > { %2167 = vst [vmem:[#allocation1 + $0x3] ss:$4 sm:$0xff] %v11341_v20  ;;  %v8221_v10 = vld.sshfl [vmem:[#allocation1 + $0x20] sm:$0xff pattern:$0x73625140]  ;;  %v8227_v20 = vpop.f32.mrf.mxu2 }
 0x2a4   : > { %11554 = vst [vmem:[#allocation64_spill] sm:$0xff] %v8217_v44  ;;  %6450 = vmatmul.msk.f32.gmra.mxu2 %vm1098_vm1, %v8131_v33  ;;  %6490 = vmatmul.msk.f32.gmra.mxu3 %vm1098_vm1, %v8131_v33  ;;  %v319_v33 = vld [vmem:[%s7002_s17 + $0x148] sm:$0x3] }
 0x2a5   : > { %1587 = vst [vmem:[#allocation1 + $0x20] ss:$4 sm:$0xff] %v8053_v14 }
 0x2a6   : > { %1588 = vst [vmem:[#allocation1 + $0x21] ss:$4 sm:$0xff] %v11555_v54  ;;  %v8245_v54 = vpop.f32.mrf.mxu0 }
 0x2a7   : > { %1589 = vst [vmem:[#allocation1 + $0x22] ss:$4 sm:$0xff] %v11343_v5  ;;  %v316_v5 = vld [vmem:[%s7002_s17 + $0x130] sm:$0x3]  ;;  %v8256_v44 = vpop.f32.mrf.mxu1 }
 0x2a8   : > { %1590 = vst [vmem:[#allocation1 + $0x23] ss:$4 sm:$0xff] %v11556_v34  ;;  %v8251_v34 = vpop.f32.mrf.mxu3 }
 0x2a9   : > { %11557 = vst [vmem:[#allocation65_spill] sm:$0xff] %v8237_v19  ;;  %v6346_v19 = vld [vmem:[%s7002_s17 + $0x1b0] sm:$0xff] }
 0x2aa   : > { %v8239_v2 = vld.sshfl [vmem:[#allocation1] sm:$0xff pattern:$0x73625140]  ;;  %11559 = vst [vmem:[#allocation67_spill] sm:$0xff] %v8245_v54  ;;  %v886_v53 = vrot.slane %v6346_v19, 2 }
 0x2ab   : > { %11558 = vst [vmem:[#allocation66_spill] sm:$0xff] %v8239_v2  ;;  %v8249_v63 = vpop.f32.mrf.mxu2 }
 0x2ac   : > { %2174 = vst [vmem:[#allocation1] ss:$4 sm:$0xff] %v880_v55  ;;  %v888_v55 = vrot.slane %v6346_v19, 6  ;;  %6451 = vmatmul.msk.f32.gmra.mxu2 %vm1098_vm1, %v7630_v17  ;;  %6491 = vmatmul.msk.f32.gmra.mxu3 %vm1098_vm1, %v7630_v17 }
 0x2ad   : > { %2175 = vst [vmem:[#allocation1 + $0x1] ss:$4 sm:$0xff] %v881_v26 }
 0x2ae   : > { %2176 = vst [vmem:[#allocation1 + $0x2] ss:$4 sm:$0xff] %v882_v43  ;;  %v887_v43 = vrot.slane %v6346_v19, 4  ;;  %v8267_v26 = vpop.f32.mrf.mxu0 }
 0x2af   : > { %2177 = vst [vmem:[#allocation1 + $0x3] ss:$4 sm:$0xff] %v7655_v12  ;;  %v8254_v2 = vld.sshfl [vmem:[#allocation1 + $0x20] sm:$0xff pattern:$0x73625140]  ;;  %v8273_v54 = vpop.f32.mrf.mxu1 }
 0x2b0   : > { %1597 = vst [vmem:[#allocation1 + $0x20] ss:$4 sm:$0xff] %v316_v5 }
 0x2b1   : > { %11560 = vst [vmem:[#allocation68_spill] sm:$0xff] %v8256_v44  ;;  %v8271_v44 = vpop.f32.mrf.mxu3 }
 0x2b2   : > { %1598 = vst [vmem:[#allocation1 + $0x21] ss:$4 sm:$0xff] %v7536_v57 }
 0x2b3   : > { %1599 = vst [vmem:[#allocation1 + $0x22] ss:$4 sm:$0xff] %v7541_v30  ;;  %v8269_v57 = vpop.f32.mrf.mxu2 }
 0x2b4   : > { %1600 = vst [vmem:[#allocation1 + $0x23] ss:$4 sm:$0xff] %v7550_v62  ;;  %6452 = vmatmul.msk.f32.gmra.mxu2 %vm1098_vm1, %v8153_v6  ;;  %6492 = vmatmul.msk.f32.gmra.mxu3 %vm1098_vm1, %v8153_v6 }
 0x2b5   : > { %11562 = vst [vmem:[#allocation70_spill] sm:$0xff] %v8267_v26 }
 0x2b6   : > { %v8265_v5 = vld.sshfl [vmem:[#allocation1] sm:$0xff pattern:$0x73625140]  ;;  %11563 = vst [vmem:[#allocation71_spill] sm:$0xff] %v8273_v54  ;;  %v8292_v26 = vpop.f32.mrf.mxu0 }
 0x2b7   : > { %11561 = vst [vmem:[#allocation69_spill] sm:$0xff] %v8265_v5  ;;  %v8296_v17 = vpop.f32.mrf.mxu1 }
 0x2b8   : > { %2184 = vst [vmem:[#allocation1] ss:$4 sm:$0xff] %v6346_v19  ;;  %v11564_v19 = vrot.slane %v7346_v56, 6  ;;  %v6510_v56 = vld [vmem:[%s11230_s1 + $0x10] sm:$0x77] }
 0x2b9   : > { %2185 = vst [vmem:[#allocation1 + $0x1] ss:$4 sm:$0xff] %v886_v53  ;;  %v6348_v53 = vld [vmem:[%s7002_s17 + $0x1c0] sm:$0x3]  ;;  %v8290_v5 = vpop.f32.mrf.mxu3 }
 0x2ba   : > { %2186 = vst [vmem:[#allocation1 + $0x2] ss:$4 sm:$0xff] %v887_v43  ;;  %v11565_v43 = vrot.slane %v7361_v11, 2 }
 0x2bb   : > { %2187 = vst [vmem:[#allocation1 + $0x3] ss:$4 sm:$0xff] %v888_v55  ;;  %v8278_v12 = vld.sshfl [vmem:[#allocation1 + $0x20] sm:$0xff pattern:$0x73625140]  ;;  %v8288_v55 = vpop.f32.mrf.mxu2 }
 0x2bc   : > { %1607 = vst [vmem:[#allocation1 + $0x20] ss:$4 sm:$0xff] %v11564_v19  ;;  %v11569_v19 = vrot.slane %v7364_v46, 4  ;;  %6453 = vmatmul.msk.f32.gmra.mxu2 %vm1098_vm1, %v7652_v22  ;;  %6493 = vmatmul.msk.f32.gmra.mxu3 %vm1098_vm1, %v7652_v22  ;;  %v11575_v22 = vrot.slane %v7382_v39, 2 }
 0x2bd   : > { %1608 = vst [vmem:[#allocation1 + $0x21] ss:$4 sm:$0xff] %v319_v33  ;;  %v322_v33 = vld [vmem:[%s7002_s17 + $0x160] sm:$0x3] }
 0x2be   : > { %1609 = vst [vmem:[#allocation1 + $0x22] ss:$4 sm:$0xff] %v7361_v11 }
 0x2bf   : > { %1610 = vst [vmem:[#allocation1 + $0x23] ss:$4 sm:$0xff] %v11565_v43  ;;  %v8318_v6 = vpop.f32.mrf.mxu1 }
 0x2c0   : > { %11566 = vst [vmem:[#allocation72_spill] sm:$0xff] %v8292_v26  ;;  %v8320_v26 = vpop.f32.mrf.mxu0 }
 0x2c1   : > { %11568 = vst [vmem:[#allocation74_spill] sm:$0xff] %v8296_v17  ;;  %v11571_v17 = vrot.slane %v7364_v46, 6 }
 0x2c2   : > { %v8294_v54 = vld.sshfl [vmem:[#allocation1] sm:$0xff pattern:$0x73625140]  ;;  %11572 = vst [vmem:[#allocation76_spill] sm:$0xff] %v8318_v6 }
 0x2c3   : > { %11567 = vst [vmem:[#allocation73_spill] sm:$0xff] %v8294_v54  ;;  %v8310_v43 = vpop.f32.mrf.mxu2 }
 0x2c4   : > { %2194 = vst [vmem:[#allocation1] ss:$4 sm:$0xff] %v6348_v53  ;;  %v8312_v53 = vpop.f32.mrf.mxu3  ;;  %6454 = vmatmul.msk.f32.gmra.mxu2 %vm1098_vm1, %v8184_v21  ;;  %6494 = vmatmul.msk.f32.gmra.mxu3 %vm1098_vm1, %v8184_v21  ;;  %v11356_v21 = vrot.slane %v8193_v25, 4 }
 0x2c5   : > { %11573 = vst [vmem:[#allocation77_spill] sm:$0xff] %v8320_v26 }
 0x2c6   : > { %v8305_v11 = vld.sshfl [vmem:[#allocation1 + $0x20] sm:$0xff pattern:$0x73625140] }
 0x2c7   : > { %1617 = vst [vmem:[#allocation1 + $0x20] ss:$4 sm:$0xff] %v11569_v19 }
 0x2c8   : > { %1618 = vst [vmem:[#allocation1 + $0x21] ss:$4 sm:$0xff] %v11571_v17 }
 0x2c9   : > { %1619 = vst [vmem:[#allocation1 + $0x22] ss:$4 sm:$0xff] %v322_v33 }
 0x2ca   : > { %1620 = vst [vmem:[#allocation1 + $0x23] ss:$4 sm:$0xff] %v7379_v38  ;;  %v325_v38 = vld [vmem:[%s7002_s17 + $0x178] sm:$0x3] }
 0x2cb   : > { %v8314_v54 = vld.sshfl [vmem:[#allocation1] sm:$0xff pattern:$0x73625140]  ;;  %v8327_v19 = vpop.f32.mrf.mxu2 }
 0x2cc   : > { %11570 = vst [vmem:[#allocation75_spill] sm:$0xff] %v8314_v54  ;;  %v8329_v54 = vpop.f32.mrf.mxu3  ;;  %6455 = vmatmul.msk.f32.gmra.mxu2 %vm1098_vm1, %v7678_v24  ;;  %6495 = vmatmul.msk.f32.gmra.mxu3 %vm1098_vm1, %v7678_v24 }
 0x2cd   : > { %2197 = vst [vmem:[#allocation1] ss:$2 sm:$0xff] %v6510_v56  ;;  %v8333_v56 = vpop.f32.mrf.mxu1 }
 0x2ce   : > { %11574 = vst [vmem:[#allocation78_spill] sm:$0xff] %v8333_v56  ;;  %v11578_v56 = vrot.slane %v7382_v39, 6 }
 0x2d1   : > { %v8337_v33 = vld.sshfl [vmem:[#allocation1 + $0x20] sm:$0xff pattern:$0x73625140] }
 0x2d2   : > { %1627 = vst [vmem:[#allocation1 + $0x20] ss:$4 sm:$0xff] %v11575_v22 }
 0x2d3   : > { %1629 = vst [vmem:[#allocation1 + $0x22] ss:$4 sm:$0xff] %v11578_v56 }
 0x2d4   : > { %v2198_v46 = vld.sshfl [vmem:[#allocation1] sm:$0xff pattern:$0x75316420]  ;;  %v2199_v17 = vld.sshfl [vmem:[#allocation1 + $0x8] sm:$0xff pattern:$0x75316420]  ;;  %v8356_v26 = vpop.f32.mrf.mxu3  ;;  %6456 = vmatmul.msk.f32.gmra.mxu2 %vm1098_vm1, %v8221_v10  ;;  %6496 = vmatmul.msk.f32.gmra.mxu3 %vm1098_vm1, %v8221_v10 }
 0x2d5   : > { %6511 = vmatpush.msk.msrb.mxu0 %vm1177_vm0, %v2198_v46  ;;  %6551 = vmatpush.msk.msrb.mxu1 %vm1177_vm0, %v2199_v17  ;;  %v11576_v46 = vrot.slane %v7382_v39, 4  ;;  %v8350_v17 = vpop.f32.mrf.mxu0  ;;  %1630 = vst [vmem:[#allocation1 + $0x23] ss:$4 sm:$0xff] %v325_v38  ;;  %v8358_v22 = vpop.f32.mrf.mxu1  ;;  %v11359_v39 = vrot.slane %v8193_v25, 6  ;;  %v11581_v38 = vrot.slane %v8193_v25, 2 }
 0x2d6   : > { %6512 = vmatmul.msk.f32.vlgmr.msrb.gmra.mxu0 %vm1098_vm1, %v7832_v41  ;;  %6552 = vmatmul.msk.f32.vlgmr.msrb.gmra.mxu1 %vm1098_vm1, %v7832_v41  ;;  %11577 = vst [vmem:[#allocation79_spill] sm:$0xff] %v8350_v17  ;;  %v8354_v41 = vpop.f32.mrf.mxu2 }
 0x2d7   : > { %1628 = vst [vmem:[#allocation1 + $0x21] ss:$4 sm:$0xff] %v11576_v46 }
 0x2d8   : > { %11579 = vst [vmem:[#allocation80_spill] sm:$0xff] %v8358_v22 }
 0x2dc   : > { %v8375_v17 = vpop.f32.mrf.mxu3  ;;  %6457 = vmatmul.msk.f32.gmra.mxu2 %vm1098_vm1, %v7695_v4  ;;  %6497 = vmatmul.msk.f32.gmra.mxu3 %vm1098_vm1, %v7695_v4 }
 0x2dd   : > { %v8365_v46 = vpop.f32.mrf.mxu0  ;;  %v8381_v24 = vpop.f32.mrf.mxu1 }
 0x2de   : > { %11580 = vst [vmem:[#allocation81_spill] sm:$0xff] %v8365_v46  ;;  %v8368_v56 = vld.sshfl [vmem:[#allocation1 + $0x20] sm:$0xff pattern:$0x73625140]  ;;  %v8373_v22 = vpop.f32.mrf.mxu2  ;;  %v6299_v46 = vld [vmem:[%s7002_s17 + $0x38] sm:$0xff] }
 0x2df   : > { %1637 = vst [vmem:[#allocation1 + $0x20] ss:$4 sm:$0xff] %v8193_v25  ;;  %v793_v6 = vrot.slane %v6299_v46, 2  ;;  %v794_v59 = vrot.slane %v6299_v46, 4 }
 0x2e0   : > { %1638 = vst [vmem:[#allocation1 + $0x21] ss:$4 sm:$0xff] %v11581_v38 }
 0x2e1   : > { %1639 = vst [vmem:[#allocation1 + $0x22] ss:$4 sm:$0xff] %v11356_v21  ;;  %v795_v21 = vrot.slane %v6299_v46, 6 }
 0x2e2   : > { %1640 = vst [vmem:[#allocation1 + $0x23] ss:$4 sm:$0xff] %v11359_v39 }
 0x2e3   : > { %11582 = vst [vmem:[#allocation82_spill] sm:$0xff] %v8381_v24 }
 0x2e4   : > { %v8392_v13 = vpop.f32.mrf.mxu3  ;;  %6458 = vmatmul.msk.f32.gmra.mxu2 %vm1098_vm1, %v8254_v2  ;;  %6498 = vmatmul.msk.f32.gmra.mxu3 %vm1098_vm1, %v8254_v2  ;;  %v805_v2 = vrot.slane %v7864_v49, 2 }
 0x2e5   : > { %v8388_v38 = vpop.f32.mrf.mxu0  ;;  %v8396_v39 = vpop.f32.mrf.mxu1 }
 0x2e6   : > { %11583 = vst [vmem:[#allocation83_spill] sm:$0xff] %v8388_v38  ;;  %v8390_v42 = vpop.f32.mrf.mxu2 }
 0x2e7   : > { %11584 = vst [vmem:[#allocation84_spill] sm:$0xff] %v8396_v39  ;;  %v800_v39 = vrot.slane %v7838_v32, 4 }
 0x2e9   : > { %v8394_v25 = vld.sshfl [vmem:[#allocation1 + $0x20] sm:$0xff pattern:$0x73625140] }
 0x2ea   : > { %2005 = vst [vmem:[#allocation1 + $0x20] ss:$4 sm:$0xff] %v6299_v46 }
 0x2eb   : > { %2007 = vst [vmem:[#allocation1 + $0x21] ss:$4 sm:$0xff] %v793_v6  ;;  %v799_v6 = vrot.slane %v7838_v32, 2 }
 0x2ec   : > { %2009 = vst [vmem:[#allocation1 + $0x22] ss:$4 sm:$0xff] %v794_v59  ;;  %v8406_v24 = vpop.f32.mrf.mxu3  ;;  %6459 = vmatmul.msk.f32.gmra.mxu2 %vm1098_vm1, %v7712_v23  ;;  %6499 = vmatmul.msk.f32.gmra.mxu3 %vm1098_vm1, %v7712_v23  ;;  %v11591_v23 = vrot.slane %v7845_v60, 6 }
 0x2ed   : > { %2011 = vst [vmem:[#allocation1 + $0x23] ss:$4 sm:$0xff] %v795_v21  ;;  %v8402_v10 = vpop.f32.mrf.mxu0  ;;  %v8409_v46 = vpop.f32.mrf.mxu1 }
 0x2ee   : > { %11585 = vst [vmem:[#allocation85_spill] sm:$0xff] %v8402_v10  ;;  %v8404_v38 = vpop.f32.mrf.mxu2  ;;  %v11605_v10 = vld [vmem:[#allocation25_spill] sm:$0xff] }
 0x2ef   : > { %11586 = vst [vmem:[#allocation86_spill] sm:$0xff] %v8409_v46 }
 0x2f4   : > { %v2013_v59 = vld.sshfl [vmem:[#allocation1 + $0x20] sm:$0xff pattern:$0x73625140]  ;;  %v8424_v21 = vpop.f32.mrf.mxu3  ;;  %6460 = vmatmul.msk.f32.gmra.mxu2 %vm1098_vm1, %v8278_v12  ;;  %6500 = vmatmul.msk.f32.gmra.mxu3 %vm1098_vm1, %v8278_v12 }
 0x2f5   : > { %6513 = vmatmul.msk.f32.gmra.mxu0 %vm1098_vm1, %v2013_v59  ;;  %2019 = vst [vmem:[#allocation1 + $0x21] ss:$4 sm:$0xff] %v7838_v32  ;;  %v8419_v4 = vpop.f32.mrf.mxu0  ;;  %6553 = vmatmul.msk.f32.gmra.mxu1 %vm1098_vm1, %v2013_v59  ;;  %v8426_v46 = vpop.f32.mrf.mxu1  ;;  %v11590_v59 = vrot.slane %v7845_v60, 4  ;;  %v11595_v12 = vld [vmem:[#allocation19_spill] sm:$0xff] }
 0x2f6   : > { %11587 = vst [vmem:[#allocation87_spill] sm:$0xff] %v8419_v4  ;;  %v8422_v47 = vpop.f32.mrf.mxu2 }
 0x2f7   : > { %2018 = vst [vmem:[#allocation1 + $0x20] ss:$4 sm:$0xff] %v798_v40 }
 0x2f8   : > { %2020 = vst [vmem:[#allocation1 + $0x22] ss:$4 sm:$0xff] %v799_v6 }
 0x2f9   : > { %2021 = vst [vmem:[#allocation1 + $0x23] ss:$4 sm:$0xff] %v800_v39 }
 0x2fa   : > { %11588 = vst [vmem:[#allocation88_spill] sm:$0xff] %v8426_v46 }
 0x2fc   : > { %v8442_v6 = vpop.f32.mrf.mxu3  ;;  %6461 = vmatmul.msk.f32.gmra.mxu2 %vm1098_vm1, %v11595_v12  ;;  %6501 = vmatmul.msk.f32.gmra.mxu3 %vm1098_vm1, %v11595_v12 }
 0x2fd   : > { %6514 = vmatmul.msk.f32.gmra.mxu0 %vm1098_vm1, %v7852_v35  ;;  %v8434_v32 = vpop.f32.mrf.mxu0  ;;  %6554 = vmatmul.msk.f32.gmra.mxu1 %vm1098_vm1, %v7852_v35  ;;  %v8448_v46 = vpop.f32.mrf.mxu1 }
 0x2fe   : > { %11589 = vst [vmem:[#allocation89_spill] sm:$0xff] %v8434_v32  ;;  %v8440_v39 = vpop.f32.mrf.mxu2 }
 0x2ff   : > { %11592 = vst [vmem:[#allocation90_spill] sm:$0xff] %v8448_v46  ;;  %v810_v46 = vrot.slane %v7881_v52, 6 }
 0x300   : > { %v2023_v40 = vld.sshfl [vmem:[#allocation1 + $0x20] sm:$0xff pattern:$0x73625140] }
 0x301   : > { %2030 = vst [vmem:[#allocation1 + $0x22] ss:$4 sm:$0xff] %v7864_v49  ;;  %v808_v49 = vrot.slane %v7881_v52, 2 }
 0x302   : > { %2028 = vst [vmem:[#allocation1 + $0x20] ss:$4 sm:$0xff] %v11590_v59 }
 0x303   : > { %2029 = vst [vmem:[#allocation1 + $0x21] ss:$4 sm:$0xff] %v11591_v23 }
 0x304   : > { %2031 = vst [vmem:[#allocation1 + $0x23] ss:$4 sm:$0xff] %v805_v2  ;;  %v8461_v59 = vpop.f32.mrf.mxu3  ;;  %v809_v2 = vrot.slane %v7881_v52, 4  ;;  %v6310_v52 = vld [vmem:[%s7002_s17 + $0x90] sm:$0xff]  ;;  %6462 = vmatmul.msk.f32.gmra.mxu2 %vm1098_vm1, %v8305_v11  ;;  %6502 = vmatmul.msk.f32.gmra.mxu3 %vm1098_vm1, %v8305_v11  ;;  %v11600_v11 = vld [vmem:[#allocation8_spill] sm:$0xff] }
 0x305   : > { %6515 = vmatmul.msk.f32.gmra.mxu0 %vm1098_vm1, %v2023_v40  ;;  %v8455_v35 = vpop.f32.mrf.mxu0  ;;  %6555 = vmatmul.msk.f32.gmra.mxu1 %vm1098_vm1, %v2023_v40  ;;  %v8465_v32 = vpop.f32.mrf.mxu1  ;;  %v815_v4 = vrot.slane %v6310_v52, 4 }
 0x306   : > { %11593 = vst [vmem:[#allocation91_spill] sm:$0xff] %v8455_v35  ;;  %v8459_v60 = vpop.f32.mrf.mxu2  ;;  %v814_v35 = vrot.slane %v6310_v52, 2 }
 0x307   : > { %11594 = vst [vmem:[#allocation92_spill] sm:$0xff] %v8465_v32 }
 0x30b   : > { %v2033_v23 = vld.sshfl [vmem:[#allocation1 + $0x20] sm:$0xff pattern:$0x73625140] }
 0x30c   : > { %2041 = vst [vmem:[#allocation1 + $0x23] ss:$4 sm:$0xff] %v7887_v61  ;;  %v8481_v61 = vpop.f32.mrf.mxu3  ;;  %6463 = vmatmul.msk.f32.gmra.mxu2 %vm1098_vm1, %v11600_v11  ;;  %6503 = vmatmul.msk.f32.gmra.mxu3 %vm1098_vm1, %v11600_v11 }
 0x30d   : > { %2038 = vst [vmem:[#allocation1 + $0x20] ss:$4 sm:$0xff] %v808_v49  ;;  %6516 = vmatmul.msk.f32.gmra.mxu0 %vm1098_vm1, %v7878_v31  ;;  %v8474_v40 = vpop.f32.mrf.mxu0  ;;  %6556 = vmatmul.msk.f32.gmra.mxu1 %vm1098_vm1, %v7878_v31  ;;  %v8483_v49 = vpop.f32.mrf.mxu1  ;;  %v816_v31 = vrot.slane %v6310_v52, 6 }
 0x30e   : > { %2039 = vst [vmem:[#allocation1 + $0x21] ss:$4 sm:$0xff] %v809_v2  ;;  %v8479_v32 = vpop.f32.mrf.mxu2 }
 0x30f   : > { %11596 = vst [vmem:[#allocation19_spill] sm:$0xff] %v8474_v40 }
 0x310   : > { %2040 = vst [vmem:[#allocation1 + $0x22] ss:$4 sm:$0xff] %v810_v46 }
 0x311   : > { %11597 = vst [vmem:[#allocation93_spill] sm:$0xff] %v8483_v49 }
 0x314   : > { %v8497_v40 = vpop.f32.mrf.mxu3  ;;  %6464 = vmatmul.msk.f32.gmra.mxu2 %vm1098_vm1, %v8337_v33  ;;  %6504 = vmatmul.msk.f32.gmra.mxu3 %vm1098_vm1, %v8337_v33 }
 0x315   : > { %6517 = vmatmul.msk.f32.gmra.mxu0 %vm1098_vm1, %v2033_v23  ;;  %v8490_v46 = vpop.f32.mrf.mxu0  ;;  %6557 = vmatmul.msk.f32.gmra.mxu1 %vm1098_vm1, %v2033_v23  ;;  %v8495_v49 = vpop.f32.mrf.mxu1 }
 0x316   : > { %11598 = vst [vmem:[#allocation94_spill] sm:$0xff] %v8490_v46  ;;  %v8493_v12 = vpop.f32.mrf.mxu2  ;;  %v6315_v46 = vld [vmem:[%s7002_s17 + $0xb8] sm:$0x3] }
 0x317   : > { %v2043_v2 = vld.sshfl [vmem:[#allocation1 + $0x20] sm:$0xff pattern:$0x73625140]  ;;  %11599 = vst [vmem:[#allocation95_spill] sm:$0xff] %v8495_v49 }
 0x318   : > { %2048 = vst [vmem:[#allocation1 + $0x20] ss:$4 sm:$0xff] %v6310_v52 }
 0x319   : > { %2049 = vst [vmem:[#allocation1 + $0x21] ss:$4 sm:$0xff] %v814_v35  ;;  %v820_v35 = vrot.slane %v7932_v0, 2 }
 0x31a   : > { %2050 = vst [vmem:[#allocation1 + $0x22] ss:$4 sm:$0xff] %v815_v4  ;;  %v6312_v4 = vld [vmem:[%s7002_s17 + $0xa0] sm:$0x3] }
 0x31b   : > { %2051 = vst [vmem:[#allocation1 + $0x23] ss:$4 sm:$0xff] %v816_v31  ;;  %v821_v31 = vrot.slane %v7932_v0, 4 }
 0x31c   : > { %6465 = vmatmul.msk.f32.gmra.mxu2 %vm1098_vm1, %v11605_v10  ;;  %6505 = vmatmul.msk.f32.gmra.mxu3 %vm1098_vm1, %v11605_v10 }
 0x31d   : > { %6518 = vmatmul.msk.f32.gmra.mxu0 %vm1098_vm1, %v7899_v28  ;;  %v8505_v23 = vpop.f32.mrf.mxu0  ;;  %6558 = vmatmul.msk.f32.gmra.mxu1 %vm1098_vm1, %v7899_v28  ;;  %v8515_v11 = vpop.f32.mrf.mxu1 }
 0x31e   : > { %11601 = vst [vmem:[#allocation8_spill] sm:$0xff] %v8505_v23  ;;  %v8512_v49 = vpop.f32.mrf.mxu2  ;;  %v8519_v28 = vpop.f32.mrf.mxu3 }
 0x31f   : > { %11602 = vst [vmem:[#allocation96_spill] sm:$0xff] %v8515_v11  ;;  %v826_v11 = vrot.slane %v7959_v8, 2 }
 0x322   : > { %v2053_v52 = vld.sshfl [vmem:[#allocation1 + $0x20] sm:$0xff pattern:$0x73625140] }
 0x323   : > { %2059 = vst [vmem:[#allocation1 + $0x21] ss:$4 sm:$0xff] %v7932_v0 }
 0x324   : > { %2058 = vst [vmem:[#allocation1 + $0x20] ss:$4 sm:$0xff] %v6312_v4  ;;  %6466 = vmatmul.msk.f32.gmra.mxu2 %vm1098_vm1, %v8368_v56  ;;  %6506 = vmatmul.msk.f32.gmra.mxu3 %vm1098_vm1, %v8368_v56 }
 0x325   : > { %2060 = vst [vmem:[#allocation1 + $0x22] ss:$4 sm:$0xff] %v820_v35  ;;  %6519 = vmatmul.msk.f32.gmra.mxu0 %vm1098_vm1, %v2043_v2  ;;  %v8524_v23 = vpop.f32.mrf.mxu0  ;;  %6559 = vmatmul.msk.f32.gmra.mxu1 %vm1098_vm1, %v2043_v2  ;;  %v8529_v4 = vpop.f32.mrf.mxu1 }
 0x326   : > { %2061 = vst [vmem:[#allocation1 + $0x23] ss:$4 sm:$0xff] %v821_v31  ;;  %v8527_v0 = vpop.f32.mrf.mxu2  ;;  %v825_v31 = vrot.slane %v7937_v51, 6  ;;  %v8545_v51 = vpop.f32.mrf.mxu3 }
 0x327   : > { %11603 = vst [vmem:[#allocation97_spill] sm:$0xff] %v8524_v23  ;;  %v6323_v23 = vld [vmem:[%s7002_s17 + $0xf8] sm:$0xff] }
 0x328   : > { %11604 = vst [vmem:[#allocation98_spill] sm:$0xff] %v8529_v4  ;;  %v6318_v4 = vld [vmem:[%s7002_s17 + $0xd0] sm:$0x3] }
 0x32d   : > { %v2063_v35 = vld.sshfl [vmem:[#allocation1 + $0x20] sm:$0xff pattern:$0x73625140]  ;;  %6520 = vmatmul.msk.f32.gmra.mxu0 %vm1098_vm1, %v7923_v50  ;;  %v8541_v33 = vpop.f32.mrf.mxu0  ;;  %6560 = vmatmul.msk.f32.gmra.mxu1 %vm1098_vm1, %v7923_v50 }
 0x32e   : > { %2070 = vst [vmem:[#allocation1 + $0x22] ss:$4 sm:$0xff] %v7959_v8  ;;  %v8547_v8 = vpop.f32.mrf.mxu1  ;;  %v8549_v2 = vpop.f32.mrf.mxu2 }
 0x32f   : > { %11606 = vst [vmem:[#allocation25_spill] sm:$0xff] %v8541_v33  ;;  %v11611_v33 = vld [vmem:[#allocation27_spill] sm:$0xff] }
 0x330   : > { %2068 = vst [vmem:[#allocation1 + $0x20] ss:$4 sm:$0xff] %v825_v31  ;;  %v11610_v31 = vrot.slane %v7964_v29, 6  ;;  %6467 = vmatmul.msk.f32.gmra.mxu2 %vm1098_vm1, %v11611_v33  ;;  %6507 = vmatmul.msk.f32.gmra.mxu3 %vm1098_vm1, %v11611_v33 }
 0x331   : > { %2069 = vst [vmem:[#allocation1 + $0x21] ss:$4 sm:$0xff] %v6315_v46  ;;  %v11608_v46 = vrot.slane %v7964_v29, 4 }
 0x332   : > { %2071 = vst [vmem:[#allocation1 + $0x23] ss:$4 sm:$0xff] %v826_v11  ;;  %v8560_v11 = vpop.f32.mrf.mxu3 }
 0x333   : > { %11607 = vst [vmem:[#allocation99_spill] sm:$0xff] %v8547_v8 }
 0x334   : > { %11609 = vst [vmem:[#allocation100_spill] sm:$0xff] %v8560_v11 }
 0x335   : > { %6521 = vmatmul.msk.f32.gmra.mxu0 %vm1098_vm1, %v2053_v52  ;;  %v1310_v10 = vpop.f32.mrf.mxu0  ;;  %6561 = vmatmul.msk.f32.gmra.mxu1 %vm1098_vm1, %v2053_v52 }
 0x336   : > { %v1442_v8 = vpop.f32.mrf.mxu1  ;;  %v8573_v56 = vpop.f32.mrf.mxu2  ;;  %v837_v10 = vrot.slane %v8003_v45, 6 }
 0x337   : > { %v836_v8 = vrot.slane %v8003_v45, 4 }
 0x338   : > { %6468 = vmatmul.msk.f32.gmra.mxu2 %vm1098_vm1, %v8394_v25  ;;  %6508 = vmatmul.msk.f32.gmra.mxu3 %vm1098_vm1, %v8394_v25  ;;  %v11616_v25 = vld [vmem:[#allocation42_spill] sm:$0xff] }
 0x339   : > { %v2073_v50 = vld.sshfl [vmem:[#allocation1 + $0x20] sm:$0xff pattern:$0x73625140] }
 0x33a   : > { %2081 = vst [vmem:[#allocation1 + $0x23] ss:$4 sm:$0xff] %v7984_v18  ;;  %v8575_v29 = vpop.f32.mrf.mxu3 }
 0x33b   : > { %2078 = vst [vmem:[#allocation1 + $0x20] ss:$4 sm:$0xff] %v11608_v46 }
 0x33c   : > { %2079 = vst [vmem:[#allocation1 + $0x21] ss:$4 sm:$0xff] %v11610_v31  ;;  %v11615_v31 = vld [vmem:[#allocation29_spill] sm:$0xff] }
 0x33d   : > { %6522 = vmatmul.msk.f32.gmra.mxu0 %vm1098_vm1, %v7949_v9  ;;  %v1312_v18 = vpop.f32.mrf.mxu0  ;;  %2080 = vst [vmem:[#allocation1 + $0x22] ss:$4 sm:$0xff] %v6318_v4  ;;  %6562 = vmatmul.msk.f32.gmra.mxu1 %vm1098_vm1, %v7949_v9  ;;  %v835_v9 = vrot.slane %v8003_v45, 2 }
 0x33e   : > { %11612 = vst [vmem:[#allocation27_spill] sm:$0xff] %v8575_v29  ;;  %v1444_v52 = vpop.f32.mrf.mxu1  ;;  %v8583_v4 = vpop.f32.mrf.mxu2 }
 0x33f   : > { %11613 = vst [vmem:[#allocation101_spill] sm:$0xff] %v8583_v4  ;;  %v843_v4 = vrot.slane %v6323_v23, 6 }
 0x340   : > { %6469 = vmatmul.msk.f32.gmra.mxu2 %vm1098_vm1, %v11615_v31  ;;  %6509 = vmatmul.msk.f32.gmra.mxu3 %vm1098_vm1, %v11615_v31 }
 0x342   : > { %v8585_v33 = vpop.f32.mrf.mxu3 }
 0x343   : > { %11614 = vst [vmem:[#allocation102_spill] sm:$0xff] %v8585_v33  ;;  %v841_v33 = vrot.slane %v6323_v23, 2 }
 0x344   : > { %v2083_v46 = vld.sshfl [vmem:[#allocation1 + $0x20] sm:$0xff pattern:$0x73625140] }
 0x345   : > { %6523 = vmatmul.msk.f32.gmra.mxu0 %vm1098_vm1, %v2063_v35  ;;  %6563 = vmatmul.msk.f32.gmra.mxu1 %vm1098_vm1, %v2063_v35  ;;  %v6321_v35 = vld [vmem:[%s7002_s17 + $0xe8] sm:$0x3]  ;;  %2088 = vst [vmem:[#allocation1 + $0x20] ss:$4 sm:$0xff] %v835_v9  ;;  %v842_v9 = vrot.slane %v6323_v23, 4 }
 0x346   : > { %2089 = vst [vmem:[#allocation1 + $0x21] ss:$4 sm:$0xff] %v836_v8  ;;  %v8599_v45 = vpop.f32.mrf.mxu2 }
 0x347   : > { %2090 = vst [vmem:[#allocation1 + $0x22] ss:$4 sm:$0xff] %v837_v10 }
 0x348   : > { %2091 = vst [vmem:[#allocation1 + $0x23] ss:$4 sm:$0xff] %v6321_v35 }
 0x349   : > { %11617 = vst [vmem:[#allocation29_spill] sm:$0xff] %v8599_v45 }
 0x34a   : > { %v8601_v18 = vpop.f32.mrf.mxu3 }
 0x34b   : > { %11618 = vst [vmem:[#allocation42_spill] sm:$0xff] %v8601_v18 }
 0x34d   : > { %6524 = vmatmul.msk.f32.gmra.mxu0 %vm1098_vm1, %v11616_v25  ;;  %6564 = vmatmul.msk.f32.gmra.mxu1 %vm1098_vm1, %v11616_v25  ;;  %v11620_v25 = vld [vmem:[#allocation43_spill] sm:$0xff] }
 0x34e   : > { %v8605_v52 = vpop.f32.mrf.mxu2 }
 0x34f   : > { %11619 = vst [vmem:[#allocation103_spill] sm:$0xff] %v8605_v52  ;;  %v2093_v31 = vld.sshfl [vmem:[#allocation1 + $0x20] sm:$0xff pattern:$0x73625140]  ;;  %v11628_v52 = vld [vmem:[#allocation18_spill] sm:$0xff] }
 0x350   : > { %2098 = vst [vmem:[#allocation1 + $0x20] ss:$4 sm:$0xff] %v6323_v23  ;;  %v1884_v45 = vadd.f32 %v8251_v34, %v11628_v52 }
 0x351   : > { %2099 = vst [vmem:[#allocation1 + $0x21] ss:$4 sm:$0xff] %v841_v33 }
 0x352   : > { %v8612_v8 = vpop.f32.mrf.mxu3  ;;  %2100 = vst [vmem:[#allocation1 + $0x22] ss:$4 sm:$0xff] %v842_v9 }
 0x353   : > { %11621 = vst [vmem:[#allocation43_spill] sm:$0xff] %v8612_v8  ;;  %v2299_v33 = vpop.f32.mrf.mxu0  ;;  %v2431_v35 = vpop.f32.mrf.mxu1  ;;  %v847_v8 = vrot.slane %v8045_v7, 2 }
 0x354   : > { %2101 = vst [vmem:[#allocation1 + $0x23] ss:$4 sm:$0xff] %v843_v4  ;;  %v848_v4 = vrot.slane %v8045_v7, 4 }
 0x355   : > { %6525 = vmatmul.msk.f32.gmra.mxu0 %vm1098_vm1, %v2073_v50  ;;  %6565 = vmatmul.msk.f32.gmra.mxu1 %vm1098_vm1, %v2073_v50 }
 0x356   : > { %v8614_v50 = vpop.f32.mrf.mxu2 }
 0x357   : > { %11622 = vst [vmem:[#allocation104_spill] sm:$0xff] %v8614_v50  ;;  %v11626_v50 = vld [vmem:[#allocation16_spill] sm:$0xff] }
 0x35a   : > { %v8621_v23 = vpop.f32.mrf.mxu3 }
 0x35b   : > { %v8618_v10 = vld.sshfl [vmem:[#allocation1 + $0x20] sm:$0xff pattern:$0x73625140]  ;;  %11623 = vst [vmem:[#allocation105_spill] sm:$0xff] %v8621_v23 }
 0x35c   : > { %2109 = vst [vmem:[#allocation1 + $0x21] ss:$4 sm:$0xff] %v8045_v7  ;;  %v11627_v7 = vld [vmem:[#allocation17_spill] sm:$0xff] }
 0x35d   : > { %6526 = vmatmul.msk.f32.gmra.mxu0 %vm1098_vm1, %v11620_v25  ;;  %6566 = vmatmul.msk.f32.gmra.mxu1 %vm1098_vm1, %v11620_v25  ;;  %v846_v25 = vrot.slane %v8027_v1, 6  ;;  %2110 = vst [vmem:[#allocation1 + $0x22] ss:$4 sm:$0xff] %v847_v8  ;;  %v1881_v1 = vadd.f32 %v8229_v37, %v11626_v50 }
 0x35e   : > { %v8626_v9 = vpop.f32.mrf.mxu2  ;;  %2111 = vst [vmem:[#allocation1 + $0x23] ss:$4 sm:$0xff] %v848_v4  ;;  %v11630_v4 = vld [vmem:[#allocation20_spill] sm:$0xff] }
 0x35f   : > { %11624 = vst [vmem:[#allocation106_spill] sm:$0xff] %v8626_v9  ;;  %v1752_v9 = vadd.f32 %v8249_v63, %v11627_v7 }
 0x360   : > { %2108 = vst [vmem:[#allocation1 + $0x20] ss:$4 sm:$0xff] %v846_v25  ;;  %v2547_v25 = vadd.f32 %v2431_v35, %v1881_v1  ;;  %v11629_v35 = vrot.slane %v8053_v14, 4  ;;  %v11632_v1 = vrot.slane %v8053_v14, 6 }
 0x362   : > { %v8642_v29 = vpop.f32.mrf.mxu3  ;;  %v2913_v63 = vrot.slane %v2547_v25, 2 }
 0x365   : > { %6527 = vmatmul.msk.f32.gmra.mxu0 %vm1098_vm1, %v2083_v46  ;;  %6567 = vmatmul.msk.f32.gmra.mxu1 %vm1098_vm1, %v2083_v46  ;;  %v11625_v46 = vld [vmem:[#allocation15_spill] sm:$0xff] }
 0x366   : > { %v1749_v23 = vadd.f32 %v8227_v20, %v11625_v46  ;;  %v8650_v34 = vpop.f32.mrf.mxu2 }
 0x367   : > { %v8652_v52 = vld.sshfl [vmem:[#allocation1 + $0x20] sm:$0xff pattern:$0x73625140] }
 0x368   : > { %v8636_v18 = vadd.f32 %v2299_v33, %v1749_v23  ;;  %2120 = vst [vmem:[#allocation1 + $0x22] ss:$4 sm:$0xff] %v8071_v58 }
 0x369   : > { %2118 = vst [vmem:[#allocation1 + $0x20] ss:$4 sm:$0xff] %v11629_v35 }
 0x36a   : > { %v2658_v37 = vrot.slane %v8636_v18, 1  ;;  %2119 = vst [vmem:[#allocation1 + $0x21] ss:$4 sm:$0xff] %v11632_v1 }
 0x36d   : > { %6528 = vmatmul.msk.f32.gmra.mxu0 %vm1098_vm1, %v8017_v15  ;;  %6568 = vmatmul.msk.f32.gmra.mxu1 %vm1098_vm1, %v8017_v15 }
 0x372   : > { %v2302_v15 = vpop.f32.mrf.mxu0  ;;  %v2434_v8 = vpop.f32.mrf.mxu1 }
 0x373   : > { %v8644_v11 = vadd.f32 %v2302_v15, %v1752_v9  ;;  %v2549_v20 = vadd.f32 %v2434_v8, %v1884_v45  ;;  %v11631_v9 = vld [vmem:[#allocation21_spill] sm:$0xff]  ;;  %v853_v8 = vrot.slane %v8071_v58, 2  ;;  %v11633_v58 = vld [vmem:[#allocation22_spill] sm:$0xff] }
 0x374   : > { %v1887_v46 = vadd.f32 %v8271_v44, %v11631_v9  ;;  %v1758_v35 = vadd.f32 %v8288_v55, %v11633_v58 }
 0x375   : > { %v2659_v50 = vrot.slane %v8644_v11, 1  ;;  %6529 = vmatmul.msk.f32.gmra.mxu0 %vm1098_vm1, %v2093_v31  ;;  %v2914_v23 = vrot.slane %v2549_v20, 2  ;;  %6569 = vmatmul.msk.f32.gmra.mxu1 %vm1098_vm1, %v2093_v31  ;;  %v1755_v31 = vadd.f32 %v8269_v57, %v11630_v4  ;;  %2121 = vst [vmem:[#allocation1 + $0x23] ss:$4 sm:$0xff] %v853_v8  ;;  %v11634_v4 = vld [vmem:[#allocation23_spill] sm:$0xff]  ;;  %v11635_v8 = vld [vmem:[#allocation24_spill] sm:$0xff] }
 0x377   : > { %v2660_v33 = vsel %vm2657_vm2, %v2658_v37, %v2659_v50  ;;  %v8657_v45 = vsel %vm2912_vm3, %v2913_v63, %v2914_v23  ;;  %v8671_v37 = vpop.f32.mrf.mxu3 }
 0x378   : > { %2731 = vrot.lane.b32.xlu0 %v2660_v33, %s6907_s29  ;;  %v8682_v33 = vpop.f32.mrf.mxu2 }
 0x37a   : > { %v2305_v7 = vpop.f32.mrf.mxu0  ;;  %v2437_v25 = vpop.f32.mrf.mxu1 }
 0x37b   : > { %v8668_v15 = vadd.f32 %v2305_v7, %v1755_v31  ;;  %v2551_v20 = vadd.f32 %v2437_v25, %v1887_v46  ;;  %v1890_v31 = vadd.f32 %v8290_v5, %v11634_v4 }
 0x37c   : > { %v8691_v7 = vld.sshfl [vmem:[#allocation1 + $0x20] sm:$0xff pattern:$0x73625140] }
 0x37d   : > { %v2661_v63 = vrot.slane %v8668_v15, 1  ;;  %6530 = vmatmul.msk.f32.gmra.mxu0 %vm1098_vm1, %v8041_v16  ;;  %v2916_v57 = vrot.slane %v2551_v20, 2  ;;  %6570 = vmatmul.msk.f32.gmra.mxu1 %vm1098_vm1, %v8041_v16  ;;  %2131 = vst [vmem:[#allocation1 + $0x23] ss:$4 sm:$0xff] %v8093_v36  ;;  %v1761_v36 = vadd.f32 %v8310_v43, %v11635_v8  ;;  %v11636_v20 = vld [vmem:[#allocation9_spill] sm:$0xff] }
 0x37e   : > { %2128 = vst [vmem:[#allocation1 + $0x20] ss:$4 sm:$0xff] %v7541_v30 }
 0x37f   : > { %v2662_v14 = vsel %vm2657_vm2, %v2659_v50, %v2661_v63  ;;  %v8680_v44 = vsel %vm2912_vm3, %v2914_v23, %v2916_v57  ;;  %v8699_v55 = vpop.f32.mrf.mxu3  ;;  %2129 = vst [vmem:[#allocation1 + $0x21] ss:$4 sm:$0xff] %v7550_v62 }
 0x380   : > { %2733 = vrot.lane.b32.xlu1 %v2662_v14, %s6907_s29  ;;  %v1893_v14 = vadd.f32 %v8312_v53, %v11636_v20 }
 0x382   : > { %v2308_v9 = vpop.f32.mrf.mxu0  ;;  %v2440_v46 = vpop.f32.mrf.mxu1 }
 0x383   : > { %v8689_v1 = vadd.f32 %v2308_v9, %v1758_v35  ;;  %v2553_v16 = vadd.f32 %v2440_v46, %v1890_v31  ;;  %v11639_v9 = vld [vmem:[#allocation26_spill] sm:$0xff] }
 0x384   : > { %v1764_v46 = vadd.f32 %v8327_v19, %v11639_v9 }
 0x385   : > { %v2663_v50 = vrot.slane %v8689_v1, 1  ;;  %6531 = vmatmul.msk.f32.gmra.mxu0 %vm1098_vm1, %v8618_v10  ;;  %v2918_v23 = vrot.slane %v2553_v16, 2  ;;  %6571 = vmatmul.msk.f32.gmra.mxu1 %vm1098_vm1, %v8618_v10  ;;  %v8712_v10 = vpop.f32.mrf.mxu2  ;;  %v11640_v16 = vld [vmem:[#allocation28_spill] sm:$0xff] }
 0x387   : > { %v2664_v5 = vsel %vm2657_vm2, %v2661_v63, %v2663_v50  ;;  %v8705_v25 = vsel %vm2912_vm3, %v2916_v57, %v2918_v23  ;;  %v11637_v57 = vld [vmem:[#allocation13_spill] sm:$0xff]  ;;  %v8726_v31 = vpop.f32.mrf.mxu3 }
 0x388   : > { %2735 = vrot.lane.b32.xlu0 %v2664_v5, %s6907_s29  ;;  %2130 = vst [vmem:[#allocation1 + $0x22] ss:$4 sm:$0xff] %v11637_v57  ;;  %v1896_v5 = vadd.f32 %v8329_v54, %v11640_v16  ;;  %v6334_v16 = vld [vmem:[%s7002_s17 + $0x150] sm:$0xff] }
 0x38a   : > { %v2311_v58 = vpop.f32.mrf.mxu0  ;;  %v2443_v35 = vpop.f32.mrf.mxu1 }
 0x38b   : > { %v8714_v30 = vadd.f32 %v2311_v58, %v1761_v36  ;;  %v2555_v63 = vadd.f32 %v2443_v35, %v1893_v14  ;;  %v11642_v58 = vld [vmem:[#allocation30_spill] sm:$0xff] }
 0x38c   : > { %v1767_v35 = vadd.f32 %v8354_v41, %v11642_v58 }
 0x38d   : > { %v2665_v62 = vrot.slane %v8714_v30, 1  ;;  %6532 = vmatmul.msk.f32.gmra.mxu0 %vm1098_vm1, %v8061_v48  ;;  %v2920_v4 = vrot.slane %v2555_v63, 2  ;;  %6572 = vmatmul.msk.f32.gmra.mxu1 %vm1098_vm1, %v8061_v48 }
 0x38f   : > { %v2666_v43 = vsel %vm2657_vm2, %v2663_v50, %v2665_v62  ;;  %v8724_v53 = vsel %vm2912_vm3, %v2918_v23, %v2920_v4  ;;  %v8735_v50 = vpop.f32.mrf.mxu2  ;;  %v8749_v63 = vpop.f32.mrf.mxu3 }
 0x390   : > { %11638 = vst [vmem:[#allocation15_spill] sm:$0xff] %v8724_v53  ;;  %2737 = vrot.lane.b32.xlu1 %v2666_v43, %s6907_s29  ;;  %v11643_v43 = vld [vmem:[#allocation10_spill] sm:$0xff]  ;;  %v11725_v53 = vld [vmem:[#allocation104_spill] sm:$0xff] }
 0x391   : > { %v1899_v9 = vadd.f32 %v8356_v26, %v11643_v43  ;;  %v11646_v43 = vld [vmem:[#allocation11_spill] sm:$0xff] }
 0x392   : > { %v2314_v8 = vpop.f32.mrf.mxu0  ;;  %v2446_v36 = vpop.f32.mrf.mxu1 }
 0x393   : > { %v8733_v20 = vadd.f32 %v2314_v8, %v1764_v46  ;;  %v2557_v48 = vadd.f32 %v2446_v36, %v1896_v5  ;;  %v8753_v46 = vld.sshfl [vmem:[#allocation1 + $0x20] sm:$0xff pattern:$0x73625140]  ;;  %v864_v8 = vrot.slane %v6334_v16, 6 }
 0x394   : > { %2138 = vst [vmem:[#allocation1 + $0x20] ss:$4 sm:$0xff] %v6334_v16 }
 0x395   : > { %11641 = vst [vmem:[#allocation16_spill] sm:$0xff] %v8733_v20  ;;  %v2667_v23 = vrot.slane %v8733_v20, 1  ;;  %6533 = vmatmul.msk.f32.gmra.mxu0 %vm1098_vm1, %v8652_v52  ;;  %v2922_v14 = vrot.slane %v2557_v48, 2  ;;  %6573 = vmatmul.msk.f32.gmra.mxu1 %vm1098_vm1, %v8652_v52  ;;  %v11662_v20 = vld [vmem:[#allocation51_spill] sm:$0xff] }
 0x396   : > { %2141 = vst [vmem:[#allocation1 + $0x23] ss:$4 sm:$0xff] %v864_v8 }
 0x397   : > { %v2668_v19 = vsel %vm2657_vm2, %v2665_v62, %v2667_v23  ;;  %v8744_v54 = vsel %vm2912_vm3, %v2920_v4, %v2922_v14  ;;  %v862_v62 = vrot.slane %v6334_v16, 2  ;;  %v863_v4 = vrot.slane %v6334_v16, 4  ;;  %v8763_v26 = vpop.f32.mrf.mxu2 }
 0x398   : > { %2739 = vrot.lane.b32.xlu2 %v2668_v19, %s6907_s29 }
 0x399   : > { %2139 = vst [vmem:[#allocation1 + $0x21] ss:$4 sm:$0xff] %v862_v62 }
 0x39a   : > { %v2317_v57 = vpop.f32.mrf.mxu0  ;;  %v2449_v52 = vpop.f32.mrf.mxu1  ;;  %2140 = vst [vmem:[#allocation1 + $0x22] ss:$4 sm:$0xff] %v863_v4 }
 0x39b   : > { %v8756_v5 = vadd.f32 %v2317_v57, %v1767_v35  ;;  %v2559_v36 = vadd.f32 %v2449_v52, %v1899_v9  ;;  %v11645_v35 = vld [vmem:[#allocation31_spill] sm:$0xff]  ;;  %v1902_v9 = vadd.f32 %v8375_v17, %v11646_v43  ;;  %v8776_v4 = vpop.f32.mrf.mxu3 }
 0x39c   : > { %v1770_v57 = vadd.f32 %v8373_v22, %v11645_v35 }
 0x39d   : > { %v2669_v48 = vrot.slane %v8756_v5, 1  ;;  %6534 = vmatmul.msk.f32.gmra.mxu0 %vm1098_vm1, %v8088_v27  ;;  %6574 = vmatmul.msk.f32.gmra.mxu1 %vm1098_vm1, %v8088_v27  ;;  %v2924_v41 = vrot.slane %v2559_v36, 2 }
 0x39f   : > { %v2670_v19 = vsel %vm2657_vm2, %v2667_v23, %v2669_v48  ;;  %v8768_v58 = vsel %vm2912_vm3, %v2922_v14, %v2924_v41  ;;  %v8790_v36 = vpop.f32.mrf.mxu2 }
 0x3a0   : > { %2741 = vrot.lane.b32.xlu1 %v2670_v19, %s6907_s29  ;;  %11644 = vst [vmem:[#allocation17_spill] sm:$0xff] %v8768_v58  ;;  %v11648_v19 = vld [vmem:[#allocation32_spill] sm:$0xff] }
 0x3a1   : > { %v8783_v22 = vld.sshfl [vmem:[#allocation1 + $0x20] sm:$0xff pattern:$0x73625140]  ;;  %v1773_v35 = vadd.f32 %v8390_v42, %v11648_v19  ;;  %v11653_v19 = vld [vmem:[#allocation34_spill] sm:$0xff] }
 0x3a2   : > { %v2320_v16 = vpop.f32.mrf.mxu0  ;;  %v2452_v27 = vpop.f32.mrf.mxu1  ;;  %2149 = vst [vmem:[#allocation1 + $0x21] ss:$4 sm:$0xff] %v8151_v3  ;;  %v11651_v58 = vld [vmem:[#allocation48_spill] sm:$0xff] }
 0x3a3   : > { %v8774_v52 = vadd.f32 %v2320_v16, %v1770_v57  ;;  %v2561_v62 = vadd.f32 %v2452_v27, %v1902_v9  ;;  %v11649_v57 = vld [vmem:[#allocation33_spill] sm:$0xff]  ;;  %v869_v27 = vrot.slane %v8151_v3, 4 }
 0x3a4   : > { %v1905_v43 = vadd.f32 %v8392_v13, %v11649_v57  ;;  %v8807_v13 = vpop.f32.mrf.mxu3  ;;  %v11654_v57 = vld [vmem:[#allocation12_spill] sm:$0xff] }
 0x3a5   : > { %11647 = vst [vmem:[#allocation18_spill] sm:$0xff] %v8774_v52  ;;  %v2671_v23 = vrot.slane %v8774_v52, 1  ;;  %6535 = vmatmul.msk.f32.gmra.mxu0 %vm1098_vm1, %v8691_v7  ;;  %v2926_v14 = vrot.slane %v2561_v62, 2  ;;  %6575 = vmatmul.msk.f32.gmra.mxu1 %vm1098_vm1, %v8691_v7  ;;  %v6336_v62 = vld [vmem:[%s7002_s17 + $0x160] sm:$0x3] }
 0x3a6   : > { %2148 = vst [vmem:[#allocation1 + $0x20] ss:$4 sm:$0xff] %v6336_v62 }
 0x3a7   : > { %v2672_v17 = vsel %vm2657_vm2, %v2669_v48, %v2671_v23  ;;  %v8788_v8 = vsel %vm2912_vm3, %v2924_v41, %v2926_v14  ;;  %v868_v48 = vrot.slane %v8151_v3, 2  ;;  %2151 = vst [vmem:[#allocation1 + $0x23] ss:$4 sm:$0xff] %v869_v27  ;;  %v11656_v27 = vld [vmem:[#allocation58_spill] sm:$0xff] }
 0x3a8   : > { %2743 = vrot.lane.b32.xlu2 %v2672_v17, %s6907_s29 }
 0x3a9   : > { %2150 = vst [vmem:[#allocation1 + $0x22] ss:$4 sm:$0xff] %v868_v48 }
 0x3aa   : > { %v2323_v7 = vpop.f32.mrf.mxu0  ;;  %v2455_v9 = vpop.f32.mrf.mxu1 }
 0x3ab   : > { %v8797_v16 = vadd.f32 %v2323_v7, %v1773_v35  ;;  %v2563_v41 = vadd.f32 %v2455_v9, %v1905_v43  ;;  %v1776_v35 = vadd.f32 %v8404_v38, %v11653_v19  ;;  %v1908_v43 = vadd.f32 %v8406_v24, %v11654_v57  ;;  %v8818_v7 = vpop.f32.mrf.mxu2  ;;  %v11658_v19 = vld [vmem:[#allocation35_spill] sm:$0xff]  ;;  %v11659_v57 = vld [vmem:[#allocation36_spill] sm:$0xff] }
 0x3ad   : > { %11650 = vst [vmem:[#allocation20_spill] sm:$0xff] %v8797_v16  ;;  %v2673_v52 = vrot.slane %v8797_v16, 1  ;;  %6536 = vmatmul.msk.f32.gmra.mxu0 %vm1098_vm1, %v11651_v58  ;;  %v2928_v42 = vrot.slane %v2563_v41, 2  ;;  %6576 = vmatmul.msk.f32.gmra.mxu1 %vm1098_vm1, %v11651_v58  ;;  %v11724_v16 = vld [vmem:[#allocation70_spill] sm:$0xff] }
 0x3af   : > { %v2674_v17 = vsel %vm2657_vm2, %v2671_v23, %v2673_v52  ;;  %v8811_v3 = vsel %vm2912_vm3, %v2926_v14, %v2928_v42 }
 0x3b0   : > { %11652 = vst [vmem:[#allocation21_spill] sm:$0xff] %v8811_v3  ;;  %2745 = vrot.lane.b32.xlu0 %v2674_v17, %s6907_s29  ;;  %v8827_v38 = vld.sshfl [vmem:[#allocation1 + $0x20] sm:$0xff pattern:$0x73625140]  ;;  %v8834_v17 = vpop.f32.mrf.mxu3 }
 0x3b1   : > { %2160 = vst [vmem:[#allocation1 + $0x22] ss:$4 sm:$0xff] %v11656_v27 }
 0x3b2   : > { %v2326_v58 = vpop.f32.mrf.mxu0  ;;  %v2458_v9 = vpop.f32.mrf.mxu1 }
 0x3b3   : > { %v8820_v41 = vadd.f32 %v2326_v58, %v1776_v35  ;;  %v2565_v48 = vadd.f32 %v2458_v9, %v1908_v43  ;;  %v1779_v35 = vadd.f32 %v8422_v47, %v11658_v19  ;;  %v8845_v3 = vpop.f32.mrf.mxu2  ;;  %v11664_v19 = vld [vmem:[#allocation37_spill] sm:$0xff] }
 0x3b5   : > { %11655 = vst [vmem:[#allocation22_spill] sm:$0xff] %v8820_v41  ;;  %v2675_v23 = vrot.slane %v8820_v41, 1  ;;  %6537 = vmatmul.msk.f32.gmra.mxu0 %vm1098_vm1, %v8753_v46  ;;  %v2930_v14 = vrot.slane %v2565_v48, 2  ;;  %6577 = vmatmul.msk.f32.gmra.mxu1 %vm1098_vm1, %v8753_v46  ;;  %v1911_v46 = vadd.f32 %v8424_v21, %v11659_v57  ;;  %v874_v41 = vrot.slane %v11656_v27, 2  ;;  %v11665_v57 = vld [vmem:[#allocation38_spill] sm:$0xff] }
 0x3b7   : > { %v2676_v24 = vsel %vm2657_vm2, %v2673_v52, %v2675_v23  ;;  %v8832_v62 = vsel %vm2912_vm3, %v2928_v42, %v2930_v14  ;;  %v11661_v52 = vld [vmem:[#allocation54_spill] sm:$0xff]  ;;  %2161 = vst [vmem:[#allocation1 + $0x23] ss:$4 sm:$0xff] %v874_v41 }
 0x3b8   : > { %11657 = vst [vmem:[#allocation23_spill] sm:$0xff] %v8832_v62  ;;  %2747 = vrot.lane.b32.xlu2 %v2676_v24, %s6907_s29  ;;  %v873_v48 = vrot.slane %v11661_v52, 6  ;;  %v6339_v62 = vld [vmem:[%s7002_s17 + $0x178] sm:$0x3] }
 0x3b9   : > { %2159 = vst [vmem:[#allocation1 + $0x21] ss:$4 sm:$0xff] %v6339_v62 }
 0x3ba   : > { %v2329_v43 = vpop.f32.mrf.mxu0  ;;  %v2461_v58 = vpop.f32.mrf.mxu1  ;;  %2158 = vst [vmem:[#allocation1 + $0x20] ss:$4 sm:$0xff] %v873_v48  ;;  %v11667_v48 = vld [vmem:[#allocation64_spill] sm:$0xff] }
 0x3bb   : > { %v8841_v9 = vadd.f32 %v2329_v43, %v1779_v35  ;;  %v2567_v42 = vadd.f32 %v2461_v58, %v1911_v46  ;;  %v1782_v35 = vadd.f32 %v8440_v39, %v11664_v19  ;;  %v1914_v46 = vadd.f32 %v8442_v6, %v11665_v57  ;;  %v8862_v43 = vpop.f32.mrf.mxu3  ;;  %v8871_v39 = vpop.f32.mrf.mxu2 }
 0x3bd   : > { %11660 = vst [vmem:[#allocation24_spill] sm:$0xff] %v8841_v9  ;;  %v2677_v24 = vrot.slane %v8841_v9, 1  ;;  %6538 = vmatmul.msk.f32.gmra.mxu0 %vm1098_vm1, %v11662_v20  ;;  %v2932_v47 = vrot.slane %v2567_v42, 2  ;;  %6578 = vmatmul.msk.f32.gmra.mxu1 %vm1098_vm1, %v11662_v20 }
 0x3bf   : > { %v2678_v21 = vsel %vm2657_vm2, %v2675_v23, %v2677_v24  ;;  %v8855_v27 = vsel %vm2912_vm3, %v2930_v14, %v2932_v47 }
 0x3c0   : > { %11663 = vst [vmem:[#allocation9_spill] sm:$0xff] %v8855_v27  ;;  %2749 = vrot.lane.b32.xlu0 %v2678_v21, %s6907_s29  ;;  %v11669_v21 = vld [vmem:[#allocation39_spill] sm:$0xff] }
 0x3c1   : > { %v8873_v6 = vld.sshfl [vmem:[#allocation1 + $0x20] sm:$0xff pattern:$0x73625140]  ;;  %v1785_v19 = vadd.f32 %v8459_v60, %v11669_v21 }
 0x3c2   : > { %v2332_v58 = vpop.f32.mrf.mxu0  ;;  %v2464_v52 = vpop.f32.mrf.mxu1  ;;  %2171 = vst [vmem:[#allocation1 + $0x23] ss:$4 sm:$0xff] %v11667_v48  ;;  %v11672_v48 = vld [vmem:[#allocation56_spill] sm:$0xff]  ;;  %v11705_v27 = vld [vmem:[#allocation27_spill] sm:$0xff] }
 0x3c3   : > { %v8864_v20 = vadd.f32 %v2332_v58, %v1782_v35  ;;  %v2569_v62 = vadd.f32 %v2464_v52, %v1914_v46  ;;  %v11670_v35 = vld [vmem:[#allocation44_spill] sm:$0xff] }
 0x3c5   : > { %11666 = vst [vmem:[#allocation13_spill] sm:$0xff] %v8864_v20  ;;  %v2679_v41 = vrot.slane %v8864_v20, 1  ;;  %6539 = vmatmul.msk.f32.gmra.mxu0 %vm1098_vm1, %v8783_v22  ;;  %v2934_v23 = vrot.slane %v2569_v62, 2  ;;  %6579 = vmatmul.msk.f32.gmra.mxu1 %vm1098_vm1, %v8783_v22  ;;  %v1917_v22 = vadd.f32 %v8461_v59, %v11670_v35  ;;  %v8887_v62 = vpop.f32.mrf.mxu3  ;;  %v11673_v59 = vld [vmem:[#allocation60_spill] sm:$0xff] }
 0x3c6   : > { %v11674_v21 = vrot.slane %v11673_v59, 4  ;;  %v11675_v35 = vrot.slane %v11673_v59, 6  ;;  %v11682_v59 = vld [vmem:[#allocation49_spill] sm:$0xff] }
 0x3c7   : > { %v2680_v14 = vsel %vm2657_vm2, %v2677_v24, %v2679_v41  ;;  %v8878_v42 = vsel %vm2912_vm3, %v2932_v47, %v2934_v23  ;;  %v6342_v47 = vld [vmem:[%s7002_s17 + $0x190] sm:$0x3] }
 0x3c8   : > { %11668 = vst [vmem:[#allocation26_spill] sm:$0xff] %v8878_v42  ;;  %2751 = vrot.lane.b32.xlu0 %v2680_v14, %s6907_s29 }
 0x3c9   : > { %2168 = vst [vmem:[#allocation1 + $0x20] ss:$4 sm:$0xff] %v11674_v21 }
 0x3ca   : > { %v2335_v57 = vpop.f32.mrf.mxu0  ;;  %v2467_v46 = vpop.f32.mrf.mxu1  ;;  %2169 = vst [vmem:[#allocation1 + $0x21] ss:$4 sm:$0xff] %v11675_v35  ;;  %v1923_v35 = vadd.f32 %v8497_v40, %v11682_v59 }
 0x3cb   : > { %v8885_v58 = vadd.f32 %v2335_v57, %v1785_v19  ;;  %v2571_v52 = vadd.f32 %v2467_v46, %v1917_v22  ;;  %v8898_v19 = vpop.f32.mrf.mxu2  ;;  %v11677_v57 = vld [vmem:[#allocation40_spill] sm:$0xff]  ;;  %2170 = vst [vmem:[#allocation1 + $0x22] ss:$4 sm:$0xff] %v6342_v47 }
 0x3cc   : > { %v1788_v46 = vadd.f32 %v8479_v32, %v11677_v57 }
 0x3cd   : > { %11671 = vst [vmem:[#allocation28_spill] sm:$0xff] %v8885_v58  ;;  %v2681_v24 = vrot.slane %v8885_v58, 1  ;;  %6540 = vmatmul.msk.f32.gmra.mxu0 %vm1098_vm1, %v11672_v48  ;;  %6580 = vmatmul.msk.f32.gmra.mxu1 %vm1098_vm1, %v11672_v48  ;;  %v2936_v60 = vrot.slane %v2571_v52, 2  ;;  %v11678_v48 = vld [vmem:[#allocation46_spill] sm:$0xff]  ;;  %v8912_v9 = vpop.f32.mrf.mxu3  ;;  %v11722_v58 = vld [vmem:[#allocation43_spill] sm:$0xff] }
 0x3ce   : > { %v1920_v52 = vadd.f32 %v8481_v61, %v11678_v48 }
 0x3cf   : > { %v2682_v14 = vsel %vm2657_vm2, %v2679_v41, %v2681_v24  ;;  %v8904_v22 = vsel %vm2912_vm3, %v2934_v23, %v2936_v60 }
 0x3d0   : > { %2753 = vrot.lane.b32.xlu1 %v2682_v14, %s6907_s29  ;;  %11676 = vst [vmem:[#allocation30_spill] sm:$0xff] %v8904_v22 }
 0x3d2   : > { %v2338_v41 = vpop.f32.mrf.mxu0  ;;  %v2470_v20 = vpop.f32.mrf.mxu1 }
 0x3d3   : > { %v8910_v21 = vadd.f32 %v2338_v41, %v1788_v46  ;;  %v2573_v42 = vadd.f32 %v2470_v20, %v1920_v52  ;;  %v11681_v20 = vld [vmem:[#allocation41_spill] sm:$0xff]  ;;  %v8928_v57 = vpop.f32.mrf.mxu2 }
 0x3d4   : > { %v1791_v47 = vadd.f32 %v8493_v12, %v11681_v20  ;;  %v11684_v52 = vld [vmem:[#allocation61_spill] sm:$0xff]  ;;  %v8941_v12 = vld.sshfl [vmem:[#allocation1 + $0x20] sm:$0xff pattern:$0x73625140]  ;;  %v11685_v20 = vld [vmem:[#allocation14_spill] sm:$0xff] }
 0x3d5   : > { %11679 = vst [vmem:[#allocation10_spill] sm:$0xff] %v8910_v21  ;;  %v2683_v14 = vrot.slane %v8910_v21, 1  ;;  %6541 = vmatmul.msk.f32.gmra.mxu0 %vm1098_vm1, %v8827_v38  ;;  %v2938_v23 = vrot.slane %v2573_v42, 2  ;;  %6581 = vmatmul.msk.f32.gmra.mxu1 %vm1098_vm1, %v8827_v38  ;;  %v11687_v59 = vrot.slane %v11685_v20, 4 }
 0x3d7   : > { %v2684_v32 = vsel %vm2657_vm2, %v2681_v24, %v2683_v14  ;;  %v8921_v61 = vsel %vm2912_vm3, %v2936_v60, %v2938_v23  ;;  %v8934_v24 = vpop.f32.mrf.mxu3  ;;  %2179 = vst [vmem:[#allocation1 + $0x21] ss:$4 sm:$0xff] %v11687_v59 }
 0x3d8   : > { %11680 = vst [vmem:[#allocation31_spill] sm:$0xff] %v8921_v61  ;;  %2755 = vrot.lane.b32.xlu2 %v2684_v32, %s6907_s29  ;;  %v6345_v32 = vld [vmem:[%s7002_s17 + $0x1a8] sm:$0x3] }
 0x3d9   : > { %2181 = vst [vmem:[#allocation1 + $0x23] ss:$4 sm:$0xff] %v6345_v32 }
 0x3da   : > { %v2341_v42 = vpop.f32.mrf.mxu0  ;;  %v2473_v46 = vpop.f32.mrf.mxu1 }
 0x3db   : > { %v8930_v48 = vadd.f32 %v2341_v42, %v1791_v47  ;;  %v8932_v38 = vadd.f32 %v2473_v46, %v1923_v35  ;;  %v11686_v47 = vrot.slane %v11685_v20, 2  ;;  %v11689_v42 = vld [vmem:[#allocation45_spill] sm:$0xff] }
 0x3dc   : > { %v1794_v46 = vadd.f32 %v8512_v49, %v11689_v42 }
 0x3dd   : > { %11683 = vst [vmem:[#allocation11_spill] sm:$0xff] %v8930_v48  ;;  %v2685_v60 = vrot.slane %v8930_v48, 1  ;;  %6542 = vmatmul.msk.f32.gmra.mxu0 %vm1098_vm1, %v11684_v52  ;;  %6582 = vmatmul.msk.f32.gmra.mxu1 %vm1098_vm1, %v11684_v52  ;;  %v11368_v40 = vrot.slane %v8932_v38, 2  ;;  %v11690_v52 = vrot.slane %v11685_v20, 6 }
 0x3de   : > { %2178 = vst [vmem:[#allocation1 + $0x20] ss:$4 sm:$0xff] %v11686_v47 }
 0x3df   : > { %v2686_v41 = vsel %vm2657_vm2, %v2683_v14, %v2685_v60  ;;  %v8954_v35 = vsel %vm2912_vm3, %v2938_v23, %v11368_v40  ;;  %2180 = vst [vmem:[#allocation1 + $0x22] ss:$4 sm:$0xff] %v11690_v52  ;;  %v8966_v59 = vpop.f32.mrf.mxu3  ;;  %v11693_v23 = vld [vmem:[#allocation47_spill] sm:$0xff] }
 0x3e0   : > { %2757 = vrot.lane.b32.xlu1 %v2686_v41, %s6907_s29  ;;  %11688 = vst [vmem:[#allocation32_spill] sm:$0xff] %v8954_v35  ;;  %v8964_v41 = vpop.f32.mrf.mxu2  ;;  %v1797_v32 = vadd.f32 %v8527_v0, %v11693_v23  ;;  %v11698_v0 = vld [vmem:[#allocation50_spill] sm:$0xff]  ;;  %v11702_v35 = vld [vmem:[#allocation59_spill] sm:$0xff] }
 0x3e1   : > { %11692 = vst [vmem:[#allocation48_spill] sm:$0xff] %v8966_v59  ;;  %v1800_v23 = vadd.f32 %v8549_v2, %v11698_v0  ;;  %v11708_v0 = vld [vmem:[#allocation101_spill] sm:$0xff] }
 0x3e2   : > { %v2344_v14 = vpop.f32.mrf.mxu0  ;;  %v8960_v48 = vpop.f32.mrf.mxu1 }
 0x3e3   : > { %v8962_v47 = vadd.f32 %v2344_v14, %v1794_v46 }
 0x3e5   : > { %11691 = vst [vmem:[#allocation33_spill] sm:$0xff] %v8962_v47  ;;  %v2687_v21 = vrot.slane %v8962_v47, 1  ;;  %6543 = vmatmul.msk.f32.gmra.mxu0 %vm1098_vm1, %v8873_v6  ;;  %6583 = vmatmul.msk.f32.gmra.mxu1 %vm1098_vm1, %v8873_v6  ;;  %v11703_v47 = vld [vmem:[#allocation100_spill] sm:$0xff] }
 0x3e6   : > { %v9007_v22 = vadd.f32 %v11703_v47, %v11702_v35  ;;  %v277_v35 = vld [vmem:[%s11235_s6] sm:$0xf]  ;;  %v11713_v47 = vld [vmem:[#allocation29_spill] sm:$0xff] }
 0x3e7   : > { %v2688_v49 = vsel %vm2657_vm2, %v2685_v60, %v2687_v21  ;;  %v8984_v59 = vpop.f32.mrf.mxu3  ;;  %v276_v60 = vld [vmem:[%s11234_s5] sm:$0xf] }
 0x3e8   : > { %2759 = vrot.lane.b32.xlu1 %v2688_v49, %s6907_s29  ;;  %v8982_v40 = vpop.f32.mrf.mxu2  ;;  %11696 = vst [vmem:[#allocation58_spill] sm:$0xff] %v8984_v59  ;;  %v11697_v49 = vld [vmem:[#allocation66_spill] sm:$0xff]  ;;  %v9013_v2 = vperm.slane %v276_v60, 0 }
 0x3e9   : > { %11695 = vst [vmem:[#allocation12_spill] sm:$0xff] %v8982_v40  ;;  %v11701_v40 = vld [vmem:[#allocation53_spill] sm:$0xff] }
 0x3ea   : > { %v2347_v20 = vpop.f32.mrf.mxu0  ;;  %v2732_v42 = vpop.permute.xlu0 %2731 }
 0x3eb   : > { %v8977_v46 = vadd.f32 %v2347_v20, %v1797_v32  ;;  %v8979_v52 = vpop.f32.mrf.mxu1  ;;  %v2839_v14 = vadd.f32 %v2732_v42, %v8636_v18  ;;  %v11699_v18 = vld [vmem:[#allocation52_spill] sm:$0xff]  ;;  %v11700_v20 = vld [vmem:[#allocation55_spill] sm:$0xff] }
 0x3ec   : > { %v1926_v32 = vadd.f32 %v8519_v28, %v11699_v18  ;;  %v9000_v42 = vadd.f32 %v8545_v51, %v11700_v20  ;;  %v11707_v51 = vld [vmem:[#allocation57_spill] sm:$0xff]  ;;  %v11715_v20 = vld [vmem:[#allocation67_spill] sm:$0xff] }
 0x3ed   : > { %11694 = vst [vmem:[#allocation34_spill] sm:$0xff] %v8977_v46  ;;  %v2689_v6 = vrot.slane %v8977_v46, 1  ;;  %6544 = vmatmul.msk.f32.gmra.mxu0 %vm1098_vm1, %v11697_v49  ;;  %6584 = vmatmul.msk.f32.gmra.mxu1 %vm1098_vm1, %v11697_v49  ;;  %v1803_v46 = vadd.f32 %v8573_v56, %v11701_v40  ;;  %v11704_v49 = vld [vmem:[#allocation62_spill] sm:$0xff]  ;;  %v3022_v28 = vadd.f32 %v8657_v45, %v2839_v14  ;;  %v11709_v18 = vld [vmem:[#allocation65_spill] sm:$0xff]  ;;  %v11716_v45 = vld [vmem:[#allocation103_spill] sm:$0xff] }
 0x3ee   : > { %v9011_v61 = vadd.f32 %v11705_v27, %v11704_v49  ;;  %v11710_v56 = vld [vmem:[#allocation102_spill] sm:$0xff]  ;;  %v11712_v27 = vld [vmem:[#allocation63_spill] sm:$0xff]  ;;  %v9034_v14 = vadd.f32 %v11716_v45, %v11715_v20  ;;  %v11729_v45 = vld [vmem:[#allocation105_spill] sm:$0xff] }
 0x3ef   : > { %v2690_v59 = vsel %vm2657_vm2, %v2687_v21, %v2689_v6  ;;  %v9019_v21 = vadd.f32 %v11708_v0, %v11707_v51  ;;  %v9023_v40 = vadd.f32 %v11710_v56, %v11709_v18  ;;  %v9030_v60 = vadd.f32 %v11713_v47, %v11712_v27  ;;  %v11719_v49 = vld [vmem:[#allocation42_spill] sm:$0xff]  ;;  %v11721_v0 = vld [vmem:[#allocation71_spill] sm:$0xff]  ;;  %v11726_v27 = vld [vmem:[#allocation72_spill] sm:$0xff] }
 0x3f0   : > { %11706 = vst [vmem:[#allocation35_spill] sm:$0xff] %v9011_v61  ;;  %2761 = vrot.lane.b32.xlu2 %v2690_v59, %s6907_s29  ;;  %v11718_v59 = vld [vmem:[#allocation68_spill] sm:$0xff]  ;;  %v9042_v18 = vadd.f32 %v11722_v58, %v11721_v0  ;;  %v9046_v61 = vadd.f32 %v11725_v53, %v11724_v16  ;;  %v11727_v47 = vld [vmem:[#allocation106_spill] sm:$0xff] }
 0x3f1   : > { %11711 = vst [vmem:[#allocation36_spill] sm:$0xff] %v9023_v40  ;;  %v9038_v51 = vadd.f32 %v11719_v49, %v11718_v59  ;;  %v11728_v20 = vld [vmem:[#allocation74_spill] sm:$0xff]  ;;  %v11730_v59 = vld [vmem:[#allocation76_spill] sm:$0xff] }
 0x3f2   : > { %11714 = vst [vmem:[#allocation54_spill] sm:$0xff] %v9030_v60  ;;  %v2350_v56 = vpop.f32.mrf.mxu0  ;;  %v2740_v40 = vpop.permute.xlu2 %2739  ;;  %v9050_v60 = vadd.f32 %v11727_v47, %v11726_v27  ;;  %v9058_v49 = vadd.f32 %v8642_v29, %v11730_v59  ;;  %v11732_v16 = vld [vmem:[#allocation78_spill] sm:$0xff]  ;;  %v3059_v29 = vmul.f32 %v9013_v2, %v3022_v28 }
 0x3f3   : > { %11717 = vst [vmem:[#allocation51_spill] sm:$0xff] %v9034_v14  ;;  %v9054_v14 = vadd.f32 %v11729_v45, %v11728_v20  ;;  %v9060_v58 = vadd.f32 %v2350_v56, %v1800_v23  ;;  %v2843_v0 = vadd.f32 %v2740_v40, %v8714_v30  ;;  %v9069_v27 = vadd.f32 %v8671_v37, %v11732_v16  ;;  %v9071_v47 = vpop.f32.mrf.mxu1  ;;  %v11733_v56 = vld [vmem:[#allocation79_spill] sm:$0xff]  ;;  %v1859_v40 = vpop.f32.mrf.mxu2  ;;  %v11736_v28 = vld [vmem:[#allocation82_spill] sm:$0xff] }
 0x3f4   : > { %11720 = vst [vmem:[#allocation37_spill] sm:$0xff] %v9038_v51  ;;  %v11731_v51 = vld [vmem:[#allocation77_spill] sm:$0xff]  ;;  %v9073_v20 = vperm.slane %v277_v35, 0  ;;  %v9079_v30 = vadd.f32 %v8682_v33, %v11733_v56  ;;  %v1991_v45 = vpop.f32.mrf.mxu3  ;;  %v11737_v16 = vld [vmem:[#allocation83_spill] sm:$0xff]  ;;  %v11739_v40 = vld [vmem:[#allocation84_spill] sm:$0xff] }
 0x3f5   : > { %11723 = vst [vmem:[#allocation38_spill] sm:$0xff] %v9042_v18  ;;  %v2734_v18 = vpop.permute.xlu1 %2733  ;;  %v9065_v53 = vadd.f32 %v8650_v34, %v11731_v51  ;;  %6545 = vmatmul.msk.f32.gmra.mxu0 %vm1098_vm1, %v8941_v12  ;;  %v11734_v34 = vld [vmem:[#allocation81_spill] sm:$0xff]  ;;  %v11735_v51 = vld [vmem:[#allocation80_spill] sm:$0xff]  ;;  %6585 = vmatmul.msk.f32.gmra.mxu1 %vm1098_vm1, %v8941_v12  ;;  %v2691_v33 = vrot.slane %v9060_v58, 1  ;;  %v9113_v12 = vadd.f32 %v8749_v63, %v11739_v40  ;;  %v11740_v45 = vld [vmem:[#allocation86_spill] sm:$0xff] }
 0x3f6   : > { %v2840_v23 = vadd.f32 %v2734_v18, %v8644_v11  ;;  %v9085_v37 = vadd.f32 %v8712_v10, %v11734_v34  ;;  %v9089_v35 = vadd.f32 %v8699_v55, %v11735_v51  ;;  %v9093_v11 = vadd.f32 %v8726_v31, %v11736_v28  ;;  %v11738_v56 = vld [vmem:[#allocation85_spill] sm:$0xff] }
 0x3f7   : > { %v3026_v18 = vadd.f32 %v8744_v54, %v2843_v0  ;;  %v9102_v10 = vadd.f32 %v8735_v50, %v11737_v16  ;;  %v9105_v55 = vadd.f32 %v8960_v48, %v1926_v32  ;;  %v9109_v31 = vadd.f32 %v8763_v26, %v11738_v56  ;;  %v11741_v26 = vld [vmem:[#allocation87_spill] sm:$0xff]  ;;  %v11742_v63 = vld [vmem:[#allocation89_spill] sm:$0xff] }
 0x3f8   : > { %v3023_v59 = vadd.f32 %v8680_v44, %v2840_v23  ;;  %v9117_v54 = vadd.f32 %v8776_v4, %v11740_v45  ;;  %v3096_v44 = vadd.f32 %v9073_v20, %v3059_v29  ;;  %v2692_v48 = vsel %vm2657_vm2, %v2689_v6, %v2691_v33  ;;  %v11743_v4 = vld [vmem:[#allocation91_spill] sm:$0xff]  ;;  %v11744_v29 = vld [vmem:[#allocation88_spill] sm:$0xff] }
 0x3f9   : > { %v3063_v50 = vmul.f32 %v9013_v2, %v3026_v18  ;;  %2763 = vrot.lane.b32.xlu0 %v2692_v48, %s6907_s29  ;;  %v9126_v32 = vadd.f32 %v8790_v36, %v11741_v26  ;;  %v9130_v23 = vadd.f32 %v8818_v7, %v11742_v63  ;;  %v9134_v34 = vadd.f32 %v8845_v3, %v11743_v4  ;;  %v11745_v36 = vld [vmem:[#allocation90_spill] sm:$0xff]  ;;  %v11746_v7 = vld [vmem:[#allocation92_spill] sm:$0xff] }
 0x3fa   : > { %v3060_v0 = vmul.f32 %v9013_v2, %v3023_v59  ;;  %v9138_v51 = vadd.f32 %v8807_v13, %v11744_v29  ;;  %v2353_v18 = vpop.f32.mrf.mxu0  ;;  %v2736_v59 = vpop.permute.xlu0 %2735  ;;  %v9144_v16 = vadd.f32 %v8834_v17, %v11745_v36  ;;  %v9148_v56 = vadd.f32 %v8862_v43, %v11746_v7  ;;  %v11758_v36 = vld [vmem:[#allocation96_spill] sm:$0xff] }
 0x3fb   : > { %v3100_v6 = vadd.f32 %v9073_v20, %v3063_v50  ;;  %v9150_v3 = vadd.f32 %v2353_v18, %v1803_v46  ;;  %v2841_v40 = vadd.f32 %v2736_v59, %v8668_v15  ;;  %v11373_v13 = vrot.slane %v9105_v55, 2  ;;  %v9154_v45 = vpop.f32.mrf.mxu1  ;;  %v11749_v50 = vld [vmem:[#allocation19_spill] sm:$0xff]  ;;  %v11750_v46 = vld [vmem:[#allocation94_spill] sm:$0xff]  ;;  %v1861_v26 = vpop.f32.mrf.mxu2  ;;  %v11754_v18 = vld [vmem:[#allocation8_spill] sm:$0xff] }
 0x3fc   : > { %v3097_v28 = vadd.f32 %v9073_v20, %v3060_v0  ;;  %11747 = vst [vmem:[#allocation64_spill] sm:$0xff] %v9148_v56  ;;  %v9158_v0 = vadd.f32 %v8871_v39, %v11749_v50  ;;  %v9160_v48 = vmax.f32 %v3096_v44, 0.0  ;;  %v9166_v43 = vadd.f32 %v8979_v52, %v9000_v42  ;;  %v1993_v63 = vpop.f32.mrf.mxu3  ;;  %v11751_v44 = vld [vmem:[#allocation69_spill] sm:$0xff]  ;;  %v11756_v59 = vld [vmem:[#allocation95_spill] sm:$0xff] }
 0x3fd   : > { %11748 = vst [vmem:[#allocation39_spill] sm:$0xff] %v9150_v3  ;;  %v9170_v15 = vadd.f32 %v8898_v19, %v11750_v46  ;;  %v9172_v4 = vmax.f32 %v3100_v6, 0.0  ;;  %v2693_v29 = vrot.slane %v9150_v3, 1  ;;  %v3024_v39 = vadd.f32 %v8705_v25, %v2841_v40  ;;  %6546 = vmatmul.msk.f32.gmra.mxu0 %vm1098_vm1, %v11751_v44  ;;  %6586 = vmatmul.msk.f32.gmra.mxu1 %vm1098_vm1, %v11751_v44  ;;  %v11752_v52 = vld [vmem:[#allocation93_spill] sm:$0xff]  ;;  %v6347_v19 = vld [vmem:[%s7002_s17 + $0x1b8] sm:$0xff]  ;;  %s6187_s17 = sshll.u32 %s6183_s14, 4  ;;  %s6188_s17 = int_to_ptr.hbm [resolvable:$true] %s6187_s17 }
 0x3fe   : > { %v9162_v17 = vmax.f32 %v3097_v28, 0.0  ;;  %v9182_v42 = vadd.f32 %v8887_v62, %v11752_v52  ;;  %v2183_v28 = vld.sshfl [vmem:[#allocation1 + $0x20] sm:$0xff pattern:$0x73625140]  ;;  %v9187_v6 = vadd.f32 %v8928_v57, %v11754_v18  ;;  %v9191_v25 = vadd.f32 %v8912_v9, %v11756_v59  ;;  %v11761_v46 = vld [vmem:[#allocation97_spill] sm:$0xff]  ;;  %s6857_s19 = sshra.s32 %s6188_s17, 4  ;;  %s6858_s19 = int_to_ptr.hbm [resolvable:$true] %s6857_s19 }
 0x3ff   : > { %v9195_v7 = vadd.f32 %v8934_v24, %v11758_v36  ;;  %v3061_v62 = vmul.f32 %v9013_v2, %v3024_v39  ;;  %2188 = vst [vmem:[#allocation1 + $0x20] ss:$4 sm:$0xff] %v6347_v19  ;;  %v11760_v50 = vrot.slane %v8932_v38, 2  ;;  %v9208_v9 = vadd.f32 %v8964_v41, %v11761_v46  ;;  %s6859_s20 = scalar_lea.hbm %s6858_s19, 1  ;;  %p6864_p0 = scmp.lt.s32.totalorder %s6858_s19, %s11236_s7 }
 0x400   : > { %11753 = vst [vmem:[#allocation44_spill] sm:$0xff] %v9182_v42  ;;  %v3209_v40 = vrot.slane %v9162_v17, 6  ;;  %v3204_v26 = vrot.slane %v9160_v48, 2  ;;  %v3205_v24 = vrot.slane %v9160_v48, 4  ;;  %v2694_v63 = vsel %vm2657_vm2, %v2691_v33, %v2693_v29  ;;  %p6860_p11 = scmp.ne.s32.totalorder %s6858_s19, %s6859_s20  ;;  %p6865_p1 = scmp.lt.s32.totalorder %s6863_s22, %s6859_s20 }
 0x401   : > { %11755 = vst [vmem:[#allocation56_spill] sm:$0xff] %v9187_v6  ;;  %v9204_v57 = vsel %vm2912_vm3, %v11760_v50, %v11373_v13  ;;  %v3461_v44 = vsel %vm3396_vm4, %v9172_v4, -inf  ;;  %v3098_v52 = vadd.f32 %v9073_v20, %v3061_v62  ;;  %2765 = vrot.lane.b32.xlu2 %v2694_v63, %s6907_s29  ;;  %v889_v18 = vrot.slane %v6347_v19, 2 }
 0x402   : > { %11757 = vst [vmem:[#allocation60_spill] sm:$0xff] %v9191_v25  ;;  %v3460_v38 = vsel %vm3396_vm4, %v3209_v40, -inf  ;;  %v2356_v59 = vpop.f32.mrf.mxu0  ;;  %v2744_v36 = vpop.permute.xlu2 %2743  ;;  %v890_v50 = vrot.slane %v6347_v19, 4  ;;  %v891_v46 = vrot.slane %v6347_v19, 6  ;;  %v3206_v62 = vrot.slane %v9160_v48, 6  ;;  %v6604_v25 = vld [vmem:[%s11231_s2 + $0xe8] sm:$0xff]  ;;  %p6861_p12 = pnand %p6860_p11, %p6987_p5  ;;  %p6866_p2 = por %p6865_p1, %p6864_p0 }
 0x403   : > { %11759 = vst [vmem:[#allocation40_spill] sm:$0xff] %v9195_v7  ;;  %v9219_v41 = vmax.f32 %v3460_v38, %v3461_v44  ;;  %v3134_v33 = vmax.f32 %v3098_v52, 0.0  ;;  %v9222_v13 = vadd.f32 %v2356_v59, %v9019_v21  ;;  %v2845_v39 = vadd.f32 %v2744_v36, %v8756_v5  ;;  %v2738_v40 = vpop.permute.xlu1 %2737  ;;  %v9225_v7 = vpop.f32.mrf.mxu1 }
 0x404   : > { %11762 = vst [vmem:[#allocation46_spill] sm:$0xff] %v9208_v9  ;;  %v3397_v63 = vsel %vm3396_vm4, %v9160_v48, -inf  ;;  %v3406_v44 = vsel %vm3396_vm4, %v3204_v26, -inf  ;;  %v9233_v19 = vadd.f32 %v9071_v47, %v9007_v22  ;;  %v11379_v26 = vmov 0.0   ;;  %v11764_v47 = vld [vmem:[#allocation35_spill] sm:$0xff]  ;;  %p6862_p13 = pneg %p6861_p12 }
 0x405   : > { %11763 = vst [vmem:[#allocation41_spill] sm:$0xff] %v9222_v13  ;;  %v3210_v21 = vrot.slane %v3134_v33, 2  ;;  %v3211_v38 = vrot.slane %v3134_v33, 4  ;;  %v3212_v52 = vrot.slane %v3134_v33, 6  ;;  %v11374_v5 = vrot.slane %v9222_v13, 1  ;;  %6547 = vmatmul.msk.f32.gmra.mxu0 %vm1098_vm1, %v2183_v28  ;;  %6587 = vmatmul.msk.f32.gmra.mxu1 %vm1098_vm1, %v2183_v28 }
 0x406   : > { %2189 = vst [vmem:[#allocation1 + $0x21] ss:$4 sm:$0xff] %v889_v18  ;;  %v3415_v18 = vsel %vm3396_vm4, %v3205_v24, -inf  ;;  %v3028_v48 = vadd.f32 %v8788_v8, %v2845_v39  ;;  %v2842_v22 = vadd.f32 %v2738_v40, %v8689_v1  ;;  %v9245_v59 = vadd.f32 %v9154_v45, %v11764_v47  ;;  %p6867_p3 = pnand %p6866_p2, %p6862_p13 }
 0x407   : > { %2190 = vst [vmem:[#allocation1 + $0x22] ss:$4 sm:$0xff] %v890_v50  ;;  %v3398_v36 = vsel %vm3396_vm4, %v3210_v21, -inf  ;;  %v3407_v50 = vsel %vm3396_vm4, %v3211_v38, -inf  ;;  %v3416_v28 = vsel %vm3396_vm4, %v3212_v52, -inf  ;;  %v2696_v8 = vsel %vm2657_vm2, %v2693_v29, %v11374_v5  ;;  %v11765_v21 = vld [vmem:[#allocation15_spill] sm:$0xff] }
 0x408   : > { %2191 = vst [vmem:[#allocation1 + $0x23] ss:$4 sm:$0xff] %v891_v46  ;;  %v3399_v24 = vmax.f32 %v3397_v63, %v3398_v36  ;;  %v3408_v39 = vmax.f32 %v3406_v44, %v3407_v50  ;;  %v3417_v1 = vmax.f32 %v3415_v18, %v3416_v28  ;;  %v9256_v46 = vsel %vm3396_vm4, %v3206_v62, -inf  ;;  %2767 = vrot.lane.b32.xlu0 %v2696_v8, %s6907_s29 }
 0x409   : > { %3976 = vst.msk [vmem:[#allocation2 + $0x10] sm:$0xff] %vm3973_vm5, %v11379_v26  ;;  %v3216_v45 = vrot.slane %v9172_v4, 4  ;;  %v3463_v33 = vrot.slane %v9219_v41, 4  ;;  %v3065_v40 = vmul.f32 %v9013_v2, %v3028_v48  ;;  %v3025_v38 = vadd.f32 %v11765_v21, %v2842_v22  ;;  %v11766_v22 = vld [vmem:[#allocation54_spill] sm:$0xff] }
 0x40a   : > { %3977 = vst.msk [vmem:[#allocation2 + $0x18] sm:$0x3] %vm3396_vm4, %v11379_v26  ;;  %v3400_v62 = vrot.slane %v3399_v24, 4  ;;  %v3409_v63 = vrot.slane %v3408_v39, 4  ;;  %v3418_v44 = vrot.slane %v3417_v1, 4  ;;  %v2359_v52 = vpop.f32.mrf.mxu0  ;;  %v3207_v18 = vrot.slane %v9162_v17, 2 }
 0x40b   : > { %3974 = vst.msk [vmem:[#allocation2] sm:$0xff] %vm3973_vm5, %v11379_v26  ;;  %v3102_v47 = vadd.f32 %v9073_v20, %v3065_v40  ;;  %v3062_v48 = vmul.f32 %v9013_v2, %v3025_v38  ;;  %v9276_v36 = vadd.f32 %v2359_v52, %v11766_v22  ;;  %v9278_v50 = vpop.f32.mrf.mxu1  ;;  %v3208_v28 = vrot.slane %v9162_v17, 4  ;;  %v11768_v22 = vld [vmem:[#allocation73_spill] sm:$0xff] }
 0x40c   : > { %3975 = vst.msk [vmem:[#allocation2 + $0x8] sm:$0x3] %vm3396_vm4, %v11379_v26  ;;  %v3401_v8 = vmax.f32 %v3399_v24, %v3400_v62  ;;  %v3410_v21 = vmax.f32 %v3408_v39, %v3409_v63  ;;  %v3419_v29 = vmax.f32 %v3417_v1, %v3418_v44  ;;  %v9284_v40 = vmax.f32 %v9219_v41, %v3463_v33 }
 0x40d   : > { %3978 = vst.msk [vmem:[#allocation2 + $0x20] sm:$0xff] %vm3973_vm5, %v11379_v26  ;;  %v9286_v38 = vmax.f32 %v3102_v47, 0.0  ;;  %v3099_v5 = vadd.f32 %v9073_v20, %v3062_v48  ;;  %v11375_v52 = vrot.slane %v9276_v36, 1  ;;  %6548 = vmatmul.msk.f32.gmra.mxu0 %vm1098_vm1, %v11768_v22  ;;  %6588 = vmatmul.msk.f32.gmra.mxu1 %vm1098_vm1, %v11768_v22  ;;  %v3433_v24 = vsel %vm3396_vm4, %v9162_v17, -inf }
 0x40e   : > { %3979 = vst.msk [vmem:[#allocation2 + $0x28] sm:$0x3] %vm3396_vm4, %v11379_v26  ;;  %v3402_v41 = vrot.slane %v3401_v8, 2  ;;  %v3411_v39 = vrot.slane %v3410_v21, 2  ;;  %v3420_v1 = vrot.slane %v3419_v29, 2  ;;  %v3469_v33 = vsel %vm3396_vm4, %v3216_v45, -inf }
 0x40f   : > { %11767 = vst [vmem:[#allocation49_spill] sm:$0xff] %v9276_v36  ;;  %v3442_v62 = vsel %vm3396_vm4, %v3207_v18, -inf  ;;  %v3222_v63 = vrot.slane %v9286_v38, 6  ;;  %v3135_v44 = vmax.f32 %v3099_v5, 0.0  ;;  %v11769_v17 = vrot.slane %v9222_v13, 1  ;;  %v6605_v18 = vld [vmem:[%s11231_s2 + $0xf0] sm:$0xff] }
 0x410   : > { %3980 = vst.msk [vmem:[#allocation2 + $0x30] sm:$0xff] %vm3973_vm5, %v11379_v26  ;;  %v3403_v47 = vmax.f32 %v3401_v8, %v3402_v41  ;;  %v3412_v48 = vmax.f32 %v3410_v21, %v3411_v39  ;;  %v3421_v22 = vmax.f32 %v3419_v29, %v3420_v1  ;;  %v6606_v5 = vld [vmem:[%s11231_s2 + $0xf8] sm:$0xff]  ;;  %v3465_v8 = vrot.slane %v9284_v40, 2  ;;  %4459 = vmatpush.msrb.mxu2 %v6605_v18 }
 0x411   : > { %3981 = vst.msk [vmem:[#allocation2 + $0x38] sm:$0x3] %vm3396_vm4, %v11379_v26  ;;  %v2698_v45 = vsel %vm2657_vm2, %v11769_v17, %v11375_v52  ;;  %v3470_v29 = vsel %vm3396_vm4, %v3222_v63, -inf  ;;  %v3213_v21 = vrot.slane %v3135_v44, 2  ;;  %v3214_v41 = vrot.slane %v3135_v44, 4  ;;  %4511 = vmatpush.msrb.mxu3 %v6606_v5  ;;  %v6603_v63 = vld [vmem:[%s11231_s2 + $0xe0] sm:$0xff] }
 0x412   : > { %3982 = vst.msk [vmem:[#allocation2 + $0x40] sm:$0xff] %vm3973_vm5, %v11379_v26  ;;  %2769 = vrot.lane.b32.xlu0 %v2698_v45, %s6907_s29  ;;  %v3404_v39 = vrot.slane %v3403_v47, 1  ;;  %v3413_v1 = vrot.slane %v3412_v48, 1  ;;  %v3422_v17 = vrot.slane %v3421_v22, 1  ;;  %v9323_v52 = vmax.f32 %v3469_v33, %v3470_v29  ;;  %v2362_v13 = vpop.f32.mrf.mxu0  ;;  %4460 = vmatpush.msrb.mxu2 %v6603_v63 }
 0x413   : > { %3983 = vst.msk [vmem:[#allocation2 + $0x48] sm:$0x3] %vm3396_vm4, %v11379_v26  ;;  %v3215_v45 = vrot.slane %v3135_v44, 6  ;;  %v3425_v18 = vsel %vm3396_vm4, %v3135_v44, -inf  ;;  %v3434_v9 = vsel %vm3396_vm4, %v3213_v21, -inf  ;;  %v3443_v33 = vsel %vm3396_vm4, %v3214_v41, -inf  ;;  %v9338_v5 = vpop.f32.mrf.mxu1  ;;  %4512 = vmatpush.msrb.mxu3 %v6604_v25 }
 0x414   : > { %3984 = vst.msk [vmem:[#allocation2 + $0x50] sm:$0xff] %vm3973_vm5, %v11379_v26  ;;  %v3451_v29 = vsel %vm3396_vm4, %v3208_v28, -inf  ;;  %v3405_v3 = vmax.f32 %v3403_v47, %v3404_v39  ;;  %v3414_v6 = vmax.f32 %v3412_v48, %v3413_v1  ;;  %v3423_v42 = vmax.f32 %v3421_v22, %v3422_v17  ;;  %v6601_v44 = vld [vmem:[%s11231_s2 + $0xd0] sm:$0xff]  ;;  %v6602_v21 = vld [vmem:[%s11231_s2 + $0xd8] sm:$0xff]  ;;  %v2748_v47 = vpop.permute.xlu2 %2747  ;;  %v6599_v25 = vld [vmem:[%s11231_s2 + $0xc0] sm:$0xff] }
 0x415   : > { %3985 = vst.msk [vmem:[#allocation2 + $0x58] sm:$0x3] %vm3396_vm4, %v11379_v26  ;;  %v3426_v41 = vmax.f32 %v9256_v46, %v3425_v18  ;;  %v3435_v63 = vmax.f32 %v3433_v24, %v3434_v9  ;;  %v3444_v56 = vmax.f32 %v3442_v62, %v3443_v33  ;;  %v3452_v28 = vsel %vm3396_vm4, %v3215_v45, -inf  ;;  %4461 = vmatpush.msrb.mxu2 %v6601_v44  ;;  %v2193_v39 = vld.sshfl [vmem:[#allocation1 + $0x20] sm:$0xff pattern:$0x73625140]  ;;  %v2742_v62 = vpop.permute.xlu1 %2741 }
 0x416   : > { %3986 = vst.msk [vmem:[#allocation2 + $0x60] sm:$0xff] %vm3973_vm5, %v11379_v26  ;;  %v9357_v48 = vmax.f32 %v9284_v40, %v3465_v8  ;;  %v4061_v22 = vsel %vm4060_vm6, %v3414_v6, %v3405_v3  ;;  %v3453_v46 = vmax.f32 %v3451_v29, %v3452_v28  ;;  %v11770_v9 = vld [vmem:[#allocation51_spill] sm:$0xff]  ;;  %4513 = vmatpush.msrb.mxu3 %v6602_v21  ;;  %v3472_v3 = vrot.slane %v9323_v52, 4  ;;  %v11772_v40 = vld [vmem:[#allocation20_spill] sm:$0xff] }
 0x417   : > { %3987 = vst.msk [vmem:[#allocation2 + $0x68] sm:$0x3] %vm3396_vm4, %v11379_v26  ;;  %v9363_v24 = vadd.f32 %v2362_v13, %v11770_v9  ;;  %v9366_v1 = vsel %vm4062_vm7, %v3423_v42, %v4061_v22  ;;  %v3427_v17 = vrot.slane %v3426_v41, 4  ;;  %v3436_v45 = vrot.slane %v3435_v63, 4  ;;  %4462 = vmatpush.msrb.mxu2 %v6599_v25  ;;  %v6600_v8 = vld [vmem:[%s11231_s2 + $0xc8] sm:$0xff]  ;;  %6549 = vmatmul.msk.f32.gmra.mxu0 %vm1098_vm1, %v2193_v39 }
 0x418   : > { %3988 = vst.msk [vmem:[#allocation2 + $0x70] sm:$0xff] %vm3973_vm5, %v11379_v26  ;;  %v3445_v18 = vrot.slane %v3444_v56, 4  ;;  %v3454_v6 = vrot.slane %v3453_v46, 4  ;;  %v2847_v42 = vadd.f32 %v2748_v47, %v11772_v40  ;;  %6589 = vmatmul.msk.f32.gmra.mxu1 %vm1098_vm1, %v2193_v39  ;;  %v11773_v21 = vld [vmem:[#allocation16_spill] sm:$0xff]  ;;  %v6597_v47 = vld [vmem:[%s11231_s2 + $0xb0] sm:$0xff]  ;;  %v3467_v25 = vrot.slane %v9357_v48, 1  ;;  %4514 = vmatpush.msrb.mxu3 %v6600_v8 }
 0x419   : > { %3989 = vst.msk [vmem:[#allocation2 + $0x78] sm:$0x3] %vm3396_vm4, %v11379_v26  ;;  %v2699_v13 = vrot.slane %v9363_v24, 1  ;;  %v3428_v33 = vmax.f32 %v3426_v41, %v3427_v17  ;;  %v3437_v29 = vmax.f32 %v3435_v63, %v3436_v45  ;;  %v2844_v28 = vadd.f32 %v2742_v62, %v11773_v21  ;;  %v11774_v39 = vld [vmem:[#allocation23_spill] sm:$0xff]  ;;  %4463 = vmatpush.msrb.mxu2 %v6597_v47 }
 0x41a   : > { %3990 = vst.msk [vmem:[#allocation2 + $0x80] sm:$0xff] %vm3973_vm5, %v11379_v26  ;;  %v3446_v44 = vmax.f32 %v3444_v56, %v3445_v18  ;;  %v3455_v22 = vmax.f32 %v3453_v46, %v3454_v6  ;;  %v3030_v41 = vadd.f32 %v11774_v39, %v2847_v42  ;;  %v11775_v56 = vrot.slane %v9276_v36, 1  ;;  %v2365_v9 = vpop.f32.mrf.mxu0  ;;  %v6598_v62 = vld [vmem:[%s11231_s2 + $0xb8] sm:$0xff]  ;;  %v11776_v46 = vld [vmem:[#allocation17_spill] sm:$0xff]  ;;  %v6595_v40 = vld [vmem:[%s11231_s2 + $0xa0] sm:$0xff] }
 0x41b   : > { %11771 = vst [vmem:[#allocation61_spill] sm:$0xff] %v9363_v24  ;;  %v3429_v17 = vrot.slane %v3428_v33, 2  ;;  %v3438_v45 = vrot.slane %v3437_v29, 2  ;;  %v3027_v6 = vadd.f32 %v11776_v46, %v2844_v28  ;;  %v9403_v42 = vpop.f32.mrf.mxu1  ;;  %v3473_v21 = vmax.f32 %v9323_v52, %v3472_v3  ;;  %v6596_v28 = vld [vmem:[%s11231_s2 + $0xa8] sm:$0xff]  ;;  %4515 = vmatpush.msrb.mxu3 %v6598_v62  ;;  %v6593_v52 = vld [vmem:[%s11231_s2 + $0x90] sm:$0xff]  ;;  %4464 = vmatpush.msrb.mxu2 %v6595_v40 }
 0x41c   : > { %3991 = vst.msk [vmem:[#allocation2 + $0x88] sm:$0x3] %vm3396_vm4, %v11379_v26  ;;  %v2700_v63 = vsel %vm2657_vm2, %v11775_v56, %v2699_v13  ;;  %v3447_v18 = vrot.slane %v3446_v44, 2  ;;  %v3456_v39 = vrot.slane %v3455_v22, 2  ;;  %v3067_v56 = vmul.f32 %v9013_v2, %v3030_v41  ;;  %v6592_v40 = vld [vmem:[%s11231_s2 + $0x88] sm:$0xff] }
 0x41d   : > { %3992 = vst.msk [vmem:[#allocation2 + $0x90] sm:$0xff] %vm3973_vm5, %v11379_v26  ;;  %2771 = vrot.lane.b32.xlu1 %v2700_v63, %s6907_s29  ;;  %v9408_v36 = vadd.f32 %v2365_v9, %v9046_v61  ;;  %v3430_v8 = vmax.f32 %v3428_v33, %v3429_v17  ;;  %v3439_v63 = vmax.f32 %v3437_v29, %v3438_v45  ;;  %v3221_v3 = vrot.slane %v9286_v38, 2  ;;  %v6594_v33 = vld [vmem:[%s11231_s2 + $0x98] sm:$0xff]  ;;  %v6591_v17 = vld [vmem:[%s11231_s2 + $0x80] sm:$0xff] }
 0x41e   : > { %3993 = vst.msk [vmem:[#allocation2 + $0x98] sm:$0x3] %vm3396_vm4, %v11379_v26  ;;  %v3448_v46 = vmax.f32 %v3446_v44, %v3447_v18  ;;  %v3457_v41 = vmax.f32 %v3455_v22, %v3456_v39  ;;  %v3104_v61 = vadd.f32 %v9073_v20, %v3067_v56  ;;  %4516 = vmatpush.msrb.mxu3 %v6596_v28  ;;  %v3474_v22 = vrot.slane %v3473_v21, 2  ;;  %v11778_v39 = vld [vmem:[#allocation75_spill] sm:$0xff] }
 0x41f   : > { %3994 = vst.msk [vmem:[#allocation2 + $0xa0] sm:$0xff] %vm3973_vm5, %v11379_v26  ;;  %v11382_v47 = vrot.slane %v9408_v36, 1  ;;  %v3431_v29 = vrot.slane %v3430_v8, 1  ;;  %v3440_v44 = vrot.slane %v3439_v63, 1  ;;  %4465 = vmatpush.msrb.mxu2 %v6593_v52  ;;  %6550 = vmatmul.msk.f32.gmra.mxu0 %vm1098_vm1, %v11778_v39 }
 0x420   : > { %3995 = vst.msk [vmem:[#allocation2 + $0xa8] sm:$0x3] %vm3396_vm4, %v11379_v26  ;;  %v3064_v26 = vmul.f32 %v9013_v2, %v3027_v6  ;;  %v3449_v9 = vrot.slane %v3448_v46, 1  ;;  %v3458_v45 = vrot.slane %v3457_v41, 1  ;;  %v3140_v18 = vmax.f32 %v3104_v61, 0.0  ;;  %4517 = vmatpush.msrb.mxu3 %v6594_v33  ;;  %6590 = vmatmul.msk.f32.gmra.mxu1 %vm1098_vm1, %v11778_v39 }
 0x421   : > { %11777 = vst [vmem:[#allocation14_spill] sm:$0xff] %v9408_v36  ;;  %v2702_v6 = vsel %vm2657_vm2, %v2699_v13, %v11382_v47  ;;  %v3441_v56 = vmax.f32 %v3439_v63, %v3440_v44  ;;  %v3468_v61 = vmax.f32 %v9357_v48, %v3467_v25  ;;  %4466 = vmatpush.msrb.mxu2 %v6591_v17  ;;  %v3532_v63 = vsel %vm3396_vm4, %v3221_v3, -inf }
 0x422   : > { %v3101_v62 = vadd.f32 %v9073_v20, %v3064_v26  ;;  %v3432_v26 = vmax.f32 %v3430_v8, %v3431_v29  ;;  %v3450_v28 = vmax.f32 %v3448_v46, %v3449_v9  ;;  %2773 = vrot.lane.b32.xlu2 %v2702_v6, %s6907_s29  ;;  %v3226_v13 = vrot.slane %v3140_v18, 2  ;;  %v2368_v47 = vpop.f32.mrf.mxu0  ;;  %4518 = vmatpush.msrb.mxu3 %v6592_v40  ;;  %v2746_v6 = vpop.permute.xlu0 %2745 }
 0x423   : > { %v3227_v52 = vrot.slane %v3140_v18, 4  ;;  %v3523_v8 = vsel %vm3396_vm4, %v9286_v38, -inf  ;;  %v3459_v48 = vmax.f32 %v3457_v41, %v3458_v45  ;;  %v3475_v9 = vmax.f32 %v3473_v21, %v3474_v22  ;;  %v2500_v3 = vpop.f32.mrf.mxu1 }
 0x424   : > { %v9435_v24 = vmax.f32 %v3101_v62, 0.0  ;;  %v4065_v46 = vsel %vm4064_vm8, %v3432_v26, %v9366_v1  ;;  %v3524_v29 = vsel %vm3396_vm4, %v3226_v13, -inf  ;;  %v3515_v1 = vsel %vm3396_vm4, %v3140_v18, -inf }
 0x425   : > { %v4067_v25 = vsel %vm4066_vm9, %v3441_v56, %v4065_v46  ;;  %v3533_v44 = vsel %vm3396_vm4, %v3227_v52, -inf  ;;  %v3525_v17 = vmax.f32 %v3523_v8, %v3524_v29  ;;  %v9455_v41 = vadd.f32 %v2368_v47, %v9050_v60  ;;  %v11781_v8 = vld [vmem:[#allocation36_spill] sm:$0xff] }
 0x426   : > { %v3220_v33 = vrot.slane %v9435_v24, 6  ;;  %v4069_v62 = vsel %vm4068_vm10, %v3450_v28, %v4067_v25  ;;  %v3534_v38 = vmax.f32 %v3532_v63, %v3533_v44  ;;  %v11780_v28 = vld [vmem:[#allocation18_spill] sm:$0xff]  ;;  %v11385_v52 = vrot.slane %v9245_v59, 2 }
 0x427   : > { %v4071_v39 = vsel %vm4070_vm11, %v3459_v48, %v4069_v62  ;;  %11779 = vst [vmem:[#allocation45_spill] sm:$0xff] %v9455_v41  ;;  %v3526_v26 = vrot.slane %v3525_v17, 4  ;;  %v2703_v22 = vrot.slane %v9455_v41, 1  ;;  %v2846_v13 = vadd.f32 %v2746_v6, %v11780_v28 }
 0x428   : > { %v3514_v40 = vsel %vm3396_vm4, %v3220_v33, -inf  ;;  %v4073_v45 = vsel %vm4072_vm12, %v3468_v61, %v4071_v39  ;;  %v3535_v56 = vrot.slane %v3534_v38, 4  ;;  %v9464_v18 = vadd.f32 %v9225_v7, %v11781_v8  ;;  %v11782_v61 = vld [vmem:[#allocation21_spill] sm:$0xff] }
 0x429   : > { %v3516_v21 = vmax.f32 %v3514_v40, %v3515_v1  ;;  %4132 = vst.msk [vmem:[#allocation2 + $0x11] sm:$0xff] %vm3973_vm5, %v4073_v45  ;;  %v3476_v63 = vrot.slane %v3475_v9, 1  ;;  %v3527_v60 = vmax.f32 %v3525_v17, %v3526_v26  ;;  %v3029_v33 = vadd.f32 %v11782_v61, %v2846_v13 }
 0x42a   : > { %v3536_v47 = vmax.f32 %v3534_v38, %v3535_v56  ;;  %v11783_v48 = vrot.slane %v9408_v36, 1  ;;  %v2371_v29 = vpop.f32.mrf.mxu0  ;;  %v11784_v44 = vrot.slane %v9166_v43, 2  ;;  %v11785_v62 = vrot.slane %v9105_v55, 2 }
 0x42b   : > { %v3517_v46 = vrot.slane %v3516_v21, 4  ;;  %v11386_v7 = vrot.slane %v9233_v19, 2  ;;  %v3528_v39 = vrot.slane %v3527_v60, 2  ;;  %v3218_v17 = vrot.slane %v9435_v24, 2  ;;  %v2503_v13 = vpop.f32.mrf.mxu1 }
 0x42c   : > { %v2704_v25 = vsel %vm2657_vm2, %v11783_v48, %v2703_v22  ;;  %v9475_v6 = vsel %vm2912_vm3, %v11785_v62, %v11784_v44  ;;  %v9481_v1 = vadd.f32 %v2371_v29, %v9065_v53  ;;  %v11786_v40 = vrot.slane %v9172_v4, 6  ;;  %v11788_v29 = vld [vmem:[#allocation37_spill] sm:$0xff] }
 0x42d   : > { %v3518_v38 = vmax.f32 %v3516_v21, %v3517_v46  ;;  %2775 = vrot.lane.b32.xlu1 %v2704_v25, %s6907_s29  ;;  %v3066_v55 = vmul.f32 %v9013_v2, %v3029_v33  ;;  %v9492_v26 = vsel %vm2912_vm3, %v11386_v7, %v11385_v52  ;;  %v9495_v21 = vmax.f32 %v3475_v9, %v3476_v63 }
 0x42e   : > { %v3478_v45 = vsel %vm3396_vm4, %v11786_v40, -inf  ;;  %v3537_v28 = vrot.slane %v3536_v47, 2  ;;  %v3219_v53 = vrot.slane %v9435_v24, 4  ;;  %v2705_v4 = vrot.slane %v9481_v1, 1  ;;  %v11789_v40 = vld [vmem:[#allocation38_spill] sm:$0xff] }
 0x42f   : > { %v3529_v8 = vmax.f32 %v3527_v60, %v3528_v39  ;;  %v3519_v46 = vrot.slane %v3518_v38, 2  ;;  %v3103_v61 = vadd.f32 %v9073_v20, %v3066_v55  ;;  %v9501_v33 = vadd.f32 %v2500_v3, %v9058_v49 }
 0x430   : > { %v9503_v48 = vld [vmem:[#allocation2 + $0x10] sm:$0xff]  ;;  %v4204_v25 = vld [vmem:[#allocation2 + $0x18] sm:$0x3]  ;;  %v3487_v9 = vsel %vm3396_vm4, %v9435_v24, -inf  ;;  %v3496_v63 = vsel %vm3396_vm4, %v3218_v17, -inf  ;;  %v9510_v44 = vadd.f32 %v9278_v50, %v11788_v29  ;;  %v9513_v60 = vadd.f32 %v2503_v13, %v9069_v27 }
 0x431   : > { %11787 = vst [vmem:[#allocation47_spill] sm:$0xff] %v9503_v48  ;;  %v11383_v62 = vrot.slane %v9503_v48, 2  ;;  %v11384_v49 = vrot.slane %v9503_v48, 4  ;;  %v11389_v3 = vrot.slane %v9503_v48, 6  ;;  %v2706_v39 = vsel %vm2657_vm2, %v2703_v22, %v2705_v4 }
 0x432   : > { %4363 = vst [vmem:[#allocation1] ss:$4 sm:$0xff] %v9503_v48  ;;  %v3505_v24 = vsel %vm3396_vm4, %v3219_v53, -inf  ;;  %v3139_v17 = vmax.f32 %v3103_v61, 0.0  ;;  %v9523_v50 = vadd.f32 %v9338_v5, %v11789_v40  ;;  %v9527_v27 = vadd.f32 %v9403_v42, %v9054_v14  ;;  %v2374_v22 = vpop.f32.mrf.mxu0  ;;  %v2750_v14 = vpop.permute.xlu0 %2749 }
 0x433   : > { %4371 = vst [vmem:[#allocation1 + $0x20] ss:$4 sm:$0xff] %v4204_v25  ;;  %v3530_v55 = vrot.slane %v3529_v8, 1  ;;  %v3538_v13 = vmax.f32 %v3536_v47, %v3537_v28  ;;  %v9531_v29 = vmax.f32 %v3518_v38, %v3519_v46  ;;  %v2756_v25 = vpop.permute.xlu2 %2755  ;;  %v9542_v38 = vadd.f32 %v2374_v22, %v9079_v30  ;;  %v11790_v28 = vld [vmem:[#allocation28_spill] sm:$0xff]  ;;  %v2506_v53 = vpop.f32.mrf.mxu1  ;;  %v11792_v22 = vld [vmem:[#allocation31_spill] sm:$0xff] }
 0x434   : > { %4365 = vst [vmem:[#allocation1 + $0x1] ss:$4 sm:$0xff] %v11383_v62  ;;  %v3223_v5 = vrot.slane %v3139_v17, 2  ;;  %v3224_v61 = vrot.slane %v3139_v17, 4  ;;  %v3225_v40 = vrot.slane %v3139_v17, 6  ;;  %v3479_v47 = vsel %vm3396_vm4, %v3139_v17, -inf }
 0x435   : > { %4367 = vst [vmem:[#allocation1 + $0x2] ss:$4 sm:$0xff] %v11384_v49  ;;  %2777 = vrot.lane.b32.xlu1 %v2706_v39, %s6907_s29  ;;  %v2851_v46 = vadd.f32 %v2756_v25, %v11790_v28  ;;  %v11791_v62 = vld [vmem:[#allocation22_spill] sm:$0xff]  ;;  %v3480_v52 = vmax.f32 %v3478_v45, %v3479_v47  ;;  %v11392_v17 = vrot.slane %v9542_v38, 1  ;;  %v3539_v41 = vrot.slane %v3538_v13, 1  ;;  %v11793_v25 = vld [vmem:[#allocation9_spill] sm:$0xff] }
 0x436   : > { %4369 = vst [vmem:[#allocation1 + $0x3] ss:$4 sm:$0xff] %v11389_v3  ;;  %v2848_v49 = vadd.f32 %v2750_v14, %v11791_v62  ;;  %v3488_v56 = vsel %vm3396_vm4, %v3223_v5, -inf  ;;  %v3497_v39 = vsel %vm3396_vm4, %v3224_v61, -inf  ;;  %v3506_v7 = vsel %vm3396_vm4, %v3225_v40, -inf }
 0x437   : > { %v3489_v42 = vmax.f32 %v3487_v9, %v3488_v56  ;;  %v3498_v48 = vmax.f32 %v3496_v63, %v3497_v39  ;;  %v3507_v3 = vmax.f32 %v3505_v24, %v3506_v7  ;;  %v3481_v30 = vrot.slane %v3480_v52, 4 }
 0x438   : > { %v3034_v36 = vadd.f32 %v11792_v22, %v2851_v46  ;;  %v3031_v28 = vadd.f32 %v11793_v25, %v2848_v49  ;;  %v2708_v5 = vsel %vm2657_vm2, %v2705_v4, %v11392_v17  ;;  %v9555_v61 = vmax.f32 %v3529_v8, %v3530_v55  ;;  %v11798_v22 = vld [vmem:[#allocation24_spill] sm:$0xff] }
 0x439   : > { %v3490_v62 = vrot.slane %v3489_v42, 4  ;;  %v3499_v45 = vrot.slane %v3498_v48, 4  ;;  %v3508_v14 = vrot.slane %v3507_v3, 4  ;;  %v3482_v56 = vmax.f32 %v3480_v52, %v3481_v30  ;;  %2779 = vrot.lane.b32.xlu2 %v2708_v5, %s6907_s29 }
 0x43a   : > { %v3071_v7 = vmul.f32 %v9013_v2, %v3034_v36  ;;  %v3068_v9 = vmul.f32 %v9013_v2, %v3031_v28  ;;  %v2377_v49 = vpop.f32.mrf.mxu0  ;;  %v11794_v47 = vrot.slane %v9513_v60, 2  ;;  %v11795_v46 = vrot.slane %v9501_v33, 2 }
 0x43b   : > { %v3491_v63 = vmax.f32 %v3489_v42, %v3490_v62  ;;  %v3500_v24 = vmax.f32 %v3498_v48, %v3499_v45  ;;  %v3509_v40 = vmax.f32 %v3507_v3, %v3508_v14  ;;  %v3483_v8 = vrot.slane %v3482_v56, 2  ;;  %v2752_v42 = vpop.permute.xlu0 %2751  ;;  %v9579_v5 = vpop.f32.mrf.mxu1 }
 0x43c   : > { %v9565_v39 = vsel %vm2912_vm3, %v11795_v46, %v11794_v47  ;;  %v3108_v52 = vadd.f32 %v9073_v20, %v3071_v7  ;;  %v3105_v36 = vadd.f32 %v9073_v20, %v3068_v9  ;;  %v9570_v55 = vadd.f32 %v2377_v49, %v9085_v37 }
 0x43d   : > { %11796 = vst [vmem:[#allocation66_spill] sm:$0xff] %v9565_v39  ;;  %v4378_v4 = vld.sshfl [vmem:[#allocation1] sm:$0xff pattern:$0x73625140]  ;;  %v3492_v48 = vrot.slane %v3491_v63, 2  ;;  %v3501_v3 = vrot.slane %v3500_v24, 2  ;;  %v2849_v25 = vadd.f32 %v2752_v42, %v11798_v22  ;;  %v3484_v62 = vmax.f32 %v3482_v56, %v3483_v8 }
 0x43e   : > { %11797 = vst [vmem:[#allocation50_spill] sm:$0xff] %v9570_v55  ;;  %v3510_v30 = vrot.slane %v3509_v40, 2  ;;  %6607 = vmatmul.msk.f32.vlgmr.msrb.gmra.mxu2 %vm3973_vm5, %v4378_v4  ;;  %6619 = vmatmul.msk.f32.vlgmr.msrb.gmra.mxu3 %vm3973_vm5, %v4378_v4  ;;  %v3521_v28 = vrot.slane %v9531_v29, 1  ;;  %v3144_v45 = vmax.f32 %v3108_v52, 0.0  ;;  %v9577_v14 = vadd.f32 %v2506_v53, %v9089_v35  ;;  %v11799_v56 = vld [vmem:[#allocation26_spill] sm:$0xff] }
 0x43f   : > { %v3540_v37 = vmax.f32 %v3538_v13, %v3539_v41  ;;  %v3493_v7 = vmax.f32 %v3491_v63, %v3492_v48  ;;  %v3502_v9 = vmax.f32 %v3500_v24, %v3501_v3  ;;  %v3485_v47 = vrot.slane %v3484_v62, 1 }
 0x440   : > { %v3511_v49 = vmax.f32 %v3509_v40, %v3510_v30  ;;  %v3238_v46 = vrot.slane %v3144_v45, 4  ;;  %v9581_v17 = vmax.f32 %v3105_v36, 0.0  ;;  %v2709_v4 = vrot.slane %v9570_v55, 1 }
 0x441   : > { %v3494_v42 = vrot.slane %v3493_v7, 1  ;;  %v3503_v22 = vrot.slane %v3502_v9, 1  ;;  %v3032_v8 = vadd.f32 %v11799_v56, %v2849_v25  ;;  %v3522_v35 = vmax.f32 %v9531_v29, %v3521_v28 }
 0x442   : > { %v3512_v39 = vrot.slane %v3511_v49, 1  ;;  %v3486_v53 = vmax.f32 %v3484_v62, %v3485_v47  ;;  %v3239_v52 = vrot.slane %v3144_v45, 6  ;;  %v11394_v41 = vrot.slane %v9577_v14, 2  ;;  %v2380_v36 = vpop.f32.mrf.mxu0  ;;  %v2754_v48 = vpop.permute.xlu1 %2753 }
 0x443   : > { %v3495_v13 = vmax.f32 %v3493_v7, %v3494_v42  ;;  %v3504_v63 = vmax.f32 %v3502_v9, %v3503_v22  ;;  %v3237_v24 = vrot.slane %v3144_v45, 2  ;;  %v3569_v40 = vsel %vm3396_vm4, %v3144_v45, -inf }
 0x444   : > { %v3513_v3 = vmax.f32 %v3511_v49, %v3512_v39  ;;  %v4074_v30 = vsel %vm4060_vm6, %v3486_v53, %v9495_v21  ;;  %v3587_v55 = vsel %vm3396_vm4, %v3238_v46, -inf  ;;  %v3230_v25 = vrot.slane %v9581_v17, 6  ;;  %v11801_v49 = vld [vmem:[#allocation13_spill] sm:$0xff]  ;;  %v9605_v46 = vpop.f32.mrf.mxu1 }
 0x445   : > { %v4075_v29 = vsel %vm4062_vm7, %v3495_v13, %v4074_v30  ;;  %v3069_v28 = vmul.f32 %v9013_v2, %v3032_v8  ;;  %v11800_v62 = vrot.slane %v9542_v38, 1  ;;  %v9598_v45 = vadd.f32 %v2380_v36, %v9102_v10 }
 0x446   : > { %v4076_v39 = vsel %vm4064_vm8, %v3504_v63, %v4075_v29  ;;  %v3596_v9 = vsel %vm3396_vm4, %v3239_v52, -inf  ;;  %v3568_v21 = vsel %vm3396_vm4, %v3230_v25, -inf  ;;  %v2850_v47 = vadd.f32 %v2754_v48, %v11801_v49  ;;  %v11802_v52 = vld [vmem:[#allocation30_spill] sm:$0xff]  ;;  %v11804_v49 = vld [vmem:[#allocation33_spill] sm:$0xff] }
 0x447   : > { %v2710_v7 = vsel %vm2657_vm2, %v11800_v62, %v2709_v4  ;;  %v4077_v42 = vsel %vm4066_vm9, %v3513_v3, %v4076_v39  ;;  %v3570_v22 = vmax.f32 %v3568_v21, %v3569_v40  ;;  %v3106_v56 = vadd.f32 %v9073_v20, %v3069_v28 }
 0x448   : > { %2781 = vrot.lane.b32.xlu0 %v2710_v7, %s6907_s29  ;;  %v2711_v10 = vrot.slane %v9598_v45, 1  ;;  %v4078_v8 = vsel %vm4068_vm10, %v3522_v35, %v4077_v42  ;;  %v3228_v53 = vrot.slane %v9581_v17, 2  ;;  %v3033_v13 = vadd.f32 %v11802_v52, %v2850_v47 }
 0x449   : > { %v11803_v63 = vrot.slane %v9513_v60, 2  ;;  %v4079_v40 = vsel %vm4070_vm11, %v9555_v61, %v4078_v8  ;;  %v3571_v48 = vrot.slane %v3570_v22, 4  ;;  %v9622_v3 = vmax.f32 %v3106_v56, 0.0 }
 0x44a   : > { %v2712_v30 = vsel %vm2657_vm2, %v2709_v4, %v2711_v10  ;;  %v4080_v35 = vsel %vm4072_vm12, %v3540_v37, %v4079_v40  ;;  %v3229_v25 = vrot.slane %v9581_v17, 4  ;;  %v3541_v29 = vsel %vm3396_vm4, %v9581_v17, -inf  ;;  %v2383_v7 = vpop.f32.mrf.mxu0  ;;  %v2762_v37 = vpop.permute.xlu2 %2761 }
 0x44b   : > { %v9618_v36 = vsel %vm2912_vm3, %v11803_v63, %v11394_v41  ;;  %v3070_v60 = vmul.f32 %v9013_v2, %v3033_v13  ;;  %2783 = vrot.lane.b32.xlu2 %v2712_v30, %s6907_s29  ;;  %4133 = vst.msk [vmem:[#allocation2 + $0x21] sm:$0xff] %vm3973_vm5, %v4080_v35  ;;  %v3572_v28 = vmax.f32 %v3570_v22, %v3571_v48  ;;  %v3578_v61 = vsel %vm3396_vm4, %v3237_v24, -inf }
 0x44c   : > { %v3231_v62 = vrot.slane %v9622_v3, 2  ;;  %v3232_v4 = vrot.slane %v9622_v3, 4  ;;  %v3577_v39 = vsel %vm3396_vm4, %v9622_v3, -inf  ;;  %v9639_v21 = vadd.f32 %v2383_v7, %v9109_v31  ;;  %v9645_v40 = vpop.f32.mrf.mxu1 }
 0x44d   : > { %v3107_v17 = vadd.f32 %v9073_v20, %v3070_v60  ;;  %v2854_v47 = vadd.f32 %v2762_v37, %v11804_v49  ;;  %v3573_v42 = vrot.slane %v3572_v28, 2  ;;  %v3579_v22 = vmax.f32 %v3577_v39, %v3578_v61 }
 0x44e   : > { %v3586_v24 = vsel %vm3396_vm4, %v3231_v62, -inf  ;;  %v3595_v56 = vsel %vm3396_vm4, %v3232_v4, -inf  ;;  %v11395_v63 = vrot.slane %v9639_v21, 1  ;;  %v3550_v30 = vsel %vm3396_vm4, %v3228_v53, -inf }
 0x44f   : > { %v3588_v8 = vmax.f32 %v3586_v24, %v3587_v55  ;;  %v3597_v52 = vmax.f32 %v3595_v56, %v3596_v9  ;;  %v3143_v13 = vmax.f32 %v3107_v17, 0.0  ;;  %v3580_v48 = vrot.slane %v3579_v22, 4 }
 0x450   : > { %v3559_v31 = vsel %vm3396_vm4, %v3229_v25, -inf  ;;  %v3037_v35 = vadd.f32 %v9475_v6, %v2854_v47  ;;  %v3574_v60 = vmax.f32 %v3572_v28, %v3573_v42  ;;  %v2714_v53 = vsel %vm2657_vm2, %v2711_v10, %v11395_v63 }
 0x451   : > { %v3589_v61 = vrot.slane %v3588_v8, 4  ;;  %v3598_v7 = vrot.slane %v3597_v52, 4  ;;  %v3234_v62 = vrot.slane %v3143_v13, 2  ;;  %v3581_v37 = vmax.f32 %v3579_v22, %v3580_v48  ;;  %2785 = vrot.lane.b32.xlu0 %v2714_v53, %s6907_s29 }
 0x452   : > { %v3235_v4 = vrot.slane %v3143_v13, 4  ;;  %v3236_v55 = vrot.slane %v3143_v13, 6  ;;  %v3074_v9 = vmul.f32 %v9013_v2, %v3037_v35  ;;  %v9651_v39 = vld [vmem:[#allocation2 + $0x20] sm:$0xff]  ;;  %v3233_v47 = vrot.slane %v9622_v3, 6  ;;  %v2386_v42 = vpop.f32.mrf.mxu0  ;;  %v2758_v22 = vpop.permute.xlu1 %2757  ;;  %v4206_v13 = vld [vmem:[#allocation2 + $0x28] sm:$0x3] }
 0x453   : > { %11805 = vst [vmem:[#allocation52_spill] sm:$0xff] %v9651_v39  ;;  %v3590_v17 = vmax.f32 %v3588_v8, %v3589_v61  ;;  %v3599_v49 = vmax.f32 %v3597_v52, %v3598_v7  ;;  %v3542_v24 = vsel %vm3396_vm4, %v3234_v62, -inf  ;;  %v9658_v6 = vrot.slane %v9651_v39, 2 }
 0x454   : > { %v9661_v25 = vrot.slane %v9651_v39, 4  ;;  %v9664_v28 = vrot.slane %v9651_v39, 6  ;;  %4373 = vst [vmem:[#allocation1 + $0x21] ss:$4 sm:$0xff] %v9651_v39  ;;  %v3582_v56 = vrot.slane %v3581_v37, 2  ;;  %v3543_v52 = vmax.f32 %v3541_v29, %v3542_v24  ;;  %v9679_v29 = vpop.f32.mrf.mxu1 }
 0x455   : > { %11806 = vst [vmem:[#allocation55_spill] sm:$0xff] %v9658_v6  ;;  %v3591_v8 = vrot.slane %v3590_v17, 2  ;;  %v3600_v10 = vrot.slane %v3599_v49, 2  ;;  %v3551_v48 = vsel %vm3396_vm4, %v3235_v4, -inf  ;;  %v3560_v35 = vsel %vm3396_vm4, %v3236_v55, -inf }
 0x456   : > { %11807 = vst [vmem:[#allocation53_spill] sm:$0xff] %v9661_v25  ;;  %v3111_v61 = vadd.f32 %v9073_v20, %v3074_v9  ;;  %v9674_v3 = vadd.f32 %v2386_v42, %v9126_v32  ;;  %v3575_v7 = vrot.slane %v3574_v60, 1  ;;  %v3583_v62 = vmax.f32 %v3581_v37, %v3582_v56  ;;  %v11810_v42 = vld [vmem:[#allocation10_spill] sm:$0xff] }
 0x457   : > { %11808 = vst [vmem:[#allocation59_spill] sm:$0xff] %v9664_v28  ;;  %v9677_v53 = vmax.f32 %v3590_v17, %v3591_v8  ;;  %v3544_v41 = vrot.slane %v3543_v52, 4  ;;  %v9682_v24 = vmax.f32 %v3599_v49, %v3600_v10  ;;  %v3552_v4 = vmax.f32 %v3550_v30, %v3551_v48 }
 0x458   : > { %4375 = vst [vmem:[#allocation1 + $0x22] ss:$4 sm:$0xff] %v9658_v6  ;;  %v3561_v55 = vmax.f32 %v3559_v31, %v3560_v35  ;;  %v9684_v63 = vmax.f32 %v3111_v61, 0.0  ;;  %v2715_v9 = vrot.slane %v9674_v3, 1  ;;  %v9690_v37 = vadd.f32 %v9579_v5, %v9093_v11 }
 0x459   : > { %11809 = vst [vmem:[#allocation100_spill] sm:$0xff] %v9674_v3  ;;  %v3545_v32 = vmax.f32 %v3543_v52, %v3544_v41  ;;  %v3553_v17 = vrot.slane %v3552_v4, 4  ;;  %v9693_v8 = vsel %vm3396_vm4, %v3233_v47, -inf  ;;  %v9697_v30 = vadd.f32 %v9605_v46, %v9113_v12 }
 0x45a   : > { %4377 = vst [vmem:[#allocation1 + $0x23] ss:$4 sm:$0xff] %v9661_v25  ;;  %v3562_v56 = vrot.slane %v3561_v55, 4  ;;  %v9699_v31 = vmax.f32 %v3574_v60, %v3575_v7  ;;  %v3584_v41 = vrot.slane %v3583_v62, 1  ;;  %v3593_v49 = vrot.slane %v9677_v53, 1  ;;  %v2389_v48 = vpop.f32.mrf.mxu0  ;;  %v2760_v35 = vpop.permute.xlu1 %2759 }
 0x45b   : > { %4380 = vst [vmem:[#allocation1] ss:$4 sm:$0xff] %v9664_v28  ;;  %v3546_v10 = vrot.slane %v3545_v32, 2  ;;  %v3602_v52 = vrot.slane %v9682_v24, 1  ;;  %v3245_v5 = vrot.slane %v9684_v63, 2  ;;  %v3246_v61 = vrot.slane %v9684_v63, 6  ;;  %v2766_v7 = vpop.permute.xlu2 %2765 }
 0x45c   : > { %4381 = vst [vmem:[#allocation1 + $0x1] ss:$4 sm:$0xff] %v4206_v13  ;;  %v3554_v13 = vmax.f32 %v3552_v4, %v3553_v17  ;;  %v3563_v11 = vmax.f32 %v3561_v55, %v3562_v56  ;;  %v2852_v12 = vadd.f32 %v2758_v22, %v11810_v42  ;;  %v11811_v46 = vrot.slane %v9639_v21, 1  ;;  %v11812_v17 = vld [vmem:[#allocation32_spill] sm:$0xff]  ;;  %v11813_v22 = vld [vmem:[#allocation11_spill] sm:$0xff] }
 0x45d   : > { %v3547_v47 = vmax.f32 %v3545_v32, %v3546_v10  ;;  %v9711_v4 = vadd.f32 %v2389_v48, %v9130_v23  ;;  %v2856_v55 = vadd.f32 %v2766_v7, %v9060_v58  ;;  %v2853_v42 = vadd.f32 %v2760_v35, %v11813_v22 }
 0x45e   : > { %v2716_v60 = vsel %vm2657_vm2, %v11811_v46, %v2715_v9  ;;  %v3555_v25 = vrot.slane %v3554_v13, 2  ;;  %v3564_v6 = vrot.slane %v3563_v11, 2  ;;  %v3035_v56 = vadd.f32 %v11812_v17, %v2852_v12  ;;  %v9724_v17 = vpop.f32.mrf.mxu1 }
 0x45f   : > { %2787 = vrot.lane.b32.xlu0 %v2716_v60, %s6907_s29  ;;  %v3548_v32 = vrot.slane %v3547_v47, 1  ;;  %v2964_v10 = vrot.slane %v9690_v37, 2  ;;  %v2717_v60 = vrot.slane %v9711_v4, 1  ;;  %v3039_v23 = vadd.f32 %v9492_v26, %v2856_v55 }
 0x460   : > { %v3556_v46 = vmax.f32 %v3554_v13, %v3555_v25  ;;  %v3565_v39 = vmax.f32 %v3563_v11, %v3564_v6  ;;  %v3072_v58 = vmul.f32 %v9013_v2, %v3035_v56  ;;  %v3036_v7 = vadd.f32 %v9204_v57, %v2853_v42 }
 0x461   : > { %v4379_v28 = vld.sshfl [vmem:[#allocation1 + $0x20] sm:$0xff pattern:$0x73625140]  ;;  %v3549_v48 = vmax.f32 %v3547_v47, %v3548_v32  ;;  %v2966_v12 = vrot.slane %v9697_v30, 2  ;;  %v3076_v35 = vmul.f32 %v9013_v2, %v3039_v23  ;;  %v2718_v6 = vsel %vm2657_vm2, %v2715_v9, %v2717_v60 }
 0x462   : > { %6608 = vmatmul.msk.f32.gmra.mxu2 %vm3973_vm5, %v4379_v28  ;;  %6620 = vmatmul.msk.f32.gmra.mxu3 %vm3973_vm5, %v4379_v28  ;;  %v3557_v28 = vrot.slane %v3556_v46, 1  ;;  %v3566_v3 = vrot.slane %v3565_v39, 1  ;;  %v3585_v25 = vmax.f32 %v3583_v62, %v3584_v41  ;;  %v3109_v26 = vadd.f32 %v9073_v20, %v3072_v58  ;;  %v2392_v32 = vpop.f32.mrf.mxu0 }
 0x463   : > { %v3073_v37 = vmul.f32 %v9013_v2, %v3036_v7  ;;  %2789 = vrot.lane.b32.xlu1 %v2718_v6, %s6907_s29  ;;  %v9736_v57 = vsel %vm2912_vm3, %v2964_v10, %v2966_v12  ;;  %v3594_v13 = vmax.f32 %v9677_v53, %v3593_v49  ;;  %v3113_v55 = vadd.f32 %v9073_v20, %v3076_v35 }
 0x464   : > { %v3558_v11 = vmax.f32 %v3556_v46, %v3557_v28  ;;  %v3567_v47 = vmax.f32 %v3565_v39, %v3566_v3  ;;  %v3603_v62 = vmax.f32 %v9682_v24, %v3602_v52  ;;  %v3614_v9 = vsel %vm3396_vm4, %v3246_v61, -inf }
 0x465   : > { %v3667_v41 = vsel %vm3396_vm4, %v9684_v63, -inf  ;;  %v9744_v56 = vmax.f32 %v3109_v26, 0.0  ;;  %v3676_v42 = vsel %vm3396_vm4, %v3245_v5, -inf  ;;  %v3149_v23 = vmax.f32 %v3113_v55, 0.0 }
 0x466   : > { %v4081_v22 = vsel %vm4060_vm6, %v3558_v11, %v3549_v48  ;;  %v11814_v53 = vrot.slane %v9577_v14, 2  ;;  %v3110_v63 = vadd.f32 %v9073_v20, %v3073_v37  ;;  %v9764_v48 = vadd.f32 %v2392_v32, %v9134_v34  ;;  %v9770_v7 = vpop.f32.mrf.mxu1 }
 0x467   : > { %v4082_v3 = vsel %vm4062_vm7, %v3567_v47, %v4081_v22  ;;  %v3240_v24 = vrot.slane %v9744_v56, 4  ;;  %v3605_v49 = vsel %vm3396_vm4, %v9744_v56, -inf  ;;  %v3250_v61 = vrot.slane %v3149_v23, 2 }
 0x468   : > { %v9751_v39 = vsel %vm2912_vm3, %v11814_v53, %v2964_v10  ;;  %v4083_v52 = vsel %vm4064_vm8, %v9699_v31, %v4082_v3  ;;  %v3606_v5 = vmax.f32 %v9693_v8, %v3605_v49  ;;  %v3251_v46 = vrot.slane %v3149_v23, 4 }
 0x469   : > { %v4084_v14 = vsel %vm4066_vm9, %v3585_v25, %v4083_v52  ;;  %v3613_v10 = vsel %vm3396_vm4, %v3240_v24, -inf  ;;  %v9768_v58 = vadd.f32 %v9645_v40, %v9117_v54  ;;  %v3668_v8 = vsel %vm3396_vm4, %v3250_v61, -inf }
 0x46a   : > { %v3607_v28 = vrot.slane %v3606_v5, 4  ;;  %v3615_v35 = vmax.f32 %v3613_v10, %v3614_v9  ;;  %v4085_v31 = vsel %vm4068_vm10, %v3594_v13, %v4084_v14  ;;  %v3669_v25 = vmax.f32 %v3667_v41, %v3668_v8  ;;  %v2395_v55 = vpop.f32.mrf.mxu0 }
 0x46b   : > { %v4086_v6 = vsel %vm4070_vm11, %v3603_v62, %v4085_v31  ;;  %v3677_v26 = vsel %vm3396_vm4, %v3251_v46, -inf  ;;  %v3146_v37 = vmax.f32 %v3110_v63, 0.0  ;;  %v11815_v54 = vrot.slane %v9233_v19, 2  ;;  %v2764_v3 = vpop.permute.xlu0 %2763 }
 0x46c   : > { %v3608_v34 = vmax.f32 %v3606_v5, %v3607_v28  ;;  %v3616_v11 = vrot.slane %v3615_v35, 4  ;;  %v3678_v47 = vmax.f32 %v3676_v42, %v3677_v26  ;;  %v11816_v40 = vrot.slane %v9166_v43, 2 }
 0x46d   : > { %v3670_v9 = vrot.slane %v3669_v25, 4  ;;  %v3244_v13 = vrot.slane %v3146_v37, 6  ;;  %v2719_v22 = vrot.slane %v9764_v48, 1  ;;  %v11405_v62 = vrot.slane %v9523_v50, 2 }
 0x46e   : > { %v2947_v32 = vsel %vm2912_vm3, %v11816_v40, %v11815_v54  ;;  %v3609_v41 = vrot.slane %v3608_v34, 2  ;;  %v11817_v24 = vrot.slane %v9464_v18, 2  ;;  %v11818_v42 = vrot.slane %v9245_v59, 2 }
 0x46f   : > { %v2605_v43 = vadd.f32 %v9679_v29, %v9138_v51  ;;  %v3241_v49 = vrot.slane %v9744_v56, 6  ;;  %v3658_v63 = vsel %vm3396_vm4, %v3244_v13, -inf  ;;  %v11819_v52 = vrot.slane %v9527_v27, 2  ;;  %v11820_v56 = vld [vmem:[#allocation34_spill] sm:$0xff] }
 0x470   : > { %v9789_v19 = vsel %vm2912_vm3, %v11818_v42, %v11817_v24  ;;  %v2968_v61 = vrot.slane %v9768_v58, 2  ;;  %v3610_v59 = vmax.f32 %v3608_v34, %v3609_v41  ;;  %v3617_v46 = vmax.f32 %v3615_v35, %v3616_v11  ;;  %v2527_v11 = vpop.f32.mrf.mxu1 }
 0x471   : > { %v9800_v5 = vsel %vm2912_vm3, %v11405_v62, %v11819_v52  ;;  %v3659_v14 = vsel %vm3396_vm4, %v3149_v23, -inf  ;;  %v3679_v10 = vrot.slane %v3678_v47, 4  ;;  %v3671_v28 = vmax.f32 %v3669_v25, %v3670_v9 }
 0x472   : > { %v2720_v51 = vsel %vm2657_vm2, %v2717_v60, %v2719_v22  ;;  %v9808_v29 = vadd.f32 %v2395_v55, %v9158_v0  ;;  %v2855_v31 = vadd.f32 %v2764_v3, %v11820_v56  ;;  %v3611_v8 = vrot.slane %v3610_v59, 1  ;;  %v2398_v9 = vpop.f32.mrf.mxu0 }
 0x473   : > { %v3242_v26 = vrot.slane %v3146_v37, 2  ;;  %v3660_v54 = vmax.f32 %v3658_v63, %v3659_v14  ;;  %2791 = vrot.lane.b32.xlu2 %v2720_v51, %s6907_s29  ;;  %v2970_v58 = vrot.slane %v2605_v43, 2  ;;  %v3243_v35 = vrot.slane %v3146_v37, 4  ;;  %v11821_v63 = vld [vmem:[#allocation64_spill] sm:$0xff] }
 0x474   : > { %v2721_v23 = vrot.slane %v9808_v29, 1  ;;  %v3038_v34 = vadd.f32 %v2947_v32, %v2855_v31  ;;  %v2607_v25 = vadd.f32 %v9724_v17, %v9144_v16  ;;  %v3612_v60 = vmax.f32 %v3610_v59, %v3611_v8 }
 0x475   : > { %v3618_v40 = vrot.slane %v3617_v46, 2  ;;  %v3622_v0 = vsel %vm3396_vm4, %v3241_v49, -inf  ;;  %v9816_v55 = vmax.f32 %v3678_v47, %v3679_v10  ;;  %v3672_v13 = vrot.slane %v3671_v28, 2  ;;  %v11822_v10 = vld [vmem:[#allocation44_spill] sm:$0xff] }
 0x476   : > { %v3075_v41 = vmul.f32 %v9013_v2, %v3038_v34  ;;  %v2722_v3 = vsel %vm2657_vm2, %v2719_v22, %v2721_v23  ;;  %v9821_v24 = vadd.f32 %v2398_v9, %v9170_v15  ;;  %v4087_v32 = vsel %vm4072_vm12, %v3612_v60, %v4086_v6 }
 0x477   : > { %v3631_v16 = vsel %vm3396_vm4, %v3146_v37, -inf  ;;  %v3640_v17 = vsel %vm3396_vm4, %v3242_v26, -inf  ;;  %v3661_v42 = vrot.slane %v3660_v54, 4  ;;  %2793 = vrot.lane.b32.xlu1 %v2722_v3, %s6907_s29  ;;  %4134 = vst.msk [vmem:[#allocation2 + $0x31] sm:$0xff] %vm3973_vm5, %v4087_v32  ;;  %v3649_v47 = vsel %vm3396_vm4, %v3243_v35, -inf }
 0x478   : > { %v3112_v43 = vadd.f32 %v9073_v20, %v3075_v41  ;;  %v2723_v22 = vrot.slane %v9821_v24, 1  ;;  %v2972_v49 = vrot.slane %v2607_v25, 2  ;;  %v9831_v15 = vmax.f32 %v3617_v46, %v3618_v40  ;;  %v9856_v35 = vpop.f32.mrf.mxu1  ;;  %v11823_v40 = vld [vmem:[#allocation56_spill] sm:$0xff] }
 0x479   : > { %v3681_v6 = vrot.slane %v9816_v55, 2  ;;  %v2609_v37 = vadd.f32 %v9770_v7, %v11821_v63  ;;  %v9839_v52 = vsel %vm2912_vm3, %v2966_v12, %v2968_v61  ;;  %v9841_v59 = vmax.f32 %v3671_v28, %v3672_v13 }
 0x47a   : > { %v3148_v14 = vmax.f32 %v3112_v43, 0.0  ;;  %v9844_v51 = vadd.f32 %v2527_v11, %v11822_v10  ;;  %v9847_v56 = vsel %vm2912_vm3, %v2968_v61, %v2970_v58  ;;  %v3662_v46 = vmax.f32 %v3660_v54, %v3661_v42  ;;  %v2401_v25 = vpop.f32.mrf.mxu0 }
 0x47b   : > { %v2724_v31 = vsel %vm2657_vm2, %v2721_v23, %v2723_v22  ;;  %v2974_v7 = vrot.slane %v2609_v37, 2  ;;  %v9853_v30 = vsel %vm2912_vm3, %v2970_v58, %v2972_v49  ;;  %v3620_v34 = vrot.slane %v9831_v15, 1 }
 0x47c   : > { %v3247_v12 = vrot.slane %v3148_v14, 2  ;;  %v3248_v8 = vrot.slane %v3148_v14, 4  ;;  %v3249_v28 = vrot.slane %v3148_v14, 6  ;;  %v3623_v26 = vsel %vm3396_vm4, %v3148_v14, -inf  ;;  %v2774_v42 = vpop.permute.xlu2 %2773  ;;  %v2768_v14 = vpop.permute.xlu0 %2767 }
 0x47d   : > { %v3624_v61 = vmax.f32 %v3622_v0, %v3623_v26  ;;  %v9860_v54 = vsel %vm2912_vm3, %v2972_v49, %v2974_v7  ;;  %v11406_v23 = vrot.slane %v9844_v51, 2  ;;  %v9867_v9 = vadd.f32 %v2401_v25, %v11823_v40  ;;  %v11826_v26 = vld [vmem:[#allocation39_spill] sm:$0xff] }
 0x47e   : > { %v3632_v11 = vsel %vm3396_vm4, %v3247_v12, -inf  ;;  %v3641_v58 = vsel %vm3396_vm4, %v3248_v8, -inf  ;;  %v3650_v60 = vsel %vm3396_vm4, %v3249_v28, -inf  ;;  %v9869_v13 = vld [vmem:[#allocation2 + $0x30] sm:$0xff]  ;;  %v3663_v37 = vrot.slane %v3662_v46, 2  ;;  %v11825_v8 = vld [vmem:[#allocation61_spill] sm:$0xff] }
 0x47f   : > { %v3625_v41 = vrot.slane %v3624_v61, 4  ;;  %v3633_v3 = vmax.f32 %v3631_v16, %v3632_v11  ;;  %v3642_v0 = vmax.f32 %v3640_v17, %v3641_v58  ;;  %v3651_v32 = vmax.f32 %v3649_v47, %v3650_v60  ;;  %2795 = vrot.lane.b32.xlu1 %v2724_v31, %s6907_s29  ;;  %4382 = vst [vmem:[#allocation1 + $0x2] ss:$4 sm:$0xff] %v9869_v13  ;;  %v4208_v12 = vld [vmem:[#allocation2 + $0x38] sm:$0x3] }
 0x480   : > { %v9873_v43 = vrot.slane %v9869_v13, 2  ;;  %v9876_v49 = vrot.slane %v9869_v13, 4  ;;  %v9879_v63 = vrot.slane %v9869_v13, 6  ;;  %v11407_v31 = vrot.slane %v9867_v9, 1  ;;  %4386 = vst [vmem:[#allocation1 + $0x22] ss:$4 sm:$0xff] %v4208_v12 }
 0x481   : > { %v3626_v10 = vmax.f32 %v3624_v61, %v3625_v41  ;;  %v3634_v16 = vrot.slane %v3633_v3, 4  ;;  %v3643_v17 = vrot.slane %v3642_v0, 4  ;;  %v3652_v47 = vrot.slane %v3651_v32, 4 }
 0x482   : > { %11824 = vst [vmem:[#allocation62_spill] sm:$0xff] %v9879_v63  ;;  %v2860_v28 = vadd.f32 %v2774_v42, %v11825_v8  ;;  %v2857_v25 = vadd.f32 %v2768_v14, %v11826_v26  ;;  %v9889_v11 = vsel %vm2912_vm3, %v2974_v7, %v11406_v23  ;;  %v3674_v41 = vrot.slane %v9841_v59, 1  ;;  %v2533_v8 = vpop.f32.mrf.mxu1 }
 0x483   : > { %4383 = vst [vmem:[#allocation1 + $0x3] ss:$4 sm:$0xff] %v9873_v43  ;;  %v3627_v61 = vrot.slane %v3626_v10, 2  ;;  %v3635_v58 = vmax.f32 %v3633_v3, %v3634_v16  ;;  %v3644_v60 = vmax.f32 %v3642_v0, %v3643_v17  ;;  %v3653_v40 = vmax.f32 %v3651_v32, %v3652_v47 }
 0x484   : > { %4384 = vst [vmem:[#allocation1 + $0x20] ss:$4 sm:$0xff] %v9876_v49  ;;  %v3682_v62 = vmax.f32 %v9816_v55, %v3681_v6  ;;  %v3043_v42 = vadd.f32 %v9800_v5, %v2860_v28  ;;  %v3040_v14 = vadd.f32 %v9789_v19, %v2857_v25  ;;  %v3621_v3 = vmax.f32 %v9831_v15, %v3620_v34 }
 0x485   : > { %4385 = vst [vmem:[#allocation1 + $0x21] ss:$4 sm:$0xff] %v9879_v63  ;;  %v3628_v7 = vmax.f32 %v3626_v10, %v3627_v61  ;;  %v3636_v26 = vrot.slane %v3635_v58, 2  ;;  %v3645_v23 = vrot.slane %v3644_v60, 2  ;;  %v3654_v53 = vrot.slane %v3653_v40, 2  ;;  %v2404_v10 = vpop.f32.mrf.mxu0 }
 0x486   : > { %v3664_v0 = vmax.f32 %v3662_v46, %v3663_v37  ;;  %v3077_v32 = vmul.f32 %v9013_v2, %v3040_v14  ;;  %v2726_v55 = vsel %vm2657_vm2, %v2723_v22, %v11407_v31  ;;  %v3683_v17 = vrot.slane %v3682_v62, 1  ;;  %v11827_v46 = vld [vmem:[#allocation46_spill] sm:$0xff]  ;;  %v2770_v37 = vpop.permute.xlu0 %2769 }
 0x487   : > { %v3629_v5 = vrot.slane %v3628_v7, 1  ;;  %v3637_v6 = vmax.f32 %v3635_v58, %v3636_v26  ;;  %v3646_v19 = vmax.f32 %v3644_v60, %v3645_v23  ;;  %v3655_v16 = vmax.f32 %v3653_v40, %v3654_v53  ;;  %2797 = vrot.lane.b32.xlu2 %v2726_v55, %s6907_s29  ;;  %v11828_v53 = vld [vmem:[#allocation60_spill] sm:$0xff] }
 0x488   : > { %v3080_v47 = vmul.f32 %v9013_v2, %v3043_v42  ;;  %v3114_v15 = vadd.f32 %v9073_v20, %v3077_v32  ;;  %v9908_v34 = vadd.f32 %v2404_v10, %v11827_v46  ;;  %v3665_v58 = vrot.slane %v3664_v0, 1  ;;  %v11829_v40 = vld [vmem:[#allocation40_spill] sm:$0xff]  ;;  %v11830_v32 = vld [vmem:[#allocation41_spill] sm:$0xff] }
 0x489   : > { %v3630_v28 = vmax.f32 %v3628_v7, %v3629_v5  ;;  %v3638_v25 = vrot.slane %v3637_v6, 1  ;;  %v3647_v22 = vrot.slane %v3646_v19, 1  ;;  %v3656_v61 = vrot.slane %v3655_v16, 1  ;;  %v11832_v46 = vld [vmem:[#allocation12_spill] sm:$0xff] }
 0x48a   : > { %v4388_v12 = vld.sshfl [vmem:[#allocation1] sm:$0xff pattern:$0x73625140]  ;;  %v9910_v23 = vmax.f32 %v3114_v15, 0.0  ;;  %v2613_v60 = vadd.f32 %v9856_v35, %v11828_v53  ;;  %v9917_v42 = vadd.f32 %v2533_v8, %v11829_v40  ;;  %v2858_v55 = vadd.f32 %v2770_v37, %v11830_v32  ;;  %v11831_v15 = vld [vmem:[#allocation25_spill] sm:$0xff] }
 0x48b   : > { %6609 = vmatmul.msk.f32.gmra.mxu2 %vm3973_vm5, %v4388_v12  ;;  %6621 = vmatmul.msk.f32.gmra.mxu3 %vm3973_vm5, %v4388_v12  ;;  %v3639_v14 = vmax.f32 %v3637_v6, %v3638_v25  ;;  %v3648_v26 = vmax.f32 %v3646_v19, %v3647_v22  ;;  %v4088_v7 = vsel %vm4060_vm6, %v3630_v28, %v3621_v3  ;;  %v2727_v10 = vrot.slane %v9908_v34, 1  ;;  %v2536_v12 = vpop.f32.mrf.mxu1  ;;  %v11838_v32 = vld [vmem:[#allocation48_spill] sm:$0xff] }
 0x48c   : > { %v3117_v5 = vadd.f32 %v9073_v20, %v3080_v47  ;;  %v1857_v31 = vadd.f32 %v11832_v46, %v11831_v15  ;;  %v3675_v63 = vmax.f32 %v9841_v59, %v3674_v41  ;;  %v3657_v35 = vmax.f32 %v3655_v16, %v3656_v61 }
 0x48d   : > { %v4089_v8 = vsel %vm4062_vm7, %v3639_v14, %v4088_v7  ;;  %v11833_v6 = vrot.slane %v9510_v44, 2  ;;  %v11834_v19 = vrot.slane %v9464_v18, 2  ;;  %v3684_v37 = vmax.f32 %v3682_v62, %v3683_v17  ;;  %v2407_v59 = vpop.f32.mrf.mxu0  ;;  %v11837_v7 = vld [vmem:[#allocation98_spill] sm:$0xff] }
 0x48e   : > { %v3666_v28 = vmax.f32 %v3664_v0, %v3665_v58  ;;  %v4090_v47 = vsel %vm4064_vm8, %v3648_v26, %v4089_v8  ;;  %v2978_v25 = vrot.slane %v2613_v60, 2  ;;  %v3254_v53 = vrot.slane %v9910_v23, 6  ;;  %v11836_v60 = vld [vmem:[#allocation49_spill] sm:$0xff]  ;;  %v11841_v8 = vld [vmem:[#allocation99_spill] sm:$0xff] }
 0x48f   : > { %v2953_v3 = vsel %vm2912_vm3, %v11834_v19, %v11833_v6  ;;  %v4091_v22 = vsel %vm4066_vm9, %v3657_v35, %v4090_v47  ;;  %v2980_v41 = vrot.slane %v9917_v42, 2  ;;  %v3153_v61 = vmax.f32 %v3117_v5, 0.0  ;;  %v2772_v0 = vpop.permute.xlu1 %2771 }
 0x490   : > { %v3041_v40 = vadd.f32 %v2953_v3, %v2858_v55  ;;  %v4092_v16 = vsel %vm4068_vm10, %v3666_v28, %v4091_v22  ;;  %v11835_v18 = vrot.slane %v9867_v9, 1  ;;  %v2618_v62 = vadd.f32 %v2407_v59, %v1857_v31 }
 0x491   : > { %v4093_v17 = vsel %vm4070_vm11, %v3675_v63, %v4092_v16  ;;  %v2859_v26 = vadd.f32 %v2772_v0, %v11836_v60  ;;  %v1986_v55 = vadd.f32 %v11838_v32, %v11837_v7  ;;  %v11839_v46 = vrot.slane %v9523_v50, 2  ;;  %v11842_v63 = vld [vmem:[#allocation58_spill] sm:$0xff] }
 0x492   : > { %v2728_v14 = vsel %vm2657_vm2, %v11835_v18, %v2727_v10  ;;  %v3078_v58 = vmul.f32 %v9013_v2, %v3041_v40  ;;  %v4094_v15 = vsel %vm4072_vm12, %v3684_v37, %v4093_v17  ;;  %v2729_v5 = vrot.slane %v2618_v62, 1 }
 0x493   : > { %2799 = vrot.lane.b32.xlu0 %v2728_v14, %s6907_s29  ;;  %v11840_v35 = vmov %v11833_v6  ;;  %v1989_v6 = vadd.f32 %v11842_v63, %v11841_v8  ;;  %4135 = vst.msk [vmem:[#allocation2 + $0x41] sm:$0xff] %vm3973_vm5, %v4094_v15  ;;  %v3712_v19 = vsel %vm3396_vm4, %v3254_v53, -inf  ;;  %v9960_v37 = vsel %vm2912_vm3, %v2978_v25, %v2980_v41  ;;  %v2539_v47 = vpop.f32.mrf.mxu1  ;;  %v2780_v0 = vpop.permute.xlu2 %2779 }
 0x494   : > { %v2955_v31 = vsel %vm2912_vm3, %v11840_v35, %v11839_v46  ;;  %v3115_v3 = vadd.f32 %v9073_v20, %v3078_v58  ;;  %v3713_v50 = vsel %vm3396_vm4, %v3153_v61, -inf  ;;  %v2730_v44 = vsel %vm2657_vm2, %v2727_v10, %v2729_v5 }
 0x495   : > { %v3042_v28 = vadd.f32 %v2955_v31, %v2859_v26  ;;  %v11843_v22 = vrot.slane %v9844_v51, 2  ;;  %2801 = vrot.lane.b32.xlu2 %v2730_v44, %s6907_s29  ;;  %v2617_v16 = vadd.f32 %v2536_v12, %v1986_v55  ;;  %v2619_v18 = vadd.f32 %v2539_v47, %v1989_v6  ;;  %v2410_v60 = vpop.f32.mrf.mxu0 }
 0x496   : > { %v9969_v59 = vmax.f32 %v3115_v3, 0.0  ;;  %v3261_v14 = vrot.slane %v3153_v61, 2  ;;  %v3714_v62 = vmax.f32 %v3712_v19, %v3713_v50  ;;  %v3262_v58 = vrot.slane %v3153_v61, 4 }
 0x497   : > { %v9967_v40 = vsel %vm2912_vm3, %v11843_v22, %v2978_v25  ;;  %v3079_v53 = vmul.f32 %v9013_v2, %v3042_v28  ;;  %v2863_v25 = vadd.f32 %v2780_v0, %v9481_v1  ;;  %v3263_v26 = vrot.slane %v3153_v61, 6 }
 0x498   : > { %v3255_v17 = vrot.slane %v9969_v59, 2  ;;  %v3256_v10 = vrot.slane %v9969_v59, 4  ;;  %v3721_v7 = vsel %vm3396_vm4, %v9969_v59, -inf  ;;  %v2982_v32 = vrot.slane %v2617_v16, 2 }
 0x499   : > { %v3116_v51 = vadd.f32 %v9073_v20, %v3079_v53  ;;  %v2984_v12 = vrot.slane %v2619_v18, 2  ;;  %v3252_v15 = vrot.slane %v9910_v23, 2  ;;  %v3715_v5 = vrot.slane %v3714_v62, 4 }
 0x49a   : > { %v9979_v55 = vld [vmem:[#allocation2 + $0x40] sm:$0xff]  ;;  %v3722_v46 = vsel %vm3396_vm4, %v3261_v14, -inf  ;;  %v3730_v35 = vsel %vm3396_vm4, %v3255_v17, -inf  ;;  %v3739_v8 = vsel %vm3396_vm4, %v3256_v10, -inf  ;;  %v3253_v63 = vrot.slane %v9910_v23, 4 }
 0x49b   : > { %v9985_v31 = vrot.slane %v9979_v55, 2  ;;  %v9988_v1 = vrot.slane %v9979_v55, 4  ;;  %v9991_v61 = vrot.slane %v9979_v55, 6  ;;  %4387 = vst [vmem:[#allocation1 + $0x23] ss:$4 sm:$0xff] %v9979_v55  ;;  %v3723_v6 = vmax.f32 %v3721_v7, %v3722_v46  ;;  %v2542_v28 = vpop.f32.mrf.mxu1 }
 0x49c   : > { %v3152_v19 = vmax.f32 %v3116_v51, 0.0  ;;  %v3046_v3 = vadd.f32 %v9618_v36, %v2863_v25  ;;  %v4210_v50 = vld [vmem:[#allocation2 + $0x48] sm:$0x3]  ;;  %v3731_v44 = vsel %vm3396_vm4, %v3262_v58, -inf  ;;  %v3740_v47 = vsel %vm3396_vm4, %v3263_v26, -inf }
 0x49d   : > { %4390 = vst [vmem:[#allocation1] ss:$4 sm:$0xff] %v9985_v31  ;;  %v10001_v22 = vsel %vm2912_vm3, %v2982_v32, %v2984_v12  ;;  %v10006_v53 = vsel %vm2912_vm3, %v2980_v41, %v2982_v32  ;;  %v3732_v16 = vmax.f32 %v3730_v35, %v3731_v44  ;;  %v3741_v36 = vmax.f32 %v3739_v8, %v3740_v47  ;;  %v2412_v26 = vpop.f32.mrf.mxu0 }
 0x49e   : > { %4391 = vst [vmem:[#allocation1 + $0x1] ss:$4 sm:$0xff] %v9988_v1  ;;  %v3258_v18 = vrot.slane %v3152_v19, 2  ;;  %v3259_v14 = vrot.slane %v3152_v19, 4  ;;  %v3685_v0 = vsel %vm3396_vm4, %v9910_v23, -inf  ;;  %v3716_v17 = vmax.f32 %v3714_v62, %v3715_v5 }
 0x49f   : > { %4392 = vst [vmem:[#allocation1 + $0x2] ss:$4 sm:$0xff] %v9991_v61  ;;  %v3260_v10 = vrot.slane %v3152_v19, 6  ;;  %v3694_v58 = vsel %vm3396_vm4, %v3252_v15, -inf  ;;  %v3724_v42 = vrot.slane %v3723_v6, 4  ;;  %v3083_v25 = vmul.f32 %v9013_v2, %v3046_v3  ;;  %v2776_v60 = vpop.permute.xlu1 %2775  ;;  %v11844_v19 = vld [vmem:[#allocation14_spill] sm:$0xff] }
 0x4a0   : > { %4393 = vst [vmem:[#allocation1 + $0x3] ss:$4 sm:$0xff] %v4210_v50  ;;  %v3686_v41 = vsel %vm3396_vm4, %v3258_v18, -inf  ;;  %v3695_v51 = vsel %vm3396_vm4, %v3259_v14, -inf  ;;  %v3703_v12 = vsel %vm3396_vm4, %v3253_v63, -inf  ;;  %v3733_v62 = vrot.slane %v3732_v16, 4 }
 0x4a1   : > { %v3687_v7 = vmax.f32 %v3685_v0, %v3686_v41  ;;  %v3696_v32 = vmax.f32 %v3694_v58, %v3695_v51  ;;  %v3704_v23 = vsel %vm3396_vm4, %v3260_v10, -inf  ;;  %v3742_v5 = vrot.slane %v3741_v36, 4 }
 0x4a2   : > { %v3705_v46 = vmax.f32 %v3703_v12, %v3704_v23  ;;  %v4389_v15 = vld.sshfl [vmem:[#allocation1 + $0x20] sm:$0xff pattern:$0x73625140]  ;;  %v2861_v28 = vadd.f32 %v2776_v60, %v11844_v19  ;;  %v3717_v50 = vrot.slane %v3716_v17, 2  ;;  %v3725_v44 = vmax.f32 %v3723_v6, %v3724_v42 }
 0x4a3   : > { %v3688_v35 = vrot.slane %v3687_v7, 4  ;;  %v3697_v8 = vrot.slane %v3696_v32, 4  ;;  %v3120_v3 = vadd.f32 %v9073_v20, %v3083_v25  ;;  %6610 = vmatmul.msk.f32.gmra.mxu2 %vm3973_vm5, %v4389_v15  ;;  %6622 = vmatmul.msk.f32.gmra.mxu3 %vm3973_vm5, %v4389_v15  ;;  %v2544_v63 = vpop.f32.mrf.mxu1  ;;  %v3734_v0 = vmax.f32 %v3732_v16, %v3733_v62 }
 0x4a4   : > { %v3706_v47 = vrot.slane %v3705_v46, 4  ;;  %v3743_v10 = vmax.f32 %v3741_v36, %v3742_v5  ;;  %v11845_v41 = vrot.slane %v9501_v33, 2  ;;  %v11846_v51 = vrot.slane %v9527_v27, 2  ;;  %v11847_v33 = vld [vmem:[#allocation50_spill] sm:$0xff] }
 0x4a5   : > { %v3689_v18 = vmax.f32 %v3687_v7, %v3688_v35  ;;  %v3698_v14 = vmax.f32 %v3696_v32, %v3697_v8  ;;  %v3257_v6 = vrot.slane %v9969_v59, 6  ;;  %v3718_v12 = vmax.f32 %v3716_v17, %v3717_v50  ;;  %v2784_v7 = vpop.permute.xlu2 %2783  ;;  %v11848_v8 = vld [vmem:[#allocation45_spill] sm:$0xff] }
 0x4a6   : > { %v3707_v58 = vmax.f32 %v3705_v46, %v3706_v47  ;;  %v2959_v60 = vsel %vm2912_vm3, %v11846_v51, %v11845_v41  ;;  %v3726_v23 = vrot.slane %v3725_v44, 2  ;;  %v3156_v19 = vmax.f32 %v3120_v3, 0.0 }
 0x4a7   : > { %v3690_v42 = vrot.slane %v3689_v18, 2  ;;  %v3699_v25 = vrot.slane %v3698_v14, 2  ;;  %v3044_v26 = vadd.f32 %v2959_v60, %v2861_v28  ;;  %v2778_v32 = vpop.permute.xlu1 %2777  ;;  %v2865_v5 = vadd.f32 %v2784_v7, %v11847_v33  ;;  %v4398_v47 = vld.sshfl [vmem:[#allocation1] sm:$0xff pattern:$0x73625140] }
 0x4a8   : > { %v3708_v15 = vrot.slane %v3707_v58, 2  ;;  %v3735_v27 = vrot.slane %v3734_v0, 2  ;;  %v3744_v46 = vrot.slane %v3743_v10, 2  ;;  %v2862_v59 = vadd.f32 %v2778_v32, %v11848_v8 }
 0x4a9   : > { %v3691_v16 = vmax.f32 %v3689_v18, %v3690_v42  ;;  %v3700_v36 = vmax.f32 %v3698_v14, %v3699_v25  ;;  %v3081_v62 = vmul.f32 %v9013_v2, %v3044_v26  ;;  %v3048_v50 = vadd.f32 %v9736_v57, %v2865_v5  ;;  %v11849_v14 = vld [vmem:[#allocation66_spill] sm:$0xff] }
 0x4aa   : > { %v3709_v35 = vmax.f32 %v3707_v58, %v3708_v15  ;;  %v3727_v3 = vmax.f32 %v3725_v44, %v3726_v23  ;;  %v3270_v18 = vrot.slane %v3156_v19, 6  ;;  %v3045_v51 = vadd.f32 %v11849_v14, %v2862_v59 }
 0x4ab   : > { %v3692_v63 = vrot.slane %v3691_v16, 1  ;;  %v3701_v28 = vrot.slane %v3700_v36, 1  ;;  %v3118_v17 = vadd.f32 %v9073_v20, %v3081_v62  ;;  %6611 = vmatmul.msk.f32.gmra.mxu2 %vm3973_vm5, %v4398_v47  ;;  %6623 = vmatmul.msk.f32.gmra.mxu3 %vm3973_vm5, %v4398_v47  ;;  %v3085_v25 = vmul.f32 %v9013_v2, %v3048_v50 }
 0x4ac   : > { %v3710_v41 = vrot.slane %v3709_v35, 1  ;;  %v3719_v26 = vrot.slane %v3718_v12, 1  ;;  %v3748_v7 = vsel %vm3396_vm4, %v3257_v6, -inf  ;;  %v3082_v57 = vmul.f32 %v9013_v2, %v3045_v51 }
 0x4ad   : > { %v3693_v60 = vmax.f32 %v3691_v16, %v3692_v63  ;;  %v3702_v58 = vmax.f32 %v3700_v36, %v3701_v28  ;;  %v10036_v42 = vmax.f32 %v3118_v17, 0.0  ;;  %v3736_v44 = vmax.f32 %v3734_v0, %v3735_v27 }
 0x4ae   : > { %v3711_v15 = vmax.f32 %v3709_v35, %v3710_v41  ;;  %v3745_v16 = vmax.f32 %v3743_v10, %v3744_v46  ;;  %v3122_v33 = vadd.f32 %v9073_v20, %v3085_v25  ;;  %v3119_v5 = vadd.f32 %v9073_v20, %v3082_v57 }
 0x4af   : > { %v4095_v23 = vsel %vm4060_vm6, %v3702_v58, %v3693_v60  ;;  %v3264_v32 = vrot.slane %v10036_v42, 4  ;;  %v3749_v62 = vsel %vm3396_vm4, %v10036_v42, -inf  ;;  %v3728_v8 = vrot.slane %v3727_v3, 1 }
 0x4b0   : > { %v3750_v36 = vmax.f32 %v3748_v7, %v3749_v62  ;;  %v4096_v35 = vsel %vm4062_vm7, %v3711_v15, %v4095_v23  ;;  %v3758_v6 = vsel %vm3396_vm4, %v3270_v18, -inf  ;;  %v3720_v27 = vmax.f32 %v3718_v12, %v3719_v26 }
 0x4b1   : > { %v3757_v0 = vsel %vm3396_vm4, %v3264_v32, -inf  ;;  %v3158_v63 = vmax.f32 %v3122_v33, 0.0  ;;  %v3269_v28 = vrot.slane %v3156_v19, 2  ;;  %v3155_v17 = vmax.f32 %v3119_v5, 0.0 }
 0x4b2   : > { %v3751_v59 = vrot.slane %v3750_v36, 4  ;;  %v3759_v47 = vmax.f32 %v3757_v0, %v3758_v6  ;;  %v3737_v50 = vrot.slane %v3736_v44, 1  ;;  %v4097_v10 = vsel %vm4064_vm8, %v3720_v27, %v4096_v35 }
 0x4b3   : > { %v3274_v41 = vrot.slane %v3158_v63, 2  ;;  %v3729_v14 = vmax.f32 %v3727_v3, %v3728_v8  ;;  %v3746_v51 = vrot.slane %v3745_v16, 1  ;;  %v3275_v60 = vrot.slane %v3158_v63, 4 }
 0x4b4   : > { %v3752_v46 = vmax.f32 %v3750_v36, %v3751_v59  ;;  %v3811_v58 = vsel %vm3396_vm4, %v3156_v19, -inf  ;;  %v3268_v15 = vrot.slane %v3155_v17, 6  ;;  %v3820_v26 = vsel %vm3396_vm4, %v3269_v28, -inf }
 0x4b5   : > { %v3812_v18 = vsel %vm3396_vm4, %v3274_v41, -inf  ;;  %v4098_v12 = vsel %vm4066_vm9, %v3729_v14, %v4097_v10  ;;  %v3821_v57 = vsel %vm3396_vm4, %v3275_v60, -inf  ;;  %v3738_v23 = vmax.f32 %v3736_v44, %v3737_v50 }
 0x4b6   : > { %v3753_v25 = vrot.slane %v3752_v46, 2  ;;  %v3813_v7 = vmax.f32 %v3811_v58, %v3812_v18  ;;  %v3822_v62 = vmax.f32 %v3820_v26, %v3821_v57  ;;  %v3803_v3 = vsel %vm3396_vm4, %v3158_v63, -inf }
 0x4b7   : > { %v3802_v36 = vsel %vm3396_vm4, %v3268_v15, -inf  ;;  %v4099_v19 = vsel %vm4068_vm10, %v3738_v23, %v4098_v12  ;;  %v3747_v35 = vmax.f32 %v3745_v16, %v3746_v51  ;;  %v3760_v27 = vrot.slane %v3759_v47, 4 }
 0x4b8   : > { %v3754_v32 = vmax.f32 %v3752_v46, %v3753_v25  ;;  %v3804_v5 = vmax.f32 %v3802_v36, %v3803_v3  ;;  %v3265_v63 = vrot.slane %v10036_v42, 6  ;;  %v3266_v46 = vrot.slane %v3155_v17, 2 }
 0x4b9   : > { %v4100_v59 = vsel %vm4070_vm11, %v3747_v35, %v4099_v19  ;;  %v3761_v10 = vmax.f32 %v3759_v47, %v3760_v27  ;;  %v3814_v41 = vrot.slane %v3813_v7, 4  ;;  %v3775_v25 = vsel %vm3396_vm4, %v3155_v17, -inf }
 0x4ba   : > { %v3755_v33 = vrot.slane %v3754_v32, 1  ;;  %v2782_v8 = vpop.permute.xlu0 %2781  ;;  %v3805_v14 = vrot.slane %v3804_v5, 4  ;;  %v3766_v51 = vsel %vm3396_vm4, %v3265_v63, -inf  ;;  %v3784_v42 = vsel %vm3396_vm4, %v3266_v46, -inf }
 0x4bb   : > { %v2864_v6 = vadd.f32 %v2782_v8, %v9542_v38  ;;  %v3267_v38 = vrot.slane %v3155_v17, 4  ;;  %v3762_v58 = vrot.slane %v3761_v10, 2  ;;  %v3815_v57 = vmax.f32 %v3813_v7, %v3814_v41 }
 0x4bc   : > { %v3756_v0 = vmax.f32 %v3754_v32, %v3755_v33  ;;  %v3806_v32 = vmax.f32 %v3804_v5, %v3805_v14 }
 0x4bd   : > { %v3047_v44 = vadd.f32 %v9751_v39, %v2864_v6  ;;  %v3823_v39 = vrot.slane %v3822_v62, 4  ;;  %v3793_v23 = vsel %vm3396_vm4, %v3267_v38, -inf  ;;  %v3816_v41 = vrot.slane %v3815_v57, 2 }
 0x4be   : > { %v4101_v28 = vsel %vm4072_vm12, %v3756_v0, %v4100_v59 }
 0x4bf   : > { %4136 = vst.msk [vmem:[#allocation2 + $0x51] sm:$0xff] %vm3973_vm5, %v4101_v28  ;;  %v3084_v50 = vmul.f32 %v9013_v2, %v3047_v44  ;;  %v3824_v0 = vmax.f32 %v3822_v62, %v3823_v39  ;;  %v3763_v44 = vmax.f32 %v3761_v10, %v3762_v58 }
 0x4c1   : > { %v3121_v16 = vadd.f32 %v9073_v20, %v3084_v50  ;;  %v3807_v50 = vrot.slane %v3806_v32, 2  ;;  %v3764_v58 = vrot.slane %v3763_v44, 1 }
 0x4c3   : > { %v3157_v60 = vmax.f32 %v3121_v16, 0.0 }
 0x4c5   : > { %v3271_v18 = vrot.slane %v3157_v60, 2  ;;  %v3272_v15 = vrot.slane %v3157_v60, 4  ;;  %v3273_v12 = vrot.slane %v3157_v60, 6  ;;  %v3767_v47 = vsel %vm3396_vm4, %v3157_v60, -inf }
 0x4c6   : > { %v10071_v26 = vld [vmem:[#allocation2 + $0x50] sm:$0xff]  ;;  %v3768_v3 = vmax.f32 %v3766_v51, %v3767_v47  ;;  %v4212_v6 = vld [vmem:[#allocation2 + $0x58] sm:$0x3]  ;;  %v2786_v51 = vpop.permute.xlu0 %2785  ;;  %v3825_v60 = vrot.slane %v3824_v0, 2 }
 0x4c7   : > { %v10075_v36 = vrot.slane %v10071_v26, 2  ;;  %v10078_v33 = vrot.slane %v10071_v26, 4  ;;  %v10081_v17 = vrot.slane %v10071_v26, 6  ;;  %v3776_v19 = vsel %vm3396_vm4, %v3271_v18, -inf  ;;  %4394 = vst [vmem:[#allocation1 + $0x20] ss:$4 sm:$0xff] %v10071_v26 }
 0x4c8   : > { %v3769_v8 = vrot.slane %v3768_v3, 4  ;;  %v3777_v35 = vmax.f32 %v3775_v25, %v3776_v19  ;;  %v3785_v7 = vsel %vm3396_vm4, %v3272_v15, -inf  ;;  %v3794_v5 = vsel %vm3396_vm4, %v3273_v12, -inf  ;;  %4400 = vst [vmem:[#allocation1] ss:$4 sm:$0xff] %v4212_v6 }
 0x4c9   : > { %4395 = vst [vmem:[#allocation1 + $0x21] ss:$4 sm:$0xff] %v10075_v36  ;;  %v3786_v27 = vmax.f32 %v3784_v42, %v3785_v7  ;;  %v3795_v59 = vmax.f32 %v3793_v23, %v3794_v5  ;;  %v2866_v10 = vadd.f32 %v2786_v51, %v9598_v45  ;;  %v3808_v12 = vmax.f32 %v3806_v32, %v3807_v50 }
 0x4ca   : > { %4396 = vst [vmem:[#allocation1 + $0x22] ss:$4 sm:$0xff] %v10078_v33  ;;  %v3770_v28 = vmax.f32 %v3768_v3, %v3769_v8  ;;  %v3778_v63 = vrot.slane %v3777_v35, 4  ;;  %v3817_v19 = vmax.f32 %v3815_v57, %v3816_v41  ;;  %v3826_v5 = vmax.f32 %v3824_v0, %v3825_v60 }
 0x4cb   : > { %4397 = vst [vmem:[#allocation1 + $0x23] ss:$4 sm:$0xff] %v10081_v17  ;;  %v3787_v46 = vrot.slane %v3786_v27, 4  ;;  %v3796_v16 = vrot.slane %v3795_v59, 4  ;;  %v3049_v3 = vadd.f32 %v9839_v52, %v2866_v10  ;;  %v3809_v32 = vrot.slane %v3808_v12, 1 }
 0x4cc   : > { %v3771_v38 = vrot.slane %v3770_v28, 2  ;;  %v3779_v14 = vmax.f32 %v3777_v35, %v3778_v63 }
 0x4cd   : > { %v3788_v25 = vmax.f32 %v3786_v27, %v3787_v46  ;;  %v3797_v62 = vmax.f32 %v3795_v59, %v3796_v16  ;;  %v2792_v39 = vpop.permute.xlu2 %2791  ;;  %v3086_v45 = vmul.f32 %v9013_v2, %v3049_v3  ;;  %v3765_v59 = vmax.f32 %v3763_v44, %v3764_v58 }
 0x4ce   : > { %v3772_v42 = vmax.f32 %v3770_v28, %v3771_v38  ;;  %v3780_v18 = vrot.slane %v3779_v14, 2  ;;  %v2869_v15 = vadd.f32 %v2792_v39, %v9711_v4  ;;  %v3827_v38 = vrot.slane %v3826_v5, 1 }
 0x4cf   : > { %v3789_v47 = vrot.slane %v3788_v25, 2  ;;  %v3798_v23 = vrot.slane %v3797_v62, 2  ;;  %v3123_v52 = vadd.f32 %v9073_v20, %v3086_v45  ;;  %v3810_v39 = vmax.f32 %v3808_v12, %v3809_v32  ;;  %v11850_v45 = vld [vmem:[#allocation100_spill] sm:$0xff] }
 0x4d0   : > { %v3773_v8 = vrot.slane %v3772_v42, 1  ;;  %v3781_v35 = vmax.f32 %v3779_v14, %v3780_v18  ;;  %v3052_v7 = vadd.f32 %v9860_v54, %v2869_v15  ;;  %v3818_v54 = vrot.slane %v3817_v19, 1 }
 0x4d1   : > { %v3790_v6 = vmax.f32 %v3788_v25, %v3789_v47  ;;  %v3799_v27 = vmax.f32 %v3797_v62, %v3798_v23  ;;  %v2788_v41 = vpop.permute.xlu0 %2787  ;;  %v10101_v51 = vmax.f32 %v3123_v52, 0.0  ;;  %v3828_v23 = vmax.f32 %v3826_v5, %v3827_v38 }
 0x4d2   : > { %v4399_v28 = vld.sshfl [vmem:[#allocation1 + $0x20] sm:$0xff pattern:$0x73625140]  ;;  %v3774_v63 = vmax.f32 %v3772_v42, %v3773_v8  ;;  %v3782_v46 = vrot.slane %v3781_v35, 1  ;;  %v3089_v4 = vmul.f32 %v9013_v2, %v3052_v7  ;;  %v2867_v42 = vadd.f32 %v2788_v41, %v9639_v21 }
 0x4d3   : > { %v3791_v50 = vrot.slane %v3790_v6, 1  ;;  %v3800_v16 = vrot.slane %v3799_v27, 1  ;;  %6612 = vmatmul.msk.f32.gmra.mxu2 %vm3973_vm5, %v4399_v28  ;;  %6624 = vmatmul.msk.f32.gmra.mxu3 %vm3973_vm5, %v4399_v28  ;;  %v3278_v58 = vrot.slane %v10101_v51, 6  ;;  %v3819_v18 = vmax.f32 %v3817_v19, %v3818_v54 }
 0x4d4   : > { %v3783_v57 = vmax.f32 %v3781_v35, %v3782_v46  ;;  %v4102_v0 = vsel %vm4060_vm6, %v3774_v63, %v3765_v59  ;;  %v3126_v44 = vadd.f32 %v9073_v20, %v3089_v4 }
 0x4d5   : > { %v3792_v14 = vmax.f32 %v3790_v6, %v3791_v50  ;;  %v3801_v60 = vmax.f32 %v3799_v27, %v3800_v16  ;;  %v2790_v47 = vpop.permute.xlu1 %2789  ;;  %v3856_v35 = vsel %vm3396_vm4, %v3278_v58, -inf  ;;  %v3050_v27 = vadd.f32 %v9847_v56, %v2867_v42 }
 0x4d6   : > { %v4103_v25 = vsel %vm4062_vm7, %v3783_v57, %v4102_v0  ;;  %v3162_v62 = vmax.f32 %v3126_v44, 0.0  ;;  %v2868_v21 = vadd.f32 %v2790_v47, %v11850_v45  ;;  %v3276_v56 = vrot.slane %v10101_v51, 2 }
 0x4d7   : > { %v4104_v10 = vsel %vm4064_vm8, %v3792_v14, %v4103_v25  ;;  %v3087_v19 = vmul.f32 %v9013_v2, %v3050_v27 }
 0x4d8   : > { %v4105_v15 = vsel %vm4066_vm9, %v3801_v60, %v4104_v10  ;;  %v3857_v8 = vsel %vm3396_vm4, %v3162_v62, -inf  ;;  %v3051_v5 = vadd.f32 %v9853_v30, %v2868_v21  ;;  %v3285_v46 = vrot.slane %v3162_v62, 2 }
 0x4d9   : > { %v4106_v3 = vsel %vm4068_vm10, %v3810_v39, %v4105_v15  ;;  %v3858_v12 = vmax.f32 %v3856_v35, %v3857_v8  ;;  %v3124_v28 = vadd.f32 %v9073_v20, %v3087_v19  ;;  %v3286_v4 = vrot.slane %v3162_v62, 4 }
 0x4da   : > { %v4107_v7 = vsel %vm4070_vm11, %v3819_v18, %v4106_v3  ;;  %v3088_v63 = vmul.f32 %v9013_v2, %v3051_v5  ;;  %v3287_v54 = vrot.slane %v3162_v62, 6  ;;  %v3866_v60 = vsel %vm3396_vm4, %v3285_v46, -inf }
 0x4db   : > { %v4108_v6 = vsel %vm4072_vm12, %v3828_v23, %v4107_v7  ;;  %v3859_v59 = vrot.slane %v3858_v12, 4  ;;  %v10120_v32 = vmax.f32 %v3124_v28, 0.0  ;;  %v3875_v14 = vsel %vm3396_vm4, %v3286_v4, -inf }
 0x4dc   : > { %4137 = vst.msk [vmem:[#allocation2 + $0x61] sm:$0xff] %vm3973_vm5, %v4108_v6  ;;  %v3125_v16 = vadd.f32 %v9073_v20, %v3088_v63  ;;  %v3277_v10 = vrot.slane %v10101_v51, 4  ;;  %v3884_v15 = vsel %vm3396_vm4, %v3287_v54, -inf  ;;  %v3829_v6 = vsel %vm3396_vm4, %v10101_v51, -inf }
 0x4dd   : > { %v3860_v57 = vmax.f32 %v3858_v12, %v3859_v59  ;;  %v3279_v30 = vrot.slane %v10120_v32, 2  ;;  %v3280_v62 = vrot.slane %v10120_v32, 4  ;;  %v3838_v21 = vsel %vm3396_vm4, %v3276_v56, -inf }
 0x4de   : > { %v3161_v18 = vmax.f32 %v3125_v16, 0.0  ;;  %v3847_v4 = vsel %vm3396_vm4, %v3277_v10, -inf }
 0x4df   : > { %v3874_v39 = vsel %vm3396_vm4, %v3279_v30, -inf  ;;  %v3861_v47 = vrot.slane %v3860_v57, 2  ;;  %v3883_v23 = vsel %vm3396_vm4, %v3280_v62, -inf }
 0x4e0   : > { %v3876_v42 = vmax.f32 %v3874_v39, %v3875_v14  ;;  %v3885_v7 = vmax.f32 %v3883_v23, %v3884_v15  ;;  %v3282_v12 = vrot.slane %v3161_v18, 2  ;;  %v3283_v27 = vrot.slane %v3161_v18, 4 }
 0x4e1   : > { %v2798_v50 = vpop.permute.xlu2 %2797  ;;  %v3284_v45 = vrot.slane %v3161_v18, 6  ;;  %v3862_v16 = vmax.f32 %v3860_v57, %v3861_v47 }
 0x4e2   : > { %v2872_v0 = vadd.f32 %v2798_v50, %v9821_v24  ;;  %v3865_v24 = vsel %vm3396_vm4, %v10120_v32, -inf  ;;  %v3877_v35 = vrot.slane %v3876_v42, 4  ;;  %v3886_v59 = vrot.slane %v3885_v7, 4 }
 0x4e3   : > { %v10124_v52 = vld [vmem:[#allocation2 + $0x60] sm:$0xff]  ;;  %v4214_v38 = vld [vmem:[#allocation2 + $0x68] sm:$0x3]  ;;  %v3867_v58 = vmax.f32 %v3865_v24, %v3866_v60  ;;  %v3830_v28 = vsel %vm3396_vm4, %v3282_v12, -inf  ;;  %v3839_v46 = vsel %vm3396_vm4, %v3283_v27, -inf  ;;  %v3848_v50 = vsel %vm3396_vm4, %v3284_v45, -inf }
 0x4e4   : > { %v10129_v44 = vrot.slane %v10124_v52, 2  ;;  %v10132_v41 = vrot.slane %v10124_v52, 4  ;;  %v10137_v25 = vrot.slane %v10124_v52, 6  ;;  %4401 = vst [vmem:[#allocation1 + $0x1] ss:$4 sm:$0xff] %v10124_v52  ;;  %v3055_v3 = vadd.f32 %v9960_v37, %v2872_v0 }
 0x4e5   : > { %4405 = vst [vmem:[#allocation1 + $0x21] ss:$4 sm:$0xff] %v4214_v38  ;;  %v3868_v8 = vrot.slane %v3867_v58, 4  ;;  %v3878_v5 = vmax.f32 %v3876_v42, %v3877_v35  ;;  %v3831_v63 = vmax.f32 %v3829_v6, %v3830_v28  ;;  %v3887_v54 = vmax.f32 %v3885_v7, %v3886_v59 }
 0x4e6   : > { %4402 = vst [vmem:[#allocation1 + $0x2] ss:$4 sm:$0xff] %v10129_v44  ;;  %v3840_v51 = vmax.f32 %v3838_v21, %v3839_v46  ;;  %v3092_v30 = vmul.f32 %v9013_v2, %v3055_v3  ;;  %v3849_v56 = vmax.f32 %v3847_v4, %v3848_v50  ;;  %v3863_v10 = vrot.slane %v3862_v16, 1 }
 0x4e7   : > { %4403 = vst [vmem:[#allocation1 + $0x3] ss:$4 sm:$0xff] %v10132_v41  ;;  %v3869_v19 = vmax.f32 %v3867_v58, %v3868_v8  ;;  %v3832_v0 = vrot.slane %v3831_v63, 4  ;;  %v3879_v60 = vrot.slane %v3878_v5, 2  ;;  %v3888_v57 = vrot.slane %v3887_v54, 2 }
 0x4e8   : > { %4404 = vst [vmem:[#allocation1 + $0x20] ss:$4 sm:$0xff] %v10137_v25  ;;  %v3841_v62 = vrot.slane %v3840_v51, 4  ;;  %v3850_v39 = vrot.slane %v3849_v56, 4  ;;  %v3129_v18 = vadd.f32 %v9073_v20, %v3092_v30  ;;  %v3281_v35 = vrot.slane %v10120_v32, 6 }
 0x4e9   : > { %v2794_v37 = vpop.permute.xlu1 %2793  ;;  %v3870_v14 = vrot.slane %v3869_v19, 2  ;;  %v3833_v24 = vmax.f32 %v3831_v63, %v3832_v0  ;;  %v3880_v3 = vmax.f32 %v3878_v5, %v3879_v60  ;;  %v3864_v6 = vmax.f32 %v3862_v16, %v3863_v10 }
 0x4ea   : > { %v2870_v58 = vadd.f32 %v2794_v37, %v9764_v48  ;;  %v3842_v42 = vmax.f32 %v3840_v51, %v3841_v62  ;;  %v3851_v47 = vmax.f32 %v3849_v56, %v3850_v39  ;;  %v3889_v27 = vmax.f32 %v3887_v54, %v3888_v57 }
 0x4eb   : > { %v3834_v15 = vrot.slane %v3833_v24, 2  ;;  %v3871_v23 = vmax.f32 %v3869_v19, %v3870_v14  ;;  %v3165_v21 = vmax.f32 %v3129_v18, 0.0  ;;  %v3881_v4 = vrot.slane %v3880_v3, 1 }
 0x4ec   : > { %v3843_v8 = vrot.slane %v3842_v42, 2  ;;  %v3852_v12 = vrot.slane %v3851_v47, 2  ;;  %v3053_v48 = vadd.f32 %v9889_v11, %v2870_v58  ;;  %v3892_v56 = vsel %vm3396_vm4, %v3281_v35, -inf }
 0x4ed   : > { %v3835_v7 = vmax.f32 %v3833_v24, %v3834_v15  ;;  %v3872_v5 = vrot.slane %v3871_v23, 1  ;;  %v3294_v0 = vrot.slane %v3165_v21, 6  ;;  %v3890_v14 = vrot.slane %v3889_v27, 1 }
 0x4ee   : > { %v4408_v38 = vld.sshfl [vmem:[#allocation1] sm:$0xff pattern:$0x73625140]  ;;  %v3844_v45 = vmax.f32 %v3842_v42, %v3843_v8  ;;  %v3853_v63 = vmax.f32 %v3851_v47, %v3852_v12  ;;  %v3090_v46 = vmul.f32 %v9013_v2, %v3053_v48  ;;  %v3293_v39 = vrot.slane %v3165_v21, 2 }
 0x4ef   : > { %6613 = vmatmul.msk.f32.gmra.mxu2 %vm3973_vm5, %v4408_v38  ;;  %6625 = vmatmul.msk.f32.gmra.mxu3 %vm3973_vm5, %v4408_v38  ;;  %v2802_v59 = vpop.permute.xlu2 %2801  ;;  %v3836_v37 = vrot.slane %v3835_v7, 1  ;;  %v3873_v24 = vmax.f32 %v3871_v23, %v3872_v5  ;;  %v3882_v10 = vmax.f32 %v3880_v3, %v3881_v4  ;;  %v3891_v8 = vmax.f32 %v3889_v27, %v3890_v14 }
 0x4f0   : > { %v2874_v19 = vadd.f32 %v2802_v59, %v9908_v34  ;;  %v3845_v50 = vrot.slane %v3844_v45, 1  ;;  %v3854_v30 = vrot.slane %v3853_v63, 1  ;;  %v3127_v11 = vadd.f32 %v9073_v20, %v3090_v46 }
 0x4f1   : > { %v2796_v28 = vpop.permute.xlu1 %2795  ;;  %v3837_v51 = vmax.f32 %v3835_v7, %v3836_v37  ;;  %v3902_v35 = vsel %vm3396_vm4, %v3294_v0, -inf  ;;  %v3955_v46 = vsel %vm3396_vm4, %v3165_v21, -inf }
 0x4f2   : > { %v2871_v32 = vadd.f32 %v2796_v28, %v9808_v29  ;;  %v3057_v16 = vadd.f32 %v10001_v22, %v2874_v19  ;;  %v3846_v54 = vmax.f32 %v3844_v45, %v3845_v50  ;;  %v3855_v60 = vmax.f32 %v3853_v63, %v3854_v30 }
 0x4f3   : > { %v3163_v34 = vmax.f32 %v3127_v11, 0.0  ;;  %v3964_v19 = vsel %vm3396_vm4, %v3293_v39, -inf }
 0x4f4   : > { %v3054_v38 = vadd.f32 %v9967_v40, %v2871_v32  ;;  %v3094_v62 = vmul.f32 %v9013_v2, %v3057_v16  ;;  %v4109_v29 = vsel %vm4060_vm6, %v3846_v54, %v3837_v51 }
 0x4f5   : > { %v4110_v22 = vsel %vm4062_vm7, %v3855_v60, %v4109_v29  ;;  %v3288_v57 = vrot.slane %v3163_v34, 4  ;;  %v3893_v42 = vsel %vm3396_vm4, %v3163_v34, -inf  ;;  %v3289_v29 = vrot.slane %v3163_v34, 6 }
 0x4f6   : > { %v3091_v58 = vmul.f32 %v9013_v2, %v3054_v38  ;;  %v4111_v18 = vsel %vm4064_vm8, %v3864_v6, %v4110_v22  ;;  %v3894_v40 = vmax.f32 %v3892_v56, %v3893_v42  ;;  %v3131_v15 = vadd.f32 %v9073_v20, %v3094_v62 }
 0x4f7   : > { %v4112_v23 = vsel %vm4066_vm9, %v3873_v24, %v4111_v18  ;;  %v3901_v7 = vsel %vm3396_vm4, %v3288_v57, -inf  ;;  %v3910_v18 = vsel %vm3396_vm4, %v3289_v29, -inf }
 0x4f8   : > { %v3128_v47 = vadd.f32 %v9073_v20, %v3091_v58  ;;  %v3895_v3 = vrot.slane %v3894_v40, 4  ;;  %v3903_v12 = vmax.f32 %v3901_v7, %v3902_v35  ;;  %v4113_v48 = vsel %vm4068_vm10, %v3882_v10, %v4112_v23 }
 0x4f9   : > { %v3167_v45 = vmax.f32 %v3131_v15, 0.0  ;;  %v4114_v59 = vsel %vm4070_vm11, %v3891_v8, %v4113_v48 }
 0x4fa   : > { %v3164_v6 = vmax.f32 %v3128_v47, 0.0  ;;  %v3896_v28 = vmax.f32 %v3894_v40, %v3895_v3  ;;  %v3904_v60 = vrot.slane %v3903_v12, 4 }
 0x4fb   : > { %v3298_v37 = vrot.slane %v3167_v45, 2  ;;  %v3299_v63 = vrot.slane %v3167_v45, 4  ;;  %v3947_v16 = vsel %vm3396_vm4, %v3167_v45, -inf }
 0x4fc   : > { %v3292_v27 = vrot.slane %v3164_v6, 6  ;;  %v3897_v5 = vrot.slane %v3896_v28, 2  ;;  %v3290_v58 = vrot.slane %v3164_v6, 2  ;;  %v3905_v10 = vmax.f32 %v3903_v12, %v3904_v60 }
 0x4fd   : > { %v3956_v4 = vsel %vm3396_vm4, %v3298_v37, -inf  ;;  %v3965_v50 = vsel %vm3396_vm4, %v3299_v63, -inf  ;;  %v3291_v22 = vrot.slane %v3164_v6, 4  ;;  %v3919_v40 = vsel %vm3396_vm4, %v3164_v6, -inf }
 0x4fe   : > { %v3957_v32 = vmax.f32 %v3955_v46, %v3956_v4  ;;  %v3966_v51 = vmax.f32 %v3964_v19, %v3965_v50  ;;  %v3898_v11 = vmax.f32 %v3896_v28, %v3897_v5  ;;  %v3946_v54 = vsel %vm3396_vm4, %v3292_v27, -inf }
 0x4ff   : > { %v3948_v0 = vmax.f32 %v3946_v54, %v3947_v16  ;;  %v3906_v23 = vrot.slane %v3905_v10, 2 }
 0x500   : > { %v3899_v21 = vrot.slane %v3898_v11, 1  ;;  %v3958_v42 = vrot.slane %v3957_v32, 4 }
 0x501   : > { %v3907_v50 = vmax.f32 %v3905_v10, %v3906_v23 }
 0x502   : > { %v3900_v14 = vmax.f32 %v3898_v11, %v3899_v21  ;;  %v3959_v12 = vmax.f32 %v3957_v32, %v3958_v42 }
 0x503   : > { %v3908_v60 = vrot.slane %v3907_v50, 1 }
 0x504   : > { %v4115_v24 = vsel %vm4072_vm12, %v3900_v14, %v4114_v59 }
 0x505   : > { %v2800_v30 = vpop.permute.xlu0 %2799  ;;  %4138 = vst.msk [vmem:[#allocation2 + $0x71] sm:$0xff] %vm3973_vm5, %v4115_v24 }
 0x506   : > { %v2873_v56 = vadd.f32 %v2800_v30, %v9867_v9  ;;  %v3949_v9 = vrot.slane %v3948_v0, 4 }
 0x508   : > { %v3056_v38 = vadd.f32 %v10006_v53, %v2873_v56  ;;  %v3967_v53 = vrot.slane %v3966_v51, 4  ;;  %v3950_v48 = vmax.f32 %v3948_v0, %v3949_v9 }
 0x50a   : > { %v3093_v62 = vmul.f32 %v9013_v2, %v3056_v38  ;;  %v3928_v2 = vsel %vm3396_vm4, %v3290_v58, -inf  ;;  %v3968_v63 = vmax.f32 %v3966_v51, %v3967_v53  ;;  %v3951_v11 = vrot.slane %v3950_v48, 2 }
 0x50b   : > { %v3960_v51 = vrot.slane %v3959_v12, 2 }
 0x50c   : > { %v3130_v39 = vadd.f32 %v9073_v20, %v3093_v62  ;;  %v3937_v20 = vsel %vm3396_vm4, %v3291_v22, -inf  ;;  %v10203_v3 = vld [vmem:[#allocation2 + $0x70] sm:$0xff]  ;;  %v4216_v37 = vld [vmem:[#allocation2 + $0x78] sm:$0x3]  ;;  %v3969_v21 = vrot.slane %v3968_v63, 2  ;;  %v3952_v29 = vmax.f32 %v3950_v48, %v3951_v11 }
 0x50d   : > { %v10207_v6 = vrot.slane %v10203_v3, 2  ;;  %v10210_v28 = vrot.slane %v10203_v3, 4  ;;  %v10213_v27 = vrot.slane %v10203_v3, 6  ;;  %4406 = vst [vmem:[#allocation1 + $0x22] ss:$4 sm:$0xff] %v10203_v3  ;;  %v3961_v10 = vmax.f32 %v3959_v12, %v3960_v51  ;;  %v4342_v11 = vld [vmem:[%s11231_s2 + $0x60] sm:$0xff] }
 0x50e   : > { %v3166_v57 = vmax.f32 %v3130_v39, 0.0  ;;  %4412 = vst [vmem:[#allocation1 + $0x2] ss:$4 sm:$0xff] %v4216_v37  ;;  %v3970_v9 = vmax.f32 %v3968_v63, %v3969_v21  ;;  %v4341_v51 = vld [vmem:[%s11231_s2 + $0x58] sm:$0xff] }
 0x50f   : > { %4407 = vst [vmem:[#allocation1 + $0x23] ss:$4 sm:$0xff] %v10207_v6  ;;  %v3962_v23 = vrot.slane %v3961_v10, 1 }
 0x510   : > { %v3295_v15 = vrot.slane %v3166_v57, 2  ;;  %v3296_v47 = vrot.slane %v3166_v57, 4  ;;  %v3297_v34 = vrot.slane %v3166_v57, 6  ;;  %v3911_v8 = vsel %vm3396_vm4, %v3166_v57, -inf  ;;  %4410 = vst [vmem:[#allocation1] ss:$4 sm:$0xff] %v10210_v28 }
 0x511   : > { %v3912_v35 = vmax.f32 %v3910_v18, %v3911_v8  ;;  %4411 = vst [vmem:[#allocation1 + $0x1] ss:$4 sm:$0xff] %v10213_v27  ;;  %v3963_v63 = vmax.f32 %v3961_v10, %v3962_v23  ;;  %v10279_v10 = vld [vmem:[#allocation2 + $0x90] sm:$0xff] }
 0x512   : > { %v3920_v7 = vsel %vm3396_vm4, %v3295_v15, -inf  ;;  %v3929_v59 = vsel %vm3396_vm4, %v3296_v47, -inf  ;;  %v3938_v4 = vsel %vm3396_vm4, %v3297_v34, -inf  ;;  %v3953_v47 = vrot.slane %v3952_v29, 1 }
 0x513   : > { %v3921_v45 = vmax.f32 %v3919_v40, %v3920_v7  ;;  %v3913_v46 = vrot.slane %v3912_v35, 4  ;;  %v3930_v5 = vmax.f32 %v3928_v2, %v3929_v59  ;;  %v3939_v30 = vmax.f32 %v3937_v20, %v3938_v4 }
 0x514   : > { %v3909_v40 = vmax.f32 %v3907_v50, %v3908_v60  ;;  %v3971_v7 = vrot.slane %v3970_v9, 1  ;;  %v3954_v59 = vmax.f32 %v3952_v29, %v3953_v47  ;;  %v4337_v29 = vld [vmem:[%s11231_s2 + $0x38] sm:$0xff] }
 0x515   : > { %v3922_v19 = vrot.slane %v3921_v45, 4  ;;  %v3914_v32 = vmax.f32 %v3912_v35, %v3913_v46  ;;  %v3931_v54 = vrot.slane %v3930_v5, 4  ;;  %v3940_v56 = vrot.slane %v3939_v30, 4 }
 0x516   : > { %v4409_v42 = vld.sshfl [vmem:[#allocation1 + $0x20] sm:$0xff pattern:$0x73625140] }
 0x517   : > { %v3923_v16 = vmax.f32 %v3921_v45, %v3922_v19  ;;  %v3915_v0 = vrot.slane %v3914_v32, 2  ;;  %v3932_v14 = vmax.f32 %v3930_v5, %v3931_v54  ;;  %v3941_v24 = vmax.f32 %v3939_v30, %v3940_v56  ;;  %6614 = vmatmul.msk.f32.gmra.mxu2 %vm3973_vm5, %v4409_v42  ;;  %6626 = vmatmul.msk.f32.gmra.mxu3 %vm3973_vm5, %v4409_v42  ;;  %v4345_v30 = vld [vmem:[%s11231_s2 + $0x78] sm:$0xff]  ;;  %v4340_v54 = vld [vmem:[%s11231_s2 + $0x50] sm:$0xff]  ;;  %v4339_v56 = vld [vmem:[%s11231_s2 + $0x48] sm:$0xff] }
 0x518   : > { %v3972_v19 = vmax.f32 %v3970_v9, %v3971_v7  ;;  %4703 = vmatpush.msra.mxu3 %v4345_v30  ;;  %v4263_v42 = vrot.slane %v10279_v10, 2  ;;  %v4264_v9 = vrot.slane %v10279_v10, 4  ;;  %v11858_v30 = vld [vmem:[#allocation59_spill] sm:$0xff] }
 0x519   : > { %v3924_v38 = vrot.slane %v3923_v16, 2  ;;  %v3916_v62 = vmax.f32 %v3914_v32, %v3915_v0  ;;  %v3933_v58 = vrot.slane %v3932_v14, 2  ;;  %v3942_v57 = vrot.slane %v3941_v24, 2  ;;  %v4344_v32 = vld [vmem:[%s11231_s2 + $0x70] sm:$0xff]  ;;  %v4338_v0 = vld [vmem:[%s11231_s2 + $0x40] sm:$0xff] }
 0x51a   : > { %4651 = vmatpush.msra.mxu2 %v4344_v32  ;;  %v4145_v32 = vld [vmem:[#allocation2 + $0x28] sm:$0x3] }
 0x51b   : > { %v3925_v39 = vmax.f32 %v3923_v16, %v3924_v38  ;;  %v3917_v22 = vrot.slane %v3916_v62, 1  ;;  %v3934_v53 = vmax.f32 %v3932_v14, %v3933_v58  ;;  %v3943_v2 = vmax.f32 %v3941_v24, %v3942_v57  ;;  %v4343_v16 = vld [vmem:[%s11231_s2 + $0x68] sm:$0xff]  ;;  %v4336_v24 = vld [vmem:[%s11231_s2 + $0x30] sm:$0xff]  ;;  %v4333_v57 = vld [vmem:[%s11231_s2 + $0x18] sm:$0xff] }
 0x51c   : > { %4652 = vmatpush.msra.mxu2 %v4342_v11  ;;  %4704 = vmatpush.msra.mxu3 %v4343_v16  ;;  %v4335_v58 = vld [vmem:[%s11231_s2 + $0x28] sm:$0xff]  ;;  %v4147_v16 = vld [vmem:[#allocation2 + $0x38] sm:$0x3] }
 0x51d   : > { %v3926_v18 = vrot.slane %v3925_v39, 1  ;;  %v3918_v15 = vmax.f32 %v3916_v62, %v3917_v22  ;;  %v3935_v8 = vrot.slane %v3934_v53, 1  ;;  %v3944_v20 = vrot.slane %v3943_v2, 1  ;;  %v4332_v22 = vld [vmem:[%s11231_s2 + $0x10] sm:$0xff] }
 0x51e   : > { %4653 = vmatpush.msra.mxu2 %v4340_v54  ;;  %4705 = vmatpush.msra.mxu3 %v4341_v51  ;;  %v11859_v54 = vld [vmem:[#allocation62_spill] sm:$0xff] }
 0x51f   : > { %v3927_v34 = vmax.f32 %v3925_v39, %v3926_v18  ;;  %v4116_v35 = vsel %vm4060_vm6, %v3918_v15, %v3909_v40  ;;  %v3936_v12 = vmax.f32 %v3934_v53, %v3935_v8  ;;  %v3945_v45 = vmax.f32 %v3943_v2, %v3944_v20  ;;  %v4334_v39 = vld [vmem:[%s11231_s2 + $0x20] sm:$0xff]  ;;  %v4331_v53 = vld [vmem:[%s11231_s2 + $0x8] sm:$0xff] }
 0x520   : > { %4654 = vmatpush.msra.mxu2 %v4338_v0  ;;  %4706 = vmatpush.msra.mxu3 %v4339_v56  ;;  %v4330_v18 = vld [vmem:[%s11231_s2] sm:$0xff]  ;;  %v4265_v15 = vrot.slane %v10279_v10, 6  ;;  %v4149_v0 = vld [vmem:[#allocation2 + $0x48] sm:$0x3] }
 0x521   : > { %v4117_v48 = vsel %vm4062_vm7, %v3927_v34, %v4116_v35  ;;  %v4220_v2 = vld [vmem:[#allocation2 + $0x98] sm:$0x3]  ;;  %v4140_v34 = vld [vmem:[#allocation2] sm:$0xff] }
 0x522   : > { %v4118_v37 = vsel %vm4064_vm8, %v3936_v12, %v4117_v48  ;;  %4655 = vmatpush.msra.mxu2 %v4336_v24  ;;  %4707 = vmatpush.msra.mxu3 %v4337_v29  ;;  %v4176_v20 = vrot.slane %v4140_v34, 2  ;;  %v11851_v35 = vld [vmem:[#allocation47_spill] sm:$0xff]  ;;  %v4177_v7 = vrot.slane %v4140_v34, 4  ;;  %v4178_v48 = vrot.slane %v4140_v34, 6 }
 0x523   : > { %v4119_v46 = vsel %vm4066_vm9, %v3945_v45, %v4118_v37  ;;  %v11852_v12 = vrot.slane %v11851_v35, 2  ;;  %v11853_v45 = vrot.slane %v11851_v35, 4  ;;  %v4151_v24 = vld [vmem:[#allocation2 + $0x58] sm:$0x3] }
 0x524   : > { %v4120_v5 = vsel %vm4068_vm10, %v3954_v59, %v4119_v46  ;;  %4656 = vmatpush.msra.mxu2 %v4334_v39  ;;  %4708 = vmatpush.msra.mxu3 %v4335_v58  ;;  %v4141_v59 = vld [vmem:[#allocation2 + $0x8] sm:$0x3]  ;;  %v11854_v46 = vrot.slane %v11851_v35, 6 }
 0x525   : > { %v4121_v4 = vsel %vm4070_vm11, %v3963_v63, %v4120_v5  ;;  %v4143_v63 = vld [vmem:[#allocation2 + $0x18] sm:$0x3]  ;;  %v11855_v5 = vld [vmem:[#allocation52_spill] sm:$0xff]  ;;  %v4153_v39 = vld [vmem:[#allocation2 + $0x68] sm:$0x3] }
 0x526   : > { %v4122_v50 = vsel %vm4072_vm12, %v3972_v19, %v4121_v4  ;;  %4657 = vmatpush.msra.mxu2 %v4332_v22  ;;  %4709 = vmatpush.msra.mxu3 %v4333_v57  ;;  %v11856_v4 = vld [vmem:[#allocation55_spill] sm:$0xff]  ;;  %v10354_v57 = vpop.f32.mrf.mxu2 }
 0x527   : > { %4139 = vst.msk [vmem:[#allocation2 + $0x81] sm:$0xff] %vm3973_vm5, %v4122_v50  ;;  %v11857_v50 = vld [vmem:[#allocation53_spill] sm:$0xff]  ;;  %v4155_v22 = vld [vmem:[#allocation2 + $0x78] sm:$0x3] }
 0x528   : > { %4658 = vmatpush.msra.mxu2 %v4330_v18  ;;  %4710 = vmatpush.msra.mxu3 %v4331_v53  ;;  %v10356_v18 = vpop.f32.mrf.mxu3 }
 0x52e   : > { %v10254_v21 = vld [vmem:[#allocation2 + $0x80] sm:$0xff]  ;;  %v4218_v38 = vld [vmem:[#allocation2 + $0x88] sm:$0x3] }
 0x52f   : > { %v10257_v14 = vrot.slane %v10254_v21, 2  ;;  %v10260_v60 = vrot.slane %v10254_v21, 4  ;;  %v10263_v62 = vrot.slane %v10254_v21, 6  ;;  %4413 = vst [vmem:[#allocation1 + $0x3] ss:$4 sm:$0xff] %v10254_v21 }
 0x530   : > { %4417 = vst [vmem:[#allocation1 + $0x23] ss:$4 sm:$0xff] %v4218_v38 }
 0x531   : > { %4414 = vst [vmem:[#allocation1 + $0x20] ss:$4 sm:$0xff] %v10257_v14 }
 0x532   : > { %4415 = vst [vmem:[#allocation1 + $0x21] ss:$4 sm:$0xff] %v10260_v60 }
 0x533   : > { %4416 = vst [vmem:[#allocation1 + $0x22] ss:$4 sm:$0xff] %v10263_v62 }
 0x536   : > { %v4418_v40 = vld.sshfl [vmem:[#allocation1] sm:$0xff pattern:$0x73625140] }
 0x537   : > { %6615 = vmatmul.msk.f32.gmra.mxu2 %vm3973_vm5, %v4418_v40  ;;  %6627 = vmatmul.msk.f32.gmra.mxu3 %vm3973_vm5, %v4418_v40  ;;  %4420 = vst [vmem:[#allocation1] ss:$4 sm:$0xff] %v10279_v10  ;;  %v4157_v40 = vld [vmem:[#allocation2 + $0x88] sm:$0x3] }
 0x538   : > { %4421 = vst [vmem:[#allocation1 + $0x1] ss:$4 sm:$0xff] %v4263_v42 }
 0x539   : > { %4422 = vst [vmem:[#allocation1 + $0x2] ss:$4 sm:$0xff] %v4264_v9 }
 0x53a   : > { %v4419_v47 = vld.sshfl [vmem:[#allocation1 + $0x20] sm:$0xff pattern:$0x73625140]  ;;  %4423 = vst [vmem:[#allocation1 + $0x3] ss:$4 sm:$0xff] %v4265_v15 }
 0x53b   : > { %4424 = vst [vmem:[#allocation1 + $0x20] ss:$4 sm:$0xff] %v4220_v2 }
 0x53f   : > { %6616 = vmatmul.msk.f32.gmra.mxu2 %vm3973_vm5, %v4419_v47  ;;  %6628 = vmatmul.msk.f32.gmra.mxu3 %vm3973_vm5, %v4419_v47  ;;  %v10368_v47 = vpop.f32.mrf.mxu2 }
 0x541   : > { %v4425_v8 = vld.sshfl [vmem:[#allocation1] sm:$0xff pattern:$0x73625140] }
 0x542   : > { %v4426_v23 = vld.sshfl [vmem:[#allocation1 + $0x20] sm:$0xff pattern:$0x73625140]  ;;  %4555 = vst [vmem:[#allocation1] ss:$4 sm:$0xff] %v4140_v34  ;;  %v10370_v34 = vpop.f32.mrf.mxu3 }
 0x543   : > { %4565 = vst [vmem:[#allocation1 + $0x21] ss:$4 sm:$0xff] %v11851_v35  ;;  %v6667_v35 = vld [vmem:[%s11231_s2 + $0x160] sm:$0xff] }
 0x544   : > { %4567 = vst [vmem:[#allocation1 + $0x22] ss:$4 sm:$0xff] %v11852_v12 }
 0x545   : > { %4569 = vst [vmem:[#allocation1 + $0x23] ss:$4 sm:$0xff] %v11853_v45  ;;  %v4268_v45 = vld [vmem:[#allocation2 + $0x28] sm:$0x3] }
 0x546   : > { %4557 = vst [vmem:[#allocation1 + $0x1] ss:$4 sm:$0xff] %v4176_v20  ;;  %v6670_v20 = vld [vmem:[%s11231_s2 + $0x178] sm:$0xff] }
 0x547   : > { %6617 = vmatmul.msk.f32.gmra.mxu2 %vm3973_vm5, %v4425_v8  ;;  %6629 = vmatmul.msk.f32.gmra.mxu3 %vm3973_vm5, %v4425_v8  ;;  %4559 = vst [vmem:[#allocation1 + $0x2] ss:$4 sm:$0xff] %v4177_v7  ;;  %v10386_v7 = vpop.f32.mrf.mxu2 }
 0x548   : > { %4561 = vst [vmem:[#allocation1 + $0x3] ss:$4 sm:$0xff] %v4178_v48  ;;  %4912 = vmatpush.msrb.mxu3 %v6670_v20  ;;  %v6668_v48 = vld [vmem:[%s11231_s2 + $0x168] sm:$0xff] }
 0x549   : > { %4563 = vst [vmem:[#allocation1 + $0x20] ss:$4 sm:$0xff] %v4141_v59  ;;  %v6665_v59 = vld [vmem:[%s11231_s2 + $0x150] sm:$0xff] }
 0x54a   : > { %v10388_v12 = vpop.f32.mrf.mxu3  ;;  %4913 = vmatpush.msrb.mxu3 %v6668_v48 }
 0x54f   : > { %6618 = vmatmul.msk.f32.gmra.mxu2 %vm3973_vm5, %v4426_v23  ;;  %6630 = vmatmul.msk.f32.gmra.mxu3 %vm3973_vm5, %v4426_v23  ;;  %v4570_v37 = vld.sshfl [vmem:[#allocation1] sm:$0xff pattern:$0x73625140]  ;;  %v6669_v23 = vld [vmem:[%s11231_s2 + $0x170] sm:$0xff] }
 0x550   : > { %4572 = vst [vmem:[#allocation1] ss:$4 sm:$0xff] %v11854_v46  ;;  %v4571_v19 = vld.sshfl [vmem:[#allocation1 + $0x20] sm:$0xff pattern:$0x73625140]  ;;  %4860 = vmatpush.msrb.mxu2 %v6669_v23 }
 0x551   : > { %4573 = vst [vmem:[#allocation1 + $0x1] ss:$4 sm:$0xff] %v4143_v63  ;;  %v6663_v46 = vld [vmem:[%s11231_s2 + $0x140] sm:$0xff] }
 0x552   : > { %4574 = vst [vmem:[#allocation1 + $0x2] ss:$4 sm:$0xff] %v11855_v5  ;;  %4861 = vmatpush.msrb.mxu2 %v6667_v35 }
 0x553   : > { %4575 = vst [vmem:[#allocation1 + $0x3] ss:$4 sm:$0xff] %v11856_v4 }
 0x554   : > { %4576 = vst [vmem:[#allocation1 + $0x20] ss:$4 sm:$0xff] %v11857_v50  ;;  %4862 = vmatpush.msrb.mxu2 %v6665_v59 }
 0x555   : > { %4577 = vst [vmem:[#allocation1 + $0x21] ss:$4 sm:$0xff] %v11858_v30 }
 0x556   : > { %4578 = vst [vmem:[#allocation1 + $0x22] ss:$4 sm:$0xff] %v4145_v32  ;;  %4863 = vmatpush.msrb.mxu2 %v6663_v46  ;;  %v6657_v32 = vld [vmem:[%s11231_s2 + $0x110] sm:$0xff] }
 0x557   : > { %6631 = vmatmul.msk.f32.vlgmr.msra.gmra.mxu2 %vm3973_vm5, %v4570_v37  ;;  %6643 = vmatmul.msk.f32.vlgmr.msra.gmra.mxu3 %vm3973_vm5, %v4570_v37  ;;  %4579 = vst [vmem:[#allocation1 + $0x23] ss:$4 sm:$0xff] %v9869_v13  ;;  %v6666_v37 = vld [vmem:[%s11231_s2 + $0x158] sm:$0xff] }
 0x558   : > { %4914 = vmatpush.msrb.mxu3 %v6666_v37 }
 0x55a   : > { %v4580_v11 = vld.sshfl [vmem:[#allocation1] sm:$0xff pattern:$0x73625140] }
 0x55b   : > { %4582 = vst [vmem:[#allocation1] ss:$4 sm:$0xff] %v9873_v43 }
 0x55c   : > { %4583 = vst [vmem:[#allocation1 + $0x1] ss:$4 sm:$0xff] %v9876_v49 }
 0x55d   : > { %4584 = vst [vmem:[#allocation1 + $0x2] ss:$4 sm:$0xff] %v11859_v54 }
 0x55e   : > { %4585 = vst [vmem:[#allocation1 + $0x3] ss:$4 sm:$0xff] %v4147_v16  ;;  %v4581_v51 = vld.sshfl [vmem:[#allocation1 + $0x20] sm:$0xff pattern:$0x73625140] }
 0x55f   : > { %6632 = vmatmul.msk.f32.gmra.mxu2 %vm3973_vm5, %v4571_v19  ;;  %6644 = vmatmul.msk.f32.gmra.mxu3 %vm3973_vm5, %v4571_v19  ;;  %4586 = vst [vmem:[#allocation1 + $0x20] ss:$4 sm:$0xff] %v9979_v55  ;;  %v6664_v19 = vld [vmem:[%s11231_s2 + $0x148] sm:$0xff]  ;;  %v4270_v16 = vld [vmem:[#allocation2 + $0x38] sm:$0x3] }
 0x560   : > { %4587 = vst [vmem:[#allocation1 + $0x21] ss:$4 sm:$0xff] %v9985_v31  ;;  %4915 = vmatpush.msrb.mxu3 %v6664_v19 }
 0x561   : > { %4588 = vst [vmem:[#allocation1 + $0x22] ss:$4 sm:$0xff] %v9988_v1 }
 0x562   : > { %4589 = vst [vmem:[#allocation1 + $0x23] ss:$4 sm:$0xff] %v9991_v61 }
 0x565   : > { %v4590_v56 = vld.sshfl [vmem:[#allocation1] sm:$0xff pattern:$0x73625140] }
 0x566   : > { %4592 = vst [vmem:[#allocation1] ss:$4 sm:$0xff] %v4149_v0  ;;  %v6656_v0 = vld [vmem:[%s11231_s2 + $0x108] sm:$0xff] }
 0x567   : > { %6633 = vmatmul.msk.f32.gmra.mxu2 %vm3973_vm5, %v4580_v11  ;;  %6645 = vmatmul.msk.f32.gmra.mxu3 %vm3973_vm5, %v4580_v11  ;;  %4593 = vst [vmem:[#allocation1 + $0x1] ss:$4 sm:$0xff] %v10071_v26 }
 0x568   : > { %4594 = vst [vmem:[#allocation1 + $0x2] ss:$4 sm:$0xff] %v10075_v36 }
 0x569   : > { %4595 = vst [vmem:[#allocation1 + $0x3] ss:$4 sm:$0xff] %v10078_v33  ;;  %v4591_v38 = vld.sshfl [vmem:[#allocation1 + $0x20] sm:$0xff pattern:$0x73625140] }
 0x56a   : > { %4596 = vst [vmem:[#allocation1 + $0x20] ss:$4 sm:$0xff] %v10081_v17 }
 0x56b   : > { %4597 = vst [vmem:[#allocation1 + $0x21] ss:$4 sm:$0xff] %v4151_v24 }
 0x56c   : > { %4598 = vst [vmem:[#allocation1 + $0x22] ss:$4 sm:$0xff] %v10124_v52 }
 0x56d   : > { %4599 = vst [vmem:[#allocation1 + $0x23] ss:$4 sm:$0xff] %v10129_v44 }
 0x56f   : > { %6634 = vmatmul.msk.f32.gmra.mxu2 %vm3973_vm5, %v4581_v51  ;;  %6646 = vmatmul.msk.f32.gmra.mxu3 %vm3973_vm5, %v4581_v51  ;;  %v6655_v51 = vld [vmem:[%s11231_s2 + $0x100] sm:$0xff] }
 0x570   : > { %v4600_v29 = vld.sshfl [vmem:[#allocation1] sm:$0xff pattern:$0x73625140] }
 0x571   : > { %4602 = vst [vmem:[#allocation1] ss:$4 sm:$0xff] %v10132_v41 }
 0x572   : > { %4603 = vst [vmem:[#allocation1 + $0x1] ss:$4 sm:$0xff] %v10137_v25 }
 0x573   : > { %4604 = vst [vmem:[#allocation1 + $0x2] ss:$4 sm:$0xff] %v4153_v39 }
 0x574   : > { %4605 = vst [vmem:[#allocation1 + $0x3] ss:$4 sm:$0xff] %v10203_v3  ;;  %v4601_v58 = vld.sshfl [vmem:[#allocation1 + $0x20] sm:$0xff pattern:$0x73625140] }
 0x575   : > { %4606 = vst [vmem:[#allocation1 + $0x20] ss:$4 sm:$0xff] %v10207_v6 }
 0x576   : > { %4607 = vst [vmem:[#allocation1 + $0x21] ss:$4 sm:$0xff] %v10210_v28 }
 0x577   : > { %6635 = vmatmul.msk.f32.gmra.mxu2 %vm3973_vm5, %v4590_v56  ;;  %6647 = vmatmul.msk.f32.gmra.mxu3 %vm3973_vm5, %v4590_v56  ;;  %4608 = vst [vmem:[#allocation1 + $0x22] ss:$4 sm:$0xff] %v10213_v27 }
 0x578   : > { %4609 = vst [vmem:[#allocation1 + $0x23] ss:$4 sm:$0xff] %v4155_v22 }
 0x57b   : > { %v10358_v53 = vld.sshfl [vmem:[#allocation1] sm:$0xff pattern:$0x73625140] }
 0x57c   : > { %4612 = vst [vmem:[#allocation1] ss:$4 sm:$0xff] %v10254_v21 }
 0x57d   : > { %4613 = vst [vmem:[#allocation1 + $0x1] ss:$4 sm:$0xff] %v10257_v14 }
 0x57e   : > { %4614 = vst [vmem:[#allocation1 + $0x2] ss:$4 sm:$0xff] %v10260_v60 }
 0x57f   : > { %6636 = vmatmul.msk.f32.gmra.mxu2 %vm3973_vm5, %v4591_v38  ;;  %6648 = vmatmul.msk.f32.gmra.mxu3 %vm3973_vm5, %v4591_v38  ;;  %4615 = vst [vmem:[#allocation1 + $0x3] ss:$4 sm:$0xff] %v10263_v62  ;;  %v10366_v2 = vld.sshfl [vmem:[#allocation1 + $0x20] sm:$0xff pattern:$0x73625140] }
 0x580   : > { %4616 = vst [vmem:[#allocation1 + $0x20] ss:$4 sm:$0xff] %v4157_v40 }
 0x586   : > { %v10372_v8 = vld.sshfl [vmem:[#allocation1] sm:$0xff pattern:$0x73625140] }
 0x587   : > { %6637 = vmatmul.msk.f32.gmra.mxu2 %vm3973_vm5, %v4600_v29  ;;  %6649 = vmatmul.msk.f32.gmra.mxu3 %vm3973_vm5, %v4600_v29  ;;  %4764 = vst [vmem:[#allocation1] ss:$4 sm:$0xff] %v11855_v5  ;;  %v10402_v63 = vld.sshfl [vmem:[#allocation1 + $0x20] sm:$0xff pattern:$0x73625140]  ;;  %v6661_v5 = vld [vmem:[%s11231_s2 + $0x130] sm:$0xff] }
 0x588   : > { %4766 = vst [vmem:[#allocation1 + $0x1] ss:$4 sm:$0xff] %v11856_v4  ;;  %v6662_v4 = vld [vmem:[%s11231_s2 + $0x138] sm:$0xff]  ;;  %4864 = vmatpush.msrb.mxu2 %v6661_v5 }
 0x589   : > { %4768 = vst [vmem:[#allocation1 + $0x2] ss:$4 sm:$0xff] %v11857_v50  ;;  %v10426_v50 = vpop.f32.mrf.mxu3  ;;  %4916 = vmatpush.msrb.mxu3 %v6662_v4 }
 0x58a   : > { %4770 = vst [vmem:[#allocation1 + $0x3] ss:$4 sm:$0xff] %v11858_v30  ;;  %v6658_v30 = vld [vmem:[%s11231_s2 + $0x118] sm:$0xff] }
 0x58b   : > { %4772 = vst [vmem:[#allocation1 + $0x20] ss:$4 sm:$0xff] %v4268_v45 }
 0x58c   : > { %4774 = vst [vmem:[#allocation1 + $0x21] ss:$4 sm:$0xff] %v9869_v13  ;;  %v6659_v13 = vld [vmem:[%s11231_s2 + $0x120] sm:$0xff] }
 0x58d   : > { %4776 = vst [vmem:[#allocation1 + $0x22] ss:$4 sm:$0xff] %v9873_v43  ;;  %v10424_v43 = vpop.f32.mrf.mxu2  ;;  %4865 = vmatpush.msrb.mxu2 %v6659_v13 }
 0x58e   : > { %4778 = vst [vmem:[#allocation1 + $0x23] ss:$4 sm:$0xff] %v9876_v49  ;;  %v6660_v49 = vld [vmem:[%s11231_s2 + $0x128] sm:$0xff] }
 0x58f   : > { %6638 = vmatmul.msk.f32.gmra.mxu2 %vm3973_vm5, %v4601_v58  ;;  %6650 = vmatmul.msk.f32.gmra.mxu3 %vm3973_vm5, %v4601_v58  ;;  %v4282_v58 = vld [vmem:[#allocation2 + $0x98] sm:$0x3] }
 0x590   : > { %4917 = vmatpush.msrb.mxu3 %v6660_v49  ;;  %4866 = vmatpush.msrb.mxu2 %v6657_v32 }
 0x591   : > { %v10437_v11 = vld.sshfl [vmem:[#allocation1] sm:$0xff pattern:$0x73625140] }
 0x592   : > { %4781 = vst [vmem:[#allocation1] ss:$4 sm:$0xff] %v11859_v54  ;;  %4918 = vmatpush.msrb.mxu3 %v6658_v30  ;;  %4867 = vmatpush.msrb.mxu2 %v6655_v51  ;;  %v4272_v54 = vld [vmem:[#allocation2 + $0x48] sm:$0x3] }
 0x593   : > { %4782 = vst [vmem:[#allocation1 + $0x1] ss:$4 sm:$0xff] %v4270_v16 }
 0x594   : > { %4783 = vst [vmem:[#allocation1 + $0x2] ss:$4 sm:$0xff] %v9979_v55  ;;  %4919 = vmatpush.msrb.mxu3 %v6656_v0 }
 0x595   : > { %4784 = vst [vmem:[#allocation1 + $0x3] ss:$4 sm:$0xff] %v9985_v31  ;;  %v4780_v56 = vld.sshfl [vmem:[#allocation1 + $0x20] sm:$0xff pattern:$0x73625140]  ;;  %v10455_v55 = vpop.f32.mrf.mxu2  ;;  %v10457_v31 = vpop.f32.mrf.mxu3 }
 0x596   : > { %4785 = vst [vmem:[#allocation1 + $0x20] ss:$4 sm:$0xff] %v9988_v1  ;;  %v4274_v1 = vld [vmem:[#allocation2 + $0x58] sm:$0x3] }
 0x597   : > { %6639 = vmatmul.msk.f32.gmra.mxu2 %vm3973_vm5, %v10358_v53  ;;  %6651 = vmatmul.msk.f32.gmra.mxu3 %vm3973_vm5, %v10358_v53  ;;  %4786 = vst [vmem:[#allocation1 + $0x21] ss:$4 sm:$0xff] %v9991_v61 }
 0x598   : > { %4787 = vst [vmem:[#allocation1 + $0x22] ss:$4 sm:$0xff] %v4272_v54 }
 0x599   : > { %4788 = vst [vmem:[#allocation1 + $0x23] ss:$4 sm:$0xff] %v10071_v26 }
 0x59c   : > { %v4789_v38 = vld.sshfl [vmem:[#allocation1] sm:$0xff pattern:$0x73625140] }
 0x59d   : > { %4791 = vst [vmem:[#allocation1] ss:$4 sm:$0xff] %v10075_v36  ;;  %v10467_v26 = vpop.f32.mrf.mxu2  ;;  %v10469_v24 = vpop.f32.mrf.mxu3  ;;  %v4276_v36 = vld [vmem:[#allocation2 + $0x68] sm:$0x3] }
 0x59e   : > { %4792 = vst [vmem:[#allocation1 + $0x1] ss:$4 sm:$0xff] %v10078_v33 }
 0x59f   : > { %6640 = vmatmul.msk.f32.gmra.mxu2 %vm3973_vm5, %v10366_v2  ;;  %6652 = vmatmul.msk.f32.gmra.mxu3 %vm3973_vm5, %v10366_v2  ;;  %4793 = vst [vmem:[#allocation1 + $0x2] ss:$4 sm:$0xff] %v10081_v17  ;;  %v4283_v2 = vld [vmem:[#allocation2 + $0xa0] sm:$0xff] }
 0x5a0   : > { %4794 = vst [vmem:[#allocation1 + $0x3] ss:$4 sm:$0xff] %v4274_v1  ;;  %v4790_v61 = vld.sshfl [vmem:[#allocation1 + $0x20] sm:$0xff pattern:$0x73625140]  ;;  %v4328_v23 = vrot.slane %v4283_v2, 4 }
 0x5a1   : > { %4795 = vst [vmem:[#allocation1 + $0x20] ss:$4 sm:$0xff] %v10124_v52  ;;  %v4329_v20 = vrot.slane %v4283_v2, 6 }
 0x5a2   : > { %4796 = vst [vmem:[#allocation1 + $0x21] ss:$4 sm:$0xff] %v10129_v44 }
 0x5a3   : > { %4797 = vst [vmem:[#allocation1 + $0x22] ss:$4 sm:$0xff] %v10132_v41  ;;  %v4278_v41 = vld [vmem:[#allocation2 + $0x78] sm:$0x3] }
 0x5a4   : > { %4798 = vst [vmem:[#allocation1 + $0x23] ss:$4 sm:$0xff] %v10137_v25 }
 0x5a5   : > { %v10479_v17 = vpop.f32.mrf.mxu2  ;;  %v10481_v52 = vpop.f32.mrf.mxu3 }
 0x5a7   : > { %6641 = vmatmul.msk.f32.gmra.mxu2 %vm3973_vm5, %v10372_v8  ;;  %6653 = vmatmul.msk.f32.gmra.mxu3 %vm3973_vm5, %v10372_v8  ;;  %v4799_v33 = vld.sshfl [vmem:[#allocation1] sm:$0xff pattern:$0x73625140]  ;;  %v4327_v8 = vrot.slane %v4283_v2, 2 }
 0x5a8   : > { %4801 = vst [vmem:[#allocation1] ss:$4 sm:$0xff] %v4276_v36 }
 0x5a9   : > { %4802 = vst [vmem:[#allocation1 + $0x1] ss:$4 sm:$0xff] %v10203_v3 }
 0x5aa   : > { %4803 = vst [vmem:[#allocation1 + $0x2] ss:$4 sm:$0xff] %v10207_v6 }
 0x5ab   : > { %4804 = vst [vmem:[#allocation1 + $0x3] ss:$4 sm:$0xff] %v10210_v28  ;;  %v4800_v44 = vld.sshfl [vmem:[#allocation1 + $0x20] sm:$0xff pattern:$0x73625140] }
 0x5ac   : > { %4805 = vst [vmem:[#allocation1 + $0x20] ss:$4 sm:$0xff] %v10213_v27  ;;  %v4280_v28 = vld [vmem:[#allocation2 + $0x88] sm:$0x3] }
 0x5ad   : > { %4806 = vst [vmem:[#allocation1 + $0x21] ss:$4 sm:$0xff] %v4278_v41  ;;  %v10492_v25 = vpop.f32.mrf.mxu2  ;;  %v10494_v3 = vpop.f32.mrf.mxu3 }
 0x5ae   : > { %4807 = vst [vmem:[#allocation1 + $0x22] ss:$4 sm:$0xff] %v10254_v21 }
 0x5af   : > { %6642 = vmatmul.msk.f32.gmra.mxu2 %vm3973_vm5, %v10402_v63  ;;  %6654 = vmatmul.msk.f32.gmra.mxu3 %vm3973_vm5, %v10402_v63  ;;  %4808 = vst [vmem:[#allocation1 + $0x23] ss:$4 sm:$0xff] %v10257_v14 }
 0x5b2   : > { %v4809_v6 = vld.sshfl [vmem:[#allocation1] sm:$0xff pattern:$0x73625140] }
 0x5b3   : > { %4811 = vst [vmem:[#allocation1] ss:$4 sm:$0xff] %v10260_v60 }
 0x5b4   : > { %4812 = vst [vmem:[#allocation1 + $0x1] ss:$4 sm:$0xff] %v10263_v62 }
 0x5b5   : > { %4813 = vst [vmem:[#allocation1 + $0x2] ss:$4 sm:$0xff] %v4280_v28 }
 0x5b6   : > { %v4810_v27 = vld.sshfl [vmem:[#allocation1 + $0x20] sm:$0xff pattern:$0x73625140]  ;;  %4814 = vst [vmem:[#allocation1 + $0x3] ss:$4 sm:$0xff] %v10279_v10 }
 0x5b7   : > { %6671 = vmatmul.msk.f32.vlgmr.msrb.gmra.mxu2 %vm3973_vm5, %v10437_v11  ;;  %6683 = vmatmul.msk.f32.vlgmr.msrb.gmra.mxu3 %vm3973_vm5, %v10437_v11  ;;  %4815 = vst [vmem:[#allocation1 + $0x20] ss:$4 sm:$0xff] %v4263_v42 }
 0x5b8   : > { %4816 = vst [vmem:[#allocation1 + $0x21] ss:$4 sm:$0xff] %v4264_v9 }
 0x5b9   : > { %4817 = vst [vmem:[#allocation1 + $0x22] ss:$4 sm:$0xff] %v4265_v15 }
 0x5ba   : > { %v10509_v21 = vpop.f32.mrf.mxu2  ;;  %v10511_v14 = vpop.f32.mrf.mxu3  ;;  %4818 = vst [vmem:[#allocation1 + $0x23] ss:$4 sm:$0xff] %v4282_v58 }
 0x5bd   : > { %v4819_v40 = vld.sshfl [vmem:[#allocation1] sm:$0xff pattern:$0x73625140] }
 0x5be   : > { %4821 = vst [vmem:[#allocation1] ss:$4 sm:$0xff] %v4283_v2 }
 0x5bf   : > { %6672 = vmatmul.msk.f32.gmra.mxu2 %vm3973_vm5, %v4780_v56  ;;  %6684 = vmatmul.msk.f32.gmra.mxu3 %vm3973_vm5, %v4780_v56  ;;  %4822 = vst [vmem:[#allocation1 + $0x1] ss:$4 sm:$0xff] %v4327_v8 }
 0x5c0   : > { %4823 = vst [vmem:[#allocation1 + $0x2] ss:$4 sm:$0xff] %v4328_v23 }
 0x5c1   : > { %4824 = vst [vmem:[#allocation1 + $0x3] ss:$4 sm:$0xff] %v4329_v20  ;;  %v4820_v46 = vld.sshfl [vmem:[#allocation1 + $0x20] sm:$0xff pattern:$0x73625140] }
 0x5c2   : > { %v10515_v60 = vpop.f32.mrf.mxu2  ;;  %v10517_v62 = vpop.f32.mrf.mxu3 }
 0x5c7   : > { %6673 = vmatmul.msk.f32.gmra.mxu2 %vm3973_vm5, %v4789_v38  ;;  %6685 = vmatmul.msk.f32.gmra.mxu3 %vm3973_vm5, %v4789_v38 }
 0x5c8   : > { %v4826_v4 = vld.sshfl [vmem:[#allocation1] sm:$0xff pattern:$0x73625140] }
 0x5ca   : > { %v10521_v42 = vpop.f32.mrf.mxu2  ;;  %v10523_v10 = vpop.f32.mrf.mxu3 }
 0x5cf   : > { %6674 = vmatmul.msk.f32.gmra.mxu2 %vm3973_vm5, %v4790_v61  ;;  %6686 = vmatmul.msk.f32.gmra.mxu3 %vm3973_vm5, %v4790_v61 }
 0x5d2   : > { %v4501_v9 = vpop.f32.mrf.mxu2  ;;  %v4553_v15 = vpop.f32.mrf.mxu3 }
 0x5d7   : > { %6675 = vmatmul.msk.f32.gmra.mxu2 %vm3973_vm5, %v4799_v33  ;;  %6687 = vmatmul.msk.f32.gmra.mxu3 %vm3973_vm5, %v4799_v33 }
 0x5da   : > { %v4660_v29 = vpop.f32.mrf.mxu2  ;;  %v10529_v39 = vpop.f32.mrf.mxu3 }
 0x5db   : > { %v4661_v36 = vadd.f32 %v4660_v29, %v10354_v57 }
 0x5df   : > { %6676 = vmatmul.msk.f32.gmra.mxu2 %vm3973_vm5, %v4800_v44  ;;  %6688 = vmatmul.msk.f32.gmra.mxu3 %vm3973_vm5, %v4800_v44 }
 0x5e2   : > { %v4663_v22 = vpop.f32.mrf.mxu2  ;;  %v10533_v53 = vpop.f32.mrf.mxu3 }
 0x5e3   : > { %v4664_v33 = vadd.f32 %v4663_v22, %v10368_v47 }
 0x5e7   : > { %6677 = vmatmul.msk.f32.gmra.mxu2 %vm3973_vm5, %v4809_v6  ;;  %6689 = vmatmul.msk.f32.gmra.mxu3 %vm3973_vm5, %v4809_v6 }
 0x5ea   : > { %v4666_v35 = vpop.f32.mrf.mxu2  ;;  %v10537_v48 = vpop.f32.mrf.mxu3 }
 0x5eb   : > { %v4667_v15 = vadd.f32 %v4666_v35, %v10386_v7 }
 0x5ef   : > { %6678 = vmatmul.msk.f32.gmra.mxu2 %vm3973_vm5, %v4810_v27  ;;  %6690 = vmatmul.msk.f32.gmra.mxu3 %vm3973_vm5, %v4810_v27 }
 0x5f2   : > { %v4669_v45 = vpop.f32.mrf.mxu2  ;;  %v10541_v59 = vpop.f32.mrf.mxu3 }
 0x5f3   : > { %v4670_v29 = vadd.f32 %v4669_v45, %v10424_v43 }
 0x5f7   : > { %6679 = vmatmul.msk.f32.gmra.mxu2 %vm3973_vm5, %v4819_v40  ;;  %6691 = vmatmul.msk.f32.gmra.mxu3 %vm3973_vm5, %v4819_v40 }
 0x5fa   : > { %v4672_v37 = vpop.f32.mrf.mxu2  ;;  %v10545_v63 = vpop.f32.mrf.mxu3 }
 0x5fb   : > { %v4673_v7 = vadd.f32 %v4672_v37, %v10455_v55 }
 0x5ff   : > { %6680 = vmatmul.msk.f32.gmra.mxu2 %vm3973_vm5, %v4820_v46  ;;  %6692 = vmatmul.msk.f32.gmra.mxu3 %vm3973_vm5, %v4820_v46 }
 0x602   : > { %v4675_v19 = vpop.f32.mrf.mxu2  ;;  %v10549_v5 = vpop.f32.mrf.mxu3 }
 0x603   : > { %v4676_v43 = vadd.f32 %v4675_v19, %v10467_v26 }
 0x607   : > { %6681 = vmatmul.msk.f32.gmra.mxu2 %vm3973_vm5, %v4826_v4  ;;  %6693 = vmatmul.msk.f32.gmra.mxu3 %vm3973_vm5, %v4826_v4 }
 0x60a   : > { %v4678_v13 = vpop.f32.mrf.mxu2  ;;  %v10553_v49 = vpop.f32.mrf.mxu3 }
 0x60b   : > { %v4679_v55 = vadd.f32 %v4678_v13, %v10479_v17 }
 0x612   : > { %v4681_v32 = vpop.f32.mrf.mxu2  ;;  %v10555_v30 = vpop.f32.mrf.mxu3 }
 0x613   : > { %v4682_v26 = vadd.f32 %v4681_v32, %v10492_v25 }
 0x61a   : > { %v4684_v11 = vpop.f32.mrf.mxu2  ;;  %v10557_v16 = vpop.f32.mrf.mxu3 }
 0x61b   : > { %v4685_v17 = vadd.f32 %v4684_v11, %v10509_v21 }
 0x622   : > { %v4687_v51 = vpop.f32.mrf.mxu2  ;;  %v10559_v0 = vpop.f32.mrf.mxu3 }
 0x623   : > { %v4688_v25 = vadd.f32 %v4687_v51, %v10515_v60 }
 0x62a   : > { %v10561_v56 = vpop.f32.mrf.mxu2  ;;  %v10563_v54 = vpop.f32.mrf.mxu3 }
 0x62b   : > { %v4691_v21 = vadd.f32 %v10561_v56, %v10521_v42  ;;  %v4716_v56 = vadd.f32 %v10533_v53, %v10370_v34  ;;  %v6839_v34 = vld [vmem:[%s11234_s5] sm:$0xf] }
 0x62c   : > { %v10649_v53 = vperm.slane %v6839_v34, 1 }
 0x632   : > { %v4693_v38 = vpop.f32.mrf.mxu2  ;;  %v4745_v1 = vpop.f32.mrf.mxu3 }
 0x63a   : > { %v4869_v61 = vpop.f32.mrf.mxu2 }
 0x63b   : > { %v10567_v44 = vadd.f32 %v4869_v61, %v4661_v36 }
 0x63d   : > { %v4989_v28 = vrot.slane %v10567_v44, 1 }
 0x642   : > { %v4872_v41 = vpop.f32.mrf.mxu2 }
 0x643   : > { %v10569_v6 = vadd.f32 %v4872_v41, %v4664_v33 }
 0x645   : > { %v4990_v27 = vrot.slane %v10569_v6, 1 }
 0x647   : > { %v4991_v9 = vsel %vm2657_vm2, %v4989_v28, %v4990_v27 }
 0x648   : > { %5010 = vrot.lane.b32.xlu0 %v4991_v9, %s6907_s29 }
 0x64a   : > { %v4875_v58 = vpop.f32.mrf.mxu2 }
 0x64b   : > { %v10576_v40 = vadd.f32 %v4875_v58, %v4667_v15 }
 0x64d   : > { %v4992_v57 = vrot.slane %v10576_v40, 1 }
 0x64f   : > { %v4993_v47 = vsel %vm2657_vm2, %v4990_v27, %v4992_v57 }
 0x650   : > { %5012 = vrot.lane.b32.xlu1 %v4993_v47, %s6907_s29 }
 0x652   : > { %v4878_v22 = vpop.f32.mrf.mxu2 }
 0x653   : > { %v10582_v2 = vadd.f32 %v4878_v22, %v4670_v29  ;;  %v4921_v22 = vpop.f32.mrf.mxu3 }
 0x655   : > { %v4994_v8 = vrot.slane %v10582_v2, 1 }
 0x657   : > { %v4995_v23 = vsel %vm2657_vm2, %v4992_v57, %v4994_v8 }
 0x658   : > { %5014 = vrot.lane.b32.xlu2 %v4995_v23, %s6907_s29 }
 0x65a   : > { %v4881_v20 = vpop.f32.mrf.mxu2 }
 0x65b   : > { %v10588_v35 = vadd.f32 %v4881_v20, %v4673_v7  ;;  %v4924_v60 = vpop.f32.mrf.mxu3 }
 0x65d   : > { %v4996_v46 = vrot.slane %v10588_v35, 1 }
 0x65f   : > { %v4997_v4 = vsel %vm2657_vm2, %v4994_v8, %v4996_v46 }
 0x660   : > { %5016 = vrot.lane.b32.xlu0 %v4997_v4, %s6907_s29  ;;  %v4722_v4 = vadd.f32 %v10541_v59, %v10426_v50  ;;  %v11860_v59 = vmov 0.0  }
 0x661   : > { %5337 = vst.msk [vmem:[#allocation3] sm:$0x3f] %vm5336_vm13, %v11860_v59 }
 0x662   : > { %v4884_v45 = vpop.f32.mrf.mxu2  ;;  %5338 = vst.msk [vmem:[#allocation3 + $0x8] sm:$0x3f] %vm5336_vm13, %v11860_v59 }
 0x663   : > { %v10594_v38 = vadd.f32 %v4884_v45, %v4676_v43  ;;  %v4927_v51 = vpop.f32.mrf.mxu3  ;;  %v4719_v43 = vadd.f32 %v10537_v48, %v10388_v12  ;;  %5342 = vst.msk [vmem:[#allocation3 + $0x28] sm:$0x3f] %vm5336_vm13, %v11860_v59 }
 0x664   : > { %5343 = vst.msk [vmem:[#allocation3 + $0x30] sm:$0x3f] %vm5336_vm13, %v11860_v59 }
 0x665   : > { %v4998_v1 = vrot.slane %v10594_v38, 1  ;;  %v4961_v42 = vadd.f32 %v4927_v51, %v4719_v43  ;;  %5879 = vst.msk [vmem:[#allocation4] sm:$0xf] %vm5377_vm14, %v11860_v59 }
 0x666   : > { %5339 = vst.msk [vmem:[#allocation3 + $0x10] sm:$0x3f] %vm5336_vm13, %v11860_v59 }
 0x667   : > { %v4999_v61 = vsel %vm2657_vm2, %v4996_v46, %v4998_v1  ;;  %v5064_v50 = vrot.slane %v4961_v42, 2  ;;  %5340 = vst.msk [vmem:[#allocation3 + $0x18] sm:$0x3f] %vm5336_vm13, %v11860_v59 }
 0x668   : > { %5018 = vrot.lane.b32.xlu1 %v4999_v61, %s6907_s29  ;;  %5341 = vst.msk [vmem:[#allocation3 + $0x20] sm:$0x3f] %vm5336_vm13, %v11860_v59 }
 0x669   : > { %5880 = vst.msk [vmem:[#allocation4 + $0x4] sm:$0xf] %vm5377_vm14, %v11860_v59 }
 0x66a   : > { %v4887_v37 = vpop.f32.mrf.mxu2  ;;  %5881 = vst.msk [vmem:[#allocation4 + $0x8] sm:$0xf] %vm5377_vm14, %v11860_v59 }
 0x66b   : > { %v10600_v36 = vadd.f32 %v4887_v37, %v4679_v55  ;;  %v4930_v46 = vpop.f32.mrf.mxu3  ;;  %5882 = vst.msk [vmem:[#allocation4 + $0xc] sm:$0xf] %vm5377_vm14, %v11860_v59 }
 0x66c   : > { %v10631_v45 = vadd.f32 %v4930_v46, %v4722_v4  ;;  %5883 = vst.msk [vmem:[#allocation4 + $0x10] sm:$0xf] %vm5377_vm14, %v11860_v59 }
 0x66d   : > { %v5000_v33 = vrot.slane %v10600_v36, 1 }
 0x66e   : > { %v5066_v61 = vrot.slane %v10631_v45, 2 }
 0x66f   : > { %v5001_v41 = vsel %vm2657_vm2, %v4998_v1, %v5000_v33 }
 0x670   : > { %5020 = vrot.lane.b32.xlu2 %v5001_v41, %s6907_s29  ;;  %v4959_v41 = vadd.f32 %v4924_v60, %v4716_v56  ;;  %v5067_v48 = vsel %vm2912_vm3, %v5064_v50, %v5066_v61 }
 0x672   : > { %v4890_v19 = vpop.f32.mrf.mxu2 }
 0x673   : > { %v10606_v28 = vadd.f32 %v4890_v19, %v4682_v26  ;;  %v4933_v1 = vpop.f32.mrf.mxu3 }
 0x675   : > { %v5002_v27 = vrot.slane %v10606_v28, 1 }
 0x677   : > { %v5003_v9 = vsel %vm2657_vm2, %v5000_v33, %v5002_v27  ;;  %v4713_v33 = vadd.f32 %v10529_v39, %v10356_v18  ;;  %v5062_v39 = vrot.slane %v4959_v41, 2 }
 0x678   : > { %5022 = vrot.lane.b32.xlu0 %v5003_v9, %s6907_s29 }
 0x679   : > { %v4957_v12 = vadd.f32 %v4921_v22, %v4713_v33 }
 0x67a   : > { %v4893_v13 = vpop.f32.mrf.mxu2 }
 0x67b   : > { %v10612_v15 = vadd.f32 %v4893_v13, %v4685_v17  ;;  %v5061_v26 = vrot.slane %v4957_v12, 2 }
 0x67d   : > { %v5004_v58 = vrot.slane %v10612_v15, 1 }
 0x67f   : > { %v5005_v57 = vsel %vm2657_vm2, %v5002_v27, %v5004_v58  ;;  %v6840_v27 = vld [vmem:[%s11235_s6] sm:$0xf] }
 0x680   : > { %5024 = vrot.lane.b32.xlu1 %v5005_v57, %s6907_s29  ;;  %v10662_v9 = vperm.slane %v6840_v27, 1 }
 0x682   : > { %v4896_v32 = vpop.f32.mrf.mxu2 }
 0x683   : > { %v10618_v47 = vadd.f32 %v4896_v32, %v4688_v25 }
 0x685   : > { %v5006_v29 = vrot.slane %v10618_v47, 1 }
 0x687   : > { %v5007_v8 = vsel %vm2657_vm2, %v5004_v58, %v5006_v29  ;;  %v5063_v58 = vsel %vm2912_vm3, %v5061_v26, %v5062_v39 }
 0x688   : > { %5026 = vrot.lane.b32.xlu2 %v5007_v8, %s6907_s29 }
 0x68a   : > { %v4899_v11 = vpop.f32.mrf.mxu2 }
 0x68b   : > { %v4976_v23 = vadd.f32 %v4899_v11, %v4691_v21 }
 0x68d   : > { %v5008_v7 = vrot.slane %v4976_v23, 1 }
 0x68f   : > { %v5009_v20 = vsel %vm2657_vm2, %v5006_v29, %v5008_v7  ;;  %v5065_v7 = vsel %vm2912_vm3, %v5062_v39, %v5064_v50 }
 0x690   : > { %5028 = vrot.lane.b32.xlu0 %v5009_v20, %s6907_s29 }
 0x6b2   : > { %v5015_v55 = vpop.permute.xlu2 %5014 }
 0x6b3   : > { %v5042_v37 = vadd.f32 %v5015_v55, %v10576_v40  ;;  %v4936_v40 = vpop.f32.mrf.mxu3 }
 0x6b5   : > { %v5094_v18 = vadd.f32 %v5067_v48, %v5042_v37 }
 0x6b7   : > { %v5105_v17 = vmul.f32 %v10649_v53, %v5094_v18 }
 0x6b9   : > { %v5116_v25 = vadd.f32 %v10662_v9, %v5105_v17 }
 0x6ba   : > { %v5011_v19 = vpop.permute.xlu0 %5010 }
 0x6bb   : > { %v5040_v13 = vadd.f32 %v5011_v19, %v10567_v44  ;;  %v4939_v22 = vpop.f32.mrf.mxu3  ;;  %v10680_v8 = vmax.f32 %v5116_v25, 0.0 }
 0x6bd   : > { %v5092_v57 = vadd.f32 %v5063_v58, %v5040_v13  ;;  %v5220_v60 = vsel %vm3396_vm4, %v10680_v8, -inf  ;;  %v4728_v13 = vadd.f32 %v10549_v5, %v10469_v24 }
 0x6bf   : > { %v5103_v32 = vmul.f32 %v10649_v53, %v5092_v57 }
 0x6c1   : > { %v5114_v29 = vadd.f32 %v10662_v9, %v5103_v32 }
 0x6c2   : > { %v5013_v44 = vpop.permute.xlu1 %5012 }
 0x6c3   : > { %v5124_v21 = vmax.f32 %v5114_v29, 0.0  ;;  %v5041_v11 = vadd.f32 %v5013_v44, %v10569_v6  ;;  %v4725_v6 = vadd.f32 %v10545_v63, %v10457_v31  ;;  %v10693_v41 = vpop.f32.mrf.mxu3  ;;  %v4731_v44 = vadd.f32 %v10553_v49, %v10481_v52 }
 0x6c5   : > { %v5146_v23 = vrot.slane %v5124_v21, 6  ;;  %v5093_v20 = vadd.f32 %v5065_v7, %v5041_v11  ;;  %v5144_v56 = vrot.slane %v5124_v21, 2  ;;  %v5145_v55 = vrot.slane %v5124_v21, 4 }
 0x6c6   : > { %v4965_v33 = vadd.f32 %v4933_v1, %v4725_v6  ;;  %v5192_v34 = vsel %vm3396_vm4, %v5124_v21, -inf  ;;  %v4967_v21 = vadd.f32 %v4936_v40, %v4728_v13 }
 0x6c7   : > { %v5219_v51 = vsel %vm3396_vm4, %v5146_v23, -inf  ;;  %v5104_v4 = vmul.f32 %v10649_v53, %v5093_v20  ;;  %v5201_v18 = vsel %vm3396_vm4, %v5144_v56, -inf  ;;  %v5210_v39 = vsel %vm3396_vm4, %v5145_v55, -inf }
 0x6c8   : > { %v5221_v46 = vmax.f32 %v5219_v51, %v5220_v60  ;;  %v5068_v19 = vrot.slane %v4965_v33, 2  ;;  %v10709_v51 = vadd.f32 %v4939_v22, %v4731_v44  ;;  %v5070_v6 = vrot.slane %v4967_v21, 2 }
 0x6c9   : > { %v5115_v42 = vadd.f32 %v10662_v9, %v5104_v4  ;;  %v4740_v21 = vadd.f32 %v10559_v0, %v10517_v62 }
 0x6ca   : > { %v5222_v43 = vrot.slane %v5221_v46, 4  ;;  %v5069_v60 = vsel %vm2912_vm3, %v5066_v61, %v5068_v19  ;;  %v5021_v56 = vpop.permute.xlu2 %5020  ;;  %v5072_v55 = vrot.slane %v10709_v51, 2 }
 0x6cb   : > { %v5125_v37 = vmax.f32 %v5115_v42, 0.0 }
 0x6cc   : > { %v5223_v50 = vmax.f32 %v5221_v46, %v5222_v43  ;;  %v4945_v46 = vpop.f32.mrf.mxu3 }
 0x6cd   : > { %v5147_v59 = vrot.slane %v5125_v37, 2  ;;  %v5148_v12 = vrot.slane %v5125_v37, 4  ;;  %v5149_v48 = vrot.slane %v5125_v37, 6 }
 0x6ce   : > { %v5224_v58 = vrot.slane %v5223_v50, 2 }
 0x6cf   : > { %v5193_v26 = vsel %vm3396_vm4, %v5147_v59, -inf  ;;  %v5202_v31 = vsel %vm3396_vm4, %v5148_v12, -inf  ;;  %v5211_v63 = vsel %vm3396_vm4, %v5149_v48, -inf  ;;  %v5150_v12 = vrot.slane %v10680_v8, 4 }
 0x6d0   : > { %v5194_v1 = vmax.f32 %v5192_v34, %v5193_v26  ;;  %v5203_v27 = vmax.f32 %v5201_v18, %v5202_v31  ;;  %v5212_v17 = vmax.f32 %v5210_v39, %v5211_v63  ;;  %v5225_v24 = vmax.f32 %v5223_v50, %v5224_v58 }
 0x6d1   : > { %v5045_v48 = vadd.f32 %v5021_v56, %v10594_v38  ;;  %v5071_v18 = vsel %vm2912_vm3, %v5068_v19, %v5070_v6  ;;  %v5228_v19 = vsel %vm3396_vm4, %v5150_v12, -inf }
 0x6d2   : > { %v5017_v57 = vpop.permute.xlu0 %5016  ;;  %v5195_v25 = vrot.slane %v5194_v1, 4  ;;  %v5204_v32 = vrot.slane %v5203_v27, 4  ;;  %v5213_v29 = vrot.slane %v5212_v17, 4  ;;  %v5226_v45 = vrot.slane %v5225_v24, 1 }
 0x6d3   : > { %v5043_v11 = vadd.f32 %v5017_v57, %v10582_v2 }
 0x6d4   : > { %v5196_v23 = vmax.f32 %v5194_v1, %v5195_v25  ;;  %v5205_v7 = vmax.f32 %v5203_v27, %v5204_v32  ;;  %v5214_v20 = vmax.f32 %v5212_v17, %v5213_v29  ;;  %v4734_v1 = vadd.f32 %v10555_v30, %v10494_v3  ;;  %v4948_v3 = vpop.f32.mrf.mxu3 }
 0x6d5   : > { %v5095_v5 = vadd.f32 %v5069_v60, %v5043_v11  ;;  %v5073_v27 = vsel %vm2912_vm3, %v5070_v6, %v5072_v55  ;;  %v5227_v13 = vmax.f32 %v5225_v24, %v5226_v45  ;;  %v10741_v24 = vadd.f32 %v4948_v3, %v4740_v21 }
 0x6d6   : > { %v5197_v4 = vrot.slane %v5196_v23, 2  ;;  %v5206_v43 = vrot.slane %v5205_v7, 2  ;;  %v5215_v42 = vrot.slane %v5214_v20, 2  ;;  %v5097_v25 = vadd.f32 %v5073_v27, %v5045_v48 }
 0x6d7   : > { %v5106_v52 = vmul.f32 %v10649_v53, %v5095_v5  ;;  %v10736_v11 = vadd.f32 %v10693_v41, %v4734_v1 }
 0x6d8   : > { %v5198_v49 = vmax.f32 %v5196_v23, %v5197_v4  ;;  %v5207_v2 = vmax.f32 %v5205_v7, %v5206_v43  ;;  %v5216_v40 = vmax.f32 %v5214_v20, %v5215_v42  ;;  %v5108_v5 = vmul.f32 %v10649_v53, %v5097_v25 }
 0x6d9   : > { %v5117_v61 = vadd.f32 %v10662_v9, %v5106_v52  ;;  %v5074_v0 = vrot.slane %v10736_v11, 2 }
 0x6da   : > { %v5019_v22 = vpop.permute.xlu1 %5018  ;;  %v5199_v37 = vrot.slane %v5198_v49, 1  ;;  %v5208_v33 = vrot.slane %v5207_v2, 1  ;;  %v5217_v50 = vrot.slane %v5216_v40, 1 }
 0x6db   : > { %v5044_v59 = vadd.f32 %v5019_v22, %v10588_v35  ;;  %v5127_v34 = vmax.f32 %v5117_v61, 0.0  ;;  %v5151_v35 = vrot.slane %v10680_v8, 6  ;;  %v4737_v8 = vadd.f32 %v10557_v16, %v10511_v14 }
 0x6dc   : > { %v5200_v39 = vmax.f32 %v5198_v49, %v5199_v37  ;;  %v5209_v26 = vmax.f32 %v5207_v2, %v5208_v33  ;;  %v5218_v31 = vmax.f32 %v5216_v40, %v5217_v50  ;;  %v5078_v40 = vrot.slane %v10741_v24, 2  ;;  %v6700_v24 = vld [vmem:[%s11232_s3 + $0xa8] sm:$0xff] }
 0x6dd   : > { %v5096_v63 = vadd.f32 %v5071_v18, %v5044_v59  ;;  %v5153_v17 = vrot.slane %v5127_v34, 6  ;;  %v5152_v23 = vrot.slane %v5127_v34, 2  ;;  %v10739_v60 = vadd.f32 %v4945_v46, %v4737_v8 }
 0x6de   : > { %v5360_v38 = vsel %vm4060_vm6, %v5209_v26, %v5200_v39  ;;  %v5237_v4 = vsel %vm3396_vm4, %v5151_v35, -inf  ;;  %v5246_v41 = vsel %vm3396_vm4, %v5127_v34, -inf  ;;  %v5119_v33 = vadd.f32 %v10662_v9, %v5108_v5 }
 0x6df   : > { %v5107_v58 = vmul.f32 %v10649_v53, %v5096_v63  ;;  %v5361_v57 = vsel %vm4062_vm7, %v5218_v31, %v5360_v38  ;;  %v5229_v32 = vsel %vm3396_vm4, %v5153_v17, -inf  ;;  %v5255_v46 = vsel %vm3396_vm4, %v5152_v23, -inf }
 0x6e0   : > { %v5362_v30 = vsel %vm4064_vm8, %v5227_v13, %v5361_v57  ;;  %v5230_v29 = vmax.f32 %v5228_v19, %v5229_v32  ;;  %v5076_v22 = vrot.slane %v10739_v60, 2  ;;  %v5075_v63 = vsel %vm2912_vm3, %v5072_v55, %v5074_v0 }
 0x6e1   : > { %v5118_v44 = vadd.f32 %v10662_v9, %v5107_v58  ;;  %5378 = vst.msk [vmem:[#allocation3 + $0x9] sm:$0xf] %vm5377_vm14, %v5362_v30  ;;  %v10762_v27 = vmax.f32 %v5119_v33, 0.0 }
 0x6e2   : > { %v5231_v7 = vrot.slane %v5230_v29, 4  ;;  %v5027_v2 = vpop.permute.xlu2 %5026  ;;  %v5079_v31 = vsel %vm2912_vm3, %v5076_v22, %v5078_v40 }
 0x6e3   : > { %v5128_v20 = vmax.f32 %v5118_v44, 0.0  ;;  %v5048_v48 = vadd.f32 %v5027_v2, %v10612_v15  ;;  %v5156_v51 = vrot.slane %v10762_v27, 2  ;;  %v5264_v60 = vsel %vm3396_vm4, %v10762_v27, -inf }
 0x6e4   : > { %v5232_v14 = vmax.f32 %v5230_v29, %v5231_v7 }
 0x6e5   : > { %v5154_v16 = vrot.slane %v5128_v20, 2  ;;  %v5155_v43 = vrot.slane %v5128_v20, 4  ;;  %v5238_v62 = vsel %vm3396_vm4, %v5128_v20, -inf  ;;  %v5100_v38 = vadd.f32 %v5079_v31, %v5048_v48  ;;  %v6707_v48 = vld [vmem:[%s11232_s3 + $0xe0] sm:$0xff]  ;;  %v6708_v31 = vld [vmem:[%s11232_s3 + $0xe8] sm:$0xff] }
 0x6e6   : > { %v5239_v42 = vmax.f32 %v5237_v4, %v5238_v62  ;;  %v5233_v6 = vrot.slane %v5232_v14, 2  ;;  %v5077_v4 = vsel %vm2912_vm3, %v5074_v0, %v5076_v22 }
 0x6e7   : > { %v5247_v52 = vsel %vm3396_vm4, %v5154_v16, -inf  ;;  %v5256_v49 = vsel %vm3396_vm4, %v5155_v43, -inf  ;;  %v5111_v44 = vmul.f32 %v10649_v53, %v5100_v38 }
 0x6e8   : > { %v5240_v56 = vrot.slane %v5239_v42, 4  ;;  %v5248_v45 = vmax.f32 %v5246_v41, %v5247_v52  ;;  %v5257_v61 = vmax.f32 %v5255_v46, %v5256_v49  ;;  %v5402_v37 = vld [vmem:[#allocation3 + $0x8] sm:$0x3f]  ;;  %v5234_v12 = vmax.f32 %v5232_v14, %v5233_v6 }
 0x6e9   : > { %v5412_v50 = vrot.slane %v5402_v37, 2  ;;  %v5413_v59 = vrot.slane %v5402_v37, 4  ;;  %5476 = vst [vmem:[#allocation1] ss:$4 sm:$0xff] %v5402_v37  ;;  %v5122_v41 = vadd.f32 %v10662_v9, %v5111_v44  ;;  %v6701_v44 = vld [vmem:[%s11232_s3 + $0xb0] sm:$0xff] }
 0x6ea   : > { %v5023_v34 = vpop.permute.xlu0 %5022  ;;  %v5241_v18 = vmax.f32 %v5239_v42, %v5240_v56  ;;  %v5249_v39 = vrot.slane %v5248_v45, 4  ;;  %v5258_v26 = vrot.slane %v5257_v61, 4  ;;  %v5235_v13 = vrot.slane %v5234_v12, 1 }
 0x6eb   : > { %5478 = vst [vmem:[#allocation1 + $0x1] ss:$4 sm:$0xff] %v5412_v50  ;;  %v5046_v1 = vadd.f32 %v5023_v34, %v10600_v36  ;;  %v5157_v36 = vrot.slane %v10762_v27, 4  ;;  %v4743_v34 = vadd.f32 %v10563_v54, %v10523_v10  ;;  %v6705_v10 = vld [vmem:[%s11232_s3 + $0xd0] sm:$0xff]  ;;  %v6706_v54 = vld [vmem:[%s11232_s3 + $0xd8] sm:$0xff] }
 0x6ec   : > { %5480 = vst [vmem:[#allocation1 + $0x2] ss:$4 sm:$0xff] %v5413_v59  ;;  %v5242_v17 = vrot.slane %v5241_v18, 2  ;;  %v5250_v15 = vmax.f32 %v5248_v45, %v5249_v39  ;;  %v5259_v35 = vmax.f32 %v5257_v61, %v5258_v26  ;;  %v5236_v29 = vmax.f32 %v5234_v12, %v5235_v13  ;;  %v6709_v59 = vld [vmem:[%s11232_s3 + $0xf0] sm:$0xff]  ;;  %v6710_v12 = vld [vmem:[%s11232_s3 + $0xf8] sm:$0xff] }
 0x6ed   : > { %v5098_v58 = vadd.f32 %v5075_v63, %v5046_v1  ;;  %v5282_v49 = vsel %vm3396_vm4, %v5157_v36, -inf  ;;  %v5158_v39 = vrot.slane %v10762_v27, 6  ;;  %v10797_v26 = vmax.f32 %v5122_v41, 0.0  ;;  %5518 = vmatpush.msra.mxu2 %v6709_v59  ;;  %5547 = vmatpush.msra.mxu3 %v6710_v12  ;;  %v4284_v27 = vld [vmem:[#allocation2 + $0xa8] sm:$0x3] }
 0x6ee   : > { %v5243_v19 = vmax.f32 %v5241_v18, %v5242_v17  ;;  %v5251_v57 = vrot.slane %v5250_v15, 2  ;;  %v5260_v25 = vrot.slane %v5259_v35, 2  ;;  %v4951_v18 = vpop.f32.mrf.mxu3  ;;  %4825 = vst [vmem:[#allocation1 + $0x20] ss:$4 sm:$0xff] %v4284_v27 }
 0x6ef   : > { %v5109_v32 = vmul.f32 %v10649_v53, %v5098_v58  ;;  %5519 = vmatpush.msra.mxu2 %v6707_v48  ;;  %5548 = vmatpush.msra.mxu3 %v6708_v31  ;;  %v5164_v59 = vrot.slane %v10797_v26, 2  ;;  %v6697_v48 = vld [vmem:[%s11232_s3 + $0x90] sm:$0xff]  ;;  %v6696_v31 = vld [vmem:[%s11232_s3 + $0x88] sm:$0xff] }
 0x6f0   : > { %v5244_v3 = vrot.slane %v5243_v19, 1  ;;  %v5252_v55 = vmax.f32 %v5250_v15, %v5251_v57  ;;  %v5261_v30 = vmax.f32 %v5259_v35, %v5260_v25  ;;  %v4977_v35 = vadd.f32 %v4951_v18, %v4743_v34  ;;  %v6704_v57 = vld [vmem:[%s11232_s3 + $0xc8] sm:$0xff]  ;;  %v6698_v34 = vld [vmem:[%s11232_s3 + $0x98] sm:$0xff] }
 0x6f1   : > { %v5120_v8 = vadd.f32 %v10662_v9, %v5109_v32  ;;  %v5165_v25 = vrot.slane %v10797_v26, 6  ;;  %v5291_v32 = vsel %vm3396_vm4, %v5158_v39, -inf  ;;  %5520 = vmatpush.msra.mxu2 %v6705_v10  ;;  %5549 = vmatpush.msra.mxu3 %v6706_v54 }
 0x6f2   : > { %v5025_v21 = vpop.permute.xlu1 %5024  ;;  %v5245_v11 = vmax.f32 %v5243_v19, %v5244_v3  ;;  %v5253_v23 = vrot.slane %v5252_v55, 1  ;;  %v5262_v7 = vrot.slane %v5261_v30, 1  ;;  %v6703_v19 = vld [vmem:[%s11232_s3 + $0xc0] sm:$0xff] }
 0x6f3   : > { %v5047_v20 = vadd.f32 %v5025_v21, %v10606_v28  ;;  %v5130_v5 = vmax.f32 %v5120_v8, 0.0  ;;  %v5273_v28 = vsel %vm3396_vm4, %v5156_v51, -inf  ;;  %v6702_v8 = vld [vmem:[%s11232_s3 + $0xb8] sm:$0xff]  ;;  %5521 = vmatpush.msra.mxu2 %v6703_v19  ;;  %5550 = vmatpush.msra.mxu3 %v6704_v57  ;;  %v5455_v57 = vld [vmem:[%s11232_s3 + $0x60] sm:$0xff] }
 0x6f4   : > { %v5254_v14 = vmax.f32 %v5252_v55, %v5253_v23  ;;  %v5263_v16 = vmax.f32 %v5261_v30, %v5262_v7  ;;  %v5363_v43 = vsel %vm4060_vm6, %v5245_v11, %v5236_v29  ;;  %v5080_v11 = vrot.slane %v4977_v35, 2  ;;  %v5457_v35 = vld [vmem:[%s11232_s3 + $0x70] sm:$0xff] }
 0x6f5   : > { %v5099_v62 = vadd.f32 %v5077_v4, %v5047_v20  ;;  %v5159_v42 = vrot.slane %v5130_v5, 2  ;;  %v5160_v6 = vrot.slane %v5130_v5, 4  ;;  %v5161_v46 = vrot.slane %v5130_v5, 6  ;;  %5522 = vmatpush.msra.mxu2 %v6701_v44  ;;  %5551 = vmatpush.msra.mxu3 %v6702_v8  ;;  %v5454_v44 = vld [vmem:[%s11232_s3 + $0x58] sm:$0xff] }
 0x6f6   : > { %v5364_v52 = vsel %vm4062_vm7, %v5254_v14, %v5363_v43  ;;  %v5301_v4 = vsel %vm3396_vm4, %v5165_v25, -inf  ;;  %v5456_v25 = vld [vmem:[%s11232_s3 + $0x68] sm:$0xff]  ;;  %5610 = vmatpush.msra.mxu0 %v5457_v35  ;;  %v5383_v35 = vld [vmem:[#allocation3 + $0x8] sm:$0x3f] }
 0x6f7   : > { %v5110_v2 = vmul.f32 %v10649_v53, %v5099_v62  ;;  %v5365_v0 = vsel %vm4064_vm8, %v5263_v16, %v5364_v52  ;;  %v5265_v56 = vsel %vm3396_vm4, %v5159_v42, -inf  ;;  %v5274_v45 = vsel %vm3396_vm4, %v5160_v6, -inf  ;;  %v4827_v6 = vld.sshfl [vmem:[#allocation1 + $0x20] sm:$0xff pattern:$0x73625140]  ;;  %5552 = vmatpush.msra.mxu3 %v6700_v24 }
 0x6f8   : > { %v5283_v61 = vsel %vm3396_vm4, %v5161_v46, -inf  ;;  %5379 = vst.msk [vmem:[#allocation3 + $0x11] sm:$0xf] %vm5377_vm14, %v5365_v0  ;;  %v5266_v22 = vmax.f32 %v5264_v60, %v5265_v56  ;;  %v5275_v37 = vmax.f32 %v5273_v28, %v5274_v45  ;;  %6682 = vmatmul.msk.f32.gmra.mxu2 %vm3973_vm5, %v4827_v6  ;;  %6694 = vmatmul.msk.f32.gmra.mxu3 %vm3973_vm5, %v4827_v6  ;;  %v5443_v24 = vld [vmem:[%s11232_s3] sm:$0xff] }
 0x6f9   : > { %v5284_v33 = vmax.f32 %v5282_v49, %v5283_v61  ;;  %v5121_v50 = vadd.f32 %v10662_v9, %v5110_v2  ;;  %v5081_v28 = vsel %vm2912_vm3, %v5078_v40, %v5080_v11  ;;  %5553 = vmatpush.msra.mxu3 %v6698_v34  ;;  %5611 = vmatpush.msra.mxu0 %v5455_v57 }
 0x6fa   : > { %v5267_v63 = vrot.slane %v5266_v22, 4  ;;  %v5276_v1 = vrot.slane %v5275_v37, 4 }
 0x6fb   : > { %v5285_v17 = vrot.slane %v5284_v33, 4  ;;  %v10802_v15 = vmax.f32 %v5121_v50, 0.0  ;;  %5554 = vmatpush.msra.mxu3 %v6696_v31  ;;  %v6741_v31 = vld [vmem:[%s11232_s3 + $0x170] sm:$0xff] }
 0x6fc   : > { %v5268_v13 = vmax.f32 %v5266_v22, %v5267_v63  ;;  %v5277_v38 = vmax.f32 %v5275_v37, %v5276_v1 }
 0x6fd   : > { %v5286_v58 = vmax.f32 %v5284_v33, %v5285_v17  ;;  %v5162_v51 = vrot.slane %v10802_v15, 4  ;;  %v5292_v3 = vsel %vm3396_vm4, %v10802_v15, -inf  ;;  %v6699_v33 = vld [vmem:[%s11232_s3 + $0xa0] sm:$0xff] }
 0x6fe   : > { %v5269_v55 = vrot.slane %v5268_v13, 2  ;;  %v5278_v30 = vrot.slane %v5277_v38, 2  ;;  %v5293_v29 = vmax.f32 %v5291_v32, %v5292_v3  ;;  %5523 = vmatpush.msra.mxu2 %v6699_v33  ;;  %v5327_v32 = vsel %vm3396_vm4, %v5164_v59, -inf }
 0x6ff   : > { %v5287_v36 = vrot.slane %v5286_v58, 2  ;;  %v5403_v21 = vld [vmem:[#allocation3 + $0x10] sm:$0x3f]  ;;  %v5300_v43 = vsel %vm3396_vm4, %v5162_v51, -inf }
 0x700   : > { %v5414_v23 = vrot.slane %v5403_v21, 2  ;;  %5482 = vst [vmem:[#allocation1 + $0x3] ss:$4 sm:$0xff] %v5403_v21  ;;  %v5415_v7 = vrot.slane %v5403_v21, 4  ;;  %v5270_v20 = vmax.f32 %v5268_v13, %v5269_v55  ;;  %v5279_v60 = vmax.f32 %v5277_v38, %v5278_v30  ;;  %5524 = vmatpush.msra.mxu2 %v6697_v48  ;;  %v5458_v13 = vld [vmem:[%s11232_s3 + $0x78] sm:$0xff] }
 0x701   : > { %v5288_v14 = vmax.f32 %v5286_v58, %v5287_v36  ;;  %v5294_v16 = vrot.slane %v5293_v29, 4  ;;  %v5302_v42 = vmax.f32 %v5300_v43, %v5301_v4  ;;  %v5318_v38 = vsel %vm3396_vm4, %v10797_v26, -inf  ;;  %5639 = vmatpush.msra.mxu1 %v5458_v13 }
 0x702   : > { %v5029_v5 = vpop.permute.xlu0 %5028  ;;  %v5271_v62 = vrot.slane %v5270_v20, 1  ;;  %v5280_v41 = vrot.slane %v5279_v60, 1  ;;  %5484 = vst [vmem:[#allocation1 + $0x20] ss:$4 sm:$0xff] %v5414_v23  ;;  %v5451_v23 = vld [vmem:[%s11232_s3 + $0x40] sm:$0xff] }
 0x703   : > { %v5049_v46 = vadd.f32 %v5029_v5, %v10618_v47  ;;  %v5295_v52 = vmax.f32 %v5293_v29, %v5294_v16  ;;  %v5289_v49 = vrot.slane %v5288_v14, 1  ;;  %5486 = vst [vmem:[#allocation1 + $0x21] ss:$4 sm:$0xff] %v5415_v7  ;;  %v5303_v61 = vrot.slane %v5302_v42, 4  ;;  %v5453_v29 = vld [vmem:[%s11232_s3 + $0x50] sm:$0xff]  ;;  %5640 = vmatpush.msra.mxu1 %v5456_v25  ;;  %v5452_v7 = vld [vmem:[%s11232_s3 + $0x48] sm:$0xff] }
 0x704   : > { %v5272_v0 = vmax.f32 %v5270_v20, %v5271_v62  ;;  %v5281_v56 = vmax.f32 %v5279_v60, %v5280_v41  ;;  %v5163_v47 = vrot.slane %v10802_v15, 6  ;;  %5612 = vmatpush.msra.mxu0 %v5453_v29  ;;  %v5382_v29 = vld [vmem:[#allocation3] sm:$0x3f] }
 0x705   : > { %v5101_v2 = vadd.f32 %v5081_v28, %v5049_v46  ;;  %v5296_v45 = vrot.slane %v5295_v52, 2  ;;  %v5290_v40 = vmax.f32 %v5288_v14, %v5289_v49  ;;  %v5304_v18 = vmax.f32 %v5302_v42, %v5303_v61  ;;  %5641 = vmatpush.msra.mxu1 %v5454_v44  ;;  %v5449_v46 = vld [vmem:[%s11232_s3 + $0x30] sm:$0xff]  ;;  %v5447_v49 = vld [vmem:[%s11232_s3 + $0x20] sm:$0xff]  ;;  %v5446_v61 = vld [vmem:[%s11232_s3 + $0x18] sm:$0xff] }
 0x706   : > { %v5309_v17 = vsel %vm3396_vm4, %v5163_v47, -inf  ;;  %5613 = vmatpush.msra.mxu0 %v5451_v23  ;;  %v5393_v23 = vrot.slane %v5382_v29, 4 }
 0x707   : > { %v5112_v22 = vmul.f32 %v10649_v53, %v5101_v2  ;;  %v5297_v37 = vmax.f32 %v5295_v52, %v5296_v45  ;;  %v5366_v53 = vsel %vm4060_vm6, %v5281_v56, %v5272_v0  ;;  %v5491_v63 = vld.sshfl [vmem:[#allocation1] sm:$0xff pattern:$0x73625140]  ;;  %v5305_v51 = vrot.slane %v5304_v18, 2  ;;  %5642 = vmatpush.msra.mxu1 %v5452_v7  ;;  %v5450_v52 = vld [vmem:[%s11232_s3 + $0x38] sm:$0xff]  ;;  %v5448_v2 = vld [vmem:[%s11232_s3 + $0x28] sm:$0xff] }
 0x708   : > { %v5367_v15 = vsel %vm4062_vm7, %v5290_v40, %v5366_v53  ;;  %6715 = vmatmul.msk.f32.vlgmr.msra.gmra.mxu3 %vm3973_vm5, %v5491_v63  ;;  %5614 = vmatpush.msra.mxu0 %v5449_v46  ;;  %v5445_v45 = vld [vmem:[%s11232_s3 + $0x10] sm:$0xff]  ;;  %v5444_v40 = vld [vmem:[%s11232_s3 + $0x8] sm:$0xff] }
 0x709   : > { %v5123_v50 = vadd.f32 %v10662_v9, %v5112_v22  ;;  %v5298_v12 = vrot.slane %v5297_v37, 1  ;;  %v6695_v9 = vld [vmem:[%s11232_s3 + $0x80] sm:$0xff]  ;;  %v5306_v20 = vmax.f32 %v5304_v18, %v5305_v51  ;;  %5643 = vmatpush.msra.mxu1 %v5450_v52  ;;  %v6732_v51 = vld [vmem:[%s11232_s3 + $0x128] sm:$0xff] }
 0x70a   : > { %5525 = vmatpush.msra.mxu2 %v6695_v9  ;;  %5615 = vmatpush.msra.mxu0 %v5447_v49 }
 0x70b   : > { %v5133_v39 = vmax.f32 %v5123_v50, 0.0  ;;  %v5299_v1 = vmax.f32 %v5297_v37, %v5298_v12  ;;  %6711 = vmatmul.msk.f32.vlgmr.msra.gmra.mxu2 %vm3973_vm5, %v5491_v63  ;;  %v5307_v43 = vrot.slane %v5306_v20, 1  ;;  %5644 = vmatpush.msra.mxu1 %v5448_v2  ;;  %v5406_v37 = vld [vmem:[#allocation3 + $0x28] sm:$0x3f]  ;;  %v6742_v63 = vld [vmem:[%s11232_s3 + $0x178] sm:$0xff] }
 0x70c   : > { %5616 = vmatpush.msra.mxu0 %v5445_v45  ;;  %v5420_v12 = vrot.slane %v5406_v37, 2  ;;  %v5421_v34 = vrot.slane %v5406_v37, 4  ;;  %5719 = vmatpush.msrb.mxu2 %v6741_v31  ;;  %v5423_v2 = vld [vmem:[#allocation3 + $0x10] sm:$0x3f] }
 0x70d   : > { %v5166_v10 = vrot.slane %v5133_v39, 2  ;;  %v5167_v54 = vrot.slane %v5133_v39, 4  ;;  %v5310_v27 = vsel %vm3396_vm4, %v5133_v39, -inf  ;;  %v5368_v58 = vsel %vm4064_vm8, %v5299_v1, %v5367_v15  ;;  %5645 = vmatpush.msra.mxu1 %v5446_v61  ;;  %v6739_v1 = vld [vmem:[%s11232_s3 + $0x160] sm:$0xff]  ;;  %5748 = vmatpush.msrb.mxu3 %v6742_v63  ;;  %v6737_v15 = vld [vmem:[%s11232_s3 + $0x150] sm:$0xff] }
 0x70e   : > { %v5311_v19 = vmax.f32 %v5309_v17, %v5310_v27  ;;  %5380 = vst.msk [vmem:[#allocation3 + $0x19] sm:$0xf] %vm5377_vm14, %v5368_v58  ;;  %v5308_v22 = vmax.f32 %v5306_v20, %v5307_v43  ;;  %5617 = vmatpush.msra.mxu0 %v5443_v24  ;;  %v6740_v17 = vld [vmem:[%s11232_s3 + $0x168] sm:$0xff]  ;;  %5720 = vmatpush.msrb.mxu2 %v6739_v1  ;;  %v6734_v58 = vld [vmem:[%s11232_s3 + $0x138] sm:$0xff]  ;;  %v5434_v61 = vrot.slane %v5423_v2, 4 }
 0x70f   : > { %v5319_v26 = vsel %vm3396_vm4, %v5166_v10, -inf  ;;  %v5328_v3 = vsel %vm3396_vm4, %v5167_v54, -inf  ;;  %5646 = vmatpush.msra.mxu1 %v5444_v40  ;;  %v6738_v10 = vld [vmem:[%s11232_s3 + $0x158] sm:$0xff]  ;;  %5749 = vmatpush.msrb.mxu3 %v6740_v17  ;;  %v6735_v54 = vld [vmem:[%s11232_s3 + $0x140] sm:$0xff]  ;;  %v6736_v27 = vld [vmem:[%s11232_s3 + $0x148] sm:$0xff] }
 0x710   : > { %v5312_v55 = vrot.slane %v5311_v19, 4  ;;  %v5320_v30 = vmax.f32 %v5318_v38, %v5319_v26  ;;  %v5329_v36 = vmax.f32 %v5327_v32, %v5328_v3  ;;  %5721 = vmatpush.msrb.mxu2 %v6737_v15  ;;  %v6733_v38 = vld [vmem:[%s11232_s3 + $0x130] sm:$0xff]  ;;  %v6731_v32 = vld [vmem:[%s11232_s3 + $0x120] sm:$0xff]  ;;  %v5394_v26 = vrot.slane %v5383_v35, 2  ;;  %v5384_v3 = vld [vmem:[#allocation3 + $0x10] sm:$0x3f] }
 0x711   : > { %5750 = vmatpush.msrb.mxu3 %v6738_v10  ;;  %v5396_v44 = vrot.slane %v5384_v3, 2 }
 0x712   : > { %v5313_v8 = vmax.f32 %v5311_v19, %v5312_v55  ;;  %v5321_v21 = vrot.slane %v5320_v30, 4  ;;  %v5330_v11 = vrot.slane %v5329_v36, 4  ;;  %5722 = vmatpush.msrb.mxu2 %v6735_v54  ;;  %v5395_v55 = vrot.slane %v5383_v35, 4 }
 0x713   : > { %5751 = vmatpush.msrb.mxu3 %v6736_v27 }
 0x714   : > { %v5314_v60 = vrot.slane %v5313_v8, 2  ;;  %v5322_v5 = vmax.f32 %v5320_v30, %v5321_v21  ;;  %v5331_v4 = vmax.f32 %v5329_v36, %v5330_v11  ;;  %5723 = vmatpush.msrb.mxu2 %v6733_v38  ;;  %v6729_v30 = vld [vmem:[%s11232_s3 + $0x110] sm:$0xff]  ;;  %v6730_v36 = vld [vmem:[%s11232_s3 + $0x118] sm:$0xff]  ;;  %v6728_v21 = vld [vmem:[%s11232_s3 + $0x108] sm:$0xff]  ;;  %v5392_v11 = vrot.slane %v5382_v29, 2 }
 0x715   : > { %v5404_v14 = vld [vmem:[#allocation3 + $0x18] sm:$0x3f]  ;;  %5752 = vmatpush.msrb.mxu3 %v6734_v58 }
 0x716   : > { %v5315_v16 = vmax.f32 %v5313_v8, %v5314_v60  ;;  %v5416_v62 = vrot.slane %v5404_v14, 2  ;;  %v5417_v41 = vrot.slane %v5404_v14, 4  ;;  %5488 = vst [vmem:[#allocation1 + $0x22] ss:$4 sm:$0xff] %v5404_v14  ;;  %v5323_v6 = vrot.slane %v5322_v5, 2  ;;  %5724 = vmatpush.msrb.mxu2 %v6731_v32  ;;  %v6727_v8 = vld [vmem:[%s11232_s3 + $0x100] sm:$0xff] }
 0x717   : > { %v5332_v28 = vrot.slane %v5331_v4, 2  ;;  %5753 = vmatpush.msrb.mxu3 %v6732_v51  ;;  %v5385_v14 = vld [vmem:[#allocation3 + $0x18] sm:$0x3f] }
 0x718   : > { %v5316_v42 = vrot.slane %v5315_v16, 1  ;;  %5490 = vst [vmem:[#allocation1 + $0x23] ss:$4 sm:$0xff] %v5416_v62  ;;  %v5324_v56 = vmax.f32 %v5322_v5, %v5323_v6  ;;  %5725 = vmatpush.msrb.mxu2 %v6729_v30  ;;  %v5424_v43 = vld [vmem:[#allocation3 + $0x18] sm:$0x3f] }
 0x719   : > { %5493 = vst [vmem:[#allocation1] ss:$4 sm:$0xff] %v5417_v41  ;;  %v5333_v47 = vmax.f32 %v5331_v4, %v5332_v28  ;;  %5754 = vmatpush.msrb.mxu3 %v6730_v36  ;;  %v5398_v41 = vrot.slane %v5385_v14, 2  ;;  %v5435_v46 = vrot.slane %v5424_v43, 2  ;;  %v5436_v28 = vrot.slane %v5424_v43, 4 }
 0x71a   : > { %v5317_v0 = vmax.f32 %v5315_v16, %v5316_v42  ;;  %v5325_v33 = vrot.slane %v5324_v56, 1  ;;  %5726 = vmatpush.msrb.mxu2 %v6727_v8  ;;  %v5397_v16 = vrot.slane %v5384_v3, 4  ;;  %v5399_v42 = vrot.slane %v5385_v14, 4 }
 0x71b   : > { %v5334_v50 = vrot.slane %v5333_v47, 1  ;;  %5755 = vmatpush.msrb.mxu3 %v6728_v21 }
 0x71c   : > { %v5369_v59 = vsel %vm4060_vm6, %v5317_v0, %v5308_v22  ;;  %v5326_v53 = vmax.f32 %v5324_v56, %v5325_v33  ;;  %v5427_v0 = vld [vmem:[#allocation3 + $0x30] sm:$0x3f]  ;;  %v5433_v56 = vrot.slane %v5423_v2, 2  ;;  %v5426_v33 = vld [vmem:[#allocation3 + $0x28] sm:$0x3f] }
 0x71d   : > { %v5335_v48 = vmax.f32 %v5333_v47, %v5334_v50  ;;  %v5441_v22 = vrot.slane %v5427_v0, 2  ;;  %v5442_v47 = vrot.slane %v5427_v0, 4  ;;  %v5439_v24 = vrot.slane %v5426_v33, 2 }
 0x71e   : > { %v5370_v18 = vsel %vm4062_vm7, %v5326_v53, %v5369_v59  ;;  %v5440_v50 = vrot.slane %v5426_v33, 4 }
 0x71f   : > { %v5492_v39 = vld.sshfl [vmem:[#allocation1 + $0x20] sm:$0xff pattern:$0x73625140]  ;;  %v5371_v9 = vsel %vm4064_vm8, %v5335_v48, %v5370_v18 }
 0x720   : > { %6712 = vmatmul.msk.f32.gmra.mxu2 %vm3973_vm5, %v5492_v39  ;;  %5497 = vst [vmem:[#allocation1 + $0x20] ss:$4 sm:$0xff] %v5406_v37  ;;  %6716 = vmatmul.msk.f32.gmra.mxu3 %vm3973_vm5, %v5492_v39 }
 0x721   : > { %5381 = vst.msk [vmem:[#allocation3 + $0x21] sm:$0xf] %vm5377_vm14, %v5371_v9 }
 0x722   : > { %5498 = vst [vmem:[#allocation1 + $0x21] ss:$4 sm:$0xff] %v5420_v12 }
 0x723   : > { %5499 = vst [vmem:[#allocation1 + $0x22] ss:$4 sm:$0xff] %v5421_v34 }
 0x728   : > { %v5405_v13 = vld [vmem:[#allocation3 + $0x20] sm:$0x3f] }
 0x729   : > { %v5418_v19 = vrot.slane %v5405_v13, 2  ;;  %v5419_v57 = vrot.slane %v5405_v13, 4  ;;  %5494 = vst [vmem:[#allocation1 + $0x1] ss:$4 sm:$0xff] %v5405_v13  ;;  %v5386_v20 = vld [vmem:[#allocation3 + $0x20] sm:$0x3f] }
 0x72a   : > { %v5501_v25 = vld.sshfl [vmem:[#allocation1 + $0x20] sm:$0xff pattern:$0x73625140]  ;;  %v5400_v60 = vrot.slane %v5386_v20, 2  ;;  %v5401_v4 = vrot.slane %v5386_v20, 4 }
 0x72b   : > { %5495 = vst [vmem:[#allocation1 + $0x2] ss:$4 sm:$0xff] %v5418_v19  ;;  %v5425_v6 = vld [vmem:[#allocation3 + $0x20] sm:$0x3f] }
 0x72c   : > { %5496 = vst [vmem:[#allocation1 + $0x3] ss:$4 sm:$0xff] %v5419_v57  ;;  %v5437_v49 = vrot.slane %v5425_v6, 2  ;;  %v5438_v40 = vrot.slane %v5425_v6, 4 }
 0x72d   : > { %5576 = vst [vmem:[#allocation1 + $0x20] ss:$4 sm:$0xff] %v5394_v26 }
 0x72e   : > { %5578 = vst [vmem:[#allocation1 + $0x21] ss:$4 sm:$0xff] %v5395_v55 }
 0x72f   : > { %5580 = vst [vmem:[#allocation1 + $0x22] ss:$4 sm:$0xff] %v5384_v3 }
 0x730   : > { %5582 = vst [vmem:[#allocation1 + $0x23] ss:$4 sm:$0xff] %v5396_v44 }
 0x733   : > { %v5500_v7 = vld.sshfl [vmem:[#allocation1] sm:$0xff pattern:$0x73625140] }
 0x734   : > { %6713 = vmatmul.msk.f32.gmra.mxu2 %vm3973_vm5, %v5500_v7  ;;  %5568 = vst [vmem:[#allocation1] ss:$4 sm:$0xff] %v5382_v29  ;;  %6717 = vmatmul.msk.f32.gmra.mxu3 %vm3973_vm5, %v5500_v7 }
 0x735   : > { %5570 = vst [vmem:[#allocation1 + $0x1] ss:$4 sm:$0xff] %v5392_v11 }
 0x736   : > { %5572 = vst [vmem:[#allocation1 + $0x2] ss:$4 sm:$0xff] %v5393_v23 }
 0x737   : > { %5574 = vst [vmem:[#allocation1 + $0x3] ss:$4 sm:$0xff] %v5383_v35  ;;  %v5584_v5 = vld.sshfl [vmem:[#allocation1 + $0x20] sm:$0xff pattern:$0x73625140] }
 0x738   : > { %5589 = vst [vmem:[#allocation1 + $0x20] ss:$4 sm:$0xff] %v5386_v20 }
 0x739   : > { %5590 = vst [vmem:[#allocation1 + $0x21] ss:$4 sm:$0xff] %v5400_v60 }
 0x73a   : > { %5591 = vst [vmem:[#allocation1 + $0x22] ss:$4 sm:$0xff] %v5401_v4 }
 0x73c   : > { %6714 = vmatmul.msk.f32.gmra.mxu2 %vm3973_vm5, %v5501_v25  ;;  %6718 = vmatmul.msk.f32.gmra.mxu3 %vm3973_vm5, %v5501_v25 }
 0x73e   : > { %v5583_v62 = vld.sshfl [vmem:[#allocation1] sm:$0xff pattern:$0x73625140] }
 0x73f   : > { %6719 = vmatmul.msk.f32.vlgmr.msra.gmra.mxu0 %vm3973_vm5, %v5583_v62  ;;  %5585 = vst [vmem:[#allocation1] ss:$4 sm:$0xff] %v5397_v16  ;;  %6723 = vmatmul.msk.f32.vlgmr.msra.gmra.mxu1 %vm3973_vm5, %v5583_v62 }
 0x740   : > { %5586 = vst [vmem:[#allocation1 + $0x1] ss:$4 sm:$0xff] %v5385_v14 }
 0x741   : > { %5587 = vst [vmem:[#allocation1 + $0x2] ss:$4 sm:$0xff] %v5398_v41  ;;  %v5593_v52 = vld.sshfl [vmem:[#allocation1 + $0x20] sm:$0xff pattern:$0x73625140] }
 0x742   : > { %5588 = vst [vmem:[#allocation1 + $0x3] ss:$4 sm:$0xff] %v5399_v42 }
 0x743   : > { %5685 = vst [vmem:[#allocation1 + $0x20] ss:$4 sm:$0xff] %v5435_v46 }
 0x744   : > { %5687 = vst [vmem:[#allocation1 + $0x21] ss:$4 sm:$0xff] %v5436_v28 }
 0x745   : > { %5689 = vst [vmem:[#allocation1 + $0x22] ss:$4 sm:$0xff] %v5425_v6 }
 0x746   : > { %5691 = vst [vmem:[#allocation1 + $0x23] ss:$4 sm:$0xff] %v5437_v49 }
 0x747   : > { %6720 = vmatmul.msk.f32.gmra.mxu0 %vm3973_vm5, %v5584_v5  ;;  %6724 = vmatmul.msk.f32.gmra.mxu1 %vm3973_vm5, %v5584_v5 }
 0x749   : > { %v5592_v45 = vld.sshfl [vmem:[#allocation1] sm:$0xff pattern:$0x73625140] }
 0x74a   : > { %5677 = vst [vmem:[#allocation1] ss:$4 sm:$0xff] %v5423_v2 }
 0x74b   : > { %5679 = vst [vmem:[#allocation1 + $0x1] ss:$4 sm:$0xff] %v5433_v56 }
 0x74c   : > { %5681 = vst [vmem:[#allocation1 + $0x2] ss:$4 sm:$0xff] %v5434_v61 }
 0x74d   : > { %5683 = vst [vmem:[#allocation1 + $0x3] ss:$4 sm:$0xff] %v5424_v43  ;;  %v5693_v37 = vld.sshfl [vmem:[#allocation1 + $0x20] sm:$0xff pattern:$0x73625140] }
 0x74e   : > { %5698 = vst [vmem:[#allocation1 + $0x20] ss:$4 sm:$0xff] %v5427_v0  ;;  %v11005_v0 = vld [vmem:[%s11234_s5] sm:$0xf] }
 0x74f   : > { %6721 = vmatmul.msk.f32.gmra.mxu0 %vm3973_vm5, %v5592_v45  ;;  %6725 = vmatmul.msk.f32.gmra.mxu1 %vm3973_vm5, %v5592_v45  ;;  %5699 = vst [vmem:[#allocation1 + $0x21] ss:$4 sm:$0xff] %v5441_v22  ;;  %v5817_v56 = vperm.slane %v11005_v0, 2 }
 0x750   : > { %5700 = vst [vmem:[#allocation1 + $0x22] ss:$4 sm:$0xff] %v5442_v47  ;;  %v11011_v47 = vld [vmem:[%s11235_s6] sm:$0xf] }
 0x754   : > { %v5692_v59 = vld.sshfl [vmem:[#allocation1] sm:$0xff pattern:$0x73625140] }
 0x755   : > { %6743 = vmatmul.msk.f32.vlgmr.msrb.gmra.mxu2 %vm3973_vm5, %v5692_v59  ;;  %5694 = vst [vmem:[#allocation1] ss:$4 sm:$0xff] %v5438_v40  ;;  %6747 = vmatmul.msk.f32.vlgmr.msrb.gmra.mxu3 %vm3973_vm5, %v5692_v59 }
 0x756   : > { %5695 = vst [vmem:[#allocation1 + $0x1] ss:$4 sm:$0xff] %v5426_v33 }
 0x757   : > { %5696 = vst [vmem:[#allocation1 + $0x2] ss:$4 sm:$0xff] %v5439_v24  ;;  %6722 = vmatmul.msk.f32.gmra.mxu0 %vm3973_vm5, %v5593_v52  ;;  %6726 = vmatmul.msk.f32.gmra.mxu1 %vm3973_vm5, %v5593_v52  ;;  %v5702_v12 = vld.sshfl [vmem:[#allocation1 + $0x20] sm:$0xff pattern:$0x73625140] }
 0x758   : > { %5697 = vst [vmem:[#allocation1 + $0x3] ss:$4 sm:$0xff] %v5440_v50 }
 0x75d   : > { %6744 = vmatmul.msk.f32.gmra.mxu2 %vm3973_vm5, %v5693_v37  ;;  %6748 = vmatmul.msk.f32.gmra.mxu3 %vm3973_vm5, %v5693_v37  ;;  %v5821_v37 = vperm.slane %v11011_v47, 2 }
 0x75f   : > { %v5701_v53 = vld.sshfl [vmem:[#allocation1] sm:$0xff pattern:$0x73625140] }
 0x765   : > { %6745 = vmatmul.msk.f32.gmra.mxu2 %vm3973_vm5, %v5701_v53  ;;  %6749 = vmatmul.msk.f32.gmra.mxu3 %vm3973_vm5, %v5701_v53 }
 0x76d   : > { %6746 = vmatmul.msk.f32.gmra.mxu2 %vm3973_vm5, %v5702_v12  ;;  %6750 = vmatmul.msk.f32.gmra.mxu3 %vm3973_vm5, %v5702_v12 }
 0x77b   : > { %v4902_v48 = vpop.f32.mrf.mxu2  ;;  %v4954_v34 = vpop.f32.mrf.mxu3 }
 0x78b   : > { %v5556_v8 = vpop.f32.mrf.mxu3 }
 0x78e   : > { %v5527_v18 = vpop.f32.mrf.mxu2 }
 0x7a3   : > { %v5530_v39 = vpop.f32.mrf.mxu2  ;;  %v5559_v21 = vpop.f32.mrf.mxu3 }
 0x7b7   : > { %v5533_v9 = vpop.f32.mrf.mxu2  ;;  %v5562_v11 = vpop.f32.mrf.mxu3 }
 0x7bc   : > { %v5619_v31 = vpop.f32.mrf.mxu0  ;;  %v5648_v7 = vpop.f32.mrf.mxu1 }
 0x7bd   : > { %v5620_v15 = vadd.f32 %v5619_v31, %v5527_v18  ;;  %v5649_v52 = vadd.f32 %v5648_v7, %v5556_v8  ;;  %v6761_v7 = vld [vmem:[%s11233_s4 + $0xd0] sm:$0xff] }
 0x7bf   : > { %v5536_v63 = vpop.f32.mrf.mxu2  ;;  %v5565_v23 = vpop.f32.mrf.mxu3 }
 0x7c4   : > { %v5622_v1 = vpop.f32.mrf.mxu0  ;;  %v5651_v60 = vpop.f32.mrf.mxu1 }
 0x7c5   : > { %v5623_v10 = vadd.f32 %v5622_v1, %v5530_v39  ;;  %v5652_v43 = vadd.f32 %v5651_v60, %v5559_v21 }
 0x7cc   : > { %v5625_v13 = vpop.f32.mrf.mxu0  ;;  %v5654_v4 = vpop.f32.mrf.mxu1 }
 0x7cd   : > { %v5626_v57 = vadd.f32 %v5625_v13, %v5533_v9  ;;  %v5655_v16 = vadd.f32 %v5654_v4, %v5562_v11  ;;  %v6764_v11 = vld [vmem:[%s11233_s4 + $0xe8] sm:$0xff] }
 0x7d4   : > { %v5628_v26 = vpop.f32.mrf.mxu0  ;;  %v5657_v59 = vpop.f32.mrf.mxu1 }
 0x7d5   : > { %v5629_v55 = vadd.f32 %v5628_v26, %v5536_v63  ;;  %v5658_v18 = vadd.f32 %v5657_v59, %v5565_v23 }
 0x7d8   : > { %v5728_v17 = vpop.f32.mrf.mxu2  ;;  %v5757_v20 = vpop.f32.mrf.mxu3 }
 0x7d9   : > { %v5769_v54 = vadd.f32 %v5728_v17, %v5620_v15  ;;  %v5770_v49 = vadd.f32 %v5757_v20, %v5649_v52  ;;  %v6762_v20 = vld [vmem:[%s11233_s4 + $0xd8] sm:$0xff] }
 0x7db   : > { %v5781_v38 = vrot.slane %v5769_v54, 1  ;;  %v5804_v61 = vrot.slane %v5770_v49, 2  ;;  %v5918_v49 = vld [vmem:[%s11233_s4 + $0x68] sm:$0xff] }
 0x7e0   : > { %v5731_v27 = vpop.f32.mrf.mxu2  ;;  %v5760_v5 = vpop.f32.mrf.mxu3 }
 0x7e1   : > { %v5771_v35 = vadd.f32 %v5731_v27, %v5623_v10  ;;  %v5772_v41 = vadd.f32 %v5760_v5, %v5652_v43  ;;  %v5920_v43 = vld [vmem:[%s11233_s4 + $0x78] sm:$0xff] }
 0x7e2   : > { %6043 = vmatpush.msra.mxu3 %v5920_v43  ;;  %v6779_v43 = vld [vmem:[%s11233_s4 + $0x120] sm:$0xff] }
 0x7e3   : > { %v5782_v58 = vrot.slane %v5771_v35, 1  ;;  %v5805_v28 = vrot.slane %v5772_v41, 2  ;;  %v6759_v41 = vld [vmem:[%s11233_s4 + $0xc0] sm:$0xff] }
 0x7e4   : > { %6044 = vmatpush.msra.mxu3 %v5918_v49 }
 0x7e5   : > { %v5783_v19 = vsel %vm2657_vm2, %v5781_v38, %v5782_v58  ;;  %v5806_v40 = vsel %vm2912_vm3, %v5804_v61, %v5805_v28  ;;  %v5915_v61 = vld [vmem:[%s11233_s4 + $0x50] sm:$0xff] }
 0x7e6   : > { %5788 = vrot.lane.b32.xlu1 %v5783_v19, %s6907_s29 }
 0x7e8   : > { %v5734_v25 = vpop.f32.mrf.mxu2  ;;  %v5763_v14 = vpop.f32.mrf.mxu3 }
 0x7e9   : > { %v10994_v32 = vadd.f32 %v5734_v25, %v5626_v57  ;;  %v5774_v62 = vadd.f32 %v5763_v14, %v5655_v16  ;;  %v5919_v16 = vld [vmem:[%s11233_s4 + $0x70] sm:$0xff] }
 0x7ea   : > { %6020 = vmatpush.msra.mxu2 %v5919_v16 }
 0x7eb   : > { %v5784_v51 = vrot.slane %v10994_v32, 1  ;;  %v5807_v6 = vrot.slane %v5774_v62, 2 }
 0x7ed   : > { %v5785_v3 = vsel %vm2657_vm2, %v5782_v58, %v5784_v51  ;;  %v5808_v2 = vsel %vm2912_vm3, %v5805_v28, %v5807_v6  ;;  %v6757_v28 = vld [vmem:[%s11233_s4 + $0xb0] sm:$0xff] }
 0x7ee   : > { %5790 = vrot.lane.b32.xlu2 %v5785_v3, %s6907_s29 }
 0x7f0   : > { %v5737_v30 = vpop.f32.mrf.mxu2  ;;  %v5766_v48 = vpop.f32.mrf.mxu3 }
 0x7f1   : > { %v5775_v36 = vadd.f32 %v5737_v30, %v5629_v55  ;;  %v5776_v31 = vadd.f32 %v5766_v48, %v5658_v18  ;;  %v6756_v48 = vld [vmem:[%s11233_s4 + $0xa8] sm:$0xff] }
 0x7f3   : > { %v5786_v29 = vrot.slane %v5775_v36, 1  ;;  %v5809_v27 = vrot.slane %v5776_v31, 2  ;;  %v6753_v31 = vld [vmem:[%s11233_s4 + $0x90] sm:$0xff] }
 0x7f5   : > { %v5787_v44 = vsel %vm2657_vm2, %v5784_v51, %v5786_v29  ;;  %v5810_v26 = vsel %vm2912_vm3, %v5807_v6, %v5809_v27  ;;  %v6765_v29 = vld [vmem:[%s11233_s4 + $0xf0] sm:$0xff]  ;;  %v5917_v6 = vld [vmem:[%s11233_s4 + $0x60] sm:$0xff]  ;;  %v6752_v27 = vld [vmem:[%s11233_s4 + $0x88] sm:$0xff] }
 0x7f6   : > { %5792 = vrot.lane.b32.xlu0 %v5787_v44, %s6907_s29  ;;  %v6766_v44 = vld [vmem:[%s11233_s4 + $0xf8] sm:$0xff]  ;;  %5960 = vmatpush.msrb.mxu0 %v6765_v29  ;;  %v5906_v29 = vld [vmem:[%s11233_s4 + $0x8] sm:$0xff] }
 0x7f7   : > { %5983 = vmatpush.msrb.mxu1 %v6766_v44  ;;  %6021 = vmatpush.msra.mxu2 %v5917_v6  ;;  %v6775_v6 = vld [vmem:[%s11233_s4 + $0x100] sm:$0xff] }
 0x7f9   : > { %5984 = vmatpush.msrb.mxu1 %v6764_v11  ;;  %6022 = vmatpush.msra.mxu2 %v5915_v61 }
 0x7fb   : > { %5985 = vmatpush.msrb.mxu1 %v6762_v20  ;;  %v6784_v20 = vld [vmem:[%s11233_s4 + $0x148] sm:$0xff] }
 0x848   : > { %v5791_v42 = vpop.permute.xlu2 %5790 }
 0x849   : > { %v5798_v46 = vadd.f32 %v5791_v42, %v5771_v35  ;;  %v6760_v42 = vld [vmem:[%s11233_s4 + $0xc8] sm:$0xff] }
 0x84a   : > { %5986 = vmatpush.msrb.mxu1 %v6760_v42  ;;  %v6778_v42 = vld [vmem:[%s11233_s4 + $0x118] sm:$0xff] }
 0x84b   : > { %v5815_v45 = vadd.f32 %v5808_v2, %v5798_v46 }
 0x84d   : > { %v5819_v33 = vmul.f32 %v5817_v56, %v5815_v45  ;;  %v6758_v45 = vld [vmem:[%s11233_s4 + $0xb8] sm:$0xff] }
 0x84e   : > { %5987 = vmatpush.msrb.mxu1 %v6758_v45  ;;  %v5904_v45 = vld [vmem:[#allocation4 + $0x10] sm:$0xf] }
 0x84f   : > { %v5823_v53 = vadd.f32 %v5821_v37, %v5819_v33 }
 0x850   : > { %5988 = vmatpush.msrb.mxu1 %v6756_v48 }
 0x851   : > { %v11015_v39 = vmax.f32 %v5823_v53, 0.0 }
 0x853   : > { %v5853_v17 = vsel %vm3396_vm4, %v11015_v39, -inf  ;;  %v5833_v60 = vrot.slane %v11015_v39, 4  ;;  %v5834_v5 = vrot.slane %v11015_v39, 6  ;;  %v5911_v39 = vld [vmem:[%s11233_s4 + $0x30] sm:$0xff] }
 0x855   : > { %v5861_v33 = vsel %vm3396_vm4, %v5833_v60, -inf }
 0x858   : > { %v5789_v22 = vpop.permute.xlu1 %5788 }
 0x859   : > { %v5797_v24 = vadd.f32 %v5789_v22, %v5769_v54  ;;  %v5916_v22 = vld [vmem:[%s11233_s4 + $0x58] sm:$0xff] }
 0x85a   : > { %6045 = vmatpush.msra.mxu3 %v5916_v22 }
 0x85b   : > { %v5814_v50 = vadd.f32 %v5806_v40, %v5797_v24  ;;  %v5870_v24 = vsel %vm3396_vm4, %v5834_v5, -inf  ;;  %v5913_v40 = vld [vmem:[%s11233_s4 + $0x40] sm:$0xff] }
 0x85c   : > { %6023 = vmatpush.msra.mxu2 %v5913_v40 }
 0x85d   : > { %v5818_v12 = vmul.f32 %v5817_v56, %v5814_v50  ;;  %v5914_v50 = vld [vmem:[%s11233_s4 + $0x48] sm:$0xff] }
 0x85e   : > { %6046 = vmatpush.msra.mxu3 %v5914_v50  ;;  %6024 = vmatpush.msra.mxu2 %v5911_v39 }
 0x85f   : > { %v5822_v34 = vadd.f32 %v5821_v37, %v5818_v12  ;;  %v6755_v12 = vld [vmem:[%s11233_s4 + $0xa0] sm:$0xff] }
 0x861   : > { %v5825_v9 = vmax.f32 %v5822_v34, 0.0 }
 0x863   : > { %v5831_v63 = vrot.slane %v5825_v9, 2  ;;  %v5832_v1 = vrot.slane %v5825_v9, 6  ;;  %v5843_v15 = vsel %vm3396_vm4, %v5825_v9, -inf  ;;  %v5912_v9 = vld [vmem:[%s11233_s4 + $0x38] sm:$0xff] }
 0x864   : > { %6047 = vmatpush.msra.mxu3 %v5912_v9 }
 0x865   : > { %v5844_v10 = vsel %vm3396_vm4, %v5832_v1, -inf  ;;  %v5852_v54 = vsel %vm3396_vm4, %v5831_v63, -inf  ;;  %v6754_v63 = vld [vmem:[%s11233_s4 + $0x98] sm:$0xff] }
 0x866   : > { %v5845_v35 = vmax.f32 %v5843_v15, %v5844_v10  ;;  %v5854_v13 = vmax.f32 %v5852_v54, %v5853_v17  ;;  %v5909_v15 = vld [vmem:[%s11233_s4 + $0x20] sm:$0xff]  ;;  %v5910_v10 = vld [vmem:[%s11233_s4 + $0x28] sm:$0xff]  ;;  %5989 = vmatpush.msrb.mxu1 %v6754_v63 }
 0x867   : > { %v6751_v54 = vld [vmem:[%s11233_s4 + $0x80] sm:$0xff]  ;;  %6025 = vmatpush.msra.mxu2 %v5909_v15  ;;  %6048 = vmatpush.msra.mxu3 %v5910_v10 }
 0x868   : > { %v5846_v38 = vrot.slane %v5845_v35, 4  ;;  %v5855_v58 = vrot.slane %v5854_v13, 4  ;;  %v5793_v19 = vpop.permute.xlu0 %5792  ;;  %5990 = vmatpush.msrb.mxu1 %v6752_v27 }
 0x869   : > { %v5799_v57 = vadd.f32 %v5793_v19, %v10994_v32  ;;  %v6763_v32 = vld [vmem:[%s11233_s4 + $0xe0] sm:$0xff]  ;;  %v5907_v19 = vld [vmem:[%s11233_s4 + $0x10] sm:$0xff] }
 0x86a   : > { %v5847_v25 = vmax.f32 %v5845_v35, %v5846_v38  ;;  %v5856_v51 = vmax.f32 %v5854_v13, %v5855_v58  ;;  %5961 = vmatpush.msrb.mxu0 %v6763_v32  ;;  %v6789_v38 = vld [vmem:[%s11233_s4 + $0x170] sm:$0xff]  ;;  %v6790_v58 = vld [vmem:[%s11233_s4 + $0x178] sm:$0xff]  ;;  %6026 = vmatpush.msra.mxu2 %v5907_v19 }
 0x86b   : > { %v5816_v3 = vadd.f32 %v5810_v26, %v5799_v57  ;;  %v5908_v57 = vld [vmem:[%s11233_s4 + $0x18] sm:$0xff]  ;;  %6120 = vmatpush.msra.mxu1 %v6790_v58 }
 0x86c   : > { %v5848_v55 = vrot.slane %v5847_v25, 2  ;;  %v5857_v30 = vrot.slane %v5856_v51, 2  ;;  %5962 = vmatpush.msrb.mxu0 %v6761_v7  ;;  %6049 = vmatpush.msra.mxu3 %v5908_v57  ;;  %v6783_v7 = vld [vmem:[%s11233_s4 + $0x140] sm:$0xff] }
 0x86d   : > { %v5820_v36 = vmul.f32 %v5817_v56, %v5816_v3 }
 0x86e   : > { %v5849_v8 = vmax.f32 %v5847_v25, %v5848_v55  ;;  %v5858_v21 = vmax.f32 %v5856_v51, %v5857_v30  ;;  %5963 = vmatpush.msrb.mxu0 %v6759_v41  ;;  %v5900_v25 = vld [vmem:[#allocation4 + $0xc] sm:$0xf]  ;;  %v6787_v55 = vld [vmem:[%s11233_s4 + $0x160] sm:$0xff]  ;;  %v6788_v30 = vld [vmem:[%s11233_s4 + $0x168] sm:$0xff]  ;;  %6050 = vmatpush.msra.mxu3 %v5906_v29  ;;  %v6157_v29 = vperm.slane %v11011_v47, 3 }
 0x86f   : > { %v5824_v23 = vadd.f32 %v5821_v37, %v5820_v36  ;;  %v5905_v36 = vld [vmem:[%s11233_s4] sm:$0xff]  ;;  %5945 = vst [vmem:[#allocation1 + $0x10] ss:$2 sm:$0xff] %v5900_v25  ;;  %6121 = vmatpush.msra.mxu1 %v6788_v30  ;;  %v6777_v41 = vld [vmem:[%s11233_s4 + $0x110] sm:$0xff] }
 0x870   : > { %v5850_v4 = vrot.slane %v5849_v8, 1  ;;  %v5859_v14 = vrot.slane %v5858_v21, 1  ;;  %5964 = vmatpush.msrb.mxu0 %v6757_v28  ;;  %6027 = vmatpush.msra.mxu2 %v5905_v36 }
 0x871   : > { %v5827_v62 = vmax.f32 %v5824_v23, 0.0 }
 0x872   : > { %v5851_v46 = vmax.f32 %v5849_v8, %v5850_v4  ;;  %v5860_v52 = vmax.f32 %v5858_v21, %v5859_v14  ;;  %5965 = vmatpush.msrb.mxu0 %v6755_v12  ;;  %v6785_v8 = vld [vmem:[%s11233_s4 + $0x150] sm:$0xff]  ;;  %v6786_v21 = vld [vmem:[%s11233_s4 + $0x158] sm:$0xff] }
 0x873   : > { %v5835_v2 = vrot.slane %v5827_v62, 2  ;;  %v5836_v56 = vrot.slane %v5827_v62, 4  ;;  %6122 = vmatpush.msra.mxu1 %v6786_v21  ;;  %v6781_v4 = vld [vmem:[%s11233_s4 + $0x130] sm:$0xff]  ;;  %v6782_v14 = vld [vmem:[%s11233_s4 + $0x138] sm:$0xff]  ;;  %v6780_v62 = vld [vmem:[%s11233_s4 + $0x128] sm:$0xff] }
 0x874   : > { %v5888_v37 = vsel %vm4060_vm6, %v5860_v52, %v5851_v46  ;;  %5966 = vmatpush.msrb.mxu0 %v6753_v31  ;;  %v6776_v46 = vld [vmem:[%s11233_s4 + $0x108] sm:$0xff] }
 0x875   : > { %5893 = vst.msk [vmem:[#allocation4 + $0x5] sm:$0x3] %vm3396_vm4, %v5888_v37  ;;  %v5862_v59 = vsel %vm3396_vm4, %v5835_v2, -inf  ;;  %v5871_v53 = vsel %vm3396_vm4, %v5836_v56, -inf  ;;  %6123 = vmatpush.msra.mxu1 %v6784_v20  ;;  %v5895_v2 = vld [vmem:[#allocation4] sm:$0xf] }
 0x876   : > { %v5863_v34 = vmax.f32 %v5861_v33, %v5862_v59  ;;  %v5872_v18 = vmax.f32 %v5870_v24, %v5871_v53  ;;  %5967 = vmatpush.msrb.mxu0 %v6751_v54  ;;  %v5947_v52 = vld.sshfl [vmem:[#allocation1 + $0x10] sm:$0xff pattern:$0x75316420]  ;;  %v5903_v37 = vld [vmem:[#allocation4 + $0xc] sm:$0xf] }
 0x877   : > { %6124 = vmatpush.msra.mxu1 %v6782_v14 }
 0x878   : > { %v5864_v1 = vrot.slane %v5863_v34, 4  ;;  %v5873_v17 = vrot.slane %v5872_v18, 4  ;;  %6097 = vmatpush.msra.mxu0 %v6789_v38 }
 0x879   : > { %6125 = vmatpush.msra.mxu1 %v6780_v62 }
 0x87a   : > { %v5865_v35 = vmax.f32 %v5863_v34, %v5864_v1  ;;  %v5874_v13 = vmax.f32 %v5872_v18, %v5873_v17  ;;  %6098 = vmatpush.msra.mxu0 %v6787_v55  ;;  %v6155_v55 = vperm.slane %v11005_v0, 3 }
 0x87b   : > { %6126 = vmatpush.msra.mxu1 %v6778_v42 }
 0x87c   : > { %v5898_v51 = vld [vmem:[#allocation4 + $0x4] sm:$0xf]  ;;  %v5866_v26 = vrot.slane %v5865_v35, 2  ;;  %v5875_v3 = vrot.slane %v5874_v13, 2  ;;  %6099 = vmatpush.msra.mxu0 %v6785_v8 }
 0x87d   : > { %5941 = vst [vmem:[#allocation1] ss:$2 sm:$0xff] %v5898_v51  ;;  %6127 = vmatpush.msra.mxu1 %v6776_v46  ;;  %v5896_v61 = vld [vmem:[#allocation4 + $0x4] sm:$0xf] }
 0x87e   : > { %v5867_v44 = vmax.f32 %v5865_v35, %v5866_v26  ;;  %v5876_v32 = vmax.f32 %v5874_v13, %v5875_v3  ;;  %6100 = vmatpush.msra.mxu0 %v6783_v7 }
 0x880   : > { %v5868_v11 = vrot.slane %v5867_v44, 1  ;;  %v5877_v23 = vrot.slane %v5876_v32, 1  ;;  %6101 = vmatpush.msra.mxu0 %v6781_v4 }
 0x882   : > { %v5869_v60 = vmax.f32 %v5867_v44, %v5868_v11  ;;  %v5878_v5 = vmax.f32 %v5876_v32, %v5877_v23  ;;  %6102 = vmatpush.msra.mxu0 %v6779_v43 }
 0x884   : > { %v5889_v16 = vsel %vm4060_vm6, %v5878_v5, %v5869_v60  ;;  %6103 = vmatpush.msra.mxu0 %v6777_v41 }
 0x885   : > { %5894 = vst.msk [vmem:[#allocation4 + $0x9] sm:$0x3] %vm3396_vm4, %v5889_v16 }
 0x886   : > { %6104 = vmatpush.msra.mxu0 %v6775_v6 }
 0x88c   : > { %v5899_v28 = vld [vmem:[#allocation4 + $0x8] sm:$0xf] }
 0x88d   : > { %v5897_v49 = vld [vmem:[#allocation4 + $0x8] sm:$0xf]  ;;  %5943 = vst [vmem:[#allocation1 + $0x1] ss:$2 sm:$0xff] %v5899_v28 }
 0x88e   : > { %6005 = vst [vmem:[#allocation1 + $0x10] ss:$2 sm:$0xff] %v5897_v49  ;;  %v5902_v33 = vld [vmem:[#allocation4 + $0x8] sm:$0xf] }
 0x894   : > { %v5946_v56 = vld.sshfl [vmem:[#allocation1] sm:$0xff pattern:$0x75316420] }
 0x895   : > { %6767 = vmatmul.msk.f32.vlgmr.msrb.gmra.mxu0 %vm3973_vm5, %v5946_v56  ;;  %6001 = vst [vmem:[#allocation1] ss:$2 sm:$0xff] %v5895_v2  ;;  %6769 = vmatmul.msk.f32.vlgmr.msrb.gmra.mxu1 %vm3973_vm5, %v5946_v56  ;;  %v6007_v22 = vld.sshfl [vmem:[#allocation1 + $0x10] sm:$0xff pattern:$0x75316420] }
 0x896   : > { %6003 = vst [vmem:[#allocation1 + $0x1] ss:$2 sm:$0xff] %v5896_v61 }
 0x897   : > { %6082 = vst [vmem:[#allocation1 + $0x10] ss:$2 sm:$0xff] %v5904_v45 }
 0x89d   : > { %6768 = vmatmul.msk.f32.gmra.mxu0 %vm3973_vm5, %v5947_v52  ;;  %6770 = vmatmul.msk.f32.gmra.mxu1 %vm3973_vm5, %v5947_v52  ;;  %v6006_v24 = vld.sshfl [vmem:[#allocation1] sm:$0xff pattern:$0x75316420] }
 0x89e   : > { %6771 = vmatmul.msk.f32.vlgmr.msra.gmra.mxu2 %vm3973_vm5, %v6006_v24  ;;  %6078 = vst [vmem:[#allocation1] ss:$2 sm:$0xff] %v5902_v33  ;;  %6773 = vmatmul.msk.f32.vlgmr.msra.gmra.mxu3 %vm3973_vm5, %v6006_v24  ;;  %v6084_v50 = vld.sshfl [vmem:[#allocation1 + $0x10] sm:$0xff pattern:$0x75316420] }
 0x89f   : > { %6080 = vst [vmem:[#allocation1 + $0x1] ss:$2 sm:$0xff] %v5903_v37 }
 0x8a6   : > { %6772 = vmatmul.msk.f32.gmra.mxu2 %vm3973_vm5, %v6007_v22  ;;  %6774 = vmatmul.msk.f32.gmra.mxu3 %vm3973_vm5, %v6007_v22  ;;  %v6083_v40 = vld.sshfl [vmem:[#allocation1] sm:$0xff pattern:$0x75316420] }
 0x8a7   : > { %6791 = vmatmul.msk.f32.vlgmr.msra.gmra.mxu0 %vm3973_vm5, %v6083_v40  ;;  %6793 = vmatmul.msk.f32.vlgmr.msra.gmra.mxu1 %vm3973_vm5, %v6083_v40 }
 0x8af   : > { %6792 = vmatmul.msk.f32.gmra.mxu0 %vm3973_vm5, %v6084_v50  ;;  %6794 = vmatmul.msk.f32.gmra.mxu1 %vm3973_vm5, %v6084_v50 }
 0x912   : > { %v5969_v59 = vpop.f32.mrf.mxu0  ;;  %v5992_v10 = vpop.f32.mrf.mxu1 }
 0x91a   : > { %v5972_v53 = vpop.f32.mrf.mxu0  ;;  %v5995_v54 = vpop.f32.mrf.mxu1 }
 0x921   : > { %v6029_v12 = vpop.f32.mrf.mxu2  ;;  %v6052_v27 = vpop.f32.mrf.mxu3 }
 0x922   : > { %v6030_v34 = vadd.f32 %v6029_v12, %v5969_v59  ;;  %v6053_v19 = vadd.f32 %v6052_v27, %v5992_v10 }
 0x924   : > { %v6106_v48 = vpop.f32.mrf.mxu0  ;;  %v6129_v35 = vpop.f32.mrf.mxu1 }
 0x925   : > { %v6135_v9 = vadd.f32 %v6106_v48, %v6030_v34  ;;  %v6136_v25 = vadd.f32 %v6129_v35, %v6053_v19 }
 0x927   : > { %v6141_v1 = vrot.slane %v6135_v9, 1  ;;  %v6150_v26 = vrot.slane %v6136_v25, 2 }
 0x929   : > { %v6032_v18 = vpop.f32.mrf.mxu2  ;;  %v6055_v13 = vpop.f32.mrf.mxu3 }
 0x92a   : > { %v6033_v39 = vadd.f32 %v6032_v18, %v5972_v53  ;;  %v6056_v38 = vadd.f32 %v6055_v13, %v5995_v54 }
 0x92c   : > { %v6109_v31 = vpop.f32.mrf.mxu0  ;;  %v6132_v58 = vpop.f32.mrf.mxu1 }
 0x92d   : > { %v6137_v63 = vadd.f32 %v6109_v31, %v6033_v39  ;;  %v6138_v57 = vadd.f32 %v6132_v58, %v6056_v38 }
 0x92f   : > { %v6142_v17 = vrot.slane %v6137_v63, 1  ;;  %v6151_v51 = vrot.slane %v6138_v57, 2 }
 0x931   : > { %v6143_v15 = vsel %vm2657_vm2, %v6141_v1, %v6142_v17  ;;  %v6152_v36 = vsel %vm2912_vm3, %v6150_v26, %v6151_v51 }
 0x932   : > { %6144 = vrot.lane.b32.xlu1 %v6143_v15, %s6907_s29  ;;  %s269_s29 = sand.u32 1, %s6897_s25  }
 0x933   : > { %s270_s15 = scalar_lea.vmem [#allocation5], %s269_s29  ;;  %s6175_s18 = scalar_lea.sflag [#allocation6], %s269_s29 }
 0x934   : > { %s6185_s16 = sshll.u32 %s270_s15, 4  ;;  %s6186_s16 = int_to_ptr.vmem [resolvable:$true] %s6185_s16 }
 0x9a4   : > { %v6145_v3 = vpop.permute.xlu1 %6144 }
 0x9a5   : > { %v6147_v30 = vadd.f32 %v6145_v3, %v6135_v9 }
 0x9a7   : > { %v6154_v44 = vadd.f32 %v6152_v36, %v6147_v30 }
 0x9a9   : > { %v6156_v32 = vmul.f32 %v6155_v55, %v6154_v44 }
 0x9ab   : > { %v6158_v8 = vadd.f32 %v6157_v29, %v6156_v32 }
 0x9ad   : > { %v6159_v21 = vmax.f32 %v6158_v8, 0.0 }
 0x9af   : > { %v6161_v11 = vrot.slane %v6159_v21, 4  ;;  %v6163_v23 = vsel %vm3396_vm4, %v6159_v21, -inf }
 0x9b1   : > { %v6164_v7 = vsel %vm3396_vm4, %v6161_v11, -inf }
 0x9b2   : > { %v6165_v20 = vmax.f32 %v6163_v23, %v6164_v7 }
 0x9b4   : > { %v6166_v60 = vrot.slane %v6165_v20, 4 }
 0x9b6   : > { %v6167_v5 = vmax.f32 %v6165_v20, %v6166_v60 }
 0x9b8   : > { %v6168_v0 = vrot.slane %v6167_v5, 2 }
 0x9ba   : > { %v6169_v47 = vmax.f32 %v6167_v5, %v6168_v0 }
 0x9bc   : > { %v6170_v4 = vrot.slane %v6169_v47, 1 }
 0x9be   : > { %v6171_v14 = vmax.f32 %v6169_v47, %v6170_v4 }
 0x9c0   : > { %6173 = vst.msk [vmem:[%s270_s15] sm:$0x1] %vm6172_vm15, %v6171_v14 }
 0x9c1   : > { %6870 = shalt.err (!%p6867_p3)
}
 0x9c2   : > { %6798 = dma.vmem_to_hbm [thread:$0]  (%p6987_p5), %s6186_s16, 16, %s6188_s17, %s6175_s18  }
 0x9c3 PF: > { %p6804_p4 = scmp.ge.s32.totalorder %s6905_s27, 2  ;;  %s6199_s29 = sand.u32 1, %s6893_s24  }
 0x9c4   : > { %s6200_s9 = scalar_lea.sflag [#allocation6], %s6199_s29 }
 0x9c5   : > { %p6801_p7 = pnand %p6804_p4, %p6991_p6 }
 0x9c7   : > { %p6802_p8 = pneg %p6801_p7 }
 0x9c9   : > { %6888 = dma.done.wait (%p6802_p8), %s6200_s9, 16  }
 0x9ca   : > { %6890 = vsyncadd (%p6802_p8), %s6200_s9, 4294967280  ;;  %p17_p9 = scmp.ge.s32.totalorder %s6974_s30, 4   ;;  %s11861_s24 = smov %s6897_s25 }
 0x9cb   : > { %s11862_s25 = smov %s6901_s26  ;;  %s11863_s26 = smov %s6985_s10 }
 0x9cc   : > { %s11864_s27 = smov %s6974_s30  ;;  %19 = sbr.rel (!%p17_p9) target bundleno = 3 (0x3), region = 168 }
 0x9d1   :  { %6205 = vsyncpa [#allocation6], 1 }
 0x9d2   :  { %6207 = vsyncpa [#allocation6 + $0x1], 1 }

</bundles_post_ra>
